<compile_context>
chip_gen: v7x
topology: tpu7x:2x2x1
jax: 0.10.0
libtpu: 0.0.40
codegen_flags: <defaults>
</compile_context>

<pallas_src>
import functools
import math

import jax
import jax.numpy as jnp
from jax.experimental import pallas as pl
from jax.experimental.pallas import tpu as pltpu

EPS = 1e-6


def _rmsnorm(v, w):
    # v: [..., D] f32, w: [1, D] f32
    ms = jnp.mean(v * v, axis=-1, keepdims=True)
    return w * (v * jax.lax.rsqrt(ms + EPS))


def _vmem_limit_bytes():
    """~3/4 of physical VMEM, capped; conservative fallback if query fails."""
    try:
        phys = int(pltpu.get_tpu_info().vmem_capacity_bytes)
    except Exception:
        return 32 * 1024 * 1024
    return min((phys * 3) // 4, 100 * 1024 * 1024)


def encoder_kernel(x_ref,
                   wqkv_ref, bqkv_ref, wo_ref, bo_ref, g1_ref, g2_ref,
                   w1_ref, b1_ref, w2_ref, b2_ref, w3_ref, b3_ref, gf_ref,
                   o_ref, resid_ref, *, n_heads, d_ff_chunk):
    layer = pl.program_id(1)
    n_layers = pl.num_programs(1)

    # Load the batch element into the resident f32 residual stream once.
    @pl.when(layer == 0)
    def _():
        resid_ref[...] = x_ref[...].astype(jnp.float32)

    x = resid_ref[...]                     # [S, D] f32 residual stream
    S, D = x.shape
    dh = D // n_heads

    # ---- sublayer 1: RMSNorm -> fused-QKV multi-head attention -> residual --
    h = _rmsnorm(x, g1_ref[...]).astype(jnp.bfloat16)
    # Single [S, D] x [D, 3D] MXU pass; Q columns/bias pre-scaled by 1/sqrt(dh).
    qkv = jnp.dot(h, wqkv_ref[...],
                  preferred_element_type=jnp.float32) + bqkv_ref[...]   # [S, 3D]

    attn = jnp.zeros((S, D), jnp.float32)
    for hd in range(n_heads):              # static unroll; 128-aligned lane slices
        lo = hd * dh
        qh = qkv[:, lo:lo + dh].astype(jnp.bfloat16)
        kh = qkv[:, D + lo:D + lo + dh].astype(jnp.bfloat16)
        vh = qkv[:, 2 * D + lo:2 * D + lo + dh].astype(jnp.bfloat16)
        s = jnp.dot(qh, kh.T, preferred_element_type=jnp.float32)       # [S, S]
        s = s - jnp.max(s, axis=-1, keepdims=True)
        p = jnp.exp(s)
        p = p * pl.reciprocal(jnp.sum(p, axis=-1, keepdims=True), approx=True)
        ctx = jnp.dot(p.astype(jnp.bfloat16), vh,
                      preferred_element_type=jnp.float32)               # [S, dh]
        attn = attn + jnp.dot(ctx.astype(jnp.bfloat16), wo_ref[lo:lo + dh, :],
                              preferred_element_type=jnp.float32)
    x = x + attn + bo_ref[...]

    # ---- sublayer 2: RMSNorm -> SwiGLU FFN (chunked over d_ff) -> residual ---
    h2 = _rmsnorm(x, g2_ref[...]).astype(jnp.bfloat16)
    d_ff = w1_ref.shape[1]
    n_chunks = d_ff // d_ff_chunk

    def ff_chunk(i, acc):
        c = pl.multiple_of(i * d_ff_chunk, 128)
        x1 = jnp.dot(h2, w1_ref[:, pl.ds(c, d_ff_chunk)],
                     preferred_element_type=jnp.float32) + b1_ref[:, pl.ds(c, d_ff_chunk)]
        x2 = jnp.dot(h2, w2_ref[:, pl.ds(c, d_ff_chunk)],
                     preferred_element_type=jnp.float32) + b2_ref[:, pl.ds(c, d_ff_chunk)]
        hid = (x1 * jax.nn.sigmoid(x1)) * x2          # SiLU(x1) * x2, f32
        return acc + jnp.dot(hid.astype(jnp.bfloat16),
                             w3_ref[pl.ds(c, d_ff_chunk), :],
                             preferred_element_type=jnp.float32)

    y = jax.lax.fori_loop(0, n_chunks, ff_chunk, x + b3_ref[...], unroll=True)

    resid_ref[...] = y                     # carry residual to the next layer

    # Fused final RMSNorm + single HBM writeback on the last layer.
    @pl.when(layer == n_layers - 1)
    def _():
        o_ref[...] = _rmsnorm(y, gf_ref[...]).astype(o_ref.dtype)


def transformer_encoder(x, params, final_gain, n_heads, d_ff_chunk=512):
    (wqkv, bqkv, wo, bo, g1, g2, w1, b1, w2, b2, w3, b3) = params
    B, S, D = x.shape
    num_layers = wqkv.shape[0]
    d_ff = w1.shape[-1]
    d_ff_chunk = min(d_ff_chunk, d_ff)
    assert d_ff % d_ff_chunk == 0, "d_ff_chunk must divide d_ff"
    assert D % n_heads == 0

    def stacked_spec(arr):
        nrest = arr.ndim - 1
        return pl.BlockSpec((None,) + arr.shape[1:],
                            lambda b, l, _n=nrest: (l,) + (0,) * _n)

    in_specs = [pl.BlockSpec((None, S, D), lambda b, l: (b, 0, 0))]
    in_specs += [stacked_spec(p) for p in
                 (wqkv, bqkv, wo, bo, g1, g2, w1, b1, w2, b2, w3, b3)]
    in_specs += [pl.BlockSpec(final_gain.shape, lambda b, l: (0, 0))]

    kernel = functools.partial(encoder_kernel, n_heads=n_heads,
                               d_ff_chunk=d_ff_chunk)
    return pl.pallas_call(
        kernel,
        out_shape=jax.ShapeDtypeStruct((B, S, D), x.dtype),
        grid_spec=pltpu.PrefetchScalarGridSpec(
            num_scalar_prefetch=0,
            grid=(B, num_layers),
            in_specs=in_specs,
            out_specs=pl.BlockSpec((None, S, D), lambda b, l: (b, 0, 0)),
            scratch_shapes=[pltpu.VMEM((S, D), jnp.float32)]),
        compiler_params=pltpu.CompilerParams(
            dimension_semantics=("parallel", "arbitrary"),
            vmem_limit_bytes=_vmem_limit_bytes()),
    )(x, wqkv, bqkv, wo, bo, g1, g2, w1, b1, w2, b2, w3, b3, final_gain)


def init_params(key, num_layers, d_model, d_ff, n_heads):
    """Deterministic synthetic stacked parameters: bf16 weights, f32 biases/gains.
    The 1/sqrt(dh) attention scale is folded into the Q weights/bias."""
    dh = d_model // n_heads
    scale = 1.0 / math.sqrt(dh)

    def w(k, shape, s=0.05):
        return jax.random.normal(k, shape, jnp.float32) * s

    def b(k, shape, s=0.01):
        return jax.random.normal(k, shape, jnp.float32) * s

    names = ("wqkv", "bqkv", "wo", "bo", "g1", "g2",
             "w1", "b1", "w2", "b2", "w3", "b3")
    cols = {n: [] for n in names}
    for _ in range(num_layers):
        key, *ks = jax.random.split(key, 17)
        wq = w(ks[0], (d_model, d_model)) * scale
        bq = b(ks[1], (1, d_model)) * scale
        wk = w(ks[2], (d_model, d_model)); bk = b(ks[3], (1, d_model))
        wv = w(ks[4], (d_model, d_model)); bv = b(ks[5], (1, d_model))
        cols["wqkv"].append(jnp.concatenate([wq, wk, wv], axis=1).astype(jnp.bfloat16))
        cols["bqkv"].append(jnp.concatenate([bq, bk, bv], axis=1))
        cols["wo"].append(w(ks[6], (d_model, d_model)).astype(jnp.bfloat16))
        cols["bo"].append(b(ks[7], (1, d_model)))
        cols["g1"].append(1.0 + 0.1 * jax.random.normal(ks[8], (1, d_model), jnp.float32))
        cols["g2"].append(1.0 + 0.1 * jax.random.normal(ks[9], (1, d_model), jnp.float32))
        cols["w1"].append(w(ks[10], (d_model, d_ff)).astype(jnp.bfloat16))
        cols["b1"].append(b(ks[11], (1, d_ff)))
        cols["w2"].append(w(ks[12], (d_model, d_ff)).astype(jnp.bfloat16))
        cols["b2"].append(b(ks[13], (1, d_ff)))
        cols["w3"].append(w(ks[14], (d_ff, d_model)).astype(jnp.bfloat16))
        cols["b3"].append(b(ks[15], (1, d_model)))
    params = tuple(jnp.stack(cols[n]) for n in names)
    final_gain = 1.0 + 0.1 * jax.random.normal(key, (1, d_model), jnp.float32)
    return params, final_gain


def reference_encoder(x, params, final_gain, n_heads):
    """Pure-JAX (non-Pallas) reference with the same bf16 matmul casts."""
    (wqkv, bqkv, wo, bo, g1, g2, w1, b1, w2, b2, w3, b3) = params
    num_layers = wqkv.shape[0]
    B, S, D = x.shape
    dh = D // n_heads
    y = x.astype(jnp.float32)
    for l in range(num_layers):
        h = _rmsnorm(y, g1[l]).astype(jnp.bfloat16)
        qkv = jnp.einsum('bsd,de->bse', h, wqkv[l],
                         preferred_element_type=jnp.float32) + bqkv[l]
        attn = jnp.zeros((B, S, D), jnp.float32)
        for hd in range(n_heads):
            lo = hd * dh
            qh = qkv[..., lo:lo + dh].astype(jnp.bfloat16)
            kh = qkv[..., D + lo:D + lo + dh].astype(jnp.bfloat16)
            vh = qkv[..., 2 * D + lo:2 * D + lo + dh].astype(jnp.bfloat16)
            s = jnp.einsum('bqe,bke->bqk', qh, kh, preferred_element_type=jnp.float32)
            p = jax.nn.softmax(s, axis=-1)
            ctx = jnp.einsum('bqk,bke->bqe', p.astype(jnp.bfloat16), vh,
                             preferred_element_type=jnp.float32)
            attn = attn + jnp.einsum('bqe,ed->bqd', ctx.astype(jnp.bfloat16),
                                     wo[l, lo:lo + dh, :],
                                     preferred_element_type=jnp.float32)
        y = y + attn + bo[l]
        h2 = _rmsnorm(y, g2[l]).astype(jnp.bfloat16)
        x1 = jnp.einsum('bsd,df->bsf', h2, w1[l],
                        preferred_element_type=jnp.float32) + b1[l]
        x2 = jnp.einsum('bsd,df->bsf', h2, w2[l],
                        preferred_element_type=jnp.float32) + b2[l]
        hid = (x1 * jax.nn.sigmoid(x1)) * x2
        y = y + jnp.einsum('bsf,fd->bsd', hid.astype(jnp.bfloat16), w3[l],
                           preferred_element_type=jnp.float32) + b3[l]
    return _rmsnorm(y, final_gain)


if __name__ == "__main__":
    # Small but lane-dense shapes: D, dh, d_ff, S all multiples of 128.
    B, S, D, H, NUM_LAYERS = 2, 128, 256, 2, 2
    D_FF = 4 * D            # 1024
    D_FF_CHUNK = 512

    key = jax.random.PRNGKey(0)
    key, kx, kp = jax.random.split(key, 3)
    x = jax.random.normal(kx, (B, S, D), jnp.float32)
    params, final_gain = init_params(kp, NUM_LAYERS, D, D_FF, H)

    out = transformer_encoder(x, params, final_gain, H, d_ff_chunk=D_FF_CHUNK)
    out = jax.block_until_ready(out)
    assert out.shape == (B, S, D)
    assert bool(jnp.all(jnp.isfinite(out)))

    ref = reference_encoder(x, params, final_gain, H)
    max_err = float(jnp.max(jnp.abs(out - ref)))
    assert max_err < 2e-2, f"max abs error vs reference: {max_err}"
    print("KERNEL_OK")
</pallas_src>

<mosaic_0001>
module attributes {stable_mosaic.version = 11 : i64} {
  func.func @encoder_kernel(%arg0: i32, %arg1: i32, %arg2: memref<1x128x256xf32, #tpu.memory_space<vmem>>, %arg3: memref<1x256x768xbf16, #tpu.memory_space<vmem>>, %arg4: memref<1x1x768xf32, #tpu.memory_space<vmem>>, %arg5: memref<1x256x256xbf16, #tpu.memory_space<vmem>>, %arg6: memref<1x1x256xf32, #tpu.memory_space<vmem>>, %arg7: memref<1x1x256xf32, #tpu.memory_space<vmem>>, %arg8: memref<1x1x256xf32, #tpu.memory_space<vmem>>, %arg9: memref<1x256x1024xbf16, #tpu.memory_space<vmem>>, %arg10: memref<1x1x1024xf32, #tpu.memory_space<vmem>>, %arg11: memref<1x256x1024xbf16, #tpu.memory_space<vmem>>, %arg12: memref<1x1x1024xf32, #tpu.memory_space<vmem>>, %arg13: memref<1x1024x256xbf16, #tpu.memory_space<vmem>>, %arg14: memref<1x1x256xf32, #tpu.memory_space<vmem>>, %arg15: memref<1x256xf32, #tpu.memory_space<vmem>>, %arg16: memref<1x128x256xf32, #tpu.memory_space<vmem>>, %arg17: memref<128x256xf32, #tpu.memory_space<vmem>>) attributes {dimension_semantics = [#tpu.dimension_semantics<parallel>, #tpu.dimension_semantics<arbitrary>], iteration_bounds = array<i64: 2, 2>, scalar_prefetch = 0 : i64, scratch_operands = 1 : i64, tpu.core_type = #tpu.core_type<tc>, window_params = [{transform_indices = @transform_0, window_bounds = array<i64: 1, 128, 256>}, {transform_indices = @transform_1, window_bounds = array<i64: 1, 256, 768>}, {transform_indices = @transform_2, window_bounds = array<i64: 1, 1, 768>}, {transform_indices = @transform_3, window_bounds = array<i64: 1, 256, 256>}, {transform_indices = @transform_4, window_bounds = array<i64: 1, 1, 256>}, {transform_indices = @transform_5, window_bounds = array<i64: 1, 1, 256>}, {transform_indices = @transform_6, window_bounds = array<i64: 1, 1, 256>}, {transform_indices = @transform_7, window_bounds = array<i64: 1, 256, 1024>}, {transform_indices = @transform_8, window_bounds = array<i64: 1, 1, 1024>}, {transform_indices = @transform_9, window_bounds = array<i64: 1, 256, 1024>}, {transform_indices = @transform_10, window_bounds = array<i64: 1, 1, 1024>}, {transform_indices = @transform_11, window_bounds = array<i64: 1, 1024, 256>}, {transform_indices = @transform_12, window_bounds = array<i64: 1, 1, 256>}, {pipeline_mode = #tpu.pipeline_mode<synchronous>, transform_indices = @transform_13, window_bounds = array<i64: 1, 256>}, {transform_indices = @transform_14, window_bounds = array<i64: 1, 128, 256>}]} {
    %c0_i32 = arith.constant 0 : i32
    %0 = arith.cmpi eq, %arg1, %c0_i32 : i32
    %1 = arith.extui %0 : i1 to i32
    %c0_i32_0 = arith.constant 0 : i32
    %2 = arith.cmpi ne, %1, %c0_i32_0 : i32
    scf.if %2 {
      %c0_76 = arith.constant 0 : index
      %c0_77 = arith.constant 0 : index
      %c0_78 = arith.constant 0 : index
      %171 = vector.load %arg2[%c0_76, %c0_77, %c0_78] : memref<1x128x256xf32, #tpu.memory_space<vmem>>, vector<1x128x256xf32>
      %172 = vector.shape_cast %171 : vector<1x128x256xf32> to vector<128x256xf32>
      %c0_79 = arith.constant 0 : index
      %c0_80 = arith.constant 0 : index
      %173 = vector.load %arg17[%c0_79, %c0_80] : memref<128x256xf32, #tpu.memory_space<vmem>>, vector<128x256xf32>
      tpu.vector_store %arg17[%c0_79, %c0_80], %172 {strides = array<i32>} : memref<128x256xf32, #tpu.memory_space<vmem>>, vector<128x256xf32>,
    } else {
    }
    %c0 = arith.constant 0 : index
    %c0_1 = arith.constant 0 : index
    %3 = vector.load %arg17[%c0, %c0_1] : memref<128x256xf32, #tpu.memory_space<vmem>>, vector<128x256xf32>
    %c0_2 = arith.constant 0 : index
    %c0_3 = arith.constant 0 : index
    %c0_4 = arith.constant 0 : index
    %4 = vector.load %arg7[%c0_2, %c0_3, %c0_4] : memref<1x1x256xf32, #tpu.memory_space<vmem>>, vector<1x1x256xf32>
    %5 = vector.shape_cast %4 : vector<1x1x256xf32> to vector<1x256xf32>
    %6 = arith.mulf %3, %3 : vector<128x256xf32>
    %cst = arith.constant dense<0.000000e+00> : vector<128xf32>
    %7 = vector.multi_reduction <add>, %6, %cst [1] : vector<128x256xf32> to vector<128xf32>
    %8 = vector.shape_cast %7 : vector<128xf32> to vector<128x1xf32>
    %cst_5 = arith.constant 2.560000e+02 : f32
    %9 = vector.broadcast %cst_5 : f32 to vector<128x1xf32>
    %10 = arith.divf %8, %9 : vector<128x1xf32>
    %cst_6 = arith.constant 9.99999997E-7 : f32
    %11 = vector.broadcast %cst_6 : f32 to vector<128x1xf32>
    %12 = arith.addf %10, %11 : vector<128x1xf32>
    %13 = math.rsqrt %12 : vector<128x1xf32>
    %14 = vector.broadcast %13 : vector<128x1xf32> to vector<128x256xf32>
    %15 = arith.mulf %3, %14 : vector<128x256xf32>
    %16 = vector.broadcast %5 : vector<1x256xf32> to vector<128x256xf32>
    %17 = arith.mulf %16, %15 : vector<128x256xf32>
    %18 = arith.truncf %17 : vector<128x256xf32> to vector<128x256xbf16>
    %c0_7 = arith.constant 0 : index
    %c0_8 = arith.constant 0 : index
    %c0_9 = arith.constant 0 : index
    %19 = vector.load %arg3[%c0_7, %c0_8, %c0_9] : memref<1x256x768xbf16, #tpu.memory_space<vmem>>, vector<1x256x768xbf16>
    %20 = vector.shape_cast %19 : vector<1x256x768xbf16> to vector<256x768xbf16>
    %cst_10 = arith.constant dense<0.000000e+00> : vector<128x768xf32>
    %21 = tpu.matmul %18, %20, %cst_10 {dimension_numbers = #tpu.dot_dimension_numbers<[1], [0], [0], [1], [0, 0, 1, 1], [], []>} : vector<128x256xbf16>, vector<256x768xbf16>, vector<128x768xf32> -> vector<128x768xf32>
    %c0_11 = arith.constant 0 : index
    %c0_12 = arith.constant 0 : index
    %c0_13 = arith.constant 0 : index
    %22 = vector.load %arg4[%c0_11, %c0_12, %c0_13] : memref<1x1x768xf32, #tpu.memory_space<vmem>>, vector<1x1x768xf32>
    %23 = vector.shape_cast %22 : vector<1x1x768xf32> to vector<1x768xf32>
    %24 = vector.broadcast %23 : vector<1x768xf32> to vector<128x768xf32>
    %25 = arith.addf %21, %24 : vector<128x768xf32>
    %cst_14 = arith.constant 0.000000e+00 : f32
    %26 = vector.broadcast %cst_14 : f32 to vector<128x256xf32>
    %27 = vector.extract_strided_slice %25 {offsets = [0, 0], sizes = [128, 128], strides = [1, 1]} : vector<128x768xf32> to vector<128x128xf32>
    %28 = arith.truncf %27 : vector<128x128xf32> to vector<128x128xbf16>
    %29 = vector.extract_strided_slice %25 {offsets = [0, 256], sizes = [128, 128], strides = [1, 1]} : vector<128x768xf32> to vector<128x128xf32>
    %30 = arith.truncf %29 : vector<128x128xf32> to vector<128x128xbf16>
    %31 = vector.extract_strided_slice %25 {offsets = [0, 512], sizes = [128, 128], strides = [1, 1]} : vector<128x768xf32> to vector<128x128xf32>
    %32 = arith.truncf %31 : vector<128x128xf32> to vector<128x128xbf16>
    %33 = tpu.transpose %30, [1, 0] : vector<128x128xbf16> -> vector<128x128xbf16>
    %cst_15 = arith.constant dense<0.000000e+00> : vector<128x128xf32>
    %34 = tpu.matmul %28, %33, %cst_15 {dimension_numbers = #tpu.dot_dimension_numbers<[1], [0], [0], [1], [0, 0, 1, 1], [], []>} : vector<128x128xbf16>, vector<128x128xbf16>, vector<128x128xf32> -> vector<128x128xf32>
    %cst_16 = arith.constant dense<0xFF800000> : vector<128xf32>
    %35 = vector.multi_reduction <maximumf>, %34, %cst_16 [1] : vector<128x128xf32> to vector<128xf32>
    %36 = vector.shape_cast %35 : vector<128xf32> to vector<128x1xf32>
    %37 = vector.broadcast %36 : vector<128x1xf32> to vector<128x128xf32>
    %38 = arith.subf %34, %37 : vector<128x128xf32>
    %39 = math.exp %38 : vector<128x128xf32>
    %cst_17 = arith.constant dense<0.000000e+00> : vector<128xf32>
    %40 = vector.multi_reduction <add>, %39, %cst_17 [1] : vector<128x128xf32> to vector<128xf32>
    %41 = vector.shape_cast %40 : vector<128xf32> to vector<128x1xf32>
    %42 = tpu.reciprocal %41 {approx = true} : vector<128x1xf32> -> vector<128x1xf32>
    %43 = vector.broadcast %42 : vector<128x1xf32> to vector<128x128xf32>
    %44 = arith.mulf %39, %43 : vector<128x128xf32>
    %45 = arith.truncf %44 : vector<128x128xf32> to vector<128x128xbf16>
    %cst_18 = arith.constant dense<0.000000e+00> : vector<128x128xf32>
    %46 = tpu.matmul %45, %32, %cst_18 {dimension_numbers = #tpu.dot_dimension_numbers<[1], [0], [0], [1], [0, 0, 1, 1], [], []>} : vector<128x128xbf16>, vector<128x128xbf16>, vector<128x128xf32> -> vector<128x128xf32>
    %47 = arith.truncf %46 : vector<128x128xf32> to vector<128x128xbf16>
    %c0_19 = arith.constant 0 : index
    %c0_20 = arith.constant 0 : index
    %c0_21 = arith.constant 0 : index
    %48 = vector.load %arg5[%c0_19, %c0_20, %c0_21] : memref<1x256x256xbf16, #tpu.memory_space<vmem>>, vector<1x128x256xbf16>
    %49 = vector.shape_cast %48 : vector<1x128x256xbf16> to vector<128x256xbf16>
    %cst_22 = arith.constant dense<0.000000e+00> : vector<128x256xf32>
    %50 = tpu.matmul %47, %49, %cst_22 {dimension_numbers = #tpu.dot_dimension_numbers<[1], [0], [0], [1], [0, 0, 1, 1], [], []>} : vector<128x128xbf16>, vector<128x256xbf16>, vector<128x256xf32> -> vector<128x256xf32>
    %51 = arith.addf %26, %50 : vector<128x256xf32>
    %52 = vector.extract_strided_slice %25 {offsets = [0, 128], sizes = [128, 128], strides = [1, 1]} : vector<128x768xf32> to vector<128x128xf32>
    %53 = arith.truncf %52 : vector<128x128xf32> to vector<128x128xbf16>
    %54 = vector.extract_strided_slice %25 {offsets = [0, 384], sizes = [128, 128], strides = [1, 1]} : vector<128x768xf32> to vector<128x128xf32>
    %55 = arith.truncf %54 : vector<128x128xf32> to vector<128x128xbf16>
    %56 = vector.extract_strided_slice %25 {offsets = [0, 640], sizes = [128, 128], strides = [1, 1]} : vector<128x768xf32> to vector<128x128xf32>
    %57 = arith.truncf %56 : vector<128x128xf32> to vector<128x128xbf16>
    %58 = tpu.transpose %55, [1, 0] : vector<128x128xbf16> -> vector<128x128xbf16>
    %cst_23 = arith.constant dense<0.000000e+00> : vector<128x128xf32>
    %59 = tpu.matmul %53, %58, %cst_23 {dimension_numbers = #tpu.dot_dimension_numbers<[1], [0], [0], [1], [0, 0, 1, 1], [], []>} : vector<128x128xbf16>, vector<128x128xbf16>, vector<128x128xf32> -> vector<128x128xf32>
    %cst_24 = arith.constant dense<0xFF800000> : vector<128xf32>
    %60 = vector.multi_reduction <maximumf>, %59, %cst_24 [1] : vector<128x128xf32> to vector<128xf32>
    %61 = vector.shape_cast %60 : vector<128xf32> to vector<128x1xf32>
    %62 = vector.broadcast %61 : vector<128x1xf32> to vector<128x128xf32>
    %63 = arith.subf %59, %62 : vector<128x128xf32>
    %64 = math.exp %63 : vector<128x128xf32>
    %cst_25 = arith.constant dense<0.000000e+00> : vector<128xf32>
    %65 = vector.multi_reduction <add>, %64, %cst_25 [1] : vector<128x128xf32> to vector<128xf32>
    %66 = vector.shape_cast %65 : vector<128xf32> to vector<128x1xf32>
    %67 = tpu.reciprocal %66 {approx = true} : vector<128x1xf32> -> vector<128x1xf32>
    %68 = vector.broadcast %67 : vector<128x1xf32> to vector<128x128xf32>
    %69 = arith.mulf %64, %68 : vector<128x128xf32>
    %70 = arith.truncf %69 : vector<128x128xf32> to vector<128x128xbf16>
    %cst_26 = arith.constant dense<0.000000e+00> : vector<128x128xf32>
    %71 = tpu.matmul %70, %57, %cst_26 {dimension_numbers = #tpu.dot_dimension_numbers<[1], [0], [0], [1], [0, 0, 1, 1], [], []>} : vector<128x128xbf16>, vector<128x128xbf16>, vector<128x128xf32> -> vector<128x128xf32>
    %72 = arith.truncf %71 : vector<128x128xf32> to vector<128x128xbf16>
    %c0_27 = arith.constant 0 : index
    %c128 = arith.constant 128 : index
    %c0_28 = arith.constant 0 : index
    %73 = vector.load %arg5[%c0_27, %c128, %c0_28] : memref<1x256x256xbf16, #tpu.memory_space<vmem>>, vector<1x128x256xbf16>
    %74 = vector.shape_cast %73 : vector<1x128x256xbf16> to vector<128x256xbf16>
    %cst_29 = arith.constant dense<0.000000e+00> : vector<128x256xf32>
    %75 = tpu.matmul %72, %74, %cst_29 {dimension_numbers = #tpu.dot_dimension_numbers<[1], [0], [0], [1], [0, 0, 1, 1], [], []>} : vector<128x128xbf16>, vector<128x256xbf16>, vector<128x256xf32> -> vector<128x256xf32>
    %76 = arith.addf %51, %75 : vector<128x256xf32>
    %77 = arith.addf %3, %76 : vector<128x256xf32>
    %c0_30 = arith.constant 0 : index
    %c0_31 = arith.constant 0 : index
    %c0_32 = arith.constant 0 : index
    %78 = vector.load %arg6[%c0_30, %c0_31, %c0_32] : memref<1x1x256xf32, #tpu.memory_space<vmem>>, vector<1x1x256xf32>
    %79 = vector.shape_cast %78 : vector<1x1x256xf32> to vector<1x256xf32>
    %80 = vector.broadcast %79 : vector<1x256xf32> to vector<128x256xf32>
    %81 = arith.addf %77, %80 : vector<128x256xf32>
    %c0_33 = arith.constant 0 : index
    %c0_34 = arith.constant 0 : index
    %c0_35 = arith.constant 0 : index
    %82 = vector.load %arg8[%c0_33, %c0_34, %c0_35] : memref<1x1x256xf32, #tpu.memory_space<vmem>>, vector<1x1x256xf32>
    %83 = vector.shape_cast %82 : vector<1x1x256xf32> to vector<1x256xf32>
    %84 = arith.mulf %81, %81 : vector<128x256xf32>
    %cst_36 = arith.constant dense<0.000000e+00> : vector<128xf32>
    %85 = vector.multi_reduction <add>, %84, %cst_36 [1] : vector<128x256xf32> to vector<128xf32>
    %86 = vector.shape_cast %85 : vector<128xf32> to vector<128x1xf32>
    %cst_37 = arith.constant 2.560000e+02 : f32
    %87 = vector.broadcast %cst_37 : f32 to vector<128x1xf32>
    %88 = arith.divf %86, %87 : vector<128x1xf32>
    %cst_38 = arith.constant 9.99999997E-7 : f32
    %89 = vector.broadcast %cst_38 : f32 to vector<128x1xf32>
    %90 = arith.addf %88, %89 : vector<128x1xf32>
    %91 = math.rsqrt %90 : vector<128x1xf32>
    %92 = vector.broadcast %91 : vector<128x1xf32> to vector<128x256xf32>
    %93 = arith.mulf %81, %92 : vector<128x256xf32>
    %94 = vector.broadcast %83 : vector<1x256xf32> to vector<128x256xf32>
    %95 = arith.mulf %94, %93 : vector<128x256xf32>
    %96 = arith.truncf %95 : vector<128x256xf32> to vector<128x256xbf16>
    %c0_39 = arith.constant 0 : index
    %c0_40 = arith.constant 0 : index
    %c0_41 = arith.constant 0 : index
    %97 = vector.load %arg14[%c0_39, %c0_40, %c0_41] : memref<1x1x256xf32, #tpu.memory_space<vmem>>, vector<1x1x256xf32>
    %98 = vector.shape_cast %97 : vector<1x1x256xf32> to vector<1x256xf32>
    %99 = vector.broadcast %98 : vector<1x256xf32> to vector<128x256xf32>
    %100 = arith.addf %81, %99 : vector<128x256xf32>
    %c0_i32_42 = arith.constant 0 : i32
    %c512_i32 = arith.constant 512 : i32
    %101 = arith.muli %c0_i32_42, %c512_i32 : i32
    %102 = tpu.assume_multiple %101, 128 : i32
    %c0_43 = arith.constant 0 : index
    %c0_44 = arith.constant 0 : index
    %103 = arith.index_cast %102 : i32 to index
    %104 = vector.load %arg9[%c0_43, %c0_44, %103] : memref<1x256x1024xbf16, #tpu.memory_space<vmem>>, vector<1x256x512xbf16>
    %105 = vector.shape_cast %104 : vector<1x256x512xbf16> to vector<256x512xbf16>
    %cst_45 = arith.constant dense<0.000000e+00> : vector<128x512xf32>
    %106 = tpu.matmul %96, %105, %cst_45 {dimension_numbers = #tpu.dot_dimension_numbers<[1], [0], [0], [1], [0, 0, 1, 1], [], []>} : vector<128x256xbf16>, vector<256x512xbf16>, vector<128x512xf32> -> vector<128x512xf32>
    %c0_46 = arith.constant 0 : index
    %c0_47 = arith.constant 0 : index
    %107 = arith.index_cast %102 : i32 to index
    %108 = vector.load %arg10[%c0_46, %c0_47, %107] : memref<1x1x1024xf32, #tpu.memory_space<vmem>>, vector<1x1x512xf32>
    %109 = vector.shape_cast %108 : vector<1x1x512xf32> to vector<1x512xf32>
    %110 = vector.broadcast %109 : vector<1x512xf32> to vector<128x512xf32>
    %111 = arith.addf %106, %110 : vector<128x512xf32>
    %c0_48 = arith.constant 0 : index
    %c0_49 = arith.constant 0 : index
    %112 = arith.index_cast %102 : i32 to index
    %113 = vector.load %arg11[%c0_48, %c0_49, %112] : memref<1x256x1024xbf16, #tpu.memory_space<vmem>>, vector<1x256x512xbf16>
    %114 = vector.shape_cast %113 : vector<1x256x512xbf16> to vector<256x512xbf16>
    %cst_50 = arith.constant dense<0.000000e+00> : vector<128x512xf32>
    %115 = tpu.matmul %96, %114, %cst_50 {dimension_numbers = #tpu.dot_dimension_numbers<[1], [0], [0], [1], [0, 0, 1, 1], [], []>} : vector<128x256xbf16>, vector<256x512xbf16>, vector<128x512xf32> -> vector<128x512xf32>
    %c0_51 = arith.constant 0 : index
    %c0_52 = arith.constant 0 : index
    %116 = arith.index_cast %102 : i32 to index
    %117 = vector.load %arg12[%c0_51, %c0_52, %116] : memref<1x1x1024xf32, #tpu.memory_space<vmem>>, vector<1x1x512xf32>
    %118 = vector.shape_cast %117 : vector<1x1x512xf32> to vector<1x512xf32>
    %119 = vector.broadcast %118 : vector<1x512xf32> to vector<128x512xf32>
    %120 = arith.addf %115, %119 : vector<128x512xf32>
    %121 = arith.negf %111 : vector<128x512xf32>
    %122 = math.exp %121 : vector<128x512xf32>
    %cst_53 = arith.constant 1.000000e+00 : f32
    %123 = vector.broadcast %cst_53 : f32 to vector<128x512xf32>
    %124 = arith.addf %123, %122 : vector<128x512xf32>
    %125 = arith.divf %123, %124 : vector<128x512xf32>
    %126 = arith.mulf %111, %125 : vector<128x512xf32>
    %127 = arith.mulf %126, %120 : vector<128x512xf32>
    %128 = arith.truncf %127 : vector<128x512xf32> to vector<128x512xbf16>
    %c0_54 = arith.constant 0 : index
    %129 = arith.index_cast %102 : i32 to index
    %c0_55 = arith.constant 0 : index
    %130 = vector.load %arg13[%c0_54, %129, %c0_55] : memref<1x1024x256xbf16, #tpu.memory_space<vmem>>, vector<1x512x256xbf16>
    %131 = vector.shape_cast %130 : vector<1x512x256xbf16> to vector<512x256xbf16>
    %cst_56 = arith.constant dense<0.000000e+00> : vector<128x256xf32>
    %132 = tpu.matmul %128, %131, %cst_56 {dimension_numbers = #tpu.dot_dimension_numbers<[1], [0], [0], [1], [0, 0, 1, 1], [], []>} : vector<128x512xbf16>, vector<512x256xbf16>, vector<128x256xf32> -> vector<128x256xf32>
    %133 = arith.addf %100, %132 : vector<128x256xf32>
    %c1_i32 = arith.constant 1 : i32
    %c512_i32_57 = arith.constant 512 : i32
    %134 = arith.muli %c1_i32, %c512_i32_57 : i32
    %135 = tpu.assume_multiple %134, 128 : i32
    %c0_58 = arith.constant 0 : index
    %c0_59 = arith.constant 0 : index
    %136 = arith.index_cast %135 : i32 to index
    %137 = vector.load %arg9[%c0_58, %c0_59, %136] : memref<1x256x1024xbf16, #tpu.memory_space<vmem>>, vector<1x256x512xbf16>
    %138 = vector.shape_cast %137 : vector<1x256x512xbf16> to vector<256x512xbf16>
    %cst_60 = arith.constant dense<0.000000e+00> : vector<128x512xf32>
    %139 = tpu.matmul %96, %138, %cst_60 {dimension_numbers = #tpu.dot_dimension_numbers<[1], [0], [0], [1], [0, 0, 1, 1], [], []>} : vector<128x256xbf16>, vector<256x512xbf16>, vector<128x512xf32> -> vector<128x512xf32>
    %c0_61 = arith.constant 0 : index
    %c0_62 = arith.constant 0 : index
    %140 = arith.index_cast %135 : i32 to index
    %141 = vector.load %arg10[%c0_61, %c0_62, %140] : memref<1x1x1024xf32, #tpu.memory_space<vmem>>, vector<1x1x512xf32>
    %142 = vector.shape_cast %141 : vector<1x1x512xf32> to vector<1x512xf32>
    %143 = vector.broadcast %142 : vector<1x512xf32> to vector<128x512xf32>
    %144 = arith.addf %139, %143 : vector<128x512xf32>
    %c0_63 = arith.constant 0 : index
    %c0_64 = arith.constant 0 : index
    %145 = arith.index_cast %135 : i32 to index
    %146 = vector.load %arg11[%c0_63, %c0_64, %145] : memref<1x256x1024xbf16, #tpu.memory_space<vmem>>, vector<1x256x512xbf16>
    %147 = vector.shape_cast %146 : vector<1x256x512xbf16> to vector<256x512xbf16>
    %cst_65 = arith.constant dense<0.000000e+00> : vector<128x512xf32>
    %148 = tpu.matmul %96, %147, %cst_65 {dimension_numbers = #tpu.dot_dimension_numbers<[1], [0], [0], [1], [0, 0, 1, 1], [], []>} : vector<128x256xbf16>, vector<256x512xbf16>, vector<128x512xf32> -> vector<128x512xf32>
    %c0_66 = arith.constant 0 : index
    %c0_67 = arith.constant 0 : index
    %149 = arith.index_cast %135 : i32 to index
    %150 = vector.load %arg12[%c0_66, %c0_67, %149] : memref<1x1x1024xf32, #tpu.memory_space<vmem>>, vector<1x1x512xf32>
    %151 = vector.shape_cast %150 : vector<1x1x512xf32> to vector<1x512xf32>
    %152 = vector.broadcast %151 : vector<1x512xf32> to vector<128x512xf32>
    %153 = arith.addf %148, %152 : vector<128x512xf32>
    %154 = arith.negf %144 : vector<128x512xf32>
    %155 = math.exp %154 : vector<128x512xf32>
    %cst_68 = arith.constant 1.000000e+00 : f32
    %156 = vector.broadcast %cst_68 : f32 to vector<128x512xf32>
    %157 = arith.addf %156, %155 : vector<128x512xf32>
    %158 = arith.divf %156, %157 : vector<128x512xf32>
    %159 = arith.mulf %144, %158 : vector<128x512xf32>
    %160 = arith.mulf %159, %153 : vector<128x512xf32>
    %161 = arith.truncf %160 : vector<128x512xf32> to vector<128x512xbf16>
    %c0_69 = arith.constant 0 : index
    %162 = arith.index_cast %135 : i32 to index
    %c0_70 = arith.constant 0 : index
    %163 = vector.load %arg13[%c0_69, %162, %c0_70] : memref<1x1024x256xbf16, #tpu.memory_space<vmem>>, vector<1x512x256xbf16>
    %164 = vector.shape_cast %163 : vector<1x512x256xbf16> to vector<512x256xbf16>
    %cst_71 = arith.constant dense<0.000000e+00> : vector<128x256xf32>
    %165 = tpu.matmul %161, %164, %cst_71 {dimension_numbers = #tpu.dot_dimension_numbers<[1], [0], [0], [1], [0, 0, 1, 1], [], []>} : vector<128x512xbf16>, vector<512x256xbf16>, vector<128x256xf32> -> vector<128x256xf32>
    %166 = arith.addf %133, %165 : vector<128x256xf32>
    %c2_i32 = arith.constant 2 : i32
    %c0_72 = arith.constant 0 : index
    %c0_73 = arith.constant 0 : index
    %167 = vector.load %arg17[%c0_72, %c0_73] : memref<128x256xf32, #tpu.memory_space<vmem>>, vector<128x256xf32>
    tpu.vector_store %arg17[%c0_72, %c0_73], %166 {strides = array<i32>} : memref<128x256xf32, #tpu.memory_space<vmem>>, vector<128x256xf32>,
    %c1_i32_74 = arith.constant 1 : i32
    %168 = arith.cmpi eq, %arg1, %c1_i32_74 : i32
    %169 = arith.extui %168 : i1 to i32
    %c0_i32_75 = arith.constant 0 : i32
    %170 = arith.cmpi ne, %169, %c0_i32_75 : i32
    scf.if %170 {
      %c0_76 = arith.constant 0 : index
      %c0_77 = arith.constant 0 : index
      %171 = vector.load %arg15[%c0_76, %c0_77] : memref<1x256xf32, #tpu.memory_space<vmem>>, vector<1x256xf32>
      %172 = arith.mulf %166, %166 : vector<128x256xf32>
      %cst_78 = arith.constant dense<0.000000e+00> : vector<128xf32>
      %173 = vector.multi_reduction <add>, %172, %cst_78 [1] : vector<128x256xf32> to vector<128xf32>
      %174 = vector.shape_cast %173 : vector<128xf32> to vector<128x1xf32>
      %cst_79 = arith.constant 2.560000e+02 : f32
      %175 = vector.broadcast %cst_79 : f32 to vector<128x1xf32>
      %176 = arith.divf %174, %175 : vector<128x1xf32>
      %cst_80 = arith.constant 9.99999997E-7 : f32
      %177 = vector.broadcast %cst_80 : f32 to vector<128x1xf32>
      %178 = arith.addf %176, %177 : vector<128x1xf32>
      %179 = math.rsqrt %178 : vector<128x1xf32>
      %180 = vector.broadcast %179 : vector<128x1xf32> to vector<128x256xf32>
      %181 = arith.mulf %166, %180 : vector<128x256xf32>
      %182 = vector.broadcast %171 : vector<1x256xf32> to vector<128x256xf32>
      %183 = arith.mulf %182, %181 : vector<128x256xf32>
      %c0_81 = arith.constant 0 : index
      %c0_82 = arith.constant 0 : index
      %c0_83 = arith.constant 0 : index
      %184 = vector.load %arg16[%c0_81, %c0_82, %c0_83] : memref<1x128x256xf32, #tpu.memory_space<vmem>>, vector<1x128x256xf32>
      %185 = vector.shape_cast %184 : vector<1x128x256xf32> to vector<128x256xf32>
      %186 = vector.shape_cast %183 : vector<128x256xf32> to vector<1x128x256xf32>
      tpu.vector_store %arg16[%c0_81, %c0_82, %c0_83], %186 {strides = array<i32>} : memref<1x128x256xf32, #tpu.memory_space<vmem>>, vector<1x128x256xf32>,
    } else {
    }
    return
  }
  func.func @transform_0(%arg0: i32, %arg1: i32) -> (i32, i32, i32) {
    %c0_i32 = arith.constant 0 : i32
    %c0_i32_0 = arith.constant 0 : i32
    %c0_i32_1 = arith.constant 0 : i32
    return %arg0, %c0_i32, %c0_i32_0 : i32, i32, i32
  }
  func.func @transform_1(%arg0: i32, %arg1: i32) -> (i32, i32, i32) {
    %c0_i32 = arith.constant 0 : i32
    %c0_i32_0 = arith.constant 0 : i32
    %c0_i32_1 = arith.constant 0 : i32
    return %arg1, %c0_i32, %c0_i32_0 : i32, i32, i32
  }
  func.func @transform_2(%arg0: i32, %arg1: i32) -> (i32, i32, i32) {
    %c0_i32 = arith.constant 0 : i32
    %c0_i32_0 = arith.constant 0 : i32
    %c0_i32_1 = arith.constant 0 : i32
    return %arg1, %c0_i32, %c0_i32_0 : i32, i32, i32
  }
  func.func @transform_3(%arg0: i32, %arg1: i32) -> (i32, i32, i32) {
    %c0_i32 = arith.constant 0 : i32
    %c0_i32_0 = arith.constant 0 : i32
    %c0_i32_1 = arith.constant 0 : i32
    return %arg1, %c0_i32, %c0_i32_0 : i32, i32, i32
  }
  func.func @transform_4(%arg0: i32, %arg1: i32) -> (i32, i32, i32) {
    %c0_i32 = arith.constant 0 : i32
    %c0_i32_0 = arith.constant 0 : i32
    %c0_i32_1 = arith.constant 0 : i32
    return %arg1, %c0_i32, %c0_i32_0 : i32, i32, i32
  }
  func.func @transform_5(%arg0: i32, %arg1: i32) -> (i32, i32, i32) {
    %c0_i32 = arith.constant 0 : i32
    %c0_i32_0 = arith.constant 0 : i32
    %c0_i32_1 = arith.constant 0 : i32
    return %arg1, %c0_i32, %c0_i32_0 : i32, i32, i32
  }
  func.func @transform_6(%arg0: i32, %arg1: i32) -> (i32, i32, i32) {
    %c0_i32 = arith.constant 0 : i32
    %c0_i32_0 = arith.constant 0 : i32
    %c0_i32_1 = arith.constant 0 : i32
    return %arg1, %c0_i32, %c0_i32_0 : i32, i32, i32
  }
  func.func @transform_7(%arg0: i32, %arg1: i32) -> (i32, i32, i32) {
    %c0_i32 = arith.constant 0 : i32
    %c0_i32_0 = arith.constant 0 : i32
    %c0_i32_1 = arith.constant 0 : i32
    return %arg1, %c0_i32, %c0_i32_0 : i32, i32, i32
  }
  func.func @transform_8(%arg0: i32, %arg1: i32) -> (i32, i32, i32) {
    %c0_i32 = arith.constant 0 : i32
    %c0_i32_0 = arith.constant 0 : i32
    %c0_i32_1 = arith.constant 0 : i32
    return %arg1, %c0_i32, %c0_i32_0 : i32, i32, i32
  }
  func.func @transform_9(%arg0: i32, %arg1: i32) -> (i32, i32, i32) {
    %c0_i32 = arith.constant 0 : i32
    %c0_i32_0 = arith.constant 0 : i32
    %c0_i32_1 = arith.constant 0 : i32
    return %arg1, %c0_i32, %c0_i32_0 : i32, i32, i32
  }
  func.func @transform_10(%arg0: i32, %arg1: i32) -> (i32, i32, i32) {
    %c0_i32 = arith.constant 0 : i32
    %c0_i32_0 = arith.constant 0 : i32
    %c0_i32_1 = arith.constant 0 : i32
    return %arg1, %c0_i32, %c0_i32_0 : i32, i32, i32
  }
  func.func @transform_11(%arg0: i32, %arg1: i32) -> (i32, i32, i32) {
    %c0_i32 = arith.constant 0 : i32
    %c0_i32_0 = arith.constant 0 : i32
    %c0_i32_1 = arith.constant 0 : i32
    return %arg1, %c0_i32, %c0_i32_0 : i32, i32, i32
  }
  func.func @transform_12(%arg0: i32, %arg1: i32) -> (i32, i32, i32) {
    %c0_i32 = arith.constant 0 : i32
    %c0_i32_0 = arith.constant 0 : i32
    %c0_i32_1 = arith.constant 0 : i32
    return %arg1, %c0_i32, %c0_i32_0 : i32, i32, i32
  }
  func.func @transform_13(%arg0: i32, %arg1: i32) -> (i32, i32) {
    %c0_i32 = arith.constant 0 : i32
    %c0_i32_0 = arith.constant 0 : i32
    %c0_i32_1 = arith.constant 0 : i32
    return %c0_i32, %c0_i32_0 : i32, i32
  }
  func.func @transform_14(%arg0: i32, %arg1: i32) -> (i32, i32, i32) {
    %c0_i32 = arith.constant 0 : i32
    %c0_i32_0 = arith.constant 0 : i32
    %c0_i32_1 = arith.constant 0 : i32
    return %arg0, %c0_i32, %c0_i32_0 : i32, i32, i32
  }
}

</mosaic_0001>

<bundles_post_ra>
// kernel: tpu_custom_call.1
= control target key start
LH: loop header
LB: loop body
LE: loop exit
PB: predicated region body
PF: predicated region fallthrough
CT: control target
= control target key end

     0   :  { %s16682_s0 = inlined_call_operand.hbm [shape: f32[2,128,256], index: 0, kind: input, shape index: {}]   ;;  %s16683_s1 = inlined_call_operand.hbm [shape: bf16[2,256,768], index: 1, kind: input, shape index: {}]   ;;  %s16684_s2 = inlined_call_operand.hbm [shape: f32[2,1,768], index: 2, kind: input, shape index: {}]   ;;  %s16685_s3 = inlined_call_operand.hbm [shape: bf16[2,256,256], index: 3, kind: input, shape index: {}]   ;;  %s16686_s4 = inlined_call_operand.hbm [shape: f32[2,1,256], index: 4, kind: input, shape index: {}]   ;;  %s16687_s5 = inlined_call_operand.hbm [shape: f32[2,1,256], index: 5, kind: input, shape index: {}]   ;;  %s16688_s6 = inlined_call_operand.hbm [shape: f32[2,1,256], index: 6, kind: input, shape index: {}]   ;;  %s16689_s7 = inlined_call_operand.hbm [shape: bf16[2,256,1024], index: 7, kind: input, shape index: {}]   ;;  %s16690_s8 = inlined_call_operand.vmem [shape: f32[2,1,1024], index: 8, kind: input, shape index: {}]   ;;  %s16691_s9 = inlined_call_operand.hbm [shape: bf16[2,256,1024], index: 9, kind: input, shape index: {}]   ;;  %s16692_s10 = inlined_call_operand.vmem [shape: f32[2,1,1024], index: 10, kind: input, shape index: {}]   ;;  %s16693_s11 = inlined_call_operand.hbm [shape: bf16[2,1024,256], index: 11, kind: input, shape index: {}]   ;;  %s16694_s12 = inlined_call_operand.vmem [shape: f32[2,1,256], index: 12, kind: input, shape index: {}]   ;;  %s16695_s13 = inlined_call_operand.vmem [shape: f32[1,256], index: 13, kind: input, shape index: {}]   ;;  %s16696_s14 = inlined_call_operand.hbm [shape: f32[2,128,256], index: 14, kind: output, shape index: {}]  }
   0x1   :  { %16858 = sst [smem:[#allocation123_spill]] %s16682_s0 }
   0x2   :  { %16859 = sst [smem:[#allocation124_spill]] %s16683_s1 }
   0x3   :  { %16860 = sst [smem:[#allocation125_spill]] %s16684_s2 }
   0x4   :  { %16861 = sst [smem:[#allocation126_spill]] %s16685_s3 }
   0x5   :  { %16862 = sst [smem:[#allocation127_spill]] %s16686_s4 }
   0x6   :  { %16863 = sst [smem:[#allocation128_spill]] %s16687_s5 }
   0x7   :  { %16864 = sst [smem:[#allocation129_spill]] %s16688_s6 }
   0x8   :  { %16865 = sst [smem:[#allocation130_spill]] %s16689_s7 }
   0x9   :  { %16866 = sst [smem:[#allocation131_spill]] %s16690_s8 }
   0xa   :  { %16867 = sst [smem:[#allocation132_spill]] %s16691_s9 }
   0xb   :  { %16868 = sst [smem:[#allocation133_spill]] %s16692_s10 }
   0xc   :  { %16869 = sst [smem:[#allocation134_spill]] %s16693_s11 }
   0xd   :  { %16870 = sst [smem:[#allocation135_spill]] %s16694_s12 }
   0xe   :  { %16871 = sst [smem:[#allocation136_spill]] %s16695_s13 }
   0xf   :  { %16872 = sst [smem:[#allocation137_spill]] %s16696_s14 }
  0x10   :  { %19 = vsyncpa [#allocation4], 0 }
  0x11   :  { %21 = vsyncpa [#allocation4 + $0x1], 0 }
  0x12   :  { %22 = vsyncpa [#allocation7], 0 }
  0x13   :  { %24 = vsyncpa [#allocation7 + $0x1], 0 }
  0x14   :  { %25 = vsyncpa [#allocation10], 0 }
  0x15   :  { %27 = vsyncpa [#allocation10 + $0x1], 0 }
  0x16   :  { %28 = vsyncpa [#allocation13], 0 }
  0x17   :  { %30 = vsyncpa [#allocation13 + $0x1], 0 }
  0x18   :  { %31 = vsyncpa [#allocation16], 0 }
  0x19   :  { %33 = vsyncpa [#allocation16 + $0x1], 0 }
  0x1a   :  { %34 = vsyncpa [#allocation19], 0 }
  0x1b   :  { %36 = vsyncpa [#allocation19 + $0x1], 0 }
  0x1c   :  { %37 = vsyncpa [#allocation5], 0 }
  0x1d   :  { %39 = vsyncpa [#allocation5 + $0x1], 0  ;;  %s12320_s29 = smov 0   ;;  %s12322_s30 = smov 0  }
  0x1e   :  { %s12324_s15 = smov 0   ;;  %s12326_s16 = smov 0  }
  0x1f   :  { %s12328_s17 = smov 0   ;;  %s12330_s18 = smov 0  }
  0x20   :  { %s12332_s19 = smov 0   ;;  %s12334_s20 = smov 0  }
  0x21   :  { %s12336_s21 = smov 0   ;;  %s12338_s22 = smov 0  }
  0x22   :  { %s12340_s23 = smov 0  }
  0x23 LB: > { %16873 = sst [smem:[#allocation28_spill]] %s12185_s30  ;;  %p16701_p0 = scmp.eq.s32.totalorder %s12221_s23, 0  ;;  %s12221_s23 = sphi %s12340_s23, %s45_s23   ;;  %s12217_s22 = sphi %s12338_s22, %s17262_s22   ;;  %s12213_s21 = sphi %s12336_s21, %s17266_s21   ;;  %s12209_s20 = sphi %s12334_s20, %s17260_s20   ;;  %s12205_s19 = sphi %s12332_s19, %s17265_s19   ;;  %s12201_s18 = sphi %s12330_s18, %s17259_s18   ;;  %s12197_s17 = sphi %s12328_s17, %s17264_s17   ;;  %s12193_s16 = sphi %s12326_s16, %s17263_s16   ;;  %s12189_s15 = sphi %s12324_s15, %s17257_s15   ;;  %s12185_s30 = sphi %s12322_s30, %s17256_s30   ;;  %s12181_s29 = sphi %s12320_s29, %s17255_s29  }
  0x24   : > { %16874 = sst [smem:[#allocation29_spill]] %s12189_s15  ;;  %p97_p1 = scmp.ne.s32.totalorder %s12189_s15, %s12185_s30 }
  0x25   : > { %16875 = sst [smem:[#allocation30_spill]] %s12193_s16  ;;  %p16700_p2 = scmp.lt.s32.totalorder %s12221_s23, 4 }
  0x26   : > { %16876 = sst [smem:[#allocation31_spill]] %s12201_s18  ;;  %s12381_s25 = sand.u32 1, %s12221_s23  }
  0x27   : > { %16877 = sst [smem:[#allocation32_spill]] %s12205_s19  ;;  %p99_p3 = por %p97_p1, %p16701_p0 }
  0x28   : > { %16878 = sst [smem:[#allocation33_spill]] %s12209_s20  ;;  %s12386_s26 = sand.u32 1, %s12189_s15  }
  0x29   : > { %16879 = sst [smem:[#allocation34_spill]] %s12217_s22  ;;  %s10430_s27 = smul.u32 12288, %s12213_s21 }
  0x2a   : > { %s10429_s28 = smul.u32 768, %s12386_s26  ;;  %p12392_p4 = pnand %p16700_p2, %p99_p3 }
  0x2b   : > { %s16881_s1 = sld [smem:[#allocation124_spill]] }
  0x2c   : > { %s16880_s14 = scalar_select %p12392_p4, 1, 0 }
  0x2d   : > { %s488_s12 = scalar_lea.vmem [#allocation6], %s10429_s28  ;;  %p12409_p7 = pneg %p12392_p4 }
  0x2e   : > { %s495_s10 = sshll.u32 %s488_s12, 4  ;;  %s12401_s10 = int_to_ptr.vmem [resolvable:$true] %s495_s10 }
  0x31   : > { %s12399_s24 = scalar_lea.hbm %s16881_s1, %s10430_s27  ;;  %s11784_s27 = scalar_lea.hbm %s16881_s1, 24576 }
  0x32   : > { %s11779_s19 = scalar_lea.hbm %s12399_s24, 12288  ;;  %p11785_p10 = scmp.lt.u32.totalorder %s12399_s24, %s16881_s1 }
  0x33   : > { %p11780_p6 = scmp.ne.s32.totalorder %s12399_s24, %s11779_s19  ;;  %p11786_p11 = scmp.lt.u32.totalorder %s11784_s27, %s11779_s19 }
  0x34   : > { %p11788_p13 = scmp.lt.u32.totalorder %s11779_s19, %s12399_s24 }
  0x35   : > { %p11782_p8 = pnand %p12409_p7, %p11780_p6  ;;  %p11787_p12 = por %p11786_p11, %p11785_p10 }
  0x37   : > { %p11783_p9 = pneg %p11782_p8  ;;  %p11789_p1 = por %p11788_p13, %p11787_p12 }
  0x39   : > { %p11790_p3 = pnand %p11789_p1, %p11783_p9 }
  0x3b   : > { %11793 = shalt.err (!%p11790_p3)
}
  0x3c   : > { %s11794_s8 = scalar_lea.vmem %s12401_s10, 12288  ;;  %s12223_s13 = smov [#allocation6]  }
  0x3d   : > { %p11795_p6 = scmp.ne.s32.totalorder %s12401_s10, %s11794_s8  ;;  %s11799_s20 = sshll.u32 %s12223_s13, 4  ;;  %s11800_s20 = int_to_ptr.vmem [resolvable:$false] %s11799_s20 }
  0x3e   : > { %s11801_s12 = scalar_lea.vmem %s11800_s20, 24576  ;;  %p11802_p0 = scmp.lt.s32.totalorder %s12401_s10, %s11800_s20 }
  0x3f   : > { %p11797_p8 = pnand %p11795_p6, %p12409_p7  ;;  %p11803_p5 = scmp.lt.s32.totalorder %s11801_s12, %s11794_s8 }
  0x41   : > { %p11798_p2 = pneg %p11797_p8  ;;  %p11804_p10 = por %p11803_p5, %p11802_p0 }
  0x43   : > { %p11805_p11 = pnand %p11804_p10, %p11798_p2 }
  0x45   : > { %11808 = shalt.err (!%p11805_p11)
}
  0x46   : > { %s12224_s19 = smov 384   ;;  %s12225_s27 = smov 24  }
  0x47   : > { %s16883_s28 = scalar_lea.sflag [#allocation7], %s12381_s25  ;;  %p684_p9 = scmp.lt.s32.totalorder %s12221_s23, 5 }
  0x48   : > { %10463 = dma.hbm_to_vmem [thread:$0]  (!%p12392_p4), %s12399_s24, 12288, %s12401_s10, %s16883_s28, %s12224_s19, %s12224_s19, %s12225_s27  }
  0x49   : > { %s9193_s8 = sshll.u32 %s12386_s26, 8  ;;  %s10069_s13 = sshll.u32 %s12213_s21, 12 }
  0x4a   : > { %p16884_p0 = scmp.ge.s32.totalorder %s12221_s23, 1  ;;  %s16887_s3 = sld [smem:[#allocation126_spill]] }
  0x4b   : > { %s528_s6 = scalar_lea.vmem [#allocation9], %s9193_s8  ;;  %s12451_s10 = sshll.u32 %s12386_s26, 1 }
  0x4c   : > { %p12439_p2 = pnand %p16884_p0, %p684_p9  ;;  %s535_s4 = sshll.u32 %s528_s6, 4  ;;  %s12448_s4 = int_to_ptr.vmem [resolvable:$true] %s535_s4 }
  0x4d   : > { %s16708_s24 = scalar_lea.sflag [#allocation10], %s12381_s25 }
  0x4e   : > { %s16885_s20 = scalar_select %p12439_p2, 1, 0 }
  0x50   : > { %16886 = sst [smem:[#allocation35_spill]] %s16885_s20  ;;  %s12446_s9 = scalar_lea.hbm %s16887_s3, %s10069_s13 }
  0x51   : > { %s11809_s19 = scalar_lea.hbm %s12446_s9, 4096  ;;  %s11814_s28 = scalar_lea.hbm %s16887_s3, 8192 }
  0x52   : > { %p11810_p5 = scmp.ne.s32.totalorder %s12446_s9, %s11809_s19  ;;  %p11815_p1 = scmp.lt.u32.totalorder %s12446_s9, %s16887_s3 }
  0x53   : > { %p11816_p3 = scmp.lt.u32.totalorder %s11814_s28, %s11809_s19  ;;  %p11818_p8 = scmp.lt.u32.totalorder %s11809_s19, %s12446_s9 }
  0x54   : > { %p11812_p12 = pnand %p11810_p5, %p12409_p7 }
  0x55   : > { %p11817_p6 = por %p11816_p3, %p11815_p1 }
  0x56   : > { %p11813_p13 = pneg %p11812_p12 }
  0x57   : > { %p11819_p10 = por %p11818_p8, %p11817_p6 }
  0x59   : > { %p11820_p11 = pnand %p11819_p10, %p11813_p13 }
  0x5b   : > { %11823 = shalt.err (!%p11820_p11)
}
  0x5c   : > { %s11824_s6 = scalar_lea.vmem %s12448_s4, 4096  ;;  %s12226_s8 = smov [#allocation9]  }
  0x5d   : > { %p11825_p9 = scmp.ne.s32.totalorder %s12448_s4, %s11824_s6  ;;  %s11829_s27 = sshll.u32 %s12226_s8, 4  ;;  %s11830_s27 = int_to_ptr.vmem [resolvable:$false] %s11829_s27 }
  0x5e   : > { %s11831_s1 = scalar_lea.vmem %s11830_s27, 8192  ;;  %p11832_p12 = scmp.lt.s32.totalorder %s12448_s4, %s11830_s27 }
  0x5f   : > { %p11827_p0 = pnand %p11825_p9, %p12409_p7  ;;  %p11833_p2 = scmp.lt.s32.totalorder %s11831_s1, %s11824_s6 }
  0x61   : > { %p11828_p5 = pneg %p11827_p0  ;;  %p11834_p1 = por %p11833_p2, %p11832_p12 }
  0x63   : > { %p11835_p3 = pnand %p11834_p1, %p11828_p5 }
  0x65   : > { %11838 = shalt.err (!%p11835_p3)
}
  0x66   : > { %s16706_s19 = smov 128   ;;  %s16707_s28 = smov 8  }
  0x67   : > { %10469 = dma.hbm_to_vmem [thread:$0]  (!%p12392_p4), %s12446_s9, 4096, %s12448_s4, %s16708_s24, %s16706_s19, %s16706_s19, %s16707_s28  }
  0x68   : > { %s12481_s13 = sshll.u32 %s12213_s21, 5  ;;  %s16888_s5 = sld [smem:[#allocation128_spill]] }
  0x69   : > { %s568_s27 = scalar_lea.vmem [#allocation12], %s12451_s10  ;;  %s12493_s3 = sshll.u32 %s12386_s26, 10 }
  0x6a   : > { %s576_s1 = sshll.u32 %s568_s27, 4  ;;  %s16709_s20 = scalar_lea.sflag [#allocation13], %s12381_s25  ;;  %s12490_s1 = int_to_ptr.vmem [resolvable:$true] %s576_s1 }
  0x6e   : > { %s12487_s8 = scalar_lea.hbm %s16888_s5, %s12481_s13  ;;  %s11844_s6 = scalar_lea.hbm %s16888_s5, 64 }
  0x6f   : > { %s11839_s4 = scalar_lea.hbm %s12487_s8, 32  ;;  %p11845_p8 = scmp.lt.u32.totalorder %s12487_s8, %s16888_s5 }
  0x70   : > { %p11840_p2 = scmp.ne.s32.totalorder %s12487_s8, %s11839_s4  ;;  %p11846_p10 = scmp.lt.u32.totalorder %s11844_s6, %s11839_s4 }
  0x71   : > { %p11848_p9 = scmp.lt.u32.totalorder %s11839_s4, %s12487_s8 }
  0x72   : > { %p11842_p13 = pnand %p11840_p2, %p12409_p7  ;;  %p11847_p11 = por %p11846_p10, %p11845_p8 }
  0x74   : > { %p11843_p6 = pneg %p11842_p13  ;;  %p11849_p0 = por %p11848_p9, %p11847_p11 }
  0x76   : > { %p11850_p5 = pnand %p11849_p0, %p11843_p6 }
  0x78   : > { %11853 = shalt.err (!%p11850_p5)
}
  0x79   : > { %s11854_s27 = scalar_lea.vmem %s12490_s1, 32  ;;  %s12229_s9 = smov [#allocation12]  }
  0x7a   : > { %p11855_p12 = scmp.ne.s32.totalorder %s12490_s1, %s11854_s27  ;;  %s11859_s12 = sshll.u32 %s12229_s9, 4  ;;  %s11860_s12 = int_to_ptr.vmem [resolvable:$false] %s11859_s12 }
  0x7b   : > { %s11861_s19 = scalar_lea.vmem %s11860_s12, 64  ;;  %p11862_p2 = scmp.lt.s32.totalorder %s12490_s1, %s11860_s12 }
  0x7c   : > { %p11857_p1 = pnand %p11855_p12, %p12409_p7  ;;  %p11863_p13 = scmp.lt.s32.totalorder %s11861_s19, %s11854_s27 }
  0x7e   : > { %p11858_p3 = pneg %p11857_p1  ;;  %p11864_p8 = por %p11863_p13, %p11862_p2 }
  0x80   : > { %p11865_p10 = pnand %p11864_p8, %p11858_p3 }
  0x82   : > { %11868 = shalt.err (!%p11865_p10)
}
  0x83   : > { %10475 = dma.hbm_to_vmem [thread:$0]  (!%p12392_p4), %s12487_s8, 32, %s12490_s1, %s16709_s20  }
  0x84   : > { %s12520_s28 = sshll.u32 %s12213_s21, 14  ;;  %s16889_s7 = sld [smem:[#allocation130_spill]] }
  0x85   : > { %s606_s9 = scalar_lea.vmem [#allocation15], %s12493_s3  ;;  %s16710_s19 = scalar_lea.sflag [#allocation16], %s12381_s25 }
  0x86   : > { %s613_s12 = sshll.u32 %s606_s9, 4  ;;  %s12529_s12 = int_to_ptr.vmem [resolvable:$true] %s613_s12 }
  0x8a   : > { %s12526_s27 = scalar_lea.hbm %s16889_s7, %s12520_s28  ;;  %s11874_s4 = scalar_lea.hbm %s16889_s7, 32768 }
  0x8b   : > { %s11869_s24 = scalar_lea.hbm %s12526_s27, 16384  ;;  %p11875_p0 = scmp.lt.u32.totalorder %s12526_s27, %s16889_s7 }
  0x8c   : > { %p11870_p6 = scmp.ne.s32.totalorder %s12526_s27, %s11869_s24  ;;  %p11876_p5 = scmp.lt.u32.totalorder %s11874_s4, %s11869_s24 }
  0x8d   : > { %p11878_p1 = scmp.lt.u32.totalorder %s11869_s24, %s12526_s27 }
  0x8e   : > { %p11872_p11 = pnand %p11870_p6, %p12409_p7  ;;  %p11877_p12 = por %p11876_p5, %p11875_p0 }
  0x90   : > { %p11873_p9 = pneg %p11872_p11  ;;  %p11879_p3 = por %p11878_p1, %p11877_p12 }
  0x92   : > { %p11880_p2 = pnand %p11879_p3, %p11873_p9 }
  0x94   : > { %11883 = shalt.err (!%p11880_p2)
}
  0x95   : > { %s11884_s9 = scalar_lea.vmem %s12529_s12, 16384  ;;  %s12230_s8 = smov [#allocation15]  }
  0x96   : > { %p11885_p13 = scmp.ne.s32.totalorder %s12529_s12, %s11884_s9  ;;  %s11889_s1 = sshll.u32 %s12230_s8, 4  ;;  %s11890_s1 = int_to_ptr.vmem [resolvable:$false] %s11889_s1 }
  0x97   : > { %s11891_s20 = scalar_lea.vmem %s11890_s1, 32768  ;;  %p11892_p6 = scmp.lt.s32.totalorder %s12529_s12, %s11890_s1 }
  0x98   : > { %p11887_p8 = pnand %p11885_p13, %p12409_p7  ;;  %p11893_p11 = scmp.lt.s32.totalorder %s11891_s20, %s11884_s9 }
  0x9a   : > { %p11888_p10 = pneg %p11887_p8  ;;  %p11894_p0 = por %p11893_p11, %p11892_p6 }
  0x9c   : > { %p11895_p5 = pnand %p11894_p0, %p11888_p10 }
  0x9e   : > { %11898 = shalt.err (!%p11895_p5)
}
  0x9f   : > { %s16711_s24 = smov 512   ;;  %s16712_s4 = smov 32  }
  0xa0   : > { %10481 = dma.hbm_to_vmem [thread:$0]  (!%p12392_p4), %s12526_s27, 16384, %s12529_s12, %s16710_s19, %s16711_s24, %s16711_s24, %s16712_s4  }
  0xa1   : > { %s12559_s6 = sadd.s32 4294967295, %s12221_s23   ;;  %s9185_s9 = sadd.s32 4294967294, %s12221_s23  }
  0xa2   : > { %16890 = sst [smem:[#allocation36_spill]] %s12559_s6  ;;  %s54_s8 = sadd.s32 1, %s12213_s21 }
  0xa3   : > { %p55_p9 = scmp.ge.s32.totalorder %s54_s8, 2  ;;  %s57_s1 = sadd.s32 1, %s12217_s22 }
  0xa4   : > { %s64_s20 = sadd.s32 1, %s12201_s18  ;;  %p71_p12 = scmp.ne.s32.totalorder %s12201_s18, %s12197_s17 }
  0xa5   : > { %s17268_s8 = smov (%p55_p9, %s54_s8), 0  ;;  %s17270_s1 = smov (!%p55_p9, %s57_s1), %s12217_s22 }
  0xa6   : > { %16891 = sst [smem:[#allocation37_spill]] %s17268_s8  ;;  %p16892_p1 = scmp.eq.s32.totalorder %s12221_s23, 0 }
  0xa7   : > { %p77_p2 = scmp.ne.s32.totalorder %s12197_s17, %s12193_s16  ;;  %p59_p13 = scmp.ge.s32.totalorder %s17270_s1, 2 }
  0xa8   : > { %p12575_p3 = por %p16892_p1, %p71_p12  ;;  %p78_p8 = scmp.eq.s32.totalorder %s12559_s6, 0 }
  0xa9   : > { %s87_s12 = ssub.s32 %s12213_s21, %s17268_s8  ;;  %p103_p10 = scmp.ne.s32.totalorder %s12185_s30, %s12181_s29 }
  0xaa   : > { %s17272_s1 = smov (%p59_p13, %s17270_s1), 0  ;;  %p12591_p6 = por %p78_p8, %p77_p2 }
  0xab   : > { %16894 = sst [smem:[#allocation38_spill]] %s17272_s1  ;;  %p88_p11 = scmp.eq.s32.totalorder %s87_s12, 0 }
  0xac   : > { %s16895_s19 = scalar_select %p12591_p6, 1, 0 }
  0xad   : > { %s61_s24 = ssub.s32 %s12217_s22, %s17272_s1  ;;  %p12597_p0 = por %p103_p10, %p78_p8 }
  0xae   : > { %p62_p5 = scmp.eq.s32.totalorder %s61_s24, 0  ;;  %p434_p9 = scmp.eq.s32.totalorder %s12559_s6, 3 }
  0xaf   : > { %s16896_s4 = scalar_select %p12597_p0, 1, 0 }
  0xb0   : > { %s16898_s29 = sadd.s32 1, %s12189_s15  ;;  %p12613_p1 = por %p434_p9, %p71_p12 }
  0xb1   : > { %16897 = sst [smem:[#allocation39_spill]] %s16896_s4  ;;  %p440_p13 = scmp.eq.s32.totalorder %s9185_s9, 3 }
  0xb2   : > { %s12605_s5 = scalar_select %p88_p11, %s12189_s15, %s16898_s29  }
  0xb3   : > { %s12608_s7 = scalar_select %p62_p5, %s12201_s18, %s64_s20  }
  0xb4   : > { %16899 = sst [smem:[#allocation40_spill]] %s12605_s5  ;;  %s463_s12 = sand.u32 1, %s12201_s18  }
  0xb5   : > { %16900 = sst [smem:[#allocation41_spill]] %s12608_s7  ;;  %s10068_s1 = sshll.u32 %s12217_s22, 12 }
  0xb6   : > { %s16901_s8 = scalar_select %p12613_p1, 1, 0 }
  0xb7   : > { %p12622_p8 = por %p440_p13, %p77_p2  ;;  %s9188_s24 = sshll.u32 %s463_s12, 8 }
  0xb8   : > { %s16904_s0 = sld [smem:[#allocation123_spill]]  ;;  %p16905_p10 = scmp.lt.s32.totalorder %s12221_s23, 4 }
  0xb9   : > { %s16902_s30 = scalar_select %p12622_p8, 1, 0 }
  0xba   : > { %p12635_p12 = pnand %p16905_p10, %p12575_p3  ;;  %s467_s20 = scalar_lea.vmem [#allocation3], %s9188_s24 }
  0xbb   : > { %16903 = sst [smem:[#allocation42_spill]] %s16902_s30  ;;  %s474_s22 = sshll.u32 %s467_s20, 4  ;;  %s12639_s22 = int_to_ptr.vmem [resolvable:$true] %s474_s22 }
  0xbc   : > { %s10431_s7 = smul.u32 6, %s12386_s26  ;;  %s12642_s4 = scalar_lea.sflag [#allocation4], %s463_s12 }
  0xbd   : > { %p11901_p11 = pneg %p12635_p12 }
  0xbe   : > { %s12629_s29 = scalar_lea.hbm %s16904_s0, %s10068_s1  ;;  %s11904_s18 = scalar_lea.hbm %s16904_s0, 8192 }
  0xbf   : > { %s11899_s6 = scalar_lea.hbm %s12629_s29, 4096  ;;  %p11905_p9 = scmp.lt.u32.totalorder %s12629_s29, %s16904_s0 }
  0xc0   : > { %p11900_p2 = scmp.ne.s32.totalorder %s12629_s29, %s11899_s6  ;;  %p11906_p13 = scmp.lt.u32.totalorder %s11904_s18, %s11899_s6 }
  0xc1   : > { %p11908_p8 = scmp.lt.u32.totalorder %s11899_s6, %s12629_s29 }
  0xc2   : > { %p11902_p5 = pnand %p11901_p11, %p11900_p2  ;;  %p11907_p10 = por %p11906_p13, %p11905_p9 }
  0xc4   : > { %p11903_p3 = pneg %p11902_p5  ;;  %p11909_p1 = por %p11908_p8, %p11907_p10 }
  0xc6   : > { %p11910_p0 = pnand %p11909_p1, %p11903_p3 }
  0xc8   : > { %11913 = shalt.err (!%p11910_p0)
}
  0xc9   : > { %s11914_s12 = scalar_lea.vmem %s12639_s22, 4096  ;;  %s12233_s20 = smov [#allocation3]  }
  0xca   : > { %p11915_p2 = scmp.ne.s32.totalorder %s12639_s22, %s11914_s12  ;;  %s11919_s1 = sshll.u32 %s12233_s20, 4  ;;  %s11920_s1 = int_to_ptr.vmem [resolvable:$false] %s11919_s1 }
  0xcb   : > { %s11921_s5 = scalar_lea.vmem %s11920_s1, 8192  ;;  %p11922_p4 = scmp.lt.s32.totalorder %s12639_s22, %s11920_s1 }
  0xcc   : > { %p11917_p5 = pnand %p11915_p2, %p11901_p11  ;;  %p11923_p9 = scmp.lt.s32.totalorder %s11921_s5, %s11914_s12 }
  0xce   : > { %p11918_p6 = pneg %p11917_p5  ;;  %p11924_p13 = por %p11923_p9, %p11922_p4 }
  0xd0   : > { %p11925_p8 = pnand %p11924_p13, %p11918_p6 }
  0xd2   : > { %11928 = shalt.err (!%p11925_p8)
}
  0xd3   : > { %s12234_s18 = smov 256   ;;  %s12235_s6 = smov 16  }
  0xd4   : > { %10460 = dma.hbm_to_vmem [thread:$0]  (!%p12635_p12), %s12629_s29, 4096, %s12639_s22, %s12642_s4, %s12234_s18, %s12234_s18, %s12235_s6  }
  0xd5   : > { %s10432_s27 = smul.u32 96, %s12213_s21  ;;  %s509_s24 = scalar_lea.vmem [#allocation8], %s10431_s7 }
  0xd6   : > { %s517_s20 = sshll.u32 %s509_s24, 4  ;;  %s16907_s2 = sld [smem:[#allocation125_spill]]  ;;  %s518_s20 = int_to_ptr.vmem [resolvable:$true] %s517_s20 }
  0xdc   : > { %s515_s5 = scalar_lea.hbm %s16907_s2, %s10432_s27  ;;  %s11934_s16 = scalar_lea.hbm %s16907_s2, 192 }
  0xdd   : > { %s11929_s0 = scalar_lea.hbm %s515_s5, 96  ;;  %p11935_p1 = scmp.lt.u32.totalorder %s515_s5, %s16907_s2 }
  0xde   : > { %p11930_p4 = scmp.ne.s32.totalorder %s515_s5, %s11929_s0  ;;  %p11936_p12 = scmp.lt.u32.totalorder %s11934_s16, %s11929_s0 }
  0xdf   : > { %p11938_p3 = scmp.lt.u32.totalorder %s11929_s0, %s515_s5 }
  0xe0   : > { %p11932_p6 = pnand %p11930_p4, %p12409_p7  ;;  %p11937_p11 = por %p11936_p12, %p11935_p1 }
  0xe2   : > { %p11933_p0 = pneg %p11932_p6  ;;  %p11939_p10 = por %p11938_p3, %p11937_p11 }
  0xe4   : > { %p11940_p2 = pnand %p11939_p10, %p11933_p0 }
  0xe6   : > { %11943 = shalt.err (!%p11940_p2)
}
  0xe7   : > { %s11944_s7 = scalar_lea.vmem %s518_s20, 96  ;;  %s12236_s29 = smov [#allocation8]  }
  0xe8   : > { %p11945_p5 = scmp.ne.s32.totalorder %s518_s20, %s11944_s7  ;;  %s11949_s4 = sshll.u32 %s12236_s29, 4  ;;  %s11950_s4 = int_to_ptr.vmem [resolvable:$false] %s11949_s4 }
  0xe9   : > { %s11951_s30 = scalar_lea.vmem %s11950_s4, 192  ;;  %p11952_p8 = scmp.lt.s32.totalorder %s518_s20, %s11950_s4 }
  0xea   : > { %p11947_p9 = pnand %p11945_p5, %p12409_p7  ;;  %p11953_p4 = scmp.lt.s32.totalorder %s11951_s30, %s11944_s7 }
  0xec   : > { %p11948_p13 = pneg %p11947_p9  ;;  %p11954_p6 = por %p11953_p4, %p11952_p8 }
  0xee   : > { %p11955_p1 = pnand %p11954_p6, %p11948_p13 }
  0xf0   : > { %11958 = shalt.err (!%p11955_p1)
}
  0xf1   : > { %p16908_p12 = scmp.ne.s32.totalorder %s16880_s14, 0  ;;  %s16909_s0 = scalar_lea.sflag [#allocation7], %s12381_s25 }
  0xf2   : > { %s16910_s18 = sld [smem:[#allocation127_spill]]  ;;  %s549_s24 = scalar_lea.vmem [#allocation11], %s12451_s10 }
  0xf3   : > { %10466 = dma.hbm_to_vmem [thread:$0]  (!%p16908_p12), %s515_s5, 96, %s518_s20, %s16909_s0  }
  0xf4   : > { %s557_s1 = sshll.u32 %s549_s24, 4  ;;  %s558_s1 = int_to_ptr.vmem [resolvable:$true] %s557_s1 }
  0xf8   : > { %s16911_s6 = smov %s16910_s18  ;;  %s12694_s27 = scalar_lea.hbm %s16910_s18, %s12481_s13 }
  0xf9   : > { %s11959_s12 = scalar_lea.hbm %s12694_s27, 32  ;;  %s11964_s20 = scalar_lea.hbm %s16911_s6, 64 }
  0xfa   : > { %p11960_p0 = scmp.ne.s32.totalorder %s12694_s27, %s11959_s12  ;;  %p11965_p10 = scmp.lt.u32.totalorder %s12694_s27, %s16911_s6 }
  0xfb   : > { %p11966_p2 = scmp.lt.u32.totalorder %s11964_s20, %s11959_s12  ;;  %p11968_p9 = scmp.lt.u32.totalorder %s11959_s12, %s12694_s27 }
  0xfc   : > { %p11962_p11 = pnand %p11960_p0, %p12409_p7 }
  0xfd   : > { %p11967_p5 = por %p11966_p2, %p11965_p10 }
  0xfe   : > { %p11963_p3 = pneg %p11962_p11 }
  0xff   : > { %p11969_p13 = por %p11968_p9, %p11967_p5 }
 0x101   : > { %p11970_p8 = pnand %p11969_p13, %p11963_p3 }
 0x103   : > { %11973 = shalt.err (!%p11970_p8)
}
 0x104   : > { %s11974_s29 = scalar_lea.vmem %s558_s1, 32  ;;  %s12237_s4 = smov [#allocation11]  }
 0x105   : > { %p11975_p4 = scmp.ne.s32.totalorder %s558_s1, %s11974_s29  ;;  %s11979_s30 = sshll.u32 %s12237_s4, 4  ;;  %s11980_s30 = int_to_ptr.vmem [resolvable:$false] %s11979_s30 }
 0x106   : > { %s11981_s0 = scalar_lea.vmem %s11980_s30, 64  ;;  %p11982_p0 = scmp.lt.s32.totalorder %s558_s1, %s11980_s30 }
 0x107   : > { %p11977_p6 = pnand %p11975_p4, %p12409_p7  ;;  %p11983_p11 = scmp.lt.s32.totalorder %s11981_s0, %s11974_s29 }
 0x109   : > { %p11978_p1 = pneg %p11977_p6  ;;  %p11984_p12 = por %p11983_p11, %p11982_p0 }
 0x10b   : > { %p11985_p2 = pnand %p11984_p12, %p11978_p1 }
 0x10d   : > { %11988 = shalt.err (!%p11985_p2)
}
 0x10e   : > { %p16912_p10 = scmp.ne.s32.totalorder %s16880_s14, 0  ;;  %s16913_s15 = scalar_lea.sflag [#allocation10], %s12381_s25 }
 0x10f   : > { %s16914_s24 = sld [smem:[#allocation129_spill]]  ;;  %s587_s9 = scalar_lea.vmem [#allocation14], %s12451_s10 }
 0x110   : > { %10472 = dma.hbm_to_vmem [thread:$0]  (!%p16912_p10), %s12694_s27, 32, %s558_s1, %s16913_s15  }
 0x111   : > { %s595_s22 = sshll.u32 %s587_s9, 4  ;;  %s596_s22 = int_to_ptr.vmem [resolvable:$true] %s595_s22 }
 0x115   : > { %s12720_s12 = scalar_lea.hbm %s16914_s24, %s12481_s13  ;;  %s11994_s27 = scalar_lea.hbm %s16914_s24, 64 }
 0x116   : > { %s11989_s20 = scalar_lea.hbm %s12720_s12, 32  ;;  %p11995_p9 = scmp.lt.u32.totalorder %s12720_s12, %s16914_s24 }
 0x117   : > { %p11990_p12 = scmp.ne.s32.totalorder %s12720_s12, %s11989_s20  ;;  %p11996_p13 = scmp.lt.u32.totalorder %s11994_s27, %s11989_s20 }
 0x118   : > { %p11998_p4 = scmp.lt.u32.totalorder %s11989_s20, %s12720_s12 }
 0x119   : > { %p11992_p3 = pnand %p11990_p12, %p12409_p7  ;;  %p11997_p8 = por %p11996_p13, %p11995_p9 }
 0x11b   : > { %p11993_p5 = pneg %p11992_p3  ;;  %p11999_p6 = por %p11998_p4, %p11997_p8 }
 0x11d   : > { %p12000_p1 = pnand %p11999_p6, %p11993_p5 }
 0x11f   : > { %12003 = shalt.err (!%p12000_p1)
}
 0x120   : > { %s12004_s10 = scalar_lea.vmem %s596_s22, 32  ;;  %s12238_s13 = smov [#allocation14]  }
 0x121   : > { %p12005_p0 = scmp.ne.s32.totalorder %s596_s22, %s12004_s10  ;;  %s12009_s4 = sshll.u32 %s12238_s13, 4  ;;  %s12010_s4 = int_to_ptr.vmem [resolvable:$false] %s12009_s4 }
 0x122   : > { %s12011_s30 = scalar_lea.vmem %s12010_s4, 64  ;;  %p12012_p12 = scmp.lt.s32.totalorder %s596_s22, %s12010_s4 }
 0x123   : > { %p12007_p11 = pnand %p12005_p0, %p12409_p7  ;;  %p12013_p3 = scmp.lt.s32.totalorder %s12011_s30, %s12004_s10 }
 0x125   : > { %p12008_p2 = pneg %p12007_p11  ;;  %p12014_p10 = por %p12013_p3, %p12012_p12 }
 0x127   : > { %p12015_p9 = pnand %p12014_p10, %p12008_p2 }
 0x129   : > { %12018 = shalt.err (!%p12015_p9)
}
 0x12a   : > { %p16915_p13 = scmp.ne.s32.totalorder %s16880_s14, 0  ;;  %s16916_s0 = scalar_lea.sflag [#allocation13], %s12381_s25 }
 0x12b   : > { %s16917_s18 = sld [smem:[#allocation132_spill]]  ;;  %s634_s5 = scalar_lea.vmem [#allocation17], %s12493_s3 }
 0x12c   : > { %10478 = dma.hbm_to_vmem [thread:$0]  (!%p16915_p13), %s12720_s12, 32, %s596_s22, %s16916_s0  }
 0x12d   : > { %s641_s7 = sshll.u32 %s634_s5, 4  ;;  %s12749_s7 = int_to_ptr.vmem [resolvable:$true] %s641_s7 }
 0x131   : > { %s16918_s9 = smov %s16917_s18  ;;  %s12746_s20 = scalar_lea.hbm %s16917_s18, %s12520_s28 }
 0x132   : > { %s12019_s27 = scalar_lea.hbm %s12746_s20, 16384  ;;  %s12024_s22 = scalar_lea.hbm %s16918_s9, 32768 }
 0x133   : > { %p12020_p10 = scmp.ne.s32.totalorder %s12746_s20, %s12019_s27  ;;  %p12025_p4 = scmp.lt.u32.totalorder %s12746_s20, %s16918_s9 }
 0x134   : > { %p12026_p6 = scmp.lt.u32.totalorder %s12024_s22, %s12019_s27  ;;  %p12028_p0 = scmp.lt.u32.totalorder %s12019_s27, %s12746_s20 }
 0x135   : > { %p12022_p5 = pnand %p12020_p10, %p12409_p7 }
 0x136   : > { %p12027_p1 = por %p12026_p6, %p12025_p4 }
 0x137   : > { %p12023_p8 = pneg %p12022_p5 }
 0x138   : > { %p12029_p11 = por %p12028_p0, %p12027_p1 }
 0x13a   : > { %p12030_p2 = pnand %p12029_p11, %p12023_p8 }
 0x13c   : > { %12033 = shalt.err (!%p12030_p2)
}
 0x13d   : > { %s12034_s13 = scalar_lea.vmem %s12749_s7, 16384  ;;  %s12239_s4 = smov [#allocation17]  }
 0x13e   : > { %p12035_p12 = scmp.ne.s32.totalorder %s12749_s7, %s12034_s13  ;;  %s12039_s30 = sshll.u32 %s12239_s4, 4  ;;  %s12040_s30 = int_to_ptr.vmem [resolvable:$false] %s12039_s30 }
 0x13f   : > { %s12041_s0 = scalar_lea.vmem %s12040_s30, 32768  ;;  %p12042_p10 = scmp.lt.s32.totalorder %s12749_s7, %s12040_s30 }
 0x140   : > { %p12037_p3 = pnand %p12035_p12, %p12409_p7  ;;  %p12043_p5 = scmp.lt.s32.totalorder %s12041_s0, %s12034_s13 }
 0x142   : > { %p12038_p9 = pneg %p12037_p3  ;;  %p12044_p4 = por %p12043_p5, %p12042_p10 }
 0x144   : > { %p12045_p6 = pnand %p12044_p4, %p12038_p9 }
 0x146   : > { %12048 = shalt.err (!%p12045_p6)
}
 0x147   : > { %s16919_s15 = smov 32   ;;  %s16920_s16 = smov 512  }
 0x148   : > { %s16921_s18 = scalar_lea.sflag [#allocation16], %s12381_s25  ;;  %s16922_s1 = sld [smem:[#allocation134_spill]] }
 0x149   : > { %10484 = dma.hbm_to_vmem [thread:$0]  (!%p16915_p13), %s12746_s20, 16384, %s12749_s7, %s16921_s18, %s16920_s16, %s16920_s16, %s16919_s15  }
 0x14a   : > { %s662_s22 = scalar_lea.vmem [#allocation18], %s12493_s3  ;;  %s659_s25 = scalar_lea.sflag [#allocation19], %s12386_s26 }
 0x14b   : > { %s669_s29 = sshll.u32 %s662_s22, 4  ;;  %s12784_s29 = int_to_ptr.vmem [resolvable:$true] %s669_s29 }
 0x14e   : > { %s12781_s12 = scalar_lea.hbm %s16922_s1, %s12520_s28  ;;  %s12054_s13 = scalar_lea.hbm %s16922_s1, 32768 }
 0x14f   : > { %s12049_s10 = scalar_lea.hbm %s12781_s12, 16384  ;;  %p12055_p11 = scmp.lt.u32.totalorder %s12781_s12, %s16922_s1 }
 0x150   : > { %p12050_p8 = scmp.ne.s32.totalorder %s12781_s12, %s12049_s10  ;;  %p12056_p2 = scmp.lt.u32.totalorder %s12054_s13, %s12049_s10 }
 0x151   : > { %p12058_p3 = scmp.lt.u32.totalorder %s12049_s10, %s12781_s12 }
 0x152   : > { %p12052_p1 = pnand %p12050_p8, %p12409_p7  ;;  %p12057_p12 = por %p12056_p2, %p12055_p11 }
 0x154   : > { %p12053_p0 = pneg %p12052_p1  ;;  %p12059_p9 = por %p12058_p3, %p12057_p12 }
 0x156   : > { %p12060_p10 = pnand %p12059_p9, %p12053_p0 }
 0x158   : > { %12063 = shalt.err (!%p12060_p10)
}
 0x159   : > { %s12064_s3 = scalar_lea.vmem %s12784_s29, 16384  ;;  %s12240_s30 = smov [#allocation18]  }
 0x15a   : > { %p12065_p5 = scmp.ne.s32.totalorder %s12784_s29, %s12064_s3  ;;  %s12069_s0 = sshll.u32 %s12240_s30, 4  ;;  %s12070_s0 = int_to_ptr.vmem [resolvable:$false] %s12069_s0 }
 0x15b   : > { %s12071_s15 = scalar_lea.vmem %s12070_s0, 32768  ;;  %p12072_p8 = scmp.lt.s32.totalorder %s12784_s29, %s12070_s0 }
 0x15c   : > { %p12067_p4 = pnand %p12065_p5, %p12409_p7  ;;  %p12073_p1 = scmp.lt.s32.totalorder %s12071_s15, %s12064_s3 }
 0x15e   : > { %p12068_p6 = pneg %p12067_p4  ;;  %p12074_p11 = por %p12073_p1, %p12072_p8 }
 0x160   : > { %p12075_p2 = pnand %p12074_p11, %p12068_p6 }
 0x162   : > { %12078 = shalt.err (!%p12075_p2)
}
 0x163   : > { %s16923_s16 = smov 8   ;;  %s16924_s18 = smov 128  }
 0x164   : > { %10487 = dma.hbm_to_vmem [thread:$0]  (!%p16915_p13), %s12781_s12, 16384, %s12784_s29, %s659_s25, %s16924_s18, %s16924_s18, %s16923_s16  }
 0x165   : > { %s16925_s11 = sld [smem:[#allocation35_spill]] }
 0x16b   : > { %p16926_p7 = scmp.ne.s32.totalorder %s16925_s11, 0 }
 0x16d   : > { %688 = sbr.rel (%p16926_p7) target bundleno = 3237 (0xca5), region = 76 }
 0x174   : > { %s12816_s5 = sand.u32 1, %s12197_s17   ;;  %p16927_p0 = scmp.ne.s32.totalorder %s16895_s19, 0 }
 0x175   : > { %s16729_s27 = sshll.u32 %s12816_s5, 8  ;;  %s691_s14 = scalar_lea.sflag [#allocation4], %s12816_s5 }
 0x176   : > { %s12822_s22 = scalar_lea.vmem [#allocation3], %s16729_s27 }
 0x177   : > { %12152 = dma.done.wait (%p16927_p0), %s691_s14, 4096  }
 0x178   : > { %12154 = vsyncadd (%p16927_p0), %s691_s14, 4294963200  ;;  %s16928_s26 = sld [smem:[#allocation36_spill]]  ;;  %s16929_s12 = sld [smem:[#allocation28_spill]] }
 0x179   : > { %s16930_s29 = sld [smem:[#allocation39_spill]] }
 0x17e   : > { %s699_s25 = sand.u32 1, %s16928_s26   ;;  %s12830_s10 = sand.u32 1, %s16929_s12  }
 0x17f   : > { %s10433_s20 = smul.u32 768, %s12830_s10  ;;  %s700_s7 = scalar_lea.sflag [#allocation7], %s699_s25 }
 0x180   : > { %p16931_p13 = scmp.ne.s32.totalorder %s16930_s29, 0 }
 0x181   : > { %s12833_s13 = scalar_lea.vmem [#allocation6], %s10433_s20 }
 0x182   : > { %12156 = dma.done.wait (%p16931_p13), %s700_s7, 12384  }
 0x183   : > { %12158 = vsyncadd (%p16931_p13), %s700_s7, 4294954912  ;;  %s10434_s19 = smul.u32 6, %s12830_s10  ;;  %s9216_s28 = sshll.u32 %s12830_s10, 8 }
 0x184   : > { %s718_s3 = scalar_lea.sflag [#allocation10], %s699_s25  ;;  %s12843_s30 = scalar_lea.vmem [#allocation9], %s9216_s28 }
 0x185   : > { %s12841_s4 = scalar_lea.vmem [#allocation8], %s10434_s19 }
 0x186   : > { %12160 = dma.done.wait (%p16931_p13), %s718_s3, 4128  }
 0x187   : > { %12162 = vsyncadd (%p16931_p13), %s718_s3, 4294963168  ;;  %s12850_s0 = sshll.u32 %s12830_s10, 1  ;;  %s736_s16 = scalar_lea.sflag [#allocation13], %s699_s25 }
 0x188   : > { %12164 = dma.done.wait (%p16931_p13), %s736_s16, 64  }
 0x189   : > { %12166 = vsyncadd (%p16931_p13), %s736_s16, 4294967232  ;;  %s9220_s11 = sshll.u32 %s12830_s10, 10  ;;  %s754_s26 = scalar_lea.sflag [#allocation16], %s699_s25 }
 0x18a   : > { %s12860_s12 = scalar_lea.vmem [#allocation15], %s9220_s11 }
 0x18b   : > { %12168 = dma.done.wait (%p16931_p13), %s754_s26, 32768  }
 0x18c   : > { %12170 = vsyncadd (%p16931_p13), %s754_s26, 4294934528  ;;  %s12866_s20 = scalar_lea.vmem [#allocation17], %s9220_s11  ;;  %s772_s7 = scalar_lea.sflag [#allocation19], %s12830_s10 }
 0x18d   : > { %s12869_s19 = scalar_lea.vmem [#allocation18], %s9220_s11 }
 0x18e   : > { %12172 = dma.done.wait (%p16931_p13), %s772_s7, 16384  }
 0x18f   : > { %12174 = vsyncadd (%p16931_p13), %s772_s7, 4294950912  ;;  %s16932_s25 = sld [smem:[#allocation32_spill]]  ;;  %s16934_s27 = sld [smem:[#allocation133_spill]] }
 0x190   : > { %s16933_s15 = sld [smem:[#allocation131_spill]]  ;;  %s16935_s7 = sld [smem:[#allocation135_spill]] }
 0x191   : > { %s16936_s9 = sshll.u32 %s12816_s5, 8 }
 0x192   : > { %s12894_s24 = scalar_lea.vmem [#allocation20], %s16936_s9 }
 0x195   : > { %p877_p12 = scmp.lt.s32.totalorder %s16932_s25, 1  ;;  %p9227_p3 = scmp.ne.s32.totalorder %s16932_s25, 0 }
 0x196   : > { %v894_v0 = vld [vmem:[%s12822_s22] sm:$0xff] (!%p9227_p3)  ;;  %v895_v1 = vld [vmem:[%s12822_s22 + $0x8] sm:$0xff] (!%p9227_p3)  ;;  %v896_v2 = vld [vmem:[%s12822_s22 + $0x10] sm:$0xff] (!%p9227_p3) }
 0x197   : > { %s878_s28 = scalar_select %p877_p12, %s16932_s25, 1 }
 0x198   : > { %893 = sbr.rel (%p9227_p3) target bundleno = 424 (0x1a8), region = 120  ;;  %926 = vst [vmem:[#allocation2] sm:$0xff] (!%p9227_p3), %v894_v0  ;;  %927 = vst [vmem:[#allocation2 + $0x8] sm:$0xff] (!%p9227_p3), %v895_v1  ;;  %v897_v3 = vld [vmem:[%s12822_s22 + $0x18] sm:$0xff] (!%p9227_p3)  ;;  %v898_v4 = vld [vmem:[%s12822_s22 + $0x20] sm:$0xff] (!%p9227_p3) }
 0x199   : > { %s9224_s3 = sshll.u32 %s878_s28, 3  ;;  %s9226_s16 = sshll.u32 %s878_s28, 1  ;;  %928 = vst [vmem:[#allocation2 + $0x10] sm:$0xff] (!%p9227_p3), %v896_v2  ;;  %v899_v5 = vld [vmem:[%s12822_s22 + $0x28] sm:$0xff] (!%p9227_p3)  ;;  %929 = vst [vmem:[#allocation2 + $0x18] sm:$0xff] (!%p9227_p3), %v897_v3  ;;  %v900_v6 = vld [vmem:[%s12822_s22 + $0x30] sm:$0xff] (!%p9227_p3) }
 0x19a   : > { %s12880_s18 = scalar_lea.vmem %s16933_s15, %s9224_s3  ;;  %s12885_s1 = scalar_lea.vmem %s16934_s27, %s9224_s3  ;;  %930 = vst [vmem:[#allocation2 + $0x20] sm:$0xff] (!%p9227_p3), %v898_v4  ;;  %931 = vst [vmem:[#allocation2 + $0x28] sm:$0xff] (!%p9227_p3), %v899_v5  ;;  %v901_v7 = vld [vmem:[%s12822_s22 + $0x38] sm:$0xff] (!%p9227_p3)  ;;  %v902_v8 = vld [vmem:[%s12822_s22 + $0x40] sm:$0xff] (!%p9227_p3) }
 0x19b   : > { %s12890_s6 = scalar_lea.vmem %s16935_s7, %s9226_s16  ;;  %932 = vst [vmem:[#allocation2 + $0x30] sm:$0xff] (!%p9227_p3), %v900_v6  ;;  %933 = vst [vmem:[#allocation2 + $0x38] sm:$0xff] (!%p9227_p3), %v901_v7  ;;  %v903_v9 = vld [vmem:[%s12822_s22 + $0x48] sm:$0xff] (!%p9227_p3)  ;;  %v904_v10 = vld [vmem:[%s12822_s22 + $0x50] sm:$0xff] (!%p9227_p3) }
 0x19c   : > { %934 = vst [vmem:[#allocation2 + $0x40] sm:$0xff] (!%p9227_p3), %v902_v8  ;;  %v905_v11 = vld [vmem:[%s12822_s22 + $0x58] sm:$0xff] (!%p9227_p3)  ;;  %935 = vst [vmem:[#allocation2 + $0x48] sm:$0xff] (!%p9227_p3), %v903_v9  ;;  %v906_v12 = vld [vmem:[%s12822_s22 + $0x60] sm:$0xff] (!%p9227_p3) }
 0x19d   : > { %936 = vst [vmem:[#allocation2 + $0x50] sm:$0xff] (!%p9227_p3), %v904_v10  ;;  %937 = vst [vmem:[#allocation2 + $0x58] sm:$0xff] (!%p9227_p3), %v905_v11  ;;  %v907_v13 = vld [vmem:[%s12822_s22 + $0x68] sm:$0xff] (!%p9227_p3)  ;;  %v908_v14 = vld [vmem:[%s12822_s22 + $0x70] sm:$0xff] (!%p9227_p3) }
 0x19e   : > { %938 = vst [vmem:[#allocation2 + $0x60] sm:$0xff] (!%p9227_p3), %v906_v12  ;;  %939 = vst [vmem:[#allocation2 + $0x68] sm:$0xff] (!%p9227_p3), %v907_v13  ;;  %v909_v15 = vld [vmem:[%s12822_s22 + $0x78] sm:$0xff] (!%p9227_p3)  ;;  %v910_v16 = vld [vmem:[%s12822_s22 + $0x80] sm:$0xff] (!%p9227_p3) }
 0x19f   : > { %940 = vst [vmem:[#allocation2 + $0x70] sm:$0xff] %v908_v14  ;;  %v911_v17 = vld [vmem:[%s12822_s22 + $0x88] sm:$0xff]  ;;  %941 = vst [vmem:[#allocation2 + $0x78] sm:$0xff] %v909_v15  ;;  %v912_v18 = vld [vmem:[%s12822_s22 + $0x90] sm:$0xff] }
 0x1a0   : > { %942 = vst [vmem:[#allocation2 + $0x80] sm:$0xff] %v910_v16  ;;  %943 = vst [vmem:[#allocation2 + $0x88] sm:$0xff] %v911_v17  ;;  %v913_v19 = vld [vmem:[%s12822_s22 + $0x98] sm:$0xff]  ;;  %v914_v20 = vld [vmem:[%s12822_s22 + $0xa0] sm:$0xff] }
 0x1a1   : > { %944 = vst [vmem:[#allocation2 + $0x90] sm:$0xff] %v912_v18  ;;  %945 = vst [vmem:[#allocation2 + $0x98] sm:$0xff] %v913_v19  ;;  %v915_v21 = vld [vmem:[%s12822_s22 + $0xa8] sm:$0xff]  ;;  %v916_v22 = vld [vmem:[%s12822_s22 + $0xb0] sm:$0xff] }
 0x1a2   : > { %946 = vst [vmem:[#allocation2 + $0xa0] sm:$0xff] %v914_v20  ;;  %v917_v23 = vld [vmem:[%s12822_s22 + $0xb8] sm:$0xff]  ;;  %947 = vst [vmem:[#allocation2 + $0xa8] sm:$0xff] %v915_v21  ;;  %v918_v24 = vld [vmem:[%s12822_s22 + $0xc0] sm:$0xff] }
 0x1a3   : > { %948 = vst [vmem:[#allocation2 + $0xb0] sm:$0xff] %v916_v22  ;;  %949 = vst [vmem:[#allocation2 + $0xb8] sm:$0xff] %v917_v23  ;;  %v919_v25 = vld [vmem:[%s12822_s22 + $0xc8] sm:$0xff]  ;;  %v920_v26 = vld [vmem:[%s12822_s22 + $0xd0] sm:$0xff] }
 0x1a4   : > { %950 = vst [vmem:[#allocation2 + $0xc0] sm:$0xff] %v918_v24  ;;  %951 = vst [vmem:[#allocation2 + $0xc8] sm:$0xff] %v919_v25  ;;  %v921_v27 = vld [vmem:[%s12822_s22 + $0xd8] sm:$0xff]  ;;  %v922_v28 = vld [vmem:[%s12822_s22 + $0xe0] sm:$0xff] }
 0x1a5   : > { %952 = vst [vmem:[#allocation2 + $0xd0] sm:$0xff] %v920_v26  ;;  %v923_v29 = vld [vmem:[%s12822_s22 + $0xe8] sm:$0xff]  ;;  %953 = vst [vmem:[#allocation2 + $0xd8] sm:$0xff] %v921_v27  ;;  %v924_v30 = vld [vmem:[%s12822_s22 + $0xf0] sm:$0xff] }
 0x1a6   : > { %954 = vst [vmem:[#allocation2 + $0xe0] sm:$0xff] %v922_v28  ;;  %955 = vst [vmem:[#allocation2 + $0xe8] sm:$0xff] %v923_v29  ;;  %v925_v31 = vld [vmem:[%s12822_s22 + $0xf8] sm:$0xff] }
 0x1a7   : > { %956 = vst [vmem:[#allocation2 + $0xf0] sm:$0xff] %v924_v30  ;;  %957 = vst [vmem:[#allocation2 + $0xf8] sm:$0xff] %v925_v31 }
 0x1a8 PF: > { %v958_v32 = vld [vmem:[#allocation2] sm:$0xff]  ;;  %v959_v33 = vld [vmem:[#allocation2 + $0x8] sm:$0xff]  ;;  %v976_v3 = vld [vmem:[#allocation2 + $0x90] sm:$0xff]  ;;  %s16938_s2 = scalar_lea.vmem [#allocation12], %s12850_s0  ;;  %s16942_s9 = scalar_lea.vmem [#allocation11], %s12850_s0 }
 0x1a9   : > { %v991_v35 = vmul.f32 %v958_v32, %v958_v32  ;;  %v992_v36 = vmul.f32 %v959_v33, %v959_v33  ;;  %v960_v39 = vld [vmem:[#allocation2 + $0x10] sm:$0xff]  ;;  %v961_v40 = vld [vmem:[#allocation2 + $0x18] sm:$0xff]  ;;  %v974_v8 = vld [vmem:[#allocation2 + $0x80] sm:$0xff]  ;;  %v1009_v22 = vmul.f32 %v976_v3, %v976_v3  ;;  %s16975_s27 = scalar_lea.vmem [#allocation14], %s12850_s0 }
 0x1aa   : > { %v962_v34 = vld [vmem:[#allocation2 + $0x20] sm:$0xff]  ;;  %v963_v37 = vld [vmem:[#allocation2 + $0x28] sm:$0xff]  ;;  %v993_v42 = vmul.f32 %v960_v39, %v960_v39  ;;  %v994_v43 = vmul.f32 %v961_v40, %v961_v40  ;;  %v977_v4 = vld [vmem:[#allocation2 + $0x98] sm:$0xff]  ;;  %v1007_v16 = vmul.f32 %v974_v8, %v974_v8 }
 0x1ab   : > { %v995_v38 = vmul.f32 %v962_v34, %v962_v34  ;;  %v996_v41 = vmul.f32 %v963_v37, %v963_v37  ;;  %v964_v44 = vld [vmem:[#allocation2 + $0x30] sm:$0xff]  ;;  %v965_v45 = vld [vmem:[#allocation2 + $0x38] sm:$0xff]  ;;  %v1023_v47 = vadd.f32 %v992_v36, %v991_v35  ;;  %v975_v9 = vld [vmem:[#allocation2 + $0x88] sm:$0xff]  ;;  %v1010_v23 = vmul.f32 %v977_v4, %v977_v4 }
 0x1ac   : > { %v997_v48 = vmul.f32 %v964_v44, %v964_v44  ;;  %v998_v49 = vmul.f32 %v965_v45, %v965_v45  ;;  %v966_v51 = vld [vmem:[#allocation2 + $0x40] sm:$0xff]  ;;  %v967_v52 = vld [vmem:[#allocation2 + $0x48] sm:$0xff]  ;;  %v1026_v54 = vadd.f32 %v994_v43, %v993_v42  ;;  %v1008_v17 = vmul.f32 %v975_v9, %v975_v9  ;;  %v980_v18 = vld [vmem:[#allocation2 + $0xb0] sm:$0xff] }
 0x1ad   : > { %v968_v46 = vld [vmem:[#allocation2 + $0x50] sm:$0xff]  ;;  %v969_v50 = vld [vmem:[#allocation2 + $0x58] sm:$0xff]  ;;  %v1029_v53 = vadd.f32 %v996_v41, %v995_v38  ;;  %1024 = vadd.xlane.f32.xlu0 %v1023_v47  ;;  %v999_v55 = vmul.f32 %v966_v51, %v966_v51  ;;  %v1000_v56 = vmul.f32 %v967_v52, %v967_v52  ;;  %v978_v11 = vld [vmem:[#allocation2 + $0xa0] sm:$0xff]  ;;  %v1050_v36 = vadd.f32 %v1010_v23, %v1009_v22 }
 0x1ae   : > { %v1032_v57 = vadd.f32 %v998_v49, %v997_v48  ;;  %v1001_v58 = vmul.f32 %v968_v46, %v968_v46  ;;  %v1002_v59 = vmul.f32 %v969_v50, %v969_v50  ;;  %v970_v60 = vld [vmem:[#allocation2 + $0x60] sm:$0xff]  ;;  %v971_v61 = vld [vmem:[#allocation2 + $0x68] sm:$0xff]  ;;  %v981_v19 = vld [vmem:[#allocation2 + $0xb8] sm:$0xff]  ;;  %v1047_v30 = vadd.f32 %v1008_v17, %v1007_v16 }
 0x1af   : > { %1030 = vadd.xlane.f32.xlu1 %v1029_v53  ;;  %v972_v62 = vld [vmem:[#allocation2 + $0x70] sm:$0xff]  ;;  %v973_v63 = vld [vmem:[#allocation2 + $0x78] sm:$0xff]  ;;  %v1035_v0 = vadd.f32 %v1000_v56, %v999_v55  ;;  %v1003_v1 = vmul.f32 %v970_v60, %v970_v60  ;;  %v1004_v2 = vmul.f32 %v971_v61, %v971_v61  ;;  %v979_v12 = vld [vmem:[#allocation2 + $0xa8] sm:$0xff]  ;;  %v1011_v31 = vmul.f32 %v978_v11, %v978_v11 }
 0x1b0   : > { %v1038_v5 = vadd.f32 %v1002_v59, %v1001_v58  ;;  %v1005_v6 = vmul.f32 %v972_v62, %v972_v62  ;;  %v1006_v7 = vmul.f32 %v973_v63, %v973_v63  ;;  %v10593_v10 = vld [vmem:[%s12833_s13 + $0x4] ss:$24 sps:$4 sm:$0xff]   ;;  %v10597_v14 = vld [vmem:[%s12833_s13] ss:$24 sps:$4 sm:$0xff]   ;;  %v10599_v24 = vld [vmem:[%s12833_s13 + $0x34] ss:$24 sps:$4 sm:$0xff]   ;;  %v1012_v32 = vmul.f32 %v979_v12, %v979_v12 }
 0x1b1   : > { %1027 = vadd.xlane.f32.xlu0 %v1026_v54  ;;  %v10595_v13 = vld [vmem:[%s12833_s13 + $0xc] ss:$24 sps:$4 sm:$0xff]   ;;  %v1041_v15 = vadd.f32 %v1004_v2, %v1003_v1  ;;  %1819 = vmatprep.subr.bf16.mxu0 %v10593_v10  ;;  %v10598_v20 = vld [vmem:[%s12833_s13 + $0x8] ss:$24 sps:$4 sm:$0xff]   ;;  %v10601_v25 = vld [vmem:[%s12833_s13 + $0x3c] ss:$24 sps:$4 sm:$0xff]   ;;  %v1013_v37 = vmul.f32 %v980_v18, %v980_v18  ;;  %v1014_v38 = vmul.f32 %v981_v19, %v981_v19 }
 0x1b2   : > { %v1044_v21 = vadd.f32 %v1006_v7, %v1005_v6  ;;  %1932 = vmatprep.subr.bf16.mxu1 %v10595_v13  ;;  %1820 = vmatpush1.bf16.msra.mxu0 %v10597_v14  ;;  %v10603_v26 = vld [vmem:[%s12833_s13 + $0x30] ss:$24 sps:$4 sm:$0xff]   ;;  %v982_v28 = vld [vmem:[#allocation2 + $0xc0] sm:$0xff]  ;;  %v985_v34 = vld [vmem:[#allocation2 + $0xd8] sm:$0xff]  ;;  %v1053_v44 = vadd.f32 %v1012_v32, %v1011_v31 }
 0x1b3   : > { %1033 = vadd.xlane.f32.xlu1 %v1032_v57  ;;  %1933 = vmatpush1.bf16.msra.mxu1 %v10598_v20  ;;  %v10604_v27 = vld [vmem:[%s12833_s13 + $0x38] ss:$24 sps:$4 sm:$0xff]   ;;  %v10605_v29 = vld [vmem:[%s12833_s13 + $0x64] ss:$24 sps:$4 sm:$0xff]   ;;  %v983_v39 = vld [vmem:[#allocation2 + $0xc8] sm:$0xff]  ;;  %v1015_v45 = vmul.f32 %v982_v28, %v982_v28  ;;  %v1056_v50 = vadd.f32 %v1014_v38, %v1013_v37  ;;  %v1018_v52 = vmul.f32 %v985_v34, %v985_v34 }
 0x1b4   : > { %1821 = vmatprep.subr.bf16.mxu0 %v10599_v24  ;;  %v984_v33 = vld [vmem:[#allocation2 + $0xd0] sm:$0xff]  ;;  %1934 = vmatprep.subr.bf16.mxu1 %v10601_v25  ;;  %v10607_v35 = vld [vmem:[%s12833_s13 + $0x6c] ss:$24 sps:$4 sm:$0xff]   ;;  %v10609_v40 = vld [vmem:[%s12833_s13 + $0x60] ss:$24 sps:$4 sm:$0xff]   ;;  %v1016_v46 = vmul.f32 %v983_v39, %v983_v39 }
 0x1b5   : > { %1036 = vadd.xlane.f32.xlu0 %v1035_v0  ;;  %v10610_v41 = vld [vmem:[%s12833_s13 + $0x68] ss:$24 sps:$4 sm:$0xff]   ;;  %v10611_v42 = vld [vmem:[%s12833_s13 + $0x94] ss:$24 sps:$4 sm:$0xff]   ;;  %v989_v48 = vld [vmem:[#allocation2 + $0xf8] sm:$0xff]  ;;  %v1017_v51 = vmul.f32 %v984_v33, %v984_v33 }
 0x1b6   : > { %1822 = vmatpush1.bf16.msra.mxu0 %v10603_v26  ;;  %v10613_v43 = vld [vmem:[%s12833_s13 + $0x9c] ss:$24 sps:$4 sm:$0xff]   ;;  %v986_v49 = vld [vmem:[#allocation2 + $0xe0] sm:$0xff]  ;;  %v987_v53 = vld [vmem:[#allocation2 + $0xe8] sm:$0xff]  ;;  %v1059_v58 = vadd.f32 %v1016_v46, %v1015_v45  ;;  %v1022_v63 = vmul.f32 %v989_v48, %v989_v48 }
 0x1b7   : > { %1039 = vadd.xlane.f32.xlu1 %v1038_v5  ;;  %1935 = vmatpush1.bf16.msra.mxu1 %v10604_v27  ;;  %v988_v47 = vld [vmem:[#allocation2 + $0xf0] sm:$0xff]  ;;  %v10617_v56 = vld [vmem:[%s12833_s13 + $0xc4] ss:$24 sps:$4 sm:$0xff]   ;;  %v1019_v59 = vmul.f32 %v986_v49, %v986_v49  ;;  %v1020_v60 = vmul.f32 %v987_v53, %v987_v53  ;;  %v1062_v61 = vadd.f32 %v1018_v52, %v1017_v51  ;;  %v10621_v0 = vld [vmem:[%s12833_s13 + $0xc0] ss:$24 sps:$4 sm:$0xff]  }
 0x1b8   : > { %1823 = vmatprep.subr.bf16.mxu0 %v10605_v29  ;;  %1936 = vmatprep.subr.bf16.mxu1 %v10607_v35  ;;  %v10615_v54 = vld [vmem:[%s12833_s13 + $0x90] ss:$24 sps:$4 sm:$0xff]   ;;  %v10619_v57 = vld [vmem:[%s12833_s13 + $0xcc] ss:$24 sps:$4 sm:$0xff]   ;;  %v1021_v62 = vmul.f32 %v988_v47, %v988_v47  ;;  %v10625_v3 = vld [vmem:[%s12833_s13 + $0xfc] ss:$24 sps:$4 sm:$0xff]  }
 0x1b9   : > { %1042 = vadd.xlane.f32.xlu0 %v1041_v15  ;;  %v10616_v55 = vld [vmem:[%s12833_s13 + $0x98] ss:$24 sps:$4 sm:$0xff]   ;;  %v10622_v1 = vld [vmem:[%s12833_s13 + $0xc8] ss:$24 sps:$4 sm:$0xff]   ;;  %v10623_v2 = vld [vmem:[%s12833_s13 + $0xf4] ss:$24 sps:$4 sm:$0xff]   ;;  %v1065_v4 = vadd.f32 %v1020_v60, %v1019_v59 }
 0x1ba   : > { %1824 = vmatpush1.bf16.msra.mxu0 %v10609_v40  ;;  %v1068_v5 = vadd.f32 %v1022_v63, %v1021_v62  ;;  %v10627_v6 = vld [vmem:[%s12833_s13 + $0xf0] ss:$24 sps:$4 sm:$0xff]   ;;  %v10629_v8 = vld [vmem:[%s12833_s13 + $0x124] ss:$24 sps:$4 sm:$0xff]   ;;  %v10633_v10 = vld [vmem:[%s12833_s13 + $0x120] ss:$24 sps:$4 sm:$0xff]  }
 0x1bb   : > { %1045 = vadd.xlane.f32.xlu1 %v1044_v21  ;;  %1937 = vmatpush1.bf16.msra.mxu1 %v10610_v41  ;;  %v10628_v7 = vld [vmem:[%s12833_s13 + $0xf8] ss:$24 sps:$4 sm:$0xff]   ;;  %v10631_v9 = vld [vmem:[%s12833_s13 + $0x12c] ss:$24 sps:$4 sm:$0xff]   ;;  %v10634_v11 = vld [vmem:[%s12833_s13 + $0x128] ss:$24 sps:$4 sm:$0xff]  }
 0x1bc   : > { %1825 = vmatprep.subr.bf16.mxu0 %v10611_v42  ;;  %1938 = vmatprep.subr.bf16.mxu1 %v10613_v43  ;;  %v10635_v12 = vld [vmem:[%s12833_s13 + $0x154] ss:$24 sps:$4 sm:$0xff]   ;;  %v10639_v14 = vld [vmem:[%s12833_s13 + $0x150] ss:$24 sps:$4 sm:$0xff]   ;;  %v10641_v16 = vld [vmem:[%s12833_s13 + $0x184] ss:$24 sps:$4 sm:$0xff]  }
 0x1bd   : > { %1048 = vadd.xlane.f32.xlu0 %v1047_v30  ;;  %v10637_v13 = vld [vmem:[%s12833_s13 + $0x15c] ss:$24 sps:$4 sm:$0xff]   ;;  %v10640_v15 = vld [vmem:[%s12833_s13 + $0x158] ss:$24 sps:$4 sm:$0xff]   ;;  %v10643_v17 = vld [vmem:[%s12833_s13 + $0x18c] ss:$24 sps:$4 sm:$0xff]  }
 0x1be   : > { %1826 = vmatpush1.bf16.msra.mxu0 %v10615_v54  ;;  %v10645_v18 = vld [vmem:[%s12833_s13 + $0x180] ss:$24 sps:$4 sm:$0xff]   ;;  %v10647_v20 = vld [vmem:[%s12833_s13 + $0x1b4] ss:$24 sps:$4 sm:$0xff]   ;;  %v10651_v22 = vld [vmem:[%s12833_s13 + $0x1b0] ss:$24 sps:$4 sm:$0xff]  }
 0x1bf   : > { %1051 = vadd.xlane.f32.xlu1 %v1050_v36  ;;  %1939 = vmatpush1.bf16.msra.mxu1 %v10616_v55  ;;  %v10646_v19 = vld [vmem:[%s12833_s13 + $0x188] ss:$24 sps:$4 sm:$0xff]   ;;  %v10649_v21 = vld [vmem:[%s12833_s13 + $0x1bc] ss:$24 sps:$4 sm:$0xff]   ;;  %v10652_v23 = vld [vmem:[%s12833_s13 + $0x1b8] ss:$24 sps:$4 sm:$0xff]  }
 0x1c0   : > { %1827 = vmatprep.subr.bf16.mxu0 %v10617_v56  ;;  %1940 = vmatprep.subr.bf16.mxu1 %v10619_v57  ;;  %v10653_v24 = vld [vmem:[%s12833_s13 + $0x1e4] ss:$24 sps:$4 sm:$0xff]   ;;  %v10657_v26 = vld [vmem:[%s12833_s13 + $0x1e0] ss:$24 sps:$4 sm:$0xff]   ;;  %v10659_v28 = vld [vmem:[%s12833_s13 + $0x214] ss:$24 sps:$4 sm:$0xff]  }
 0x1c1   : > { %1054 = vadd.xlane.f32.xlu0 %v1053_v44  ;;  %v10655_v25 = vld [vmem:[%s12833_s13 + $0x1ec] ss:$24 sps:$4 sm:$0xff]   ;;  %v10658_v27 = vld [vmem:[%s12833_s13 + $0x1e8] ss:$24 sps:$4 sm:$0xff]   ;;  %v10661_v29 = vld [vmem:[%s12833_s13 + $0x21c] ss:$24 sps:$4 sm:$0xff]  }
 0x1c2   : > { %1828 = vmatpush1.bf16.msra.mxu0 %v10621_v0  ;;  %v10663_v30 = vld [vmem:[%s12833_s13 + $0x210] ss:$24 sps:$4 sm:$0xff]   ;;  %v10665_v32 = vld [vmem:[%s12833_s13 + $0x244] ss:$24 sps:$4 sm:$0xff]   ;;  %v10669_v34 = vld [vmem:[%s12833_s13 + $0x240] ss:$24 sps:$4 sm:$0xff]  }
 0x1c3   : > { %1057 = vadd.xlane.f32.xlu1 %v1056_v50  ;;  %1941 = vmatpush1.bf16.msra.mxu1 %v10622_v1  ;;  %v10664_v31 = vld [vmem:[%s12833_s13 + $0x218] ss:$24 sps:$4 sm:$0xff]   ;;  %v10667_v33 = vld [vmem:[%s12833_s13 + $0x24c] ss:$24 sps:$4 sm:$0xff]   ;;  %v10670_v35 = vld [vmem:[%s12833_s13 + $0x248] ss:$24 sps:$4 sm:$0xff]  }
 0x1c4   : > { %1829 = vmatprep.subr.bf16.mxu0 %v10623_v2  ;;  %1942 = vmatprep.subr.bf16.mxu1 %v10625_v3  ;;  %v10671_v36 = vld [vmem:[%s12833_s13 + $0x274] ss:$24 sps:$4 sm:$0xff]   ;;  %v10675_v38 = vld [vmem:[%s12833_s13 + $0x270] ss:$24 sps:$4 sm:$0xff]   ;;  %v10677_v40 = vld [vmem:[%s12833_s13 + $0x2a4] ss:$24 sps:$4 sm:$0xff]  }
 0x1c5   : > { %1060 = vadd.xlane.f32.xlu0 %v1059_v58  ;;  %v10673_v37 = vld [vmem:[%s12833_s13 + $0x27c] ss:$24 sps:$4 sm:$0xff]   ;;  %v10676_v39 = vld [vmem:[%s12833_s13 + $0x278] ss:$24 sps:$4 sm:$0xff]   ;;  %v10679_v41 = vld [vmem:[%s12833_s13 + $0x2ac] ss:$24 sps:$4 sm:$0xff]   ;;  %v1153_v58 = vlaneseq }
 0x1c6   : > { %1830 = vmatpush1.bf16.msra.mxu0 %v10627_v6  ;;  %v10681_v42 = vld [vmem:[%s12833_s13 + $0x2a0] ss:$24 sps:$4 sm:$0xff]   ;;  %v10683_v44 = vld [vmem:[%s12833_s13 + $0x2d4] ss:$24 sps:$4 sm:$0xff]   ;;  %v10687_v46 = vld [vmem:[%s12833_s13 + $0x2d0] ss:$24 sps:$4 sm:$0xff]  }
 0x1c7   : > { %1063 = vadd.xlane.f32.xlu1 %v1062_v61  ;;  %1943 = vmatpush1.bf16.msra.mxu1 %v10628_v7  ;;  %v10682_v43 = vld [vmem:[%s12833_s13 + $0x2a8] ss:$24 sps:$4 sm:$0xff]   ;;  %v10685_v45 = vld [vmem:[%s12833_s13 + $0x2dc] ss:$24 sps:$4 sm:$0xff]   ;;  %v10688_v47 = vld [vmem:[%s12833_s13 + $0x2d8] ss:$24 sps:$4 sm:$0xff]  }
 0x1c8   : > { %1831 = vmatprep.subr.bf16.mxu0 %v10629_v8  ;;  %1944 = vmatprep.subr.bf16.mxu1 %v10631_v9  ;;  %v10691_v48 = vld [vmem:[%s12833_s13 + $0x14] ss:$24 sps:$4 sm:$0xff]   ;;  %v12994_v1 = vshrl.u32 %v1153_v58, 7  ;;  %v990_v9 = vld [vmem:[%s16938_s2] sm:$0x3] }
 0x1c9   : > { %1066 = vadd.xlane.f32.xlu0 %v1065_v4 }
 0x1ca   : > { %1832 = vmatpush1.bf16.msra.mxu0 %v10633_v10  ;;  %v12997_v6 = vsub.s32 1, %v12994_v1  ;;  %v13002_v10 = vsub.s32 0, %v12994_v1 }
 0x1cb   : > { %1069 = vadd.xlane.f32.xlu1 %v1068_v5  ;;  %1945 = vmatpush1.bf16.msra.mxu1 %v10634_v11 }
 0x1cc   : > { %1833 = vmatprep.subr.bf16.mxu0 %v10635_v12  ;;  %1946 = vmatprep.subr.bf16.mxu1 %v10637_v13  ;;  %16937 = vst [vmem:[#allocation43_spill] sm:$0xff] %v12997_v6  ;;  %16939 = vst [vmem:[#allocation44_spill] sm:$0xff] %v13002_v10 }
 0x1ce   : > { %1834 = vmatpush1.bf16.msra.mxu0 %v10639_v14 }
 0x1cf   : > { %1947 = vmatpush1.bf16.msra.mxu1 %v10640_v15  ;;  %1835 = vmatprep.subr.bf16.mxu0 %v10641_v16 }
 0x1d0   : > { %1948 = vmatprep.subr.bf16.mxu1 %v10643_v17  ;;  %v11681_v17 = vld [vmem:[#allocation2 + $0x8] sm:$0xff] }
 0x1d2   : > { %1836 = vmatpush1.bf16.msra.mxu0 %v10645_v18 }
 0x1d3   : > { %1949 = vmatpush1.bf16.msra.mxu1 %v10646_v19  ;;  %1837 = vmatprep.subr.bf16.mxu0 %v10647_v20  ;;  %v13005_v19 = vrot.slane %v990_v9, %v12997_v6  ;;  %v11682_v20 = vld [vmem:[#allocation2 + $0x28] sm:$0xff] }
 0x1d4   : > { %1950 = vmatprep.subr.bf16.mxu1 %v10649_v21 }
 0x1d6   : > { %1838 = vmatpush1.bf16.msra.mxu0 %v10651_v22 }
 0x1d7   : > { %1951 = vmatpush1.bf16.msra.mxu1 %v10652_v23  ;;  %1839 = vmatprep.subr.bf16.mxu0 %v10653_v24  ;;  %v11683_v23 = vld [vmem:[#allocation2] sm:$0xff] }
 0x1d8   : > { %1952 = vmatprep.subr.bf16.mxu1 %v10655_v25  ;;  %v13008_v25 = vrot.slane %v990_v9, %v13002_v10 }
 0x1da   : > { %1840 = vmatpush1.bf16.msra.mxu0 %v10657_v26 }
 0x1db   : > { %1953 = vmatpush1.bf16.msra.mxu1 %v10658_v27  ;;  %1841 = vmatprep.subr.bf16.mxu0 %v10659_v28 }
 0x1dc   : > { %1954 = vmatprep.subr.bf16.mxu1 %v10661_v29 }
 0x1de   : > { %1842 = vmatpush1.bf16.msra.mxu0 %v10663_v30  ;;  %v11684_v30 = vld [vmem:[#allocation2 + $0x18] sm:$0xff] }
 0x1df   : > { %1955 = vmatpush1.bf16.msra.mxu1 %v10664_v31  ;;  %1843 = vmatprep.subr.bf16.mxu0 %v10665_v32  ;;  %v11685_v32 = vld [vmem:[#allocation2 + $0x10] sm:$0xff] }
 0x1e0   : > { %1956 = vmatprep.subr.bf16.mxu1 %v10667_v33 }
 0x1e2   : > { %1844 = vmatpush1.bf16.msra.mxu0 %v10669_v34 }
 0x1e3   : > { %1957 = vmatpush1.bf16.msra.mxu1 %v10670_v35  ;;  %1845 = vmatprep.subr.bf16.mxu0 %v10671_v36  ;;  %v11686_v35 = vld [vmem:[#allocation2 + $0x38] sm:$0xff] }
 0x1e4   : > { %1958 = vmatprep.subr.bf16.mxu1 %v10673_v37 }
 0x1e6   : > { %1846 = vmatpush1.bf16.msra.mxu0 %v10675_v38 }
 0x1e7   : > { %1959 = vmatpush1.bf16.msra.mxu1 %v10676_v39  ;;  %1847 = vmatprep.subr.bf16.mxu0 %v10677_v40 }
 0x1e8   : > { %1960 = vmatprep.subr.bf16.mxu1 %v10679_v41 }
 0x1ea   : > { %1848 = vmatpush1.bf16.msra.mxu0 %v10681_v42 }
 0x1eb   : > { %1961 = vmatpush1.bf16.msra.mxu1 %v10682_v43  ;;  %1849 = vmatprep.subr.bf16.mxu0 %v10683_v44 }
 0x1ec   : > { %1962 = vmatprep.subr.bf16.mxu1 %v10685_v45 }
 0x1ee   : > { %1850 = vmatpush1.bf16.msra.mxu0 %v10687_v46 }
 0x1ef   : > { %1963 = vmatpush1.bf16.msra.mxu1 %v10688_v47  ;;  %2045 = vmatprep.subr.bf16.mxu0 %v10691_v48 }
 0x23a   : > { %v1025_v49 = vpop.xlane.xlu0 %1024 }
 0x23b   : > { %v1072_v50 = vmul.f32 0.00390625, %v1025_v49  ;;  %v10689_v49 = vld [vmem:[%s12833_s13 + $0x10] ss:$24 sps:$4 sm:$0xff]  }
 0x23c   : > { %v1031_v51 = vpop.xlane.xlu1 %1030 }
 0x23d   : > { %v1074_v52 = vmul.f32 0.00390625, %v1031_v51  ;;  %v1088_v53 = vadd.f32 1e-06, %v1072_v50  ;;  %v11687_v50 = vld [vmem:[#allocation2 + $0x48] sm:$0xff] }
 0x23e   : > { %v1028_v55 = vpop.xlane.xlu0 %1027 }
 0x23f   : > { %v1090_v54 = vadd.f32 1e-06, %v1074_v52  ;;  %10977 = vrsqrt.f32 %v1088_v53  ;;  %v1073_v56 = vmul.f32 0.00390625, %v1028_v55  ;;  %v11688_v55 = vld [vmem:[#allocation2 + $0x20] sm:$0xff] }
 0x240   : > { %v1034_v57 = vpop.xlane.xlu1 %1033 }
 0x241   : > { %10979 = vrsqrt.f32 %v1090_v54  ;;  %v1075_v59 = vmul.f32 0.00390625, %v1034_v57  ;;  %v1089_v60 = vadd.f32 1e-06, %v1073_v56  ;;  %v10694_v54 = vld [vmem:[%s12833_s13 + $0x44] ss:$24 sps:$4 sm:$0xff]   ;;  %v11689_v57 = vld [vmem:[#allocation2 + $0x30] sm:$0xff] }
 0x242   : > { %v1037_v62 = vpop.xlane.xlu0 %1036 }
 0x243   : > { %v1091_v61 = vadd.f32 1e-06, %v1075_v59  ;;  %10981 = vrsqrt.f32 %v1089_v60  ;;  %v1076_v0 = vmul.f32 0.00390625, %v1037_v62  ;;  %v11690_v59 = vld [vmem:[#allocation2 + $0x58] sm:$0xff] }
 0x244   : > { %v1040_v63 = vpop.xlane.xlu1 %1039 }
 0x245   : > { %10983 = vrsqrt.f32 %v1091_v61  ;;  %v1077_v2 = vmul.f32 0.00390625, %v1040_v63  ;;  %v1092_v3 = vadd.f32 1e-06, %v1076_v0  ;;  %v10692_v0 = vld [vmem:[%s12833_s13 + $0x40] ss:$24 sps:$4 sm:$0xff]  }
 0x246   : > { %v1043_v5 = vpop.xlane.xlu0 %1042 }
 0x247   : > { %v1093_v4 = vadd.f32 1e-06, %v1077_v2  ;;  %10985 = vrsqrt.f32 %v1092_v3  ;;  %v1078_v8 = vmul.f32 0.00390625, %v1043_v5 }
 0x248   : > { %v1046_v7 = vpop.xlane.xlu1 %1045 }
 0x249   : > { %10987 = vrsqrt.f32 %v1093_v4  ;;  %v1079_v11 = vmul.f32 0.00390625, %v1046_v7  ;;  %v10978_v12 = vpop.eup %10977  ;;  %v1094_v13 = vadd.f32 1e-06, %v1078_v8  ;;  %v10697_v8 = vld [vmem:[%s12833_s13 + $0x74] ss:$24 sps:$4 sm:$0xff]  }
 0x24a   : > { %v1049_v16 = vpop.xlane.xlu0 %1048  ;;  %v1121_v18 = vmul.f32 %v11681_v17, %v10978_v12  ;;  %v1120_v24 = vmul.f32 %v11683_v23, %v10978_v12  ;;  %v10695_v17 = vld [vmem:[%s12833_s13 + $0x70] ss:$24 sps:$4 sm:$0xff]  }
 0x24b   : > { %v10980_v14 = vpop.eup %10979  ;;  %v1095_v15 = vadd.f32 1e-06, %v1079_v11  ;;  %10989 = vrsqrt.f32 %v1094_v13  ;;  %v1080_v26 = vmul.f32 0.00390625, %v1049_v16  ;;  %v11691_v11 = vld [vmem:[#allocation2 + $0x40] sm:$0xff]  ;;  %v11692_v13 = vld [vmem:[#allocation2 + $0x50] sm:$0xff] }
 0x24c   : > { %v1125_v21 = vmul.f32 %v11682_v20, %v10980_v14  ;;  %v1052_v22 = vpop.xlane.xlu1 %1051  ;;  %v1164_v34 = vmul.f32 %v13005_v19, %v1121_v18  ;;  %v1163_v39 = vmul.f32 %v13008_v25, %v1120_v24  ;;  %v1124_v56 = vmul.f32 %v11688_v55, %v10980_v14  ;;  %v11693_v20 = vld [vmem:[#allocation2 + $0x68] sm:$0xff] }
 0x24d   : > { %v10982_v27 = vpop.eup %10981  ;;  %10991 = vrsqrt.f32 %v1095_v15  ;;  %v1081_v28 = vmul.f32 0.00390625, %v1052_v22  ;;  %v1096_v41 = vadd.f32 1e-06, %v1080_v26  ;;  %v11694_v22 = vld [vmem:[#allocation2 + $0x78] sm:$0xff] }
 0x24e   : > { %v1123_v31 = vmul.f32 %v11684_v30, %v10982_v27  ;;  %v1122_v33 = vmul.f32 %v11685_v32, %v10982_v27  ;;  %v1168_v37 = vmul.f32 %v13005_v19, %v1125_v21  ;;  %v1055_v45 = vpop.xlane.xlu0 %1054  ;;  %v1167_v5 = vmul.f32 %v13008_v25, %v1124_v56  ;;  %v10700_v27 = vld [vmem:[%s12833_s13 + $0xa4] ss:$24 sps:$4 sm:$0xff]  }
 0x24f   : > { %v10984_v29 = vpop.eup %10983  ;;  %v1097_v44 = vadd.f32 1e-06, %v1081_v28  ;;  %10993 = vrsqrt.f32 %v1096_v41  ;;  %v1082_v61 = vmul.f32 0.00390625, %v1055_v45  ;;  %v10706_v56 = vld [vmem:[%s12833_s13 + $0x104] ss:$24 sps:$4 sm:$0xff]  }
 0x250   : > { %v1127_v36 = vmul.f32 %v11686_v35, %v10984_v29  ;;  %v1166_v38 = vmul.f32 %v13005_v19, %v1123_v31  ;;  %v1165_v40 = vmul.f32 %v13008_v25, %v1122_v33  ;;  %v1058_v52 = vpop.xlane.xlu1 %1057  ;;  %v1126_v58 = vmul.f32 %v11689_v57, %v10984_v29  ;;  %v10698_v33 = vld [vmem:[%s12833_s13 + $0xa0] ss:$24 sps:$4 sm:$0xff]  }
 0x251   : > { %v10986_v42 = vpop.eup %10985  ;;  %10995 = vrsqrt.f32 %v1097_v44  ;;  %v1083_v62 = vmul.f32 0.00390625, %v1058_v52  ;;  %v1098_v9 = vadd.f32 1e-06, %v1082_v61  ;;  %v11698_v52 = vld [vmem:[#allocation2 + $0x98] sm:$0xff] }
 0x252   : > { %v1170_v43 = vmul.f32 %v13005_v19, %v1127_v36  ;;  %v13016_v47 = vpack.c.bf16 %v1166_v38, %v1164_v34  ;;  %v13018_v48 = vpack.c.bf16 %v1165_v40, %v1163_v39  ;;  %v1129_v51 = vmul.f32 %v11687_v50, %v10986_v42  ;;  %v1061_v24 = vpop.xlane.xlu0 %1060  ;;  %v11695_v40 = vld [vmem:[#allocation2 + $0x60] sm:$0xff]  ;;  %v11697_v50 = vld [vmem:[#allocation2 + $0x88] sm:$0xff] }
 0x253   : > { %v10988_v46 = vpop.eup %10987  ;;  %v1169_v7 = vmul.f32 %v13008_v25, %v1126_v58  ;;  %v1128_v12 = vmul.f32 %v11691_v11, %v10986_v42  ;;  %v1099_v15 = vadd.f32 1e-06, %v1083_v62  ;;  %10997 = vrsqrt.f32 %v1098_v9  ;;  %v11696_v42 = vld [vmem:[#allocation2 + $0x70] sm:$0xff]  ;;  %v10704_v62 = vld [vmem:[%s12833_s13 + $0x100] ss:$24 sps:$4 sm:$0xff]  }
 0x254   : > { %v13021_v53 = vpack.c.bf16 %v1170_v43, %v1168_v37  ;;  %v1131_v60 = vmul.f32 %v11690_v59, %v10988_v46  ;;  %1851 = vmatprep.mubr.bf16.mxu0 %v13016_v47  ;;  %1964 = vmatprep.mubr.bf16.mxu1 %v13016_v47  ;;  %v1172_v2 = vmul.f32 %v13005_v19, %v1129_v51  ;;  %v1064_v16 = vpop.xlane.xlu1 %1063  ;;  %v1084_v31 = vmul.f32 0.00390625, %v1061_v24  ;;  %v10703_v37 = vld [vmem:[%s12833_s13 + $0xd4] ss:$24 sps:$4 sm:$0xff]  }
 0x255   : > { %1852 = vmatmul.mubr.bf16.vlgmr.msra.gmra.mrb[0].mxu0 %v13018_v48  ;;  %1965 = vmatmul.mubr.bf16.vlgmr.msra.gmra.mrb[0].mxu1 %v13018_v48  ;;  %v10990_v63 = vpop.eup %10989  ;;  %v1130_v14 = vmul.f32 %v11692_v13, %v10988_v46  ;;  %v13039_v26 = vpack.c.bf16 %v1169_v7, %v1167_v5  ;;  %v1085_v28 = vmul.f32 0.00390625, %v1064_v16  ;;  %v1171_v29 = vmul.f32 %v13008_v25, %v1128_v12  ;;  %v10701_v46 = vld [vmem:[%s12833_s13 + $0xd0] ss:$24 sps:$4 sm:$0xff]   ;;  %v11699_v7 = vld [vmem:[#allocation2 + $0x80] sm:$0xff] }
 0x256   : > { %2046 = vmatpush1.bf16.msra.mxu0 %v10689_v49  ;;  %1861 = vmatprep.mubr.bf16.mxu0 %v13021_v53  ;;  %v1174_v3 = vmul.f32 %v13005_v19, %v1131_v60  ;;  %v1133_v21 = vmul.f32 %v11693_v20, %v10990_v63  ;;  %10999 = vrsqrt.f32 %v1099_v15  ;;  %v1132_v41 = vmul.f32 %v11695_v40, %v10990_v63  ;;  %v1067_v55 = vpop.xlane.xlu0 %1066  ;;  %v11700_v9 = vld [vmem:[#allocation2 + $0x90] sm:$0xff]  ;;  %v11701_v15 = vld [vmem:[#allocation2 + $0xa8] sm:$0xff] }
 0x257   : > { %v10992_v4 = vpop.eup %10991  ;;  %1974 = vmatprep.mubr.bf16.mxu1 %v13021_v53  ;;  %2047 = vmatprep.subr.bf16.mxu0 %v10694_v54  ;;  %v1173_v30 = vmul.f32 %v13008_v25, %v1130_v14  ;;  %v1101_v38 = vadd.f32 1e-06, %v1085_v28  ;;  %v1100_v44 = vadd.f32 1e-06, %v1084_v31  ;;  %v1086_v60 = vmul.f32 0.00390625, %v1067_v55  ;;  %v11705_v40 = vld [vmem:[#allocation2 + $0xc8] sm:$0xff] }
 0x258   : > { %v13037_v18 = vpack.c.bf16 %v1174_v3, %v1172_v2  ;;  %v1135_v23 = vmul.f32 %v11694_v22, %v10992_v4  ;;  %v1176_v34 = vmul.f32 %v13005_v19, %v1133_v21  ;;  %v1134_v43 = vmul.f32 %v11696_v42, %v10992_v4  ;;  %v1070_v45 = vpop.xlane.xlu1 %1069  ;;  %v10709_v3 = vld [vmem:[%s12833_s13 + $0x134] ss:$24 sps:$4 sm:$0xff]   ;;  %v10707_v13 = vld [vmem:[%s12833_s13 + $0x130] ss:$24 sps:$4 sm:$0xff]   ;;  %v10712_v21 = vld [vmem:[%s12833_s13 + $0x164] ss:$24 sps:$4 sm:$0xff]  }
 0x259   : > { %v10994_v32 = vpop.eup %10993  ;;  %v13052_v39 = vpack.c.bf16 %v1173_v30, %v1171_v29  ;;  %11001 = vrsqrt.f32 %v1101_v38  ;;  %v1087_v57 = vmul.f32 0.00390625, %v1070_v45  ;;  %v1175_v58 = vmul.f32 %v13008_v25, %v1132_v41  ;;  %v10715_v31 = vld [vmem:[%s12833_s13 + $0x194] ss:$24 sps:$4 sm:$0xff]   ;;  %v11706_v42 = vld [vmem:[#allocation2 + $0xd8] sm:$0xff] }
 0x25a   : > { %2048 = vmatpush1.bf16.msra.mxu0 %v10692_v0  ;;  %v1178_v35 = vmul.f32 %v13005_v19, %v1135_v23  ;;  %v1137_v51 = vmul.f32 %v11697_v50, %v10994_v32  ;;  %v1177_v59 = vmul.f32 %v13008_v25, %v1134_v43  ;;  %11003 = vrsqrt.f32 %v1100_v44  ;;  %v10718_v44 = vld [vmem:[%s12833_s13 + $0x1c4] ss:$24 sps:$4 sm:$0xff]  }
 0x25b   : > { %2049 = vmatprep.subr.bf16.mxu0 %v10697_v8  ;;  %v10996_v36 = vpop.eup %10995  ;;  %v1103_v4 = vadd.f32 1e-06, %v1087_v57  ;;  %v1136_v8 = vmul.f32 %v11699_v7, %v10994_v32  ;;  %v1102_v12 = vadd.f32 1e-06, %v1086_v60  ;;  %v11708_v60 = vld [vmem:[#allocation2 + $0xd0] sm:$0xff] }
 0x25c   : > { %v13055_v49 = vpack.c.bf16 %v1178_v35, %v1176_v34  ;;  %v1139_v54 = vmul.f32 %v11698_v52, %v10996_v36  ;;  %v1180_v63 = vmul.f32 %v13005_v19, %v1137_v51  ;;  %v13068_v5 = vpack.c.bf16 %v1177_v59, %v1175_v58  ;;  %v11704_v35 = vld [vmem:[#allocation2 + $0xb0] sm:$0xff]  ;;  %v10716_v51 = vld [vmem:[%s12833_s13 + $0x1c0] ss:$24 sps:$4 sm:$0xff]   ;;  %v10724_v7 = vld [vmem:[%s12833_s13 + $0x224] ss:$24 sps:$4 sm:$0xff]  }
 0x25d   : > { %1862 = vmatmul.mubr.bf16.gmra.mrb[4].mxu0 %v13039_v26  ;;  %1975 = vmatmul.mubr.bf16.gmra.mrb[4].mxu1 %v13039_v26  ;;  %v10998_v61 = vpop.eup %10997  ;;  %v1138_v11 = vmul.f32 %v11700_v9, %v10996_v36  ;;  %11005 = vrsqrt.f32 %v1103_v4  ;;  %v1179_v22 = vmul.f32 %v13008_v25, %v1136_v8  ;;  %v11707_v58 = vld [vmem:[#allocation2 + $0xc0] sm:$0xff] }
 0x25e   : > { %2050 = vmatpush1.bf16.msra.mxu0 %v10695_v17  ;;  %1871 = vmatprep.mubr.bf16.mxu0 %v13037_v18  ;;  %v1182_v0 = vmul.f32 %v13005_v19, %v1139_v54  ;;  %v1141_v16 = vmul.f32 %v11701_v15, %v10998_v61  ;;  %v11702_v17 = vld [vmem:[#allocation2 + $0xb8] sm:$0xff]  ;;  %11007 = vrsqrt.f32 %v1102_v12  ;;  %v10727_v15 = vld [vmem:[%s12833_s13 + $0x254] ss:$24 sps:$4 sm:$0xff]  }
 0x25f   : > { %2051 = vmatprep.subr.bf16.mxu0 %v10700_v27  ;;  %1984 = vmatprep.mubr.bf16.mxu1 %v13037_v18  ;;  %v1181_v23 = vmul.f32 %v13008_v25, %v1138_v11  ;;  %v10710_v27 = vld [vmem:[%s12833_s13 + $0x160] ss:$24 sps:$4 sm:$0xff]  }
 0x260   : > { %v11000_v2 = vpop.eup %10999  ;;  %v13071_v14 = vpack.c.bf16 %v1182_v0, %v1180_v63  ;;  %v1184_v28 = vmul.f32 %v13005_v19, %v1141_v16  ;;  %v11709_v0 = vld [vmem:[#allocation2 + $0xe8] sm:$0xff]  ;;  %v10722_v11 = vld [vmem:[%s12833_s13 + $0x220] ss:$24 sps:$4 sm:$0xff]  }
 0x261   : > { %v1143_v20 = vmul.f32 %v11702_v17, %v11000_v2  ;;  %v13084_v32 = vpack.c.bf16 %v1181_v23, %v1179_v22  ;;  %v1142_v36 = vmul.f32 %v11704_v35, %v11000_v2  ;;  %v11711_v17 = vld [vmem:[#allocation2 + $0xe0] sm:$0xff]  ;;  %v10725_v23 = vld [vmem:[%s12833_s13 + $0x250] ss:$24 sps:$4 sm:$0xff]  }
 0x262   : > { %2052 = vmatpush1.bf16.msra.mxu0 %v10698_v33  ;;  %v11703_v33 = vld [vmem:[#allocation2 + $0xa0] sm:$0xff] }
 0x263   : > { %2053 = vmatprep.subr.bf16.mxu0 %v10703_v37  ;;  %v11002_v24 = vpop.eup %11001  ;;  %v1186_v29 = vmul.f32 %v13005_v19, %v1143_v20  ;;  %v1140_v34 = vmul.f32 %v11703_v33, %v10998_v61  ;;  %v10713_v37 = vld [vmem:[%s12833_s13 + $0x190] ss:$24 sps:$4 sm:$0xff]   ;;  %v10734_v35 = vld [vmem:[%s12833_s13 + $0x2e0] ss:$24 sps:$4 sm:$0xff]  }
 0x264   : > { %v11004_v30 = vpop.eup %11003  ;;  %v1147_v43 = vmul.f32 %v11706_v42, %v11002_v24  ;;  %v1146_v61 = vmul.f32 %v11708_v60, %v11002_v24  ;;  %v10731_v33 = vld [vmem:[%s12833_s13 + $0x2b0] ss:$24 sps:$4 sm:$0xff]  }
 0x265   : > { %1872 = vmatmul.mubr.bf16.gmra.mrb[8].mxu0 %v13052_v39  ;;  %1985 = vmatmul.mubr.bf16.gmra.mrb[8].mxu1 %v13052_v39  ;;  %v13087_v38 = vpack.c.bf16 %v1186_v29, %v1184_v28  ;;  %v1145_v41 = vmul.f32 %v11705_v40, %v11004_v30  ;;  %v1183_v45 = vmul.f32 %v13008_v25, %v1140_v34  ;;  %v10728_v29 = vld [vmem:[%s12833_s13 + $0x280] ss:$24 sps:$4 sm:$0xff]   ;;  %v10736_v34 = vld [vmem:[%s12833_s13 + $0x2e4] ss:$24 sps:$4 sm:$0xff]  }
 0x266   : > { %2054 = vmatpush1.bf16.msra.mxu0 %v10701_v46  ;;  %1881 = vmatprep.mubr.bf16.mxu0 %v13055_v49  ;;  %v1185_v46 = vmul.f32 %v13008_v25, %v1142_v36  ;;  %v1190_v54 = vmul.f32 %v13005_v19, %v1147_v43  ;;  %v1144_v59 = vmul.f32 %v11707_v58, %v11004_v30  ;;  %v10733_v30 = vld [vmem:[%s12833_s13 + $0x2b4] ss:$24 sps:$4 sm:$0xff]  }
 0x267   : > { %2055 = vmatprep.subr.bf16.mxu0 %v10706_v56  ;;  %1994 = vmatprep.mubr.bf16.mxu1 %v13055_v49  ;;  %v11006_v50 = vpop.eup %11005  ;;  %v1188_v52 = vmul.f32 %v13005_v19, %v1145_v41  ;;  %v10721_v56 = vld [vmem:[%s12833_s13 + $0x1f4] ss:$24 sps:$4 sm:$0xff]   ;;  %v1189_v9 = vmul.f32 %v13008_v25, %v1146_v61 }
 0x268   : > { %v11008_v55 = vpop.eup %11007  ;;  %v13100_v57 = vpack.c.bf16 %v1185_v46, %v1183_v45  ;;  %v1187_v8 = vmul.f32 %v13008_v25, %v1144_v59 }
 0x269   : > { %v1208_v63 = vpack.c.bf16 %v1190_v54, %v1188_v52  ;;  %v1149_v2 = vmul.f32 %v11709_v0, %v11008_v55  ;;  %v1148_v20 = vmul.f32 %v11711_v17, %v11008_v55 }
 0x26a   : > { %2056 = vmatpush1.bf16.msra.mxu0 %v10704_v62  ;;  %v10719_v62 = vld [vmem:[%s12833_s13 + $0x1f0] ss:$24 sps:$4 sm:$0xff]   ;;  %v1207_v16 = vpack.c.bf16 %v1189_v9, %v1187_v8 }
 0x26b   : > { %2057 = vmatprep.subr.bf16.mxu0 %v10709_v3  ;;  %v11710_v3 = vld [vmem:[#allocation2 + $0xf8] sm:$0xff]  ;;  %v1192_v12 = vmul.f32 %v13005_v19, %v1149_v2 }
 0x26c   : > { %v1151_v4 = vmul.f32 %v11710_v3, %v11006_v50 }
 0x26d   : > { %1882 = vmatmul.mubr.bf16.gmra.mrb[12].mxu0 %v13068_v5  ;;  %1995 = vmatmul.mubr.bf16.gmra.mrb[12].mxu1 %v13068_v5 }
 0x26e   : > { %2058 = vmatpush1.bf16.msra.mxu0 %v10707_v13  ;;  %1891 = vmatprep.mubr.bf16.mxu0 %v13071_v14  ;;  %v1194_v13 = vmul.f32 %v13005_v19, %v1151_v4  ;;  %v1191_v19 = vmul.f32 %v13008_v25, %v1148_v20 }
 0x26f   : > { %2059 = vmatprep.subr.bf16.mxu0 %v10712_v21  ;;  %2004 = vmatprep.mubr.bf16.mxu1 %v13071_v14  ;;  %v11712_v21 = vld [vmem:[#allocation2 + $0xf0] sm:$0xff] }
 0x270   : > { %v1150_v22 = vmul.f32 %v11712_v21, %v11006_v50  ;;  %v1210_v24 = vpack.c.bf16 %v1194_v13, %v1192_v12 }
 0x272   : > { %2060 = vmatpush1.bf16.msra.mxu0 %v10710_v27  ;;  %v10730_v27 = vld [vmem:[%s12833_s13 + $0x284] ss:$24 sps:$4 sm:$0xff]   ;;  %v1193_v28 = vmul.f32 %v13008_v25, %v1150_v22  ;;  %v13134_v25 = vsub.s32 2, %v12994_v1 }
 0x273   : > { %2061 = vmatprep.subr.bf16.mxu0 %v10715_v31 }
 0x274   : > { %v1209_v31 = vpack.c.bf16 %v1193_v28, %v1191_v19  ;;  %16940 = vst [vmem:[#allocation45_spill] sm:$0xff] %v13134_v25 }
 0x275   : > { %1892 = vmatmul.mubr.bf16.gmra.mrb[16].mxu0 %v13084_v32  ;;  %2005 = vmatmul.mubr.bf16.gmra.mrb[16].mxu1 %v13084_v32 }
 0x276   : > { %2062 = vmatpush1.bf16.msra.mxu0 %v10713_v37  ;;  %1901 = vmatprep.mubr.bf16.mxu0 %v13087_v38 }
 0x277   : > { %2063 = vmatprep.subr.bf16.mxu0 %v10718_v44  ;;  %2014 = vmatprep.mubr.bf16.mxu1 %v13087_v38 }
 0x27a   : > { %2064 = vmatpush1.bf16.msra.mxu0 %v10716_v51 }
 0x27b   : > { %2065 = vmatprep.subr.bf16.mxu0 %v10721_v56 }
 0x27d   : > { %1902 = vmatmul.mubr.bf16.gmra.mrb[20].mxu0 %v13100_v57  ;;  %2015 = vmatmul.mubr.bf16.gmra.mrb[20].mxu1 %v13100_v57 }
 0x27e   : > { %2066 = vmatpush1.bf16.msra.mxu0 %v10719_v62  ;;  %1911 = vmatprep.mubr.bf16.mxu0 %v1208_v63 }
 0x27f   : > { %2067 = vmatprep.subr.bf16.mxu0 %v10724_v7  ;;  %2024 = vmatprep.mubr.bf16.mxu1 %v1208_v63 }
 0x282   : > { %2068 = vmatpush1.bf16.msra.mxu0 %v10722_v11 }
 0x283   : > { %2069 = vmatprep.subr.bf16.mxu0 %v10727_v15 }
 0x285   : > { %1912 = vmatmul.mubr.bf16.gmra.mrb[24].mxu0 %v1207_v16  ;;  %2025 = vmatmul.mubr.bf16.gmra.mrb[24].mxu1 %v1207_v16 }
 0x286   : > { %2070 = vmatpush1.bf16.msra.mxu0 %v10725_v23  ;;  %1921 = vmatprep.mubr.bf16.mxu0 %v1210_v24 }
 0x287   : > { %2071 = vmatprep.subr.bf16.mxu0 %v10730_v27  ;;  %2034 = vmatprep.mubr.bf16.mxu1 %v1210_v24 }
 0x28a   : > { %2072 = vmatpush1.bf16.msra.mxu0 %v10728_v29 }
 0x28b   : > { %2073 = vmatprep.subr.bf16.mxu0 %v10733_v30 }
 0x28d   : > { %1922 = vmatmul.mubr.bf16.gmra.mrb[28].mxu0 %v1209_v31  ;;  %2035 = vmatmul.mubr.bf16.gmra.mrb[28].mxu1 %v1209_v31 }
 0x28e   : > { %2074 = vmatpush1.bf16.msra.mxu0 %v10731_v33  ;;  %2077 = vmatprep.mubr.bf16.mxu0 %v13016_v47  ;;  %v13137_v47 = vld [vmem:[%s12841_s4] sm:$0x3f] }
 0x28f   : > { %2075 = vmatprep.subr.bf16.mxu0 %v10736_v34 }
 0x292   : > { %2076 = vmatpush1.bf16.msra.mxu0 %v10734_v35 }
 0x295   : > { %2078 = vmatmul.mubr.bf16.vlgmr.msra.gmra.mrb[32].mxu0 %v13018_v48  ;;  %v13140_v48 = vsub.s32 3, %v12994_v1 }
 0x296   : > { %2087 = vmatprep.mubr.bf16.mxu0 %v13021_v53  ;;  %v13144_v53 = vrot.slane %v13137_v47, %v13002_v10 }
 0x297   : > { %16941 = vst [vmem:[#allocation46_spill] sm:$0xff] %v13140_v48 }
 0x29d   : > { %2088 = vmatmul.mubr.bf16.gmra.mrb[36].mxu0 %v13039_v26 }
 0x29e   : > { %2097 = vmatprep.mubr.bf16.mxu0 %v13037_v18  ;;  %v13148_v18 = vrot.slane %v13137_v47, %v13134_v25 }
 0x2a5   : > { %2098 = vmatmul.mubr.bf16.gmra.mrb[40].mxu0 %v13052_v39 }
 0x2a6   : > { %2107 = vmatprep.mubr.bf16.mxu0 %v13055_v49  ;;  %v13152_v49 = vrot.slane %v13137_v47, %v12997_v6 }
 0x2ad   : > { %2108 = vmatmul.mubr.bf16.gmra.mrb[44].mxu0 %v13068_v5  ;;  %v13156_v5 = vrot.slane %v13137_v47, %v13140_v48 }
 0x2ae   : > { %2117 = vmatprep.mubr.bf16.mxu0 %v13071_v14 }
 0x2b5   : > { %2118 = vmatmul.mubr.bf16.gmra.mrb[48].mxu0 %v13084_v32 }
 0x2b6   : > { %2127 = vmatprep.mubr.bf16.mxu0 %v13087_v38 }
 0x2bd   : > { %2128 = vmatmul.mubr.bf16.gmra.mrb[52].mxu0 %v13100_v57 }
 0x2be   : > { %2137 = vmatprep.mubr.bf16.mxu0 %v1208_v63 }
 0x2c5   : > { %2138 = vmatmul.mubr.bf16.gmra.mrb[56].mxu0 %v1207_v16 }
 0x2c6   : > { %2147 = vmatprep.mubr.bf16.mxu0 %v1210_v24 }
 0x2cd   : > { %2148 = vmatmul.mubr.bf16.gmra.mrb[60].mxu0 %v1209_v31 }
 0x328   : > { %v1853_v26 = vpop.f32.mrb[0].mxu0  ;;  %v1966_v39 = vpop.f32.mrb[0].mxu1 }
 0x329   : > { %v1855_v14 = vpop.f32.mrb[1].mxu0  ;;  %v1968_v32 = vpop.f32.mrb[1].mxu1  ;;  %v1854_v38 = vadd.f32 %v1853_v26, %v13144_v53  ;;  %v1967_v40 = vadd.f32 %v1966_v39, %v13148_v18 }
 0x32a   : > { %v1857_v36 = vpop.f32.mrb[2].mxu0  ;;  %v1970_v37 = vpop.f32.mrb[2].mxu1  ;;  %v1856_v45 = vadd.f32 %v1855_v14, %v13152_v49  ;;  %v1969_v46 = vadd.f32 %v1968_v32, %v13156_v5 }
 0x32b   : > { %v1858_v41 = vadd.f32 %v1857_v36, %v13144_v53  ;;  %v1971_v42 = vadd.f32 %v1970_v37, %v13148_v18  ;;  %v1859_v43 = vpop.f32.mrb[3].mxu0  ;;  %v1972_v44 = vpop.f32.mrb[3].mxu1 }
 0x32c   : > { %v1860_v50 = vadd.f32 %v1859_v43, %v13152_v49  ;;  %v1973_v51 = vadd.f32 %v1972_v44, %v13156_v5 }
 0x32d   : > { %v2158_v52 = vpack.c.bf16 %v1858_v41, %v1854_v38  ;;  %v2166_v54 = vpack.c.bf16 %v1971_v42, %v1967_v40 }
 0x32e   : > { %v2552_v55 = vpack.c.bf16 %v1860_v50, %v1856_v45  ;;  %v2560_v56 = vpack.c.bf16 %v1973_v51, %v1969_v46 }
 0x32f   : > { %10141 = vmatprep.subr.bf16.mxu1 %v2166_v54  ;;  %10157 = vmatprep.mubr.bf16.mxu1 %v2158_v52 }
 0x330   : > { %v1863_v57 = vpop.f32.mrb[4].mxu0  ;;  %v1976_v58 = vpop.f32.mrb[4].mxu1  ;;  %10142 = vmatpush3.bf16.xpose.msra.mxu1 %v2166_v54  ;;  %10205 = vmatprep.subr.bf16.mxu0 %v2560_v56 }
 0x331   : > { %v13167_v59 = vadd.f32 %v1863_v57, %v13144_v53  ;;  %10221 = vmatprep.mubr.bf16.mxu0 %v2552_v55  ;;  %v1865_v60 = vpop.f32.mrb[5].mxu0  ;;  %v1978_v61 = vpop.f32.mrb[5].mxu1  ;;  %10206 = vmatpush3.bf16.xpose.msra.mxu0 %v2560_v56  ;;  %v1977_v2 = vadd.f32 %v1976_v58, %v13148_v18 }
 0x332   : > { %v13170_v62 = vadd.f32 %v1865_v60, %v13152_v49  ;;  %v1867_v63 = vpop.f32.mrb[6].mxu0  ;;  %v1980_v0 = vpop.f32.mrb[6].mxu1  ;;  %v1979_v9 = vadd.f32 %v1978_v61, %v13156_v5 }
 0x333   : > { %v13174_v3 = vadd.f32 %v1867_v63, %v13144_v53  ;;  %v1981_v4 = vadd.f32 %v1980_v0, %v13148_v18  ;;  %v1869_v7 = vpop.f32.mrb[7].mxu0  ;;  %v1982_v8 = vpop.f32.mrb[7].mxu1 }
 0x334   : > { %v13179_v11 = vadd.f32 %v1869_v7, %v13152_v49  ;;  %v1983_v12 = vadd.f32 %v1982_v8, %v13156_v5 }
 0x335   : > { %v2159_v13 = vpack.c.bf16 %v13174_v3, %v13167_v59  ;;  %v2167_v15 = vpack.c.bf16 %v1981_v4, %v1977_v2 }
 0x336   : > { %v2553_v16 = vpack.c.bf16 %v13179_v11, %v13170_v62  ;;  %v2561_v17 = vpack.c.bf16 %v1983_v12, %v1979_v9 }
 0x337   : > { %10143 = vmatprep.subr.bf16.mxu1 %v2167_v15 }
 0x338   : > { %v1873_v20 = vpop.f32.mrb[8].mxu0  ;;  %v1986_v21 = vpop.f32.mrb[8].mxu1  ;;  %10144 = vmatpush3.bf16.xpose.msra.mxu1 %v2167_v15  ;;  %10207 = vmatprep.subr.bf16.mxu0 %v2561_v17 }
 0x339   : > { %v13187_v22 = vadd.f32 %v1873_v20, %v13144_v53  ;;  %v1875_v23 = vpop.f32.mrb[9].mxu0  ;;  %v1988_v24 = vpop.f32.mrb[9].mxu1  ;;  %10208 = vmatpush3.bf16.xpose.msra.mxu0 %v2561_v17  ;;  %v1987_v29 = vadd.f32 %v1986_v21, %v13148_v18 }
 0x33a   : > { %v13190_v27 = vadd.f32 %v1875_v23, %v13152_v49  ;;  %v1877_v19 = vpop.f32.mrb[10].mxu0  ;;  %v1990_v28 = vpop.f32.mrb[10].mxu1  ;;  %v1989_v35 = vadd.f32 %v1988_v24, %v13156_v5 }
 0x33b   : > { %v13194_v30 = vadd.f32 %v1877_v19, %v13144_v53  ;;  %v1991_v31 = vadd.f32 %v1990_v28, %v13148_v18  ;;  %v1879_v33 = vpop.f32.mrb[11].mxu0  ;;  %v1992_v34 = vpop.f32.mrb[11].mxu1 }
 0x33c   : > { %v13199_v26 = vadd.f32 %v1879_v33, %v13152_v49  ;;  %v1993_v39 = vadd.f32 %v1992_v34, %v13156_v5 }
 0x33d   : > { %v2160_v14 = vpack.c.bf16 %v13194_v30, %v13187_v22  ;;  %v2168_v32 = vpack.c.bf16 %v1991_v31, %v1987_v29 }
 0x33e   : > { %v2554_v36 = vpack.c.bf16 %v13199_v26, %v13190_v27  ;;  %v2562_v37 = vpack.c.bf16 %v1993_v39, %v1989_v35 }
 0x33f   : > { %10145 = vmatprep.subr.bf16.mxu1 %v2168_v32 }
 0x340   : > { %v1883_v38 = vpop.f32.mrb[12].mxu0  ;;  %v1996_v40 = vpop.f32.mrb[12].mxu1  ;;  %10146 = vmatpush3.bf16.xpose.msra.mxu1 %v2168_v32  ;;  %10209 = vmatprep.subr.bf16.mxu0 %v2562_v37 }
 0x341   : > { %v13207_v41 = vadd.f32 %v1883_v38, %v13144_v53  ;;  %v1885_v42 = vpop.f32.mrb[13].mxu0  ;;  %v1998_v43 = vpop.f32.mrb[13].mxu1  ;;  %10210 = vmatpush3.bf16.xpose.msra.mxu0 %v2562_v37  ;;  %v1997_v50 = vadd.f32 %v1996_v40, %v13148_v18 }
 0x342   : > { %v13210_v44 = vadd.f32 %v1885_v42, %v13152_v49  ;;  %v1887_v45 = vpop.f32.mrb[14].mxu0  ;;  %v2000_v46 = vpop.f32.mrb[14].mxu1  ;;  %v1999_v56 = vadd.f32 %v1998_v43, %v13156_v5 }
 0x343   : > { %v13214_v51 = vadd.f32 %v1887_v45, %v13144_v53  ;;  %v2001_v52 = vadd.f32 %v2000_v46, %v13148_v18  ;;  %v1889_v54 = vpop.f32.mrb[15].mxu0  ;;  %v2002_v55 = vpop.f32.mrb[15].mxu1 }
 0x344   : > { %v13219_v57 = vadd.f32 %v1889_v54, %v13152_v49  ;;  %v2003_v58 = vadd.f32 %v2002_v55, %v13156_v5 }
 0x345   : > { %v2161_v60 = vpack.c.bf16 %v13214_v51, %v13207_v41  ;;  %v2169_v61 = vpack.c.bf16 %v2001_v52, %v1997_v50 }
 0x346   : > { %v2555_v63 = vpack.c.bf16 %v13219_v57, %v13210_v44  ;;  %v2563_v0 = vpack.c.bf16 %v2003_v58, %v1999_v56 }
 0x347   : > { %10147 = vmatprep.subr.bf16.mxu1 %v2169_v61 }
 0x348   : > { %v1893_v2 = vpop.f32.mrb[16].mxu0  ;;  %v2006_v4 = vpop.f32.mrb[16].mxu1  ;;  %10148 = vmatpush3.bf16.xpose.msra.mxu1 %v2169_v61  ;;  %10211 = vmatprep.subr.bf16.mxu0 %v2563_v0 }
 0x349   : > { %v13227_v7 = vadd.f32 %v1893_v2, %v13144_v53  ;;  %v1895_v8 = vpop.f32.mrb[17].mxu0  ;;  %v2008_v9 = vpop.f32.mrb[17].mxu1  ;;  %10212 = vmatpush3.bf16.xpose.msra.mxu0 %v2563_v0  ;;  %v2007_v20 = vadd.f32 %v2006_v4, %v13148_v18 }
 0x34a   : > { %v13230_v12 = vadd.f32 %v1895_v8, %v13152_v49  ;;  %v1897_v15 = vpop.f32.mrb[18].mxu0  ;;  %v2010_v17 = vpop.f32.mrb[18].mxu1  ;;  %v2009_v28 = vadd.f32 %v2008_v9, %v13156_v5 }
 0x34b   : > { %v13234_v21 = vadd.f32 %v1897_v15, %v13144_v53  ;;  %v2011_v23 = vadd.f32 %v2010_v17, %v13148_v18  ;;  %v1899_v24 = vpop.f32.mrb[19].mxu0  ;;  %v2012_v19 = vpop.f32.mrb[19].mxu1 }
 0x34c   : > { %v13239_v29 = vadd.f32 %v1899_v24, %v13152_v49  ;;  %v2013_v31 = vadd.f32 %v2012_v19, %v13156_v5 }
 0x34d   : > { %v2162_v33 = vpack.c.bf16 %v13234_v21, %v13227_v7  ;;  %v2170_v34 = vpack.c.bf16 %v2011_v23, %v2007_v20 }
 0x34e   : > { %v2556_v35 = vpack.c.bf16 %v13239_v29, %v13230_v12  ;;  %v2564_v39 = vpack.c.bf16 %v2013_v31, %v2009_v28 }
 0x34f   : > { %10149 = vmatprep.subr.bf16.mxu1 %v2170_v34 }
 0x350   : > { %v1903_v32 = vpop.f32.mrb[20].mxu0  ;;  %v2016_v37 = vpop.f32.mrb[20].mxu1  ;;  %10150 = vmatpush3.bf16.xpose.msra.mxu1 %v2170_v34  ;;  %10213 = vmatprep.subr.bf16.mxu0 %v2564_v39 }
 0x351   : > { %v13247_v38 = vadd.f32 %v1903_v32, %v13144_v53  ;;  %v1905_v40 = vpop.f32.mrb[21].mxu0  ;;  %v2018_v42 = vpop.f32.mrb[21].mxu1  ;;  %10214 = vmatpush3.bf16.xpose.msra.mxu0 %v2564_v39  ;;  %v2017_v50 = vadd.f32 %v2016_v37, %v13148_v18 }
 0x352   : > { %v13250_v43 = vadd.f32 %v1905_v40, %v13152_v49  ;;  %v1907_v45 = vpop.f32.mrb[22].mxu0  ;;  %v2020_v46 = vpop.f32.mrb[22].mxu1  ;;  %v2019_v58 = vadd.f32 %v2018_v42, %v13156_v5 }
 0x353   : > { %v13254_v52 = vadd.f32 %v1907_v45, %v13144_v53  ;;  %v2021_v54 = vadd.f32 %v2020_v46, %v13148_v18  ;;  %v1909_v55 = vpop.f32.mrb[23].mxu0  ;;  %v2022_v56 = vpop.f32.mrb[23].mxu1 }
 0x354   : > { %v13259_v61 = vadd.f32 %v1909_v55, %v13152_v49  ;;  %v2023_v0 = vadd.f32 %v2022_v56, %v13156_v5 }
 0x355   : > { %v2163_v2 = vpack.c.bf16 %v13254_v52, %v13247_v38  ;;  %v2171_v4 = vpack.c.bf16 %v2021_v54, %v2017_v50 }
 0x356   : > { %v2557_v8 = vpack.c.bf16 %v13259_v61, %v13250_v43  ;;  %v2565_v9 = vpack.c.bf16 %v2023_v0, %v2019_v58 }
 0x357   : > { %10151 = vmatprep.subr.bf16.mxu1 %v2171_v4 }
 0x358   : > { %v1913_v15 = vpop.f32.mrb[24].mxu0  ;;  %v2026_v17 = vpop.f32.mrb[24].mxu1  ;;  %10152 = vmatpush3.bf16.xpose.msra.mxu1 %v2171_v4  ;;  %10215 = vmatprep.subr.bf16.mxu0 %v2565_v9 }
 0x359   : > { %v13267_v20 = vadd.f32 %v1913_v15, %v13144_v53  ;;  %v1915_v23 = vpop.f32.mrb[25].mxu0  ;;  %v2028_v24 = vpop.f32.mrb[25].mxu1  ;;  %10216 = vmatpush3.bf16.xpose.msra.mxu0 %v2565_v9  ;;  %v2027_v34 = vadd.f32 %v2026_v17, %v13148_v18 }
 0x35a   : > { %v13270_v19 = vadd.f32 %v1915_v23, %v13152_v49  ;;  %v1917_v28 = vpop.f32.mrb[26].mxu0  ;;  %v2030_v31 = vpop.f32.mrb[26].mxu1  ;;  %v2029_v42 = vadd.f32 %v2028_v24, %v13156_v5 }
 0x35b   : > { %v13274_v39 = vadd.f32 %v1917_v28, %v13144_v53  ;;  %v2031_v32 = vadd.f32 %v2030_v31, %v13148_v18  ;;  %v1919_v37 = vpop.f32.mrb[27].mxu0  ;;  %v2032_v40 = vpop.f32.mrb[27].mxu1 }
 0x35c   : > { %v13279_v45 = vadd.f32 %v1919_v37, %v13152_v49  ;;  %v2033_v46 = vadd.f32 %v2032_v40, %v13156_v5  ;;  %v1327_v40 = vsub.s32 4, %v12994_v1 }
 0x35d   : > { %v2164_v50 = vpack.c.bf16 %v13274_v39, %v13267_v20  ;;  %v2172_v54 = vpack.c.bf16 %v2031_v32, %v2027_v34 }
 0x35e   : > { %v2558_v55 = vpack.c.bf16 %v13279_v45, %v13270_v19  ;;  %v2566_v56 = vpack.c.bf16 %v2033_v46, %v2029_v42 }
 0x35f   : > { %10153 = vmatprep.subr.bf16.mxu1 %v2172_v54 }
 0x360   : > { %v1923_v58 = vpop.f32.mrb[28].mxu0  ;;  %v2036_v0 = vpop.f32.mrb[28].mxu1  ;;  %10154 = vmatpush3.bf16.xpose.msra.mxu1 %v2172_v54  ;;  %10217 = vmatprep.subr.bf16.mxu0 %v2566_v56 }
 0x361   : > { %v13287_v4 = vadd.f32 %v1923_v58, %v13144_v53  ;;  %v1925_v9 = vpop.f32.mrb[29].mxu0  ;;  %v2038_v15 = vpop.f32.mrb[29].mxu1  ;;  %10218 = vmatpush3.bf16.xpose.msra.mxu0 %v2566_v56  ;;  %v2037_v28 = vadd.f32 %v2036_v0, %v13148_v18  ;;  %v1331_v56 = vsub.s32 5, %v12994_v1 }
 0x362   : > { %v13290_v17 = vadd.f32 %v1925_v9, %v13152_v49  ;;  %v1927_v23 = vpop.f32.mrb[30].mxu0  ;;  %v2040_v24 = vpop.f32.mrb[30].mxu1  ;;  %v2039_v42 = vadd.f32 %v2038_v15, %v13156_v5  ;;  %v13309_v9 = vrot.slane %v13137_v47, %v1327_v40 }
 0x363   : > { %v13294_v31 = vadd.f32 %v1927_v23, %v13144_v53  ;;  %v2041_v34 = vadd.f32 %v2040_v24, %v13148_v18  ;;  %v1929_v32 = vpop.f32.mrb[31].mxu0  ;;  %v2042_v37 = vpop.f32.mrb[31].mxu1 }
 0x364   : > { %v13300_v46 = vadd.f32 %v1929_v32, %v13152_v49  ;;  %v2043_v54 = vadd.f32 %v2042_v37, %v13156_v5  ;;  %v13312_v49 = vrot.slane %v13137_v47, %v1331_v56 }
 0x365   : > { %v2165_v58 = vpack.c.bf16 %v13294_v31, %v13287_v4  ;;  %v2173_v53 = vpack.c.bf16 %v2041_v34, %v2037_v28 }
 0x366   : > { %v2559_v18 = vpack.c.bf16 %v13300_v46, %v13290_v17  ;;  %v2567_v0 = vpack.c.bf16 %v2043_v54, %v2039_v42 }
 0x367   : > { %10155 = vmatprep.subr.bf16.mxu1 %v2173_v53 }
 0x368   : > { %v2079_v15 = vpop.f32.mrb[32].mxu0  ;;  %10156 = vmatpush3.bf16.xpose.msra.mxu1 %v2173_v53  ;;  %10219 = vmatprep.subr.bf16.mxu0 %v2567_v0 }
 0x369   : > { %v2081_v5 = vpop.f32.mrb[33].mxu0  ;;  %10220 = vmatpush3.bf16.xpose.msra.mxu0 %v2567_v0  ;;  %v2080_v23 = vadd.f32 %v2079_v15, %v13309_v9 }
 0x36a   : > { %v2083_v1 = vpop.f32.mrb[34].mxu0  ;;  %v2082_v34 = vadd.f32 %v2081_v5, %v13312_v49 }
 0x36b   : > { %v2084_v24 = vadd.f32 %v2083_v1, %v13309_v9  ;;  %v2085_v28 = vpop.f32.mrb[35].mxu0 }
 0x36c   : > { %v2086_v32 = vadd.f32 %v2085_v28, %v13312_v49 }
 0x36d   : > { %v2174_v37 = vpack.c.bf16 %v2084_v24, %v2080_v23 }
 0x36e   : > { %v13318_v40 = vpack.c.bf16 %v2086_v32, %v2082_v34 }
 0x36f   : > { %10158 = vmatmul.mubr.bf16.vlgmr.msra.gmra.mrb[32].mxu1 %v2159_v13  ;;  %10173 = vmatprep.subr.bf16.mxu1 %v2174_v37 }
 0x370   : > { %v2089_v47 = vpop.f32.mrb[36].mxu0  ;;  %10161 = vmatprep.mubr.bf16.mxu1 %v2160_v14  ;;  %10174 = vmatpush3.bf16.msra.mxu1 %v2174_v37 }
 0x371   : > { %10222 = vmatmul.mubr.bf16.vlgmr.msra.gmra.mrb[64].mxu0 %v2553_v16  ;;  %v2091_v42 = vpop.f32.mrb[37].mxu0  ;;  %v2090_v3 = vadd.f32 %v2089_v47, %v13309_v9 }
 0x372   : > { %v2092_v54 = vadd.f32 %v2091_v42, %v13312_v49  ;;  %10225 = vmatprep.mubr.bf16.mxu0 %v2554_v36  ;;  %v2093_v59 = vpop.f32.mrb[38].mxu0 }
 0x373   : > { %v2094_v13 = vadd.f32 %v2093_v59, %v13309_v9  ;;  %v2095_v56 = vpop.f32.mrb[39].mxu0 }
 0x374   : > { %v2096_v22 = vadd.f32 %v2095_v56, %v13312_v49 }
 0x375   : > { %v2175_v30 = vpack.c.bf16 %v2094_v13, %v2090_v3 }
 0x376   : > { %v13336_v14 = vpack.c.bf16 %v2096_v22, %v2092_v54 }
 0x377   : > { %10162 = vmatmul.mubr.bf16.gmra.mrb[36].mxu1 %v2161_v60  ;;  %10175 = vmatprep.subr.bf16.mxu1 %v2175_v30 }
 0x378   : > { %v2099_v62 = vpop.f32.mrb[40].mxu0  ;;  %10165 = vmatprep.mubr.bf16.mxu1 %v2162_v33  ;;  %10176 = vmatpush3.bf16.msra.mxu1 %v2175_v30 }
 0x379   : > { %10226 = vmatmul.mubr.bf16.gmra.mrb[68].mxu0 %v2555_v63  ;;  %v2101_v11 = vpop.f32.mrb[41].mxu0  ;;  %v2100_v26 = vadd.f32 %v2099_v62, %v13309_v9 }
 0x37a   : > { %v2102_v16 = vadd.f32 %v2101_v11, %v13312_v49  ;;  %10229 = vmatprep.mubr.bf16.mxu0 %v2556_v35  ;;  %v2103_v27 = vpop.f32.mrb[42].mxu0 }
 0x37b   : > { %v2104_v36 = vadd.f32 %v2103_v27, %v13309_v9  ;;  %v2105_v41 = vpop.f32.mrb[43].mxu0 }
 0x37c   : > { %v2106_v51 = vadd.f32 %v2105_v41, %v13312_v49 }
 0x37d   : > { %v2176_v60 = vpack.c.bf16 %v2104_v36, %v2100_v26 }
 0x37e   : > { %v13354_v7 = vpack.c.bf16 %v2106_v51, %v2102_v16 }
 0x37f   : > { %10166 = vmatmul.mubr.bf16.gmra.mrb[40].mxu1 %v2163_v2  ;;  %10177 = vmatprep.subr.bf16.mxu1 %v2176_v60 }
 0x380   : > { %v2109_v44 = vpop.f32.mrb[44].mxu0  ;;  %10169 = vmatprep.mubr.bf16.mxu1 %v2164_v50  ;;  %10178 = vmatpush3.bf16.msra.mxu1 %v2176_v60 }
 0x381   : > { %10230 = vmatmul.mubr.bf16.gmra.mrb[72].mxu0 %v2557_v8  ;;  %v2111_v57 = vpop.f32.mrb[45].mxu0  ;;  %v2110_v21 = vadd.f32 %v2109_v44, %v13309_v9 }
 0x382   : > { %v2112_v63 = vadd.f32 %v2111_v57, %v13312_v49  ;;  %10233 = vmatprep.mubr.bf16.mxu0 %v2558_v55  ;;  %v2113_v12 = vpop.f32.mrb[46].mxu0 }
 0x383   : > { %v2114_v29 = vadd.f32 %v2113_v12, %v13309_v9  ;;  %v2115_v33 = vpop.f32.mrb[47].mxu0 }
 0x384   : > { %v2116_v35 = vadd.f32 %v2115_v33, %v13312_v49 }
 0x385   : > { %v2177_v38 = vpack.c.bf16 %v2114_v29, %v2110_v21 }
 0x386   : > { %v13372_v52 = vpack.c.bf16 %v2116_v35, %v2112_v63 }
 0x387   : > { %10170 = vmatmul.mubr.bf16.gmra.mrb[44].mxu1 %v2165_v58  ;;  %10179 = vmatprep.subr.bf16.mxu1 %v2177_v38 }
 0x388   : > { %v2119_v43 = vpop.f32.mrb[48].mxu0  ;;  %10180 = vmatpush3.bf16.msra.mxu1 %v2177_v38 }
 0x389   : > { %10234 = vmatmul.mubr.bf16.gmra.mrb[76].mxu0 %v2559_v18  ;;  %v2121_v61 = vpop.f32.mrb[49].mxu0  ;;  %v2120_v20 = vadd.f32 %v2119_v43, %v13309_v9 }
 0x38a   : > { %v2122_v2 = vadd.f32 %v2121_v61, %v13312_v49  ;;  %v2123_v8 = vpop.f32.mrb[50].mxu0 }
 0x38b   : > { %v2124_v19 = vadd.f32 %v2123_v8, %v13309_v9  ;;  %v2125_v39 = vpop.f32.mrb[51].mxu0 }
 0x38c   : > { %v2126_v45 = vadd.f32 %v2125_v39, %v13312_v49 }
 0x38d   : > { %v2178_v50 = vpack.c.bf16 %v2124_v19, %v2120_v20 }
 0x38e   : > { %v13384_v55 = vpack.c.bf16 %v2126_v45, %v2122_v2 }
 0x38f   : > { %10181 = vmatprep.subr.bf16.mxu1 %v2178_v50 }
 0x390   : > { %v2129_v4 = vpop.f32.mrb[52].mxu0  ;;  %10182 = vmatpush3.bf16.msra.mxu1 %v2178_v50 }
 0x391   : > { %v2131_v31 = vpop.f32.mrb[53].mxu0  ;;  %v2130_v58 = vadd.f32 %v2129_v4, %v13309_v9 }
 0x392   : > { %v2132_v17 = vadd.f32 %v2131_v31, %v13312_v49  ;;  %v2133_v46 = vpop.f32.mrb[54].mxu0 }
 0x393   : > { %v2134_v53 = vadd.f32 %v2133_v46, %v13309_v9  ;;  %v2135_v18 = vpop.f32.mrb[55].mxu0 }
 0x394   : > { %v2136_v0 = vadd.f32 %v2135_v18, %v13312_v49 }
 0x395   : > { %v2179_v15 = vpack.c.bf16 %v2134_v53, %v2130_v58 }
 0x396   : > { %v13390_v5 = vpack.c.bf16 %v2136_v0, %v2132_v17 }
 0x397   : > { %10183 = vmatprep.subr.bf16.mxu1 %v2179_v15 }
 0x398   : > { %v2139_v1 = vpop.f32.mrb[56].mxu0  ;;  %10184 = vmatpush3.bf16.msra.mxu1 %v2179_v15 }
 0x399   : > { %v2141_v23 = vpop.f32.mrb[57].mxu0  ;;  %v2140_v34 = vadd.f32 %v2139_v1, %v13309_v9 }
 0x39a   : > { %v2142_v24 = vadd.f32 %v2141_v23, %v13312_v49  ;;  %v2143_v28 = vpop.f32.mrb[58].mxu0 }
 0x39b   : > { %v2144_v32 = vadd.f32 %v2143_v28, %v13309_v9  ;;  %v2145_v37 = vpop.f32.mrb[59].mxu0 }
 0x39c   : > { %v2146_v47 = vadd.f32 %v2145_v37, %v13312_v49 }
 0x39d   : > { %v2180_v42 = vpack.c.bf16 %v2144_v32, %v2140_v34 }
 0x39e   : > { %v13396_v54 = vpack.c.bf16 %v2146_v47, %v2142_v24 }
 0x39f   : > { %10185 = vmatprep.subr.bf16.mxu1 %v2180_v42 }
 0x3a0   : > { %v2149_v59 = vpop.f32.mrb[60].mxu0  ;;  %10186 = vmatpush3.bf16.msra.mxu1 %v2180_v42 }
 0x3a1   : > { %v2151_v3 = vpop.f32.mrb[61].mxu0  ;;  %v2150_v22 = vadd.f32 %v2149_v59, %v13309_v9 }
 0x3a2   : > { %v2152_v13 = vadd.f32 %v2151_v3, %v13312_v49  ;;  %v2153_v56 = vpop.f32.mrb[62].mxu0 }
 0x3a3   : > { %v2154_v30 = vadd.f32 %v2153_v56, %v13309_v9  ;;  %v2155_v62 = vpop.f32.mrb[63].mxu0 }
 0x3a4   : > { %v2156_v11 = vadd.f32 %v2155_v62, %v13312_v49 }
 0x3a5   : > { %v2181_v16 = vpack.c.bf16 %v2154_v30, %v2150_v22 }
 0x3a6   : > { %v13402_v27 = vpack.c.bf16 %v2156_v11, %v2152_v13 }
 0x3a7   : > { %10187 = vmatprep.subr.bf16.mxu1 %v2181_v16 }
 0x3a8   : > { %10188 = vmatpush3.bf16.msra.mxu1 %v2181_v16 }
 0x3a9   : > { %10237 = vmatprep.subr.bf16.mxu1 %v13318_v40 }
 0x442   : > { %v13405_v26 = vpop.f32.mrb[32].mxu1 }
 0x443   : > { %v13407_v36 = vpop.f32.mrb[33].mxu1 }
 0x444   : > { %v13409_v41 = vpop.f32.mrb[64].mxu0  ;;  %2279 = vmax.xlane.f32.xlu0 %v13407_v36  ;;  %v13412_v51 = vpop.f32.mrb[34].mxu1 }
 0x445   : > { %v13414_v9 = vpop.f32.mrb[65].mxu0  ;;  %v13416_v49 = vpop.f32.mrb[35].mxu1 }
 0x446   : > { %v13418_v60 = vpop.f32.mrb[66].mxu0  ;;  %2281 = vmax.xlane.f32.xlu1 %v13416_v49 }
 0x447   : > { %v13421_v44 = vpop.f32.mrb[67].mxu0 }
 0x448   : > { %2283 = vmax.xlane.f32.xlu0 %v13405_v26 }
 0x44a   : > { %2285 = vmax.xlane.f32.xlu1 %v13412_v51  ;;  %v13425_v57 = vpop.f32.mrb[36].mxu1 }
 0x44b   : > { %v13427_v63 = vpop.f32.mrb[37].mxu1 }
 0x44c   : > { %v13429_v12 = vpop.f32.mrb[68].mxu0  ;;  %2287 = vmax.xlane.f32.xlu0 %v13427_v63  ;;  %v13432_v21 = vpop.f32.mrb[38].mxu1 }
 0x44d   : > { %v13434_v29 = vpop.f32.mrb[69].mxu0  ;;  %v13436_v33 = vpop.f32.mrb[39].mxu1 }
 0x44e   : > { %v13438_v35 = vpop.f32.mrb[70].mxu0  ;;  %2289 = vmax.xlane.f32.xlu1 %v13436_v33 }
 0x44f   : > { %v13441_v38 = vpop.f32.mrb[71].mxu0 }
 0x450   : > { %2291 = vmax.xlane.f32.xlu0 %v13425_v57 }
 0x452   : > { %2293 = vmax.xlane.f32.xlu1 %v13432_v21  ;;  %v13445_v43 = vpop.f32.mrb[40].mxu1 }
 0x453   : > { %v13447_v61 = vpop.f32.mrb[41].mxu1 }
 0x454   : > { %v13449_v2 = vpop.f32.mrb[72].mxu0  ;;  %2295 = vmax.xlane.f32.xlu0 %v13447_v61  ;;  %v13452_v8 = vpop.f32.mrb[42].mxu1 }
 0x455   : > { %v13454_v20 = vpop.f32.mrb[73].mxu0  ;;  %v13456_v19 = vpop.f32.mrb[43].mxu1 }
 0x456   : > { %v13458_v39 = vpop.f32.mrb[74].mxu0  ;;  %2297 = vmax.xlane.f32.xlu1 %v13456_v19 }
 0x457   : > { %v13461_v45 = vpop.f32.mrb[75].mxu0 }
 0x458   : > { %2299 = vmax.xlane.f32.xlu0 %v13445_v43 }
 0x45a   : > { %2301 = vmax.xlane.f32.xlu1 %v13452_v8  ;;  %v13465_v50 = vpop.f32.mrb[44].mxu1 }
 0x45b   : > { %v13467_v4 = vpop.f32.mrb[45].mxu1 }
 0x45c   : > { %v13469_v31 = vpop.f32.mrb[76].mxu0  ;;  %2303 = vmax.xlane.f32.xlu0 %v13467_v4  ;;  %v13472_v17 = vpop.f32.mrb[46].mxu1 }
 0x45d   : > { %v13474_v46 = vpop.f32.mrb[77].mxu0  ;;  %v13476_v58 = vpop.f32.mrb[47].mxu1 }
 0x45e   : > { %v13478_v53 = vpop.f32.mrb[78].mxu0  ;;  %2305 = vmax.xlane.f32.xlu1 %v13476_v58 }
 0x45f   : > { %v13481_v18 = vpop.f32.mrb[79].mxu0 }
 0x460   : > { %2307 = vmax.xlane.f32.xlu0 %v13465_v50 }
 0x462   : > { %2309 = vmax.xlane.f32.xlu1 %v13472_v17 }
 0x464   : > { %2673 = vmax.xlane.f32.xlu0 %v13414_v9 }
 0x466   : > { %2675 = vmax.xlane.f32.xlu1 %v13421_v44 }
 0x468   : > { %2677 = vmax.xlane.f32.xlu0 %v13409_v41 }
 0x46a   : > { %2679 = vmax.xlane.f32.xlu1 %v13418_v60 }
 0x46c   : > { %2681 = vmax.xlane.f32.xlu0 %v13434_v29 }
 0x46e   : > { %2683 = vmax.xlane.f32.xlu1 %v13441_v38 }
 0x470   : > { %2685 = vmax.xlane.f32.xlu0 %v13429_v12 }
 0x472   : > { %2687 = vmax.xlane.f32.xlu1 %v13438_v35 }
 0x474   : > { %2689 = vmax.xlane.f32.xlu0 %v13454_v20 }
 0x476   : > { %2691 = vmax.xlane.f32.xlu1 %v13461_v45 }
 0x478   : > { %2693 = vmax.xlane.f32.xlu0 %v13449_v2 }
 0x47a   : > { %2695 = vmax.xlane.f32.xlu1 %v13458_v39 }
 0x47c   : > { %2697 = vmax.xlane.f32.xlu0 %v13474_v46 }
 0x47e   : > { %2703 = vmax.xlane.f32.xlu1 %v13478_v53 }
 0x480   : > { %2701 = vmax.xlane.f32.xlu0 %v13469_v31 }
 0x482   : > { %2699 = vmax.xlane.f32.xlu1 %v13481_v18 }
 0x4d1   : > { %v2280_v0 = vpop.xlane.xlu0 %2279 }
 0x4d2   : > { %v2311_v15 = vsub.f32 %v13407_v36, %v2280_v0 }
 0x4d3   : > { %v2282_v1 = vpop.xlane.xlu1 %2281 }
 0x4d4   : > { %v2327_v23 = vmul.f32 1.442695, %v2311_v15  ;;  %v2312_v24 = vsub.f32 %v13416_v49, %v2282_v1 }
 0x4d5   : > { %v2284_v28 = vpop.xlane.xlu0 %2283 }
 0x4d6   : > { %11009 = vpow2.f32 %v2327_v23  ;;  %v2329_v34 = vmul.f32 1.442695, %v2312_v24  ;;  %v2313_v32 = vsub.f32 %v13405_v26, %v2284_v28 }
 0x4d7   : > { %v2286_v37 = vpop.xlane.xlu1 %2285 }
 0x4d8   : > { %11011 = vpow2.f32 %v2329_v34  ;;  %v2331_v47 = vmul.f32 1.442695, %v2313_v32  ;;  %v2314_v42 = vsub.f32 %v13412_v51, %v2286_v37 }
 0x4d9   : > { %v2288_v59 = vpop.xlane.xlu0 %2287 }
 0x4da   : > { %11013 = vpow2.f32 %v2331_v47  ;;  %v2333_v3 = vmul.f32 1.442695, %v2314_v42  ;;  %v2315_v13 = vsub.f32 %v13427_v63, %v2288_v59 }
 0x4db   : > { %v2290_v56 = vpop.xlane.xlu1 %2289 }
 0x4dc   : > { %11015 = vpow2.f32 %v2333_v3  ;;  %v2335_v22 = vmul.f32 1.442695, %v2315_v13  ;;  %v2316_v30 = vsub.f32 %v13436_v33, %v2290_v56 }
 0x4dd   : > { %v2292_v62 = vpop.xlane.xlu0 %2291 }
 0x4de   : > { %11017 = vpow2.f32 %v2335_v22  ;;  %v2337_v11 = vmul.f32 1.442695, %v2316_v30  ;;  %v2317_v16 = vsub.f32 %v13425_v57, %v2292_v62 }
 0x4df   : > { %v2294_v26 = vpop.xlane.xlu1 %2293 }
 0x4e0   : > { %v13508_v36 = vpop.eup %11009  ;;  %11019 = vpow2.f32 %v2337_v11  ;;  %v2339_v51 = vmul.f32 1.442695, %v2317_v16  ;;  %v2318_v49 = vsub.f32 %v13432_v21, %v2294_v26 }
 0x4e1   : > { %v2296_v0 = vpop.xlane.xlu0 %2295  ;;  %2359 = vadd.xlane.f32.xlu0 %v13508_v36 }
 0x4e2   : > { %v13512_v63 = vpop.eup %11011  ;;  %11021 = vpow2.f32 %v2339_v51  ;;  %v2341_v15 = vmul.f32 1.442695, %v2318_v49  ;;  %v2319_v33 = vsub.f32 %v13447_v61, %v2296_v0 }
 0x4e3   : > { %v2298_v1 = vpop.xlane.xlu1 %2297  ;;  %2361 = vadd.xlane.f32.xlu1 %v13512_v63 }
 0x4e4   : > { %v13516_v57 = vpop.eup %11013  ;;  %11023 = vpow2.f32 %v2341_v15  ;;  %v2343_v23 = vmul.f32 1.442695, %v2319_v33  ;;  %v2320_v24 = vsub.f32 %v13456_v19, %v2298_v1 }
 0x4e5   : > { %v2300_v28 = vpop.xlane.xlu0 %2299  ;;  %2363 = vadd.xlane.f32.xlu0 %v13516_v57 }
 0x4e6   : > { %v13520_v21 = vpop.eup %11015  ;;  %11025 = vpow2.f32 %v2343_v23  ;;  %v2345_v34 = vmul.f32 1.442695, %v2320_v24  ;;  %v2321_v32 = vsub.f32 %v13445_v43, %v2300_v28 }
 0x4e7   : > { %v2302_v37 = vpop.xlane.xlu1 %2301  ;;  %2365 = vadd.xlane.f32.xlu1 %v13520_v21 }
 0x4e8   : > { %v13524_v61 = vpop.eup %11017  ;;  %11027 = vpow2.f32 %v2345_v34  ;;  %v2347_v47 = vmul.f32 1.442695, %v2321_v32  ;;  %v2322_v42 = vsub.f32 %v13452_v8, %v2302_v37 }
 0x4e9   : > { %2367 = vadd.xlane.f32.xlu0 %v13524_v61  ;;  %v2304_v19 = vpop.xlane.xlu0 %2303 }
 0x4ea   : > { %v13528_v59 = vpop.eup %11019  ;;  %11029 = vpow2.f32 %v2347_v47  ;;  %v2349_v3 = vmul.f32 1.442695, %v2322_v42  ;;  %v2323_v13 = vsub.f32 %v13467_v4, %v2304_v19 }
 0x4eb   : > { %2369 = vadd.xlane.f32.xlu1 %v13528_v59  ;;  %v2306_v43 = vpop.xlane.xlu1 %2305 }
 0x4ec   : > { %v13532_v56 = vpop.eup %11021  ;;  %11031 = vpow2.f32 %v2349_v3  ;;  %v2351_v22 = vmul.f32 1.442695, %v2323_v13  ;;  %v2324_v30 = vsub.f32 %v13476_v58, %v2306_v43 }
 0x4ed   : > { %2371 = vadd.xlane.f32.xlu0 %v13532_v56  ;;  %v2308_v8 = vpop.xlane.xlu0 %2307 }
 0x4ee   : > { %v13536_v62 = vpop.eup %11023  ;;  %11033 = vpow2.f32 %v2351_v22  ;;  %v2353_v11 = vmul.f32 1.442695, %v2324_v30  ;;  %v2325_v16 = vsub.f32 %v13465_v50, %v2308_v8 }
 0x4ef   : > { %2373 = vadd.xlane.f32.xlu1 %v13536_v62  ;;  %v2310_v4 = vpop.xlane.xlu1 %2309 }
 0x4f0   : > { %v13540_v26 = vpop.eup %11025  ;;  %11035 = vpow2.f32 %v2353_v11  ;;  %v2355_v51 = vmul.f32 1.442695, %v2325_v16  ;;  %v2326_v49 = vsub.f32 %v13472_v17, %v2310_v4 }
 0x4f1   : > { %2375 = vadd.xlane.f32.xlu0 %v13540_v26  ;;  %v2674_v58 = vpop.xlane.xlu0 %2673 }
 0x4f2   : > { %v13544_v0 = vpop.eup %11027  ;;  %11037 = vpow2.f32 %v2355_v51  ;;  %v2357_v15 = vmul.f32 1.442695, %v2326_v49  ;;  %v2705_v33 = vsub.f32 %v13414_v9, %v2674_v58 }
 0x4f3   : > { %2377 = vadd.xlane.f32.xlu1 %v13544_v0  ;;  %v2676_v50 = vpop.xlane.xlu1 %2675 }
 0x4f4   : > { %v13548_v1 = vpop.eup %11029  ;;  %11039 = vpow2.f32 %v2357_v15  ;;  %v2721_v23 = vmul.f32 1.442695, %v2705_v33  ;;  %v2706_v24 = vsub.f32 %v13421_v44, %v2676_v50 }
 0x4f5   : > { %2379 = vadd.xlane.f32.xlu0 %v13548_v1  ;;  %v2678_v17 = vpop.xlane.xlu0 %2677 }
 0x4f6   : > { %v13552_v28 = vpop.eup %11031  ;;  %11041 = vpow2.f32 %v2721_v23  ;;  %v2723_v34 = vmul.f32 1.442695, %v2706_v24  ;;  %v2707_v32 = vsub.f32 %v13409_v41, %v2678_v17 }
 0x4f7   : > { %2381 = vadd.xlane.f32.xlu1 %v13552_v28  ;;  %v2680_v9 = vpop.xlane.xlu1 %2679 }
 0x4f8   : > { %v13556_v37 = vpop.eup %11033  ;;  %11043 = vpow2.f32 %v2723_v34  ;;  %v2725_v47 = vmul.f32 1.442695, %v2707_v32  ;;  %v2708_v42 = vsub.f32 %v13418_v60, %v2680_v9 }
 0x4f9   : > { %2383 = vadd.xlane.f32.xlu0 %v13556_v37  ;;  %v2682_v44 = vpop.xlane.xlu0 %2681 }
 0x4fa   : > { %v13560_v19 = vpop.eup %11035  ;;  %11045 = vpow2.f32 %v2725_v47  ;;  %v2727_v3 = vmul.f32 1.442695, %v2708_v42  ;;  %v2709_v13 = vsub.f32 %v13434_v29, %v2682_v44 }
 0x4fb   : > { %2385 = vadd.xlane.f32.xlu1 %v13560_v19  ;;  %v2684_v41 = vpop.xlane.xlu1 %2683 }
 0x4fc   : > { %v13564_v43 = vpop.eup %11037  ;;  %11047 = vpow2.f32 %v2727_v3  ;;  %v2729_v22 = vmul.f32 1.442695, %v2709_v13  ;;  %v2710_v30 = vsub.f32 %v13441_v38, %v2684_v41 }
 0x4fd   : > { %2387 = vadd.xlane.f32.xlu0 %v13564_v43  ;;  %v2686_v60 = vpop.xlane.xlu0 %2685 }
 0x4fe   : > { %v13568_v8 = vpop.eup %11039  ;;  %11049 = vpow2.f32 %v2729_v22  ;;  %v2731_v11 = vmul.f32 1.442695, %v2710_v30  ;;  %v2711_v16 = vsub.f32 %v13429_v12, %v2686_v60 }
 0x4ff   : > { %2389 = vadd.xlane.f32.xlu1 %v13568_v8  ;;  %v2688_v29 = vpop.xlane.xlu1 %2687 }
 0x500   : > { %v13572_v4 = vpop.eup %11041  ;;  %11051 = vpow2.f32 %v2731_v11  ;;  %v2733_v51 = vmul.f32 1.442695, %v2711_v16  ;;  %v2712_v49 = vsub.f32 %v13438_v35, %v2688_v29 }
 0x501   : > { %2753 = vadd.xlane.f32.xlu0 %v13572_v4  ;;  %v2690_v38 = vpop.xlane.xlu0 %2689 }
 0x502   : > { %v13576_v58 = vpop.eup %11043  ;;  %11053 = vpow2.f32 %v2733_v51  ;;  %v2735_v15 = vmul.f32 1.442695, %v2712_v49  ;;  %v2713_v33 = vsub.f32 %v13454_v20, %v2690_v38 }
 0x503   : > { %2755 = vadd.xlane.f32.xlu1 %v13576_v58  ;;  %v2692_v12 = vpop.xlane.xlu1 %2691 }
 0x504   : > { %v13580_v50 = vpop.eup %11045  ;;  %11055 = vpow2.f32 %v2735_v15  ;;  %v2737_v23 = vmul.f32 1.442695, %v2713_v33  ;;  %v2714_v24 = vsub.f32 %v13461_v45, %v2692_v12 }
 0x505   : > { %2757 = vadd.xlane.f32.xlu0 %v13580_v50  ;;  %v2694_v35 = vpop.xlane.xlu0 %2693 }
 0x506   : > { %v13584_v17 = vpop.eup %11047  ;;  %11057 = vpow2.f32 %v2737_v23  ;;  %v2739_v34 = vmul.f32 1.442695, %v2714_v24  ;;  %v2715_v32 = vsub.f32 %v13449_v2, %v2694_v35  ;;  %v10737_v24 = vld [vmem:[%s12843_s30] ss:$8 sps:$4 sm:$0xff]   ;;  %v10739_v35 = vld [vmem:[%s12843_s30 + $0x4] ss:$8 sps:$4 sm:$0xff]  }
 0x507   : > { %2759 = vadd.xlane.f32.xlu1 %v13584_v17  ;;  %v2696_v20 = vpop.xlane.xlu1 %2695  ;;  %3219 = vmatprep.subr.bf16.mxu0 %v10739_v35 }
 0x508   : > { %v13588_v9 = vpop.eup %11049  ;;  %11059 = vpow2.f32 %v2739_v34  ;;  %v2741_v47 = vmul.f32 1.442695, %v2715_v32  ;;  %v2716_v42 = vsub.f32 %v13458_v39, %v2696_v20  ;;  %v10742_v34 = vld [vmem:[%s12843_s30 + $0x14] ss:$8 sps:$4 sm:$0xff]   ;;  %3220 = vmatpush1.bf16.msra.mxu0 %v10737_v24  ;;  %v10740_v32 = vld [vmem:[%s12843_s30 + $0x10] ss:$8 sps:$4 sm:$0xff]  }
 0x509   : > { %2761 = vadd.xlane.f32.xlu0 %v13588_v9  ;;  %v2698_v45 = vpop.xlane.xlu0 %2697  ;;  %3221 = vmatprep.subr.bf16.mxu0 %v10742_v34  ;;  %v10745_v20 = vld [vmem:[%s12843_s30 + $0x24] ss:$8 sps:$4 sm:$0xff]  }
 0x50a   : > { %v13592_v44 = vpop.eup %11051  ;;  %11061 = vpow2.f32 %v2741_v47  ;;  %v2743_v3 = vmul.f32 1.442695, %v2716_v42  ;;  %v2717_v13 = vsub.f32 %v13474_v46, %v2698_v45  ;;  %v10743_v47 = vld [vmem:[%s12843_s30 + $0x20] ss:$8 sps:$4 sm:$0xff]   ;;  %v10748_v42 = vld [vmem:[%s12843_s30 + $0x34] ss:$8 sps:$4 sm:$0xff]  }
 0x50b   : > { %2763 = vadd.xlane.f32.xlu1 %v13592_v44  ;;  %v2704_v2 = vpop.xlane.xlu1 %2703  ;;  %v10746_v45 = vld [vmem:[%s12843_s30 + $0x30] ss:$8 sps:$4 sm:$0xff]  }
 0x50c   : > { %v13596_v41 = vpop.eup %11053  ;;  %11063 = vpow2.f32 %v2743_v3  ;;  %v2745_v22 = vmul.f32 1.442695, %v2717_v13  ;;  %v2720_v46 = vsub.f32 %v13478_v53, %v2704_v2  ;;  %3222 = vmatpush1.bf16.msra.mxu0 %v10740_v32  ;;  %v10751_v3 = vld [vmem:[%s12843_s30 + $0x44] ss:$8 sps:$4 sm:$0xff]   ;;  %v10749_v13 = vld [vmem:[%s12843_s30 + $0x40] ss:$8 sps:$4 sm:$0xff]  }
 0x50d   : > { %2765 = vadd.xlane.f32.xlu0 %v13596_v41  ;;  %v2702_v30 = vpop.xlane.xlu0 %2701  ;;  %3223 = vmatprep.subr.bf16.mxu0 %v10745_v20  ;;  %v10754_v2 = vld [vmem:[%s12843_s30 + $0x54] ss:$8 sps:$4 sm:$0xff]  }
 0x50e   : > { %v13599_v39 = vpop.eup %11055  ;;  %11065 = vpow2.f32 %v2745_v22  ;;  %v2719_v60 = vsub.f32 %v13469_v31, %v2702_v30  ;;  %v2751_v15 = vmul.f32 1.442695, %v2720_v46  ;;  %v10752_v22 = vld [vmem:[%s12843_s30 + $0x50] ss:$8 sps:$4 sm:$0xff]   ;;  %v10757_v30 = vld [vmem:[%s12843_s30 + $0x64] ss:$8 sps:$4 sm:$0xff]  }
 0x50f   : > { %2767 = vadd.xlane.f32.xlu1 %v13599_v39  ;;  %v2700_v11 = vpop.xlane.xlu1 %2699 }
 0x510   : > { %v13603_v16 = vpop.eup %11057  ;;  %v2749_v29 = vmul.f32 1.442695, %v2719_v60  ;;  %v2718_v51 = vsub.f32 %v13481_v18, %v2700_v11  ;;  %3224 = vmatpush1.bf16.msra.mxu0 %v10743_v47  ;;  %v10755_v60 = vld [vmem:[%s12843_s30 + $0x60] ss:$8 sps:$4 sm:$0xff]  }
 0x511   : > { %2769 = vadd.xlane.f32.xlu0 %v13603_v16  ;;  %3225 = vmatprep.subr.bf16.mxu0 %v10748_v42 }
 0x512   : > { %v13608_v49 = vpop.eup %11059  ;;  %11067 = vpow2.f32 %v2749_v29  ;;  %v2747_v38 = vmul.f32 1.442695, %v2718_v51 }
 0x513   : > { %2771 = vadd.xlane.f32.xlu1 %v13608_v49 }
 0x514   : > { %v13611_v31 = vpop.eup %11061  ;;  %11069 = vpow2.f32 %v2747_v38  ;;  %3226 = vmatpush1.bf16.msra.mxu0 %v10746_v45 }
 0x515   : > { %2773 = vadd.xlane.f32.xlu0 %v13611_v31  ;;  %11071 = vpow2.f32 %v2751_v15  ;;  %3227 = vmatprep.subr.bf16.mxu0 %v10751_v3 }
 0x516   : > { %v13614_v53 = vpop.eup %11063 }
 0x517   : > { %2775 = vadd.xlane.f32.xlu1 %v13614_v53 }
 0x518   : > { %v13617_v18 = vpop.eup %11065  ;;  %3228 = vmatpush1.bf16.msra.mxu0 %v10749_v13 }
 0x519   : > { %2777 = vadd.xlane.f32.xlu0 %v13617_v18  ;;  %3229 = vmatprep.subr.bf16.mxu0 %v10754_v2 }
 0x51c   : > { %v13620_v33 = vpop.eup %11067  ;;  %3230 = vmatpush1.bf16.msra.mxu0 %v10752_v22 }
 0x51d   : > { %2781 = vadd.xlane.f32.xlu0 %v13620_v33  ;;  %3231 = vmatprep.subr.bf16.mxu0 %v10757_v30 }
 0x51e   : > { %v13623_v12 = vpop.eup %11069 }
 0x51f   : > { %2779 = vadd.xlane.f32.xlu1 %v13623_v12  ;;  %v13626_v23 = vpop.eup %11071 }
 0x520   : > { %3232 = vmatpush1.bf16.msra.mxu0 %v10755_v60 }
 0x523   : > { %2783 = vadd.xlane.f32.xlu1 %v13626_v23 }
 0x56e   : > { %v2360_v11 = vpop.xlane.xlu0 %2359 }
 0x56f   : > { %11073 = vrcp.f32 %v2360_v11 }
 0x570   : > { %v2362_v46 = vpop.xlane.xlu1 %2361 }
 0x571   : > { %11075 = vrcp.f32 %v2362_v46 }
 0x572   : > { %v2364_v29 = vpop.xlane.xlu0 %2363 }
 0x573   : > { %11077 = vrcp.f32 %v2364_v29 }
 0x574   : > { %v2366_v51 = vpop.xlane.xlu1 %2365 }
 0x575   : > { %11079 = vrcp.f32 %v2366_v51 }
 0x576   : > { %v2368_v38 = vpop.xlane.xlu0 %2367 }
 0x577   : > { %11081 = vrcp.f32 %v2368_v38 }
 0x578   : > { %v2370_v15 = vpop.xlane.xlu1 %2369 }
 0x579   : > { %v11074_v24 = vpop.eup %11073  ;;  %11083 = vrcp.f32 %v2370_v15 }
 0x57a   : > { %v2372_v35 = vpop.xlane.xlu0 %2371  ;;  %v2407_v20 = vmul.f32 %v11074_v24, %v13508_v36 }
 0x57b   : > { %v11076_v34 = vpop.eup %11075  ;;  %11085 = vrcp.f32 %v2372_v35 }
 0x57c   : > { %v2374_v32 = vpop.xlane.xlu1 %2373  ;;  %v2408_v47 = vmul.f32 %v11076_v34, %v13512_v63 }
 0x57d   : > { %v11078_v42 = vpop.eup %11077  ;;  %11087 = vrcp.f32 %v2374_v32 }
 0x57e   : > { %v2376_v45 = vpop.xlane.xlu0 %2375  ;;  %v2423_v3 = vpack.c.bf16 %v2408_v47, %v2407_v20  ;;  %v2409_v2 = vmul.f32 %v11078_v42, %v13516_v57 }
 0x57f   : > { %v11080_v13 = vpop.eup %11079  ;;  %11089 = vrcp.f32 %v2376_v45 }
 0x580   : > { %v2410_v22 = vmul.f32 %v11080_v13, %v13520_v21  ;;  %10189 = vmatprep.mubr.bf16.mxu1 %v2423_v3  ;;  %v2378_v30 = vpop.xlane.xlu1 %2377 }
 0x581   : > { %v11082_v60 = vpop.eup %11081  ;;  %11091 = vrcp.f32 %v2378_v30 }
 0x582   : > { %v2380_v11 = vpop.xlane.xlu0 %2379  ;;  %v2424_v46 = vpack.c.bf16 %v2410_v22, %v2409_v2  ;;  %v2411_v63 = vmul.f32 %v11082_v60, %v13524_v61 }
 0x583   : > { %v11084_v29 = vpop.eup %11083  ;;  %11093 = vrcp.f32 %v2380_v11 }
 0x584   : > { %10190 = vmatmul.mubr.bf16.vlgmr.msra.gmra.mrb[48].mxu1 %v2424_v46  ;;  %v2382_v36 = vpop.xlane.xlu1 %2381  ;;  %v2412_v51 = vmul.f32 %v11084_v29, %v13528_v59 }
 0x585   : > { %v11086_v38 = vpop.eup %11085  ;;  %10238 = vmatpush3.bf16.msra.mxu1 %v13318_v40  ;;  %11095 = vrcp.f32 %v2382_v36 }
 0x586   : > { %10239 = vmatprep.subr.bf16.mxu1 %v13336_v14  ;;  %v2384_v57 = vpop.xlane.xlu0 %2383  ;;  %v2425_v21 = vpack.c.bf16 %v2412_v51, %v2411_v63  ;;  %v2413_v35 = vmul.f32 %v11086_v38, %v13532_v56 }
 0x587   : > { %v11088_v15 = vpop.eup %11087  ;;  %11097 = vrcp.f32 %v2384_v57 }
 0x588   : > { %10193 = vmatprep.mubr.bf16.mxu1 %v2425_v21  ;;  %v2386_v24 = vpop.xlane.xlu1 %2385  ;;  %v2414_v34 = vmul.f32 %v11088_v15, %v13536_v62 }
 0x589   : > { %v11090_v32 = vpop.eup %11089  ;;  %10240 = vmatpush3.bf16.msra.mxu1 %v13336_v14  ;;  %11099 = vrcp.f32 %v2386_v24 }
 0x58a   : > { %10241 = vmatprep.subr.bf16.mxu1 %v13354_v7  ;;  %v2388_v40 = vpop.xlane.xlu0 %2387  ;;  %v2426_v61 = vpack.c.bf16 %v2414_v34, %v2413_v35  ;;  %v2415_v47 = vmul.f32 %v11090_v32, %v13540_v26 }
 0x58b   : > { %v11092_v59 = vpop.eup %11091  ;;  %11101 = vrcp.f32 %v2388_v40 }
 0x58c   : > { %10194 = vmatmul.mubr.bf16.gmra.mrb[52].mxu1 %v2426_v61  ;;  %v2390_v20 = vpop.xlane.xlu1 %2389  ;;  %v2416_v42 = vmul.f32 %v11092_v59, %v13544_v0 }
 0x58d   : > { %v11094_v45 = vpop.eup %11093  ;;  %10242 = vmatpush3.bf16.msra.mxu1 %v13354_v7  ;;  %11103 = vrcp.f32 %v2390_v20 }
 0x58e   : > { %10243 = vmatprep.subr.bf16.mxu1 %v13372_v52  ;;  %v2754_v14 = vpop.xlane.xlu0 %2753  ;;  %v2427_v56 = vpack.c.bf16 %v2416_v42, %v2415_v47  ;;  %v2417_v13 = vmul.f32 %v11094_v45, %v13548_v1 }
 0x58f   : > { %v11096_v62 = vpop.eup %11095  ;;  %11105 = vrcp.f32 %v2754_v14 }
 0x590   : > { %10197 = vmatprep.mubr.bf16.mxu1 %v2427_v56  ;;  %v2756_v3 = vpop.xlane.xlu1 %2755  ;;  %v2418_v2 = vmul.f32 %v11096_v62, %v13552_v28 }
 0x591   : > { %v11098_v22 = vpop.eup %11097  ;;  %10244 = vmatpush3.bf16.msra.mxu1 %v13372_v52  ;;  %11107 = vrcp.f32 %v2756_v3 }
 0x592   : > { %10245 = vmatprep.subr.bf16.mxu1 %v13384_v55  ;;  %v2758_v7 = vpop.xlane.xlu0 %2757  ;;  %v2428_v26 = vpack.c.bf16 %v2418_v2, %v2417_v13  ;;  %v2419_v60 = vmul.f32 %v11098_v22, %v13556_v37 }
 0x593   : > { %v11100_v0 = vpop.eup %11099  ;;  %11109 = vrcp.f32 %v2758_v7 }
 0x594   : > { %10198 = vmatmul.mubr.bf16.gmra.mrb[56].mxu1 %v2428_v26  ;;  %v2760_v30 = vpop.xlane.xlu1 %2759  ;;  %v2420_v11 = vmul.f32 %v11100_v0, %v13560_v19 }
 0x595   : > { %v11102_v46 = vpop.eup %11101  ;;  %10246 = vmatpush3.bf16.msra.mxu1 %v13384_v55  ;;  %11111 = vrcp.f32 %v2760_v30 }
 0x596   : > { %10247 = vmatprep.subr.bf16.mxu1 %v13390_v5  ;;  %v2762_v52 = vpop.xlane.xlu0 %2761  ;;  %v2429_v1 = vpack.c.bf16 %v2420_v11, %v2419_v60  ;;  %v2421_v36 = vmul.f32 %v11102_v46, %v13564_v43 }
 0x597   : > { %v11104_v28 = vpop.eup %11103  ;;  %11113 = vrcp.f32 %v2762_v52 }
 0x598   : > { %10201 = vmatprep.mubr.bf16.mxu1 %v2429_v1  ;;  %v2764_v29 = vpop.xlane.xlu1 %2763  ;;  %v2422_v63 = vmul.f32 %v11104_v28, %v13568_v8  ;;  %v10760_v1 = vld [vmem:[%s12843_s30 + $0x74] ss:$8 sps:$4 sm:$0xff]   ;;  %v10758_v28 = vld [vmem:[%s12843_s30 + $0x70] ss:$8 sps:$4 sm:$0xff]  }
 0x599   : > { %v11106_v51 = vpop.eup %11105  ;;  %10248 = vmatpush3.bf16.msra.mxu1 %v13390_v5  ;;  %11115 = vrcp.f32 %v2764_v29  ;;  %3233 = vmatprep.subr.bf16.mxu0 %v10760_v1  ;;  %v12241_v29 = vmov 0  }
 0x59a   : > { %10249 = vmatprep.subr.bf16.mxu1 %v13396_v54  ;;  %v2766_v55 = vpop.xlane.xlu0 %2765  ;;  %v2430_v37 = vpack.c.bf16 %v2422_v63, %v2421_v36  ;;  %v2801_v57 = vmul.f32 %v11106_v51, %v13572_v4  ;;  %3234 = vmatpush1.bf16.msra.mxu0 %v10758_v28  ;;  %v10767_v36 = vld [vmem:[%s12843_s30 + $0xa0] ss:$8 sps:$4 sm:$0xff]   ;;  %v10769_v63 = vld [vmem:[%s12843_s30 + $0xa4] ss:$8 sps:$4 sm:$0xff]   ;;  %v10772_v51 = vld [vmem:[%s12843_s30 + $0xb4] ss:$8 sps:$4 sm:$0xff]  }
 0x59b   : > { %v11108_v19 = vpop.eup %11107  ;;  %11117 = vrcp.f32 %v2766_v55  ;;  %3251 = vmatprep.mubr.bf16.mxu0 %v12241_v29  ;;  %v10770_v55 = vld [vmem:[%s12843_s30 + $0xb0] ss:$8 sps:$4 sm:$0xff]  }
 0x59c   : > { %10202 = vmatmul.mubr.bf16.gmra.mrb[60].mxu1 %v2430_v37  ;;  %v2768_v38 = vpop.xlane.xlu1 %2767  ;;  %v2802_v21 = vmul.f32 %v11108_v19, %v13576_v58  ;;  %v10773_v37 = vld [vmem:[%s12843_s30 + $0xc0] ss:$8 sps:$4 sm:$0xff]   ;;  %v10775_v19 = vld [vmem:[%s12843_s30 + $0xc4] ss:$8 sps:$4 sm:$0xff]  }
 0x59d   : > { %v11110_v15 = vpop.eup %11109  ;;  %10250 = vmatpush3.bf16.msra.mxu1 %v13396_v54  ;;  %11119 = vrcp.f32 %v2768_v38  ;;  %v10778_v38 = vld [vmem:[%s12843_s30 + $0xd4] ss:$8 sps:$4 sm:$0xff]  }
 0x59e   : > { %10251 = vmatprep.subr.bf16.mxu1 %v13402_v27  ;;  %v2770_v5 = vpop.xlane.xlu0 %2769  ;;  %v2817_v43 = vpack.c.bf16 %v2802_v21, %v2801_v57  ;;  %v2803_v24 = vmul.f32 %v11110_v15, %v13580_v50  ;;  %v10776_v57 = vld [vmem:[%s12843_s30 + $0xd0] ss:$8 sps:$4 sm:$0xff]   ;;  %v10779_v21 = vld [vmem:[%s12843_s30 + $0xe0] ss:$8 sps:$4 sm:$0xff]   ;;  %v10781_v15 = vld [vmem:[%s12843_s30 + $0xe4] ss:$8 sps:$4 sm:$0xff]  }
 0x59f   : > { %v11112_v8 = vpop.eup %11111  ;;  %11121 = vrcp.f32 %v2770_v5  ;;  %v10784_v5 = vld [vmem:[%s12843_s30 + $0xf4] ss:$8 sps:$4 sm:$0xff]  }
 0x5a0   : > { %v2804_v35 = vmul.f32 %v11112_v8, %v13584_v17  ;;  %10253 = vmatprep.mubr.bf16.mxu1 %v2817_v43  ;;  %v2772_v34 = vpop.xlane.xlu1 %2771  ;;  %v10782_v43 = vld [vmem:[%s12843_s30 + $0xf0] ss:$8 sps:$4 sm:$0xff]  }
 0x5a1   : > { %v11114_v32 = vpop.eup %11113  ;;  %10252 = vmatpush3.bf16.msra.mxu1 %v13402_v27  ;;  %11123 = vrcp.f32 %v2772_v34 }
 0x5a2   : > { %v2774_v4 = vpop.xlane.xlu0 %2773  ;;  %v2818_v58 = vpack.c.bf16 %v2804_v35, %v2803_v24  ;;  %v2805_v61 = vmul.f32 %v11114_v32, %v13588_v9 }
 0x5a3   : > { %v11116_v54 = vpop.eup %11115  ;;  %11125 = vrcp.f32 %v2774_v4 }
 0x5a4   : > { %10254 = vmatmul.mubr.bf16.vlgmr.msra.gmra.mrb[64].mxu1 %v2818_v58  ;;  %v2776_v40 = vpop.xlane.xlu1 %2775  ;;  %v2806_v59 = vmul.f32 %v11116_v54, %v13592_v44 }
 0x5a5   : > { %v11118_v20 = vpop.eup %11117  ;;  %11127 = vrcp.f32 %v2776_v40 }
 0x5a6   : > { %v2778_v50 = vpop.xlane.xlu0 %2777  ;;  %v2819_v17 = vpack.c.bf16 %v2806_v59, %v2805_v61  ;;  %v2807_v42 = vmul.f32 %v11118_v20, %v13596_v41 }
 0x5a7   : > { %v11120_v47 = vpop.eup %11119  ;;  %11129 = vrcp.f32 %v2778_v50 }
 0x5a8   : > { %10257 = vmatprep.mubr.bf16.mxu1 %v2819_v17  ;;  %v2808_v27 = vmul.f32 %v11120_v47, %v13599_v39 }
 0x5a9   : > { %v11122_v45 = vpop.eup %11121 }
 0x5aa   : > { %v2820_v14 = vpack.c.bf16 %v2808_v27, %v2807_v42  ;;  %v2782_v62 = vpop.xlane.xlu0 %2781  ;;  %v2809_v9 = vmul.f32 %v11122_v45, %v13603_v16 }
 0x5ab   : > { %v11124_v56 = vpop.eup %11123 }
 0x5ac   : > { %10258 = vmatmul.mubr.bf16.gmra.mrb[68].mxu1 %v2820_v14  ;;  %v2780_v3 = vpop.xlane.xlu1 %2779  ;;  %v2810_v44 = vmul.f32 %v11124_v56, %v13608_v49 }
 0x5ad   : > { %v11126_v13 = vpop.eup %11125  ;;  %11131 = vrcp.f32 %v2780_v3 }
 0x5ae   : > { %v2821_v2 = vpack.c.bf16 %v2810_v44, %v2809_v9  ;;  %11133 = vrcp.f32 %v2782_v62  ;;  %v2811_v39 = vmul.f32 %v11126_v13, %v13611_v31 }
 0x5af   : > { %v11128_v22 = vpop.eup %11127 }
 0x5b0   : > { %10261 = vmatprep.mubr.bf16.mxu1 %v2821_v2  ;;  %v2784_v41 = vpop.xlane.xlu1 %2783  ;;  %v2812_v7 = vmul.f32 %v11128_v22, %v13614_v53 }
 0x5b1   : > { %11135 = vrcp.f32 %v2784_v41  ;;  %v11130_v0 = vpop.eup %11129 }
 0x5b2   : > { %v2822_v26 = vpack.c.bf16 %v2812_v7, %v2811_v39  ;;  %v2813_v49 = vmul.f32 %v11130_v0, %v13617_v18  ;;  %v10761_v18 = vld [vmem:[%s12843_s30 + $0x80] ss:$8 sps:$4 sm:$0xff]  }
 0x5b4   : > { %10262 = vmatmul.mubr.bf16.gmra.mrb[72].mxu1 %v2822_v26 }
 0x5b7   : > { %v11132_v16 = vpop.eup %11131 }
 0x5b8   : > { %v2814_v30 = vmul.f32 %v11132_v16, %v13623_v12  ;;  %v11134_v60 = vpop.eup %11133  ;;  %v10763_v12 = vld [vmem:[%s12843_s30 + $0x84] ss:$8 sps:$4 sm:$0xff]  }
 0x5b9   : > { %v2815_v31 = vmul.f32 %v11134_v60, %v13620_v33  ;;  %3026 = vmatprep.subr.bf16.mxu1 %v10763_v12  ;;  %v10766_v33 = vld [vmem:[%s12843_s30 + $0x94] ss:$8 sps:$4 sm:$0xff]  }
 0x5ba   : > { %v2823_v11 = vpack.c.bf16 %v2814_v30, %v2813_v49  ;;  %3027 = vmatpush1.bf16.msra.mxu1 %v10761_v18 }
 0x5bb   : > { %v11136_v46 = vpop.eup %11135  ;;  %3028 = vmatprep.subr.bf16.mxu1 %v10766_v33 }
 0x5bc   : > { %10265 = vmatprep.mubr.bf16.mxu1 %v2823_v11  ;;  %v2816_v53 = vmul.f32 %v11136_v46, %v13626_v23  ;;  %v10764_v23 = vld [vmem:[%s12843_s30 + $0x90] ss:$8 sps:$4 sm:$0xff]  }
 0x5be   : > { %v2824_v52 = vpack.c.bf16 %v2816_v53, %v2815_v31  ;;  %3029 = vmatpush1.bf16.msra.mxu1 %v10764_v23 }
 0x5bf   : > { %3030 = vmatprep.subr.bf16.mxu1 %v10769_v63  ;;  %v3672_v63 = vld [vmem:[%s12860_s12] sm:$0xff] }
 0x5c0   : > { %10266 = vmatmul.mubr.bf16.gmra.mrb[76].mxu1 %v2824_v52 }
 0x5c1   : > { %3058 = vmatprep.mubr.bf16.mxu1 %v12241_v29 }
 0x5c2   : > { %3031 = vmatpush1.bf16.msra.mxu1 %v10767_v36 }
 0x5c3   : > { %3032 = vmatprep.subr.bf16.mxu1 %v10772_v51  ;;  %v3674_v51 = vld [vmem:[%s12860_s12 + $0x20] sm:$0xff] }
 0x5c6   : > { %3033 = vmatpush1.bf16.msra.mxu1 %v10770_v55  ;;  %v4304_v55 = vld [vmem:[%s12866_s20] sm:$0xff] }
 0x5c7   : > { %3034 = vmatprep.subr.bf16.mxu1 %v10775_v19  ;;  %v9357_v19 = vcombine.high %v3672_v63, %v3674_v51 }
 0x5ca   : > { %3035 = vmatpush1.bf16.msra.mxu1 %v10773_v37  ;;  %v9356_v37 = vcombine.low %v3672_v63, %v3674_v51 }
 0x5cb   : > { %3036 = vmatprep.subr.bf16.mxu1 %v10778_v38  ;;  %v4306_v38 = vld [vmem:[%s12866_s20 + $0x20] sm:$0xff] }
 0x5ce   : > { %3037 = vmatpush1.bf16.msra.mxu1 %v10776_v57  ;;  %v3676_v57 = vld [vmem:[%s12860_s12 + $0x40] sm:$0xff] }
 0x5cf   : > { %3038 = vmatprep.subr.bf16.mxu1 %v10781_v15  ;;  %v9420_v15 = vcombine.low %v4304_v55, %v4306_v38 }
 0x5d2   : > { %3039 = vmatpush1.bf16.msra.mxu1 %v10779_v21  ;;  %v3678_v21 = vld [vmem:[%s12860_s12 + $0x60] sm:$0xff] }
 0x5d3   : > { %3040 = vmatprep.subr.bf16.mxu1 %v10784_v5  ;;  %v9421_v5 = vcombine.high %v4304_v55, %v4306_v38 }
 0x5d5   : > { %4710 = vmatprep.subr.bf16.mxu0 %v9421_v5 }
 0x5d6   : > { %3041 = vmatpush1.bf16.msra.mxu1 %v10782_v43  ;;  %v9361_v43 = vcombine.high %v3676_v57, %v3678_v21 }
 0x5d7   : > { %4078 = vmatprep.subr.bf16.mxu1 %v9357_v19  ;;  %v3706_v19 = vld [vmem:[%s12860_s12 + $0x220] sm:$0xff] }
 0x657   : > { %v10191_v8 = vpop.f32.mrb[48].mxu1 }
 0x658   : > { %v2465_v24 = vpop.f32.mrb[49].mxu1 }
 0x659   : > { %v10192_v35 = vpop.f32.mrb[50].mxu1 }
 0x65a   : > { %v2529_v34 = vpack.c.bf16 %v10192_v35, %v10191_v8  ;;  %v2468_v32 = vpop.f32.mrb[51].mxu1  ;;  %v4308_v8 = vld [vmem:[%s12866_s20 + $0x40] sm:$0xff] }
 0x65b   : > { %v2528_v4 = vpack.c.bf16 %v2468_v32, %v2465_v24  ;;  %v4310_v24 = vld [vmem:[%s12866_s20 + $0x60] sm:$0xff] }
 0x65c   : > { %v3680_v35 = vld [vmem:[%s12860_s12 + $0x80] sm:$0xff] }
 0x65d   : > { %3252 = vmatmul.mubr.bf16.vlgmr.msra.gmra.mrb[80].mxu0 %v2528_v4  ;;  %v4312_v32 = vld [vmem:[%s12866_s20 + $0x80] sm:$0xff] }
 0x65e   : > { %3261 = vmatprep.mubr.bf16.mxu0 %v12241_v29  ;;  %v4314_v4 = vld [vmem:[%s12866_s20 + $0xa0] sm:$0xff]  ;;  %4711 = vmatpush1.bf16.msra.mxu0 %v9420_v15 }
 0x65f   : > { %v10195_v58 = vpop.f32.mrb[52].mxu1 }
 0x660   : > { %v2481_v54 = vpop.f32.mrb[53].mxu1 }
 0x661   : > { %v10196_v40 = vpop.f32.mrb[54].mxu1 }
 0x662   : > { %v2531_v61 = vpack.c.bf16 %v10196_v40, %v10195_v58  ;;  %v2484_v59 = vpop.f32.mrb[55].mxu1  ;;  %v9360_v58 = vcombine.low %v3676_v57, %v3678_v21  ;;  %v4336_v57 = vld [vmem:[%s12866_s20 + $0x200] sm:$0xff] }
 0x663   : > { %v2530_v20 = vpack.c.bf16 %v2484_v59, %v2481_v54  ;;  %v9424_v54 = vcombine.low %v4308_v8, %v4310_v24  ;;  %v3684_v59 = vld [vmem:[%s12860_s12 + $0xc0] sm:$0xff] }
 0x664   : > { %v4338_v21 = vld [vmem:[%s12866_s20 + $0x220] sm:$0xff] }
 0x665   : > { %3262 = vmatmul.mubr.bf16.gmra.mrb[84].mxu0 %v2529_v34  ;;  %v3682_v34 = vld [vmem:[%s12860_s12 + $0xa0] sm:$0xff] }
 0x666   : > { %3271 = vmatprep.mubr.bf16.mxu0 %v12241_v29  ;;  %v9365_v40 = vcombine.high %v3680_v35, %v3682_v34 }
 0x667   : > { %v10199_v50 = vpop.f32.mrb[56].mxu1 }
 0x668   : > { %v2497_v17 = vpop.f32.mrb[57].mxu1 }
 0x669   : > { %v10200_v47 = vpop.f32.mrb[58].mxu1 }
 0x66a   : > { %v2533_v42 = vpack.c.bf16 %v10200_v47, %v10199_v50  ;;  %v2500_v27 = vpop.f32.mrb[59].mxu1  ;;  %v4316_v50 = vld [vmem:[%s12866_s20 + $0xc0] sm:$0xff]  ;;  %v9364_v47 = vcombine.low %v3680_v35, %v3682_v34  ;;  %v9453_v35 = vcombine.high %v4336_v57, %v4338_v21 }
 0x66b   : > { %v2532_v45 = vpack.c.bf16 %v2500_v27, %v2497_v17  ;;  %v4318_v17 = vld [vmem:[%s12866_s20 + $0xe0] sm:$0xff] }
 0x66c   : > { %v3710_v34 = vld [vmem:[%s12860_s12 + $0x260] sm:$0xff] }
 0x66d   : > { %3272 = vmatmul.mubr.bf16.gmra.mrb[88].mxu0 %v2530_v20  ;;  %v3686_v20 = vld [vmem:[%s12860_s12 + $0xe0] sm:$0xff] }
 0x66e   : > { %3281 = vmatprep.mubr.bf16.mxu0 %v12241_v29  ;;  %v9369_v27 = vcombine.high %v3684_v59, %v3686_v20 }
 0x66f   : > { %v10203_v14 = vpop.f32.mrb[60].mxu1 }
 0x670   : > { %v2513_v56 = vpop.f32.mrb[61].mxu1 }
 0x671   : > { %v10204_v62 = vpop.f32.mrb[62].mxu1 }
 0x672   : > { %v2535_v3 = vpack.c.bf16 %v10204_v62, %v10203_v14  ;;  %v2516_v9 = vpop.f32.mrb[63].mxu1  ;;  %v3688_v14 = vld [vmem:[%s12860_s12 + $0x100] sm:$0xff] }
 0x673   : > { %v2534_v44 = vpack.c.bf16 %v2516_v9, %v2513_v56  ;;  %v3690_v56 = vld [vmem:[%s12860_s12 + $0x120] sm:$0xff]  ;;  %v9368_v9 = vcombine.low %v3684_v59, %v3686_v20 }
 0x674   : > { %v4320_v62 = vld [vmem:[%s12866_s20 + $0x100] sm:$0xff] }
 0x675   : > { %3282 = vmatmul.mubr.bf16.gmra.mrb[92].mxu0 %v2531_v61  ;;  %v9429_v61 = vcombine.high %v4312_v32, %v4314_v4 }
 0x676   : > { %3291 = vmatprep.mubr.bf16.mxu0 %v12241_v29 }
 0x677   : > { %v10255_v13 = vpop.f32.mrb[64].mxu1 }
 0x678   : > { %v2859_v2 = vpop.f32.mrb[65].mxu1 }
 0x679   : > { %v10256_v22 = vpop.f32.mrb[66].mxu1 }
 0x67a   : > { %v2923_v41 = vpack.c.bf16 %v10256_v22, %v10255_v13  ;;  %v2862_v39 = vpop.f32.mrb[67].mxu1  ;;  %v9373_v13 = vcombine.high %v3688_v14, %v3690_v56  ;;  %v3692_v22 = vld [vmem:[%s12860_s12 + $0x140] sm:$0xff] }
 0x67b   : > { %v2922_v7 = vpack.c.bf16 %v2862_v39, %v2859_v2  ;;  %v4324_v39 = vld [vmem:[%s12866_s20 + $0x140] sm:$0xff] }
 0x67d   : > { %3059 = vmatmul.mubr.bf16.vlgmr.msra.gmra.mrb[80].mxu1 %v2922_v7  ;;  %3292 = vmatmul.mubr.bf16.gmra.mrb[96].mxu0 %v2532_v45  ;;  %v9433_v45 = vcombine.high %v4316_v50, %v4318_v17  ;;  %v4326_v7 = vld [vmem:[%s12866_s20 + $0x160] sm:$0xff] }
 0x67e   : > { %3068 = vmatprep.mubr.bf16.mxu1 %v12241_v29  ;;  %3301 = vmatprep.mubr.bf16.mxu0 %v12241_v29 }
 0x67f   : > { %v10259_v26 = vpop.f32.mrb[68].mxu1  ;;  %4079 = vmatpush1.bf16.msra.mxu1 %v9356_v37  ;;  %v3704_v37 = vld [vmem:[%s12860_s12 + $0x200] sm:$0xff] }
 0x680   : > { %v2875_v0 = vpop.f32.mrb[69].mxu1  ;;  %4080 = vmatprep.subr.bf16.mxu1 %v9361_v43 }
 0x681   : > { %v10260_v16 = vpop.f32.mrb[70].mxu1 }
 0x682   : > { %v2925_v49 = vpack.c.bf16 %v10260_v16, %v10259_v26  ;;  %v2878_v30 = vpop.f32.mrb[71].mxu1  ;;  %v9372_v26 = vcombine.low %v3688_v14, %v3690_v56 }
 0x683   : > { %v2924_v60 = vpack.c.bf16 %v2878_v30, %v2875_v0  ;;  %4081 = vmatpush1.bf16.msra.mxu1 %v9360_v58  ;;  %v3696_v30 = vld [vmem:[%s12860_s12 + $0x180] sm:$0xff]  ;;  %v9388_v58 = vcombine.low %v3704_v37, %v3706_v19 }
 0x684   : > { %4082 = vmatprep.subr.bf16.mxu1 %v9365_v40 }
 0x685   : > { %3069 = vmatmul.mubr.bf16.gmra.mrb[84].mxu1 %v2923_v41  ;;  %3302 = vmatmul.mubr.bf16.gmra.mrb[100].mxu0 %v2533_v42  ;;  %v9428_v42 = vcombine.low %v4312_v32, %v4314_v4  ;;  %v3694_v41 = vld [vmem:[%s12860_s12 + $0x160] sm:$0xff] }
 0x686   : > { %3078 = vmatprep.mubr.bf16.mxu1 %v12241_v29  ;;  %3311 = vmatprep.mubr.bf16.mxu0 %v12241_v29  ;;  %v9377_v16 = vcombine.high %v3692_v22, %v3694_v41  ;;  %v4340_v32 = vld [vmem:[%s12866_s20 + $0x240] sm:$0xff] }
 0x687   : > { %v10263_v11 = vpop.f32.mrb[72].mxu1  ;;  %4083 = vmatpush1.bf16.msra.mxu1 %v9364_v47  ;;  %v4342_v4 = vld [vmem:[%s12866_s20 + $0x260] sm:$0xff] }
 0x688   : > { %v2891_v46 = vpop.f32.mrb[73].mxu1  ;;  %4084 = vmatprep.subr.bf16.mxu1 %v9369_v27  ;;  %v9457_v59 = vcombine.high %v4340_v32, %v4342_v4 }
 0x689   : > { %v10264_v31 = vpop.f32.mrb[74].mxu1 }
 0x68a   : > { %v2927_v53 = vpack.c.bf16 %v10264_v31, %v10263_v11  ;;  %v2894_v52 = vpop.f32.mrb[75].mxu1  ;;  %v4328_v11 = vld [vmem:[%s12866_s20 + $0x180] sm:$0xff]  ;;  %v9376_v31 = vcombine.low %v3692_v22, %v3694_v41 }
 0x68b   : > { %v2926_v1 = vpack.c.bf16 %v2894_v52, %v2891_v46  ;;  %4085 = vmatpush1.bf16.msra.mxu1 %v9368_v9  ;;  %v4330_v46 = vld [vmem:[%s12866_s20 + $0x1a0] sm:$0xff] }
 0x68c   : > { %4086 = vmatprep.subr.bf16.mxu1 %v9373_v13  ;;  %v3364_v13 = vld [vmem:[%s16942_s9] sm:$0x3] }
 0x68d   : > { %3079 = vmatmul.mubr.bf16.gmra.mrb[88].mxu1 %v2924_v60  ;;  %3312 = vmatmul.mubr.bf16.gmra.mrb[104].mxu0 %v2534_v44  ;;  %v9432_v44 = vcombine.low %v4316_v50, %v4318_v17  ;;  %v3698_v60 = vld [vmem:[%s12860_s12 + $0x1a0] sm:$0xff] }
 0x68e   : > { %3088 = vmatprep.mubr.bf16.mxu1 %v12241_v29  ;;  %3321 = vmatprep.mubr.bf16.mxu0 %v12241_v29  ;;  %v9381_v52 = vcombine.high %v3696_v30, %v3698_v60 }
 0x68f   : > { %4087 = vmatpush1.bf16.msra.mxu1 %v9372_v26 }
 0x690   : > { %4088 = vmatprep.subr.bf16.mxu1 %v9377_v16  ;;  %v13790_v16 = vrot.slane %v3364_v13, %v12997_v6 }
 0x693   : > { %v10267_v28 = vpop.f32.mrb[76].mxu1  ;;  %4089 = vmatpush1.bf16.msra.mxu1 %v9376_v31 }
 0x694   : > { %v2907_v18 = vpop.f32.mrb[77].mxu1  ;;  %4090 = vmatprep.subr.bf16.mxu1 %v9381_v52  ;;  %v11714_v52 = vld [vmem:[#allocation2 + $0x8] sm:$0xff] }
 0x695   : > { %v10268_v12 = vpop.f32.mrb[78].mxu1  ;;  %3089 = vmatmul.mubr.bf16.gmra.mrb[92].mxu1 %v2925_v49  ;;  %3322 = vmatmul.mubr.bf16.gmra.mrb[108].mxu0 %v2535_v3  ;;  %v4322_v3 = vld [vmem:[%s12866_s20 + $0x120] sm:$0xff]  ;;  %v9441_v49 = vcombine.high %v4324_v39, %v4326_v7 }
 0x696   : > { %v2929_v33 = vpack.c.bf16 %v10268_v12, %v10267_v28  ;;  %v2910_v23 = vpop.f32.mrb[79].mxu1  ;;  %3098 = vmatprep.mubr.bf16.mxu1 %v12241_v29  ;;  %v9437_v2 = vcombine.high %v4320_v62, %v4322_v3  ;;  %v9436_v0 = vcombine.low %v4320_v62, %v4322_v3  ;;  %v3700_v28 = vld [vmem:[%s12860_s12 + $0x1c0] sm:$0xff] }
 0x697   : > { %v2928_v36 = vpack.c.bf16 %v2910_v23, %v2907_v18  ;;  %v3702_v18 = vld [vmem:[%s12860_s12 + $0x1e0] sm:$0xff]  ;;  %v9380_v23 = vcombine.low %v3696_v30, %v3698_v60  ;;  %v11713_v60 = vld [vmem:[#allocation2] sm:$0xff] }
 0x698   : > { %v4332_v12 = vld [vmem:[%s12866_s20 + $0x1c0] sm:$0xff]  ;;  %v9385_v63 = vcombine.high %v3700_v28, %v3702_v18  ;;  %v9384_v5 = vcombine.low %v3700_v28, %v3702_v18 }
 0x699   : > { %4091 = vmatpush1.bf16.msra.mxu1 %v9380_v23 }
 0x69a   : > { %4092 = vmatprep.subr.bf16.mxu1 %v9385_v63 }
 0x69d   : > { %3099 = vmatmul.mubr.bf16.gmra.mrb[96].mxu1 %v2926_v1  ;;  %v9445_v1 = vcombine.high %v4328_v11, %v4330_v46 }
 0x69e   : > { %3108 = vmatprep.mubr.bf16.mxu1 %v12241_v29  ;;  %4093 = vmatpush1.bf16.msra.mxu1 %v9384_v5 }
 0x6a5   : > { %3109 = vmatmul.mubr.bf16.gmra.mrb[100].mxu1 %v2927_v53  ;;  %v9440_v53 = vcombine.low %v4324_v39, %v4326_v7  ;;  %v13785_v39 = vrot.slane %v3364_v13, %v13002_v10  ;;  %v11719_v13 = vld [vmem:[#allocation2 + $0x30] sm:$0xff] }
 0x6a6   : > { %3118 = vmatprep.mubr.bf16.mxu1 %v12241_v29 }
 0x6ad   : > { %3119 = vmatmul.mubr.bf16.gmra.mrb[104].mxu1 %v2928_v36  ;;  %v9444_v36 = vcombine.low %v4328_v11, %v4330_v46 }
 0x6ae   : > { %3128 = vmatprep.mubr.bf16.mxu1 %v12241_v29  ;;  %v9425_v29 = vcombine.high %v4308_v8, %v4310_v24  ;;  %v9389_v24 = vcombine.high %v3704_v37, %v3706_v19 }
 0x6b0   : > { %4712 = vmatprep.subr.bf16.mxu0 %v9425_v29  ;;  %v3708_v29 = vld [vmem:[%s12860_s12 + $0x240] sm:$0xff]  ;;  %4094 = vmatprep.subr.bf16.mxu1 %v9389_v24 }
 0x6b1   : > { %4713 = vmatpush1.bf16.msra.mxu0 %v9424_v54  ;;  %v9452_v54 = vcombine.low %v4336_v57, %v4338_v21  ;;  %v9393_v40 = vcombine.high %v3708_v29, %v3710_v34  ;;  %4095 = vmatpush1.bf16.msra.mxu1 %v9388_v58  ;;  %v9392_v17 = vcombine.low %v3708_v29, %v3710_v34 }
 0x6b2   : > { %4714 = vmatprep.subr.bf16.mxu0 %v9429_v61 }
 0x6b3   : > { %4096 = vmatprep.subr.bf16.mxu1 %v9393_v40 }
 0x6b5   : > { %3129 = vmatmul.mubr.bf16.gmra.mrb[108].mxu1 %v2929_v33  ;;  %4715 = vmatpush1.bf16.msra.mxu0 %v9428_v42  ;;  %v4334_v33 = vld [vmem:[%s12866_s20 + $0x1e0] sm:$0xff]  ;;  %v9456_v42 = vcombine.low %v4340_v32, %v4342_v4  ;;  %v11717_v32 = vld [vmem:[#allocation2 + $0x20] sm:$0xff] }
 0x6b6   : > { %4716 = vmatprep.subr.bf16.mxu0 %v9433_v45  ;;  %v9449_v55 = vcombine.high %v4332_v12, %v4334_v33  ;;  %v9448_v8 = vcombine.low %v4332_v12, %v4334_v33  ;;  %4097 = vmatpush1.bf16.msra.mxu1 %v9392_v17  ;;  %v11715_v12 = vld [vmem:[#allocation2 + $0x10] sm:$0xff] }
 0x6b9   : > { %4717 = vmatpush1.bf16.msra.mxu0 %v9432_v44 }
 0x6ba   : > { %4718 = vmatprep.subr.bf16.mxu0 %v9437_v2 }
 0x6bd   : > { %4719 = vmatpush1.bf16.msra.mxu0 %v9436_v0 }
 0x6be   : > { %4720 = vmatprep.subr.bf16.mxu0 %v9441_v49 }
 0x6c1   : > { %4721 = vmatpush1.bf16.msra.mxu0 %v9440_v53 }
 0x6c2   : > { %4722 = vmatprep.subr.bf16.mxu0 %v9445_v1 }
 0x6c5   : > { %4723 = vmatpush1.bf16.msra.mxu0 %v9444_v36  ;;  %v11716_v36 = vld [vmem:[#allocation2 + $0x18] sm:$0xff] }
 0x6c6   : > { %4724 = vmatprep.subr.bf16.mxu0 %v9449_v55 }
 0x6c9   : > { %4725 = vmatpush1.bf16.msra.mxu0 %v9448_v8 }
 0x6ca   : > { %4726 = vmatprep.subr.bf16.mxu0 %v9453_v35 }
 0x6cd   : > { %4727 = vmatpush1.bf16.msra.mxu0 %v9452_v54 }
 0x6ce   : > { %4728 = vmatprep.subr.bf16.mxu0 %v9457_v59 }
 0x6d1   : > { %4729 = vmatpush1.bf16.msra.mxu0 %v9456_v42 }
 0x730   : > { %v3253_v51 = vpop.f32.mrb[80].mxu0 }
 0x731   : > { %v3255_v38 = vpop.f32.mrb[81].mxu0 }
 0x732   : > { %v3257_v15 = vpop.f32.mrb[82].mxu0 }
 0x733   : > { %v3259_v43 = vpop.f32.mrb[83].mxu0 }
 0x738   : > { %v3263_v61 = vpop.f32.mrb[84].mxu0 }
 0x739   : > { %v3265_v20 = vpop.f32.mrb[85].mxu0 }
 0x73a   : > { %v3267_v50 = vpop.f32.mrb[86].mxu0 }
 0x73b   : > { %v3269_v47 = vpop.f32.mrb[87].mxu0 }
 0x740   : > { %v13764_v27 = vpop.f32.mrb[88].mxu0 }
 0x741   : > { %v13766_v45 = vpop.f32.mrb[89].mxu0 }
 0x742   : > { %v13768_v14 = vpop.f32.mrb[90].mxu0 }
 0x743   : > { %v13770_v56 = vpop.f32.mrb[91].mxu0 }
 0x748   : > { %v13772_v62 = vpop.f32.mrb[92].mxu0 }
 0x749   : > { %v13774_v3 = vpop.f32.mrb[93].mxu0 }
 0x74a   : > { %v13776_v9 = vpop.f32.mrb[94].mxu0 }
 0x74b   : > { %v13778_v44 = vpop.f32.mrb[95].mxu0 }
 0x750   : > { %v3060_v2 = vpop.f32.mrb[80].mxu1  ;;  %v13782_v22 = vpop.f32.mrb[96].mxu0 }
 0x751   : > { %v3254_v41 = vadd.f32 %v3253_v51, %v3060_v2  ;;  %v3062_v7 = vpop.f32.mrb[81].mxu1  ;;  %v13787_v26 = vpop.f32.mrb[97].mxu0 }
 0x752   : > { %v3256_v0 = vadd.f32 %v3255_v38, %v3062_v7  ;;  %v3064_v49 = vpop.f32.mrb[82].mxu1  ;;  %v13792_v30 = vpop.f32.mrb[98].mxu0  ;;  %v11720_v7 = vld [vmem:[#allocation2 + $0x38] sm:$0xff] }
 0x753   : > { %v3332_v11 = vadd.f32 %v11713_v60, %v3254_v41  ;;  %v3258_v46 = vadd.f32 %v3257_v15, %v3064_v49  ;;  %v3066_v31 = vpop.f32.mrb[83].mxu1  ;;  %v13794_v53 = vpop.f32.mrb[99].mxu0 }
 0x754   : > { %v3333_v1 = vadd.f32 %v11714_v52, %v3256_v0  ;;  %v3260_v28 = vadd.f32 %v3259_v43, %v3066_v31 }
 0x755   : > { %v13797_v18 = vadd.f32 %v13785_v39, %v3332_v11  ;;  %v3334_v33 = vadd.f32 %v11715_v12, %v3258_v46 }
 0x756   : > { %v13800_v23 = vadd.f32 %v13790_v16, %v3333_v1  ;;  %v3335_v63 = vadd.f32 %v11716_v36, %v3260_v28 }
 0x757   : > { %16943 = vst [vmem:[#allocation47_spill] sm:$0xff] %v13797_v18  ;;  %v13803_v51 = vadd.f32 %v13785_v39, %v3334_v33  ;;  %v3409_v55 = vmul.f32 %v13797_v18, %v13797_v18 }
 0x758   : > { %16944 = vst [vmem:[#allocation48_spill] sm:$0xff] %v13800_v23  ;;  %v13808_v37 = vadd.f32 %v13790_v16, %v3335_v63  ;;  %v3070_v19 = vpop.f32.mrb[84].mxu1  ;;  %v13810_v38 = vpop.f32.mrb[100].mxu0  ;;  %v3410_v57 = vmul.f32 %v13800_v23, %v13800_v23 }
 0x759   : > { %16945 = vst [vmem:[#allocation49_spill] sm:$0xff] %v13803_v51  ;;  %v3264_v21 = vadd.f32 %v3263_v61, %v3070_v19  ;;  %v3072_v15 = vpop.f32.mrb[85].mxu1  ;;  %v13814_v5 = vpop.f32.mrb[101].mxu0  ;;  %v3411_v43 = vmul.f32 %v13803_v51, %v13803_v51  ;;  %v11718_v61 = vld [vmem:[#allocation2 + $0x28] sm:$0xff]  ;;  %v11721_v19 = vld [vmem:[#allocation2 + $0x40] sm:$0xff] }
 0x75a   : > { %16946 = vst [vmem:[#allocation50_spill] sm:$0xff] %v13808_v37  ;;  %v3266_v8 = vadd.f32 %v3265_v20, %v3072_v15  ;;  %v3074_v24 = vpop.f32.mrb[86].mxu1  ;;  %v13818_v35 = vpop.f32.mrb[102].mxu0  ;;  %v3441_v29 = vadd.f32 %v3410_v57, %v3409_v55  ;;  %v3412_v34 = vmul.f32 %v13808_v37, %v13808_v37 }
 0x75b   : > { %v3336_v4 = vadd.f32 %v11717_v32, %v3264_v21  ;;  %v3268_v58 = vadd.f32 %v3267_v50, %v3074_v24  ;;  %v3076_v54 = vpop.f32.mrb[87].mxu1  ;;  %v13822_v40 = vpop.f32.mrb[103].mxu0 }
 0x75c   : > { %v3337_v59 = vadd.f32 %v11718_v61, %v3266_v8  ;;  %v3270_v17 = vadd.f32 %v3269_v47, %v3076_v54  ;;  %3442 = vadd.xlane.f32.xlu0 %v3441_v29  ;;  %v3444_v42 = vadd.f32 %v3412_v34, %v3411_v43  ;;  %v11722_v43 = vld [vmem:[#allocation2 + $0x48] sm:$0xff]  ;;  %v11723_v34 = vld [vmem:[#allocation2 + $0x50] sm:$0xff] }
 0x75d   : > { %v13825_v20 = vadd.f32 %v13785_v39, %v3336_v4  ;;  %v3338_v2 = vadd.f32 %v11719_v13, %v3268_v58  ;;  %v3712_v13 = vld [vmem:[%s12860_s12 + $0x280] sm:$0xff] }
 0x75e   : > { %v13828_v41 = vadd.f32 %v13790_v16, %v3337_v59  ;;  %v3339_v0 = vadd.f32 %v11720_v7, %v3270_v17  ;;  %3445 = vadd.xlane.f32.xlu1 %v3444_v42  ;;  %v4344_v7 = vld [vmem:[%s12866_s20 + $0x280] sm:$0xff] }
 0x75f   : > { %16947 = vst [vmem:[#allocation51_spill] sm:$0xff] %v13825_v20  ;;  %v13831_v50 = vadd.f32 %v13785_v39, %v3338_v2  ;;  %v3413_v49 = vmul.f32 %v13825_v20, %v13825_v20  ;;  %v3714_v2 = vld [vmem:[%s12860_s12 + $0x2a0] sm:$0xff] }
 0x760   : > { %16948 = vst [vmem:[#allocation52_spill] sm:$0xff] %v13828_v41  ;;  %v13836_v47 = vadd.f32 %v13790_v16, %v3339_v0  ;;  %v3080_v60 = vpop.f32.mrb[88].mxu1  ;;  %v13838_v11 = vpop.f32.mrb[104].mxu0  ;;  %v3414_v46 = vmul.f32 %v13828_v41, %v13828_v41 }
 0x761   : > { %16949 = vst [vmem:[#allocation53_spill] sm:$0xff] %v13831_v50  ;;  %v3274_v31 = vadd.f32 %v13764_v27, %v3080_v60  ;;  %v3082_v52 = vpop.f32.mrb[89].mxu1  ;;  %v13843_v1 = vpop.f32.mrb[105].mxu0  ;;  %v3415_v28 = vmul.f32 %v13831_v50, %v13831_v50 }
 0x762   : > { %16950 = vst [vmem:[#allocation54_spill] sm:$0xff] %v13836_v47  ;;  %v3276_v12 = vadd.f32 %v13766_v45, %v3082_v52  ;;  %v3084_v33 = vpop.f32.mrb[90].mxu1  ;;  %v13848_v36 = vpop.f32.mrb[106].mxu0  ;;  %v3447_v63 = vadd.f32 %v3414_v46, %v3413_v49  ;;  %v3416_v55 = vmul.f32 %v13836_v47, %v13836_v47  ;;  %v4346_v52 = vld [vmem:[%s12866_s20 + $0x2a0] sm:$0xff] }
 0x763   : > { %v3340_v57 = vadd.f32 %v11721_v19, %v3274_v31  ;;  %v3278_v21 = vadd.f32 %v13768_v14, %v3084_v33  ;;  %v3086_v27 = vpop.f32.mrb[91].mxu1  ;;  %v13853_v15 = vpop.f32.mrb[107].mxu0  ;;  %v11724_v14 = vld [vmem:[#allocation2 + $0x58] sm:$0xff]  ;;  %v9397_v31 = vcombine.high %v3712_v13, %v3714_v2  ;;  %v9396_v19 = vcombine.low %v3712_v13, %v3714_v2 }
 0x764   : > { %v3341_v8 = vadd.f32 %v11722_v43, %v3276_v12  ;;  %v3280_v24 = vadd.f32 %v13770_v56, %v3086_v27  ;;  %3448 = vadd.xlane.f32.xlu0 %v3447_v63  ;;  %v3450_v45 = vadd.f32 %v3416_v55, %v3415_v28  ;;  %v4350_v2 = vld [vmem:[%s12866_s20 + $0x2e0] sm:$0xff] }
 0x765   : > { %v13857_v29 = vadd.f32 %v13785_v39, %v3340_v57  ;;  %v3342_v32 = vadd.f32 %v11723_v34, %v3278_v21  ;;  %4098 = vmatprep.subr.bf16.mxu1 %v9397_v31 }
 0x766   : > { %v13860_v4 = vadd.f32 %v13790_v16, %v3341_v8  ;;  %v3343_v58 = vadd.f32 %v11724_v14, %v3280_v24  ;;  %3451 = vadd.xlane.f32.xlu1 %v3450_v45  ;;  %v9461_v8 = vcombine.high %v4344_v7, %v4346_v52  ;;  %v11726_v24 = vld [vmem:[#allocation2 + $0x68] sm:$0xff]  ;;  %4099 = vmatpush1.bf16.msra.mxu1 %v9396_v19  ;;  %v3716_v14 = vld [vmem:[%s12860_s12 + $0x2c0] sm:$0xff] }
 0x767   : > { %16951 = vst [vmem:[#allocation55_spill] sm:$0xff] %v13857_v29  ;;  %v13863_v54 = vadd.f32 %v13785_v39, %v3342_v32  ;;  %v3417_v56 = vmul.f32 %v13857_v29, %v13857_v29  ;;  %v3720_v19 = vld [vmem:[%s12860_s12 + $0x300] sm:$0xff] }
 0x768   : > { %16952 = vst [vmem:[#allocation56_spill] sm:$0xff] %v13860_v4  ;;  %v13868_v61 = vadd.f32 %v13790_v16, %v3343_v58  ;;  %v3090_v59 = vpop.f32.mrb[92].mxu1  ;;  %v13870_v17 = vpop.f32.mrb[108].mxu0  ;;  %v3418_v42 = vmul.f32 %v13860_v4, %v13860_v4  ;;  %v3718_v58 = vld [vmem:[%s12860_s12 + $0x2e0] sm:$0xff]  ;;  %4730 = vmatprep.subr.bf16.mxu0 %v9461_v8 }
 0x769   : > { %16953 = vst [vmem:[#allocation57_spill] sm:$0xff] %v13863_v54  ;;  %v3284_v0 = vadd.f32 %v13772_v62, %v3090_v59  ;;  %v3092_v49 = vpop.f32.mrb[93].mxu1  ;;  %v13878_v60 = vpop.f32.mrb[109].mxu0  ;;  %v3419_v46 = vmul.f32 %v13863_v54, %v13863_v54  ;;  %v11725_v62 = vld [vmem:[#allocation2 + $0x60] sm:$0xff]  ;;  %v9401_v13 = vcombine.high %v3716_v14, %v3718_v58 }
 0x76a   : > { %16954 = vst [vmem:[#allocation58_spill] sm:$0xff] %v13868_v61  ;;  %v3286_v28 = vadd.f32 %v13774_v3, %v3092_v49  ;;  %v3094_v12 = vpop.f32.mrb[94].mxu1  ;;  %v13884_v33 = vpop.f32.mrb[110].mxu0  ;;  %v3453_v63 = vadd.f32 %v3418_v42, %v3417_v56  ;;  %v3420_v55 = vmul.f32 %v13868_v61, %v13868_v61  ;;  %v9460_v3 = vcombine.low %v4344_v7, %v4346_v52  ;;  %v4348_v56 = vld [vmem:[%s12866_s20 + $0x2c0] sm:$0xff] }
 0x76b   : > { %v3344_v57 = vadd.f32 %v11725_v62, %v3284_v0  ;;  %v3288_v21 = vadd.f32 %v13776_v9, %v3094_v12  ;;  %v3096_v27 = vpop.f32.mrb[95].mxu1  ;;  %v13889_v43 = vpop.f32.mrb[111].mxu0  ;;  %v11727_v9 = vld [vmem:[#allocation2 + $0x70] sm:$0xff]  ;;  %v9400_v49 = vcombine.low %v3716_v14, %v3718_v58  ;;  %4100 = vmatprep.subr.bf16.mxu1 %v9401_v13  ;;  %v9464_v52 = vcombine.low %v4348_v56, %v4350_v2  ;;  %v3722_v62 = vld [vmem:[%s12860_s12 + $0x320] sm:$0xff] }
 0x76c   : > { %v3345_v45 = vadd.f32 %v11726_v24, %v3286_v28  ;;  %v3290_v34 = vadd.f32 %v13778_v44, %v3096_v27  ;;  %3454 = vadd.xlane.f32.xlu0 %v3453_v63  ;;  %v3456_v32 = vadd.f32 %v3420_v55, %v3419_v46  ;;  %v11728_v44 = vld [vmem:[#allocation2 + $0x78] sm:$0xff]  ;;  %4731 = vmatpush1.bf16.msra.mxu0 %v9460_v3 }
 0x76d   : > { %v13896_v59 = vadd.f32 %v13785_v39, %v3344_v57  ;;  %v3346_v42 = vadd.f32 %v11727_v9, %v3288_v21  ;;  %v9465_v28 = vcombine.high %v4348_v56, %v4350_v2  ;;  %4101 = vmatpush1.bf16.msra.mxu1 %v9400_v49  ;;  %v4352_v57 = vld [vmem:[%s12866_s20 + $0x300] sm:$0xff]  ;;  %v9405_v8 = vcombine.high %v3720_v19, %v3722_v62 }
 0x76e   : > { %v13900_v7 = vadd.f32 %v13790_v16, %v3345_v45  ;;  %v3347_v0 = vadd.f32 %v11728_v44, %v3290_v34  ;;  %3457 = vadd.xlane.f32.xlu1 %v3456_v32  ;;  %v4354_v24 = vld [vmem:[%s12866_s20 + $0x320] sm:$0xff]  ;;  %v9404_v58 = vcombine.low %v3720_v19, %v3722_v62 }
 0x76f   : > { %16955 = vst [vmem:[#allocation59_spill] sm:$0xff] %v13896_v59  ;;  %v13903_v46 = vadd.f32 %v13785_v39, %v3346_v42  ;;  %v3421_v31 = vmul.f32 %v13896_v59, %v13896_v59  ;;  %4732 = vmatprep.subr.bf16.mxu0 %v9465_v28  ;;  %4102 = vmatprep.subr.bf16.mxu1 %v9405_v8  ;;  %v4356_v28 = vld [vmem:[%s12866_s20 + $0x340] sm:$0xff] }
 0x770   : > { %16956 = vst [vmem:[#allocation60_spill] sm:$0xff] %v13900_v7  ;;  %v13908_v12 = vadd.f32 %v13790_v16, %v3347_v0  ;;  %v3100_v63 = vpop.f32.mrb[96].mxu1  ;;  %v3422_v55 = vmul.f32 %v13900_v7, %v13900_v7  ;;  %4733 = vmatpush1.bf16.msra.mxu0 %v9464_v52  ;;  %v9468_v13 = vcombine.low %v4352_v57, %v4354_v24  ;;  %v3726_v52 = vld [vmem:[%s12860_s12 + $0x360] sm:$0xff] }
 0x771   : > { %16957 = vst [vmem:[#allocation61_spill] sm:$0xff] %v13903_v46  ;;  %v3294_v21 = vadd.f32 %v13782_v22, %v3100_v63  ;;  %v3102_v27 = vpop.f32.mrb[97].mxu1  ;;  %v3423_v3 = vmul.f32 %v13903_v46, %v13903_v46  ;;  %v11729_v22 = vld [vmem:[#allocation2 + $0x80] sm:$0xff]  ;;  %v9469_v2 = vcombine.high %v4352_v57, %v4354_v24  ;;  %4103 = vmatpush1.bf16.msra.mxu1 %v9404_v58  ;;  %v4358_v62 = vld [vmem:[%s12866_s20 + $0x360] sm:$0xff] }
 0x772   : > { %16958 = vst [vmem:[#allocation62_spill] sm:$0xff] %v13908_v12  ;;  %v3296_v45 = vadd.f32 %v13787_v26, %v3102_v27  ;;  %v3104_v34 = vpop.f32.mrb[98].mxu1  ;;  %v3459_v32 = vadd.f32 %v3422_v55, %v3421_v31  ;;  %v3424_v14 = vmul.f32 %v13908_v12, %v13908_v12  ;;  %v11730_v26 = vld [vmem:[#allocation2 + $0x88] sm:$0xff]  ;;  %v3724_v31 = vld [vmem:[%s12860_s12 + $0x340] sm:$0xff]  ;;  %v11731_v55 = vld [vmem:[#allocation2 + $0x90] sm:$0xff]  ;;  %v9472_v24 = vcombine.low %v4356_v28, %v4358_v62 }
 0x773   : > { %v3348_v56 = vadd.f32 %v11729_v22, %v3294_v21  ;;  %v3298_v9 = vadd.f32 %v13792_v30, %v3104_v34  ;;  %v3106_v42 = vpop.f32.mrb[99].mxu1  ;;  %4734 = vmatprep.subr.bf16.mxu0 %v9469_v2  ;;  %v9409_v19 = vcombine.high %v3724_v31, %v3726_v52  ;;  %v9408_v27 = vcombine.low %v3724_v31, %v3726_v52  ;;  %v3728_v58 = vld [vmem:[%s12860_s12 + $0x380] sm:$0xff] }
 0x774   : > { %v3349_v44 = vadd.f32 %v11730_v26, %v3296_v45  ;;  %v3300_v0 = vadd.f32 %v13794_v53, %v3106_v42  ;;  %3460 = vadd.xlane.f32.xlu0 %v3459_v32  ;;  %v3462_v49 = vadd.f32 %v3424_v14, %v3423_v3  ;;  %v11732_v53 = vld [vmem:[#allocation2 + $0x98] sm:$0xff]  ;;  %4735 = vmatpush1.bf16.msra.mxu0 %v9468_v13 }
 0x775   : > { %v13928_v63 = vadd.f32 %v13785_v39, %v3348_v56  ;;  %v3350_v30 = vadd.f32 %v11731_v55, %v3298_v9  ;;  %4104 = vmatprep.subr.bf16.mxu1 %v9409_v19  ;;  %v9473_v45 = vcombine.high %v4356_v28, %v4358_v62  ;;  %v3730_v22 = vld [vmem:[%s12860_s12 + $0x3a0] sm:$0xff] }
 0x776   : > { %v13932_v57 = vadd.f32 %v13790_v16, %v3349_v44  ;;  %v3351_v21 = vadd.f32 %v11732_v53, %v3300_v0  ;;  %3463 = vadd.xlane.f32.xlu1 %v3462_v49  ;;  %4105 = vmatpush1.bf16.msra.mxu1 %v9408_v27  ;;  %v4360_v56 = vld [vmem:[%s12866_s20 + $0x380] sm:$0xff]  ;;  %v9413_v2 = vcombine.high %v3728_v58, %v3730_v22 }
 0x777   : > { %16959 = vst [vmem:[#allocation63_spill] sm:$0xff] %v13928_v63  ;;  %v13935_v3 = vadd.f32 %v13785_v39, %v3350_v30  ;;  %v3425_v8 = vmul.f32 %v13928_v63, %v13928_v63  ;;  %4736 = vmatprep.subr.bf16.mxu0 %v9473_v45  ;;  %v4362_v26 = vld [vmem:[%s12866_s20 + $0x3a0] sm:$0xff]  ;;  %v9412_v52 = vcombine.low %v3728_v58, %v3730_v22 }
 0x778   : > { %16960 = vst [vmem:[#allocation64_spill] sm:$0xff] %v13932_v57  ;;  %v13940_v34 = vadd.f32 %v13790_v16, %v3351_v21  ;;  %v3110_v32 = vpop.f32.mrb[100].mxu1  ;;  %v3426_v14 = vmul.f32 %v13932_v57, %v13932_v57  ;;  %4737 = vmatpush1.bf16.msra.mxu0 %v9472_v24  ;;  %4106 = vmatprep.subr.bf16.mxu1 %v9413_v2  ;;  %v3734_v24 = vld [vmem:[%s12860_s12 + $0x3e0] sm:$0xff] }
 0x779   : > { %16961 = vst [vmem:[#allocation65_spill] sm:$0xff] %v13935_v3  ;;  %v3304_v9 = vadd.f32 %v13810_v38, %v3110_v32  ;;  %v3112_v42 = vpop.f32.mrb[101].mxu1  ;;  %v3427_v13 = vmul.f32 %v13935_v3, %v13935_v3  ;;  %v11733_v38 = vld [vmem:[#allocation2 + $0xa0] sm:$0xff]  ;;  %v9476_v19 = vcombine.low %v4360_v56, %v4362_v26  ;;  %v9477_v62 = vcombine.high %v4360_v56, %v4362_v26  ;;  %v4364_v45 = vld [vmem:[%s12866_s20 + $0x3c0] sm:$0xff] }
 0x77a   : > { %16962 = vst [vmem:[#allocation66_spill] sm:$0xff] %v13940_v34  ;;  %v3306_v44 = vadd.f32 %v13814_v5, %v3112_v42  ;;  %v3114_v0 = vpop.f32.mrb[102].mxu1  ;;  %v3465_v49 = vadd.f32 %v3426_v14, %v3425_v8  ;;  %v3428_v31 = vmul.f32 %v13940_v34, %v13940_v34  ;;  %v11734_v5 = vld [vmem:[#allocation2 + $0xa8] sm:$0xff]  ;;  %4107 = vmatpush1.bf16.msra.mxu1 %v9412_v52  ;;  %v3732_v8 = vld [vmem:[%s12860_s12 + $0x3c0] sm:$0xff]  ;;  %v11735_v14 = vld [vmem:[#allocation2 + $0xb0] sm:$0xff] }
 0x77b   : > { %v3352_v28 = vadd.f32 %v11733_v38, %v3304_v9  ;;  %v3308_v55 = vadd.f32 %v13818_v35, %v3114_v0  ;;  %v3116_v30 = vpop.f32.mrb[103].mxu1  ;;  %4738 = vmatprep.subr.bf16.mxu0 %v9477_v62  ;;  %v9417_v58 = vcombine.high %v3732_v8, %v3734_v24  ;;  %v4366_v22 = vld [vmem:[%s12866_s20 + $0x3e0] sm:$0xff]  ;;  %v9416_v42 = vcombine.low %v3732_v8, %v3734_v24  ;;  %v13977_v52 = vld [vmem:[%s12860_s12 + $0x8] sm:$0xff] }
 0x77c   : > { %v3353_v53 = vadd.f32 %v11734_v5, %v3306_v44  ;;  %v3310_v21 = vadd.f32 %v13822_v40, %v3116_v30  ;;  %3466 = vadd.xlane.f32.xlu0 %v3465_v49  ;;  %v3468_v27 = vadd.f32 %v3428_v31, %v3427_v13  ;;  %v11736_v40 = vld [vmem:[#allocation2 + $0xb8] sm:$0xff]  ;;  %4739 = vmatpush1.bf16.msra.mxu0 %v9476_v19  ;;  %v13980_v38 = vld [vmem:[%s12860_s12 + $0x28] sm:$0xff] }
 0x77d   : > { %v13960_v32 = vadd.f32 %v13785_v39, %v3352_v28  ;;  %v3354_v35 = vadd.f32 %v11735_v14, %v3308_v55  ;;  %4108 = vmatprep.subr.bf16.mxu1 %v9417_v58  ;;  %v9480_v26 = vcombine.low %v4364_v45, %v4366_v22  ;;  %v9481_v44 = vcombine.high %v4364_v45, %v4366_v22  ;;  %v11738_v14 = vld [vmem:[#allocation2 + $0xc8] sm:$0xff] }
 0x77e   : > { %v13964_v56 = vadd.f32 %v13790_v16, %v3353_v53  ;;  %v3355_v9 = vadd.f32 %v11736_v40, %v3310_v21  ;;  %3469 = vadd.xlane.f32.xlu1 %v3468_v27  ;;  %4109 = vmatpush1.bf16.msra.mxu1 %v9416_v42  ;;  %v9359_v19 = vcombine.high %v13977_v52, %v13980_v38  ;;  %v11739_v40 = vld [vmem:[#allocation2 + $0xd0] sm:$0xff] }
 0x77f   : > { %16963 = vst [vmem:[#allocation67_spill] sm:$0xff] %v13960_v32  ;;  %v13967_v13 = vadd.f32 %v13785_v39, %v3354_v35  ;;  %v3429_v2 = vmul.f32 %v13960_v32, %v13960_v32  ;;  %4740 = vmatprep.subr.bf16.mxu0 %v9481_v44  ;;  %v9358_v27 = vcombine.low %v13977_v52, %v13980_v38 }
 0x780   : > { %16964 = vst [vmem:[#allocation68_spill] sm:$0xff] %v13964_v56  ;;  %v13972_v0 = vadd.f32 %v13790_v16, %v3355_v9  ;;  %v3120_v49 = vpop.f32.mrb[104].mxu1  ;;  %v3430_v31 = vmul.f32 %v13964_v56, %v13964_v56  ;;  %4741 = vmatpush1.bf16.msra.mxu0 %v9480_v26  ;;  %4191 = vmatprep.subr.bf16.mxu1 %v9359_v19 }
 0x781   : > { %16965 = vst [vmem:[#allocation69_spill] sm:$0xff] %v13967_v13  ;;  %v3314_v28 = vadd.f32 %v13838_v11, %v3120_v49  ;;  %v3122_v55 = vpop.f32.mrb[105].mxu1  ;;  %v3431_v30 = vmul.f32 %v13967_v13, %v13967_v13  ;;  %v11737_v11 = vld [vmem:[#allocation2 + $0xc0] sm:$0xff] }
 0x782   : > { %16966 = vst [vmem:[#allocation70_spill] sm:$0xff] %v13972_v0  ;;  %v3316_v62 = vadd.f32 %v13843_v1, %v3122_v55  ;;  %v3124_v5 = vpop.f32.mrb[106].mxu1  ;;  %v3471_v53 = vadd.f32 %v3430_v31, %v3429_v2  ;;  %v3432_v21 = vmul.f32 %v13972_v0, %v13972_v0  ;;  %v11740_v2 = vld [vmem:[#allocation2 + $0xd8] sm:$0xff] }
 0x783   : > { %v3356_v8 = vadd.f32 %v11737_v11, %v3314_v28  ;;  %v3318_v24 = vadd.f32 %v13848_v36, %v3124_v5  ;;  %v3126_v45 = vpop.f32.mrb[107].mxu1 }
 0x784   : > { %v3357_v35 = vadd.f32 %v11738_v14, %v3316_v62  ;;  %v3320_v58 = vadd.f32 %v13853_v15, %v3126_v45  ;;  %3472 = vadd.xlane.f32.xlu0 %v3471_v53  ;;  %v3474_v1 = vadd.f32 %v3432_v21, %v3431_v30  ;;  %v11741_v21 = vld [vmem:[#allocation2 + $0xe0] sm:$0xff]  ;;  %v11742_v45 = vld [vmem:[#allocation2 + $0xe8] sm:$0xff] }
 0x785   : > { %v13995_v22 = vadd.f32 %v13785_v39, %v3356_v8  ;;  %v3358_v9 = vadd.f32 %v11739_v40, %v3318_v24 }
 0x786   : > { %v13998_v42 = vadd.f32 %v13790_v16, %v3357_v35  ;;  %v3359_v26 = vadd.f32 %v11740_v2, %v3320_v58  ;;  %3475 = vadd.xlane.f32.xlu1 %v3474_v1 }
 0x787   : > { %16967 = vst [vmem:[#allocation71_spill] sm:$0xff] %v13995_v22  ;;  %v14001_v36 = vadd.f32 %v13785_v39, %v3358_v9  ;;  %v3433_v44 = vmul.f32 %v13995_v22, %v13995_v22  ;;  %v11744_v9 = vld [vmem:[#allocation2 + $0xf8] sm:$0xff] }
 0x788   : > { %16968 = vst [vmem:[#allocation72_spill] sm:$0xff] %v13998_v42  ;;  %v14006_v15 = vadd.f32 %v13790_v16, %v3359_v26  ;;  %v3130_v49 = vpop.f32.mrb[108].mxu1  ;;  %v3434_v31 = vmul.f32 %v13998_v42, %v13998_v42 }
 0x789   : > { %16969 = vst [vmem:[#allocation73_spill] sm:$0xff] %v14001_v36  ;;  %v3324_v28 = vadd.f32 %v13870_v17, %v3130_v49  ;;  %v3132_v55 = vpop.f32.mrb[109].mxu1  ;;  %v3435_v30 = vmul.f32 %v14001_v36, %v14001_v36 }
 0x78a   : > { %16970 = vst [vmem:[#allocation74_spill] sm:$0xff] %v14006_v15  ;;  %v3326_v19 = vadd.f32 %v13878_v60, %v3132_v55  ;;  %v3134_v62 = vpop.f32.mrb[110].mxu1  ;;  %v3477_v5 = vadd.f32 %v3434_v31, %v3433_v44  ;;  %v3436_v53 = vmul.f32 %v14006_v15, %v14006_v15  ;;  %v11743_v60 = vld [vmem:[#allocation2 + $0xf0] sm:$0xff] }
 0x78b   : > { %v3360_v11 = vadd.f32 %v11741_v21, %v3324_v28  ;;  %v3328_v8 = vadd.f32 %v13884_v33, %v3134_v62  ;;  %v3136_v24 = vpop.f32.mrb[111].mxu1 }
 0x78c   : > { %v3361_v14 = vadd.f32 %v11742_v45, %v3326_v19  ;;  %v3330_v17 = vadd.f32 %v13889_v43, %v3136_v24  ;;  %3478 = vadd.xlane.f32.xlu0 %v3477_v5  ;;  %v3480_v35 = vadd.f32 %v3436_v53, %v3435_v30  ;;  %v3408_v45 = vld [vmem:[%s16975_s27] sm:$0x3] }
 0x78d   : > { %v14019_v58 = vadd.f32 %v13785_v39, %v3360_v11  ;;  %v3362_v1 = vadd.f32 %v11743_v60, %v3328_v8  ;;  %v14044_v60 = vrot.slane %v3408_v45, %v12997_v6 }
 0x78e   : > { %v14022_v40 = vadd.f32 %v13790_v16, %v3361_v14  ;;  %v3363_v2 = vadd.f32 %v11744_v9, %v3330_v17  ;;  %3481 = vadd.xlane.f32.xlu1 %v3480_v35  ;;  %v14041_v35 = vrot.slane %v3408_v45, %v13002_v10 }
 0x78f   : > { %16971 = vst [vmem:[#allocation75_spill] sm:$0xff] %v14019_v58  ;;  %v14025_v33 = vadd.f32 %v13785_v39, %v3362_v1  ;;  %v3437_v26 = vmul.f32 %v14019_v58, %v14019_v58 }
 0x790   : > { %16972 = vst [vmem:[#allocation76_spill] sm:$0xff] %v14022_v40  ;;  %v14030_v43 = vadd.f32 %v13790_v16, %v3363_v2  ;;  %v3438_v44 = vmul.f32 %v14022_v40, %v14022_v40 }
 0x791   : > { %16973 = vst [vmem:[#allocation77_spill] sm:$0xff] %v14025_v33  ;;  %v3439_v49 = vmul.f32 %v14025_v33, %v14025_v33 }
 0x792   : > { %16974 = vst [vmem:[#allocation78_spill] sm:$0xff] %v14030_v43  ;;  %v3483_v31 = vadd.f32 %v3438_v44, %v3437_v26  ;;  %v3440_v28 = vmul.f32 %v14030_v43, %v14030_v43 }
 0x794   : > { %3484 = vadd.xlane.f32.xlu0 %v3483_v31  ;;  %v3486_v39 = vadd.f32 %v3440_v28, %v3439_v49 }
 0x796   : > { %3487 = vadd.xlane.f32.xlu1 %v3486_v39 }
 0x7e9   : > { %v3443_v55 = vpop.xlane.xlu0 %3442 }
 0x7ea   : > { %v3489_v30 = vmul.f32 0.00390625, %v3443_v55 }
 0x7eb   : > { %v3446_v19 = vpop.xlane.xlu1 %3445 }
 0x7ec   : > { %v3505_v62 = vadd.f32 1e-06, %v3489_v30  ;;  %v3490_v16 = vmul.f32 0.00390625, %v3446_v19 }
 0x7ee   : > { %11137 = vrsqrt.f32 %v3505_v62  ;;  %v3506_v5 = vadd.f32 1e-06, %v3490_v16 }
 0x7f0   : > { %11139 = vrsqrt.f32 %v3506_v5  ;;  %v3677_v5 = vld [vmem:[%s12860_s12 + $0x48] sm:$0xff] }
 0x7f1   : > { %v3449_v53 = vpop.xlane.xlu0 %3448 }
 0x7f2   : > { %v3491_v21 = vmul.f32 0.00390625, %v3449_v53  ;;  %v3679_v53 = vld [vmem:[%s12860_s12 + $0x68] sm:$0xff] }
 0x7f3   : > { %v3452_v11 = vpop.xlane.xlu1 %3451  ;;  %v9363_v45 = vcombine.high %v3677_v5, %v3679_v53 }
 0x7f4   : > { %v3507_v8 = vadd.f32 1e-06, %v3491_v21  ;;  %v3492_v24 = vmul.f32 0.00390625, %v3452_v11 }
 0x7f6   : > { %11141 = vrsqrt.f32 %v3507_v8  ;;  %v3508_v14 = vadd.f32 1e-06, %v3492_v24 }
 0x7f8   : > { %v11138_v17 = vpop.eup %11137  ;;  %11143 = vrsqrt.f32 %v3508_v14 }
 0x7f9   : > { %v3537_v1 = vmul.f32 %v11138_v17, %v13797_v18  ;;  %v3538_v9 = vmul.f32 %v11138_v17, %v13800_v23  ;;  %v3455_v2 = vpop.xlane.xlu0 %3454 }
 0x7fa   : > { %v11140_v26 = vpop.eup %11139  ;;  %v3493_v44 = vmul.f32 0.00390625, %v3455_v2  ;;  %v3683_v2 = vld [vmem:[%s12860_s12 + $0xa8] sm:$0xff] }
 0x7fb   : > { %v3539_v49 = vmul.f32 %v11140_v26, %v13803_v51  ;;  %v3540_v31 = vmul.f32 %v11140_v26, %v13808_v37  ;;  %v3458_v28 = vpop.xlane.xlu1 %3457  ;;  %v3580_v30 = vmul.f32 %v14041_v35, %v3537_v1  ;;  %v3581_v19 = vmul.f32 %v14044_v60, %v3538_v9  ;;  %v3681_v9 = vld [vmem:[%s12860_s12 + $0x88] sm:$0xff]  ;;  %v14478_v37 = vld [vmem:[%s12860_s12 + $0x3d8] sm:$0xff] }
 0x7fc   : > { %v3509_v39 = vadd.f32 1e-06, %v3493_v44  ;;  %v3494_v55 = vmul.f32 0.00390625, %v3458_v28 }
 0x7fd   : > { %v3582_v62 = vmul.f32 %v14041_v35, %v3539_v49  ;;  %v3583_v16 = vmul.f32 %v14044_v60, %v3540_v31 }
 0x7fe   : > { %11145 = vrsqrt.f32 %v3509_v39  ;;  %v3510_v21 = vadd.f32 1e-06, %v3494_v55  ;;  %v9362_v39 = vcombine.low %v3677_v5, %v3679_v53  ;;  %v9366_v5 = vcombine.low %v3681_v9, %v3683_v2 }
 0x7ff   : > { %v14056_v11 = vpack.c.bf16 %v3582_v62, %v3580_v30  ;;  %v14058_v8 = vpack.c.bf16 %v3583_v16, %v3581_v19  ;;  %v9367_v19 = vcombine.high %v3681_v9, %v3683_v2 }
 0x800   : > { %v11142_v24 = vpop.eup %11141  ;;  %11147 = vrsqrt.f32 %v3510_v21 }
 0x801   : > { %16976 = vst [vmem:[#allocation79_spill] sm:$0xff] %v14056_v11  ;;  %16977 = vst [vmem:[#allocation80_spill] sm:$0xff] %v14058_v8  ;;  %v3541_v14 = vmul.f32 %v11142_v24, %v13825_v20  ;;  %v3542_v17 = vmul.f32 %v11142_v24, %v13828_v41  ;;  %4742 = vmatprep.mubr.bf16.mxu0 %v14058_v8  ;;  %v3461_v1 = vpop.xlane.xlu0 %3460  ;;  %4110 = vmatprep.mubr.bf16.mxu1 %v14058_v8  ;;  %v14469_v41 = vld [vmem:[%s12860_s12 + $0x3b8] sm:$0xff] }
 0x802   : > { %v11144_v26 = vpop.eup %11143  ;;  %v3495_v44 = vmul.f32 0.00390625, %v3461_v1  ;;  %4111 = vmatmul.mubr.bf16.vlgmr.msra.gmra.mrb[112].mxu1 %v14056_v11  ;;  %4743 = vmatmul.mubr.bf16.vlgmr.msra.gmra.mrb[112].mxu0 %v14056_v11  ;;  %v3685_v1 = vld [vmem:[%s12860_s12 + $0xc8] sm:$0xff] }
 0x803   : > { %v3543_v49 = vmul.f32 %v11144_v26, %v13831_v50  ;;  %v3544_v31 = vmul.f32 %v11144_v26, %v13836_v47  ;;  %v3464_v28 = vpop.xlane.xlu1 %3463  ;;  %4192 = vmatpush1.bf16.msra.mxu1 %v9358_v27  ;;  %v3584_v62 = vmul.f32 %v14041_v35, %v3541_v14  ;;  %v3585_v16 = vmul.f32 %v14044_v60, %v3542_v17  ;;  %v3687_v26 = vld [vmem:[%s12860_s12 + $0xe8] sm:$0xff]  ;;  %v14457_v47 = vld [vmem:[%s12860_s12 + $0x378] sm:$0xff] }
 0x804   : > { %v3511_v55 = vadd.f32 1e-06, %v3495_v44  ;;  %v3496_v30 = vmul.f32 0.00390625, %v3464_v28  ;;  %4193 = vmatprep.subr.bf16.mxu1 %v9363_v45  ;;  %v9371_v45 = vcombine.high %v3685_v1, %v3687_v26 }
 0x805   : > { %v3586_v21 = vmul.f32 %v14041_v35, %v3543_v49  ;;  %v3587_v24 = vmul.f32 %v14044_v60, %v3544_v31  ;;  %v3689_v49 = vld [vmem:[%s12860_s12 + $0x108] sm:$0xff] }
 0x806   : > { %11149 = vrsqrt.f32 %v3511_v55  ;;  %v3512_v52 = vadd.f32 1e-06, %v3496_v30  ;;  %v3691_v31 = vld [vmem:[%s12860_s12 + $0x128] sm:$0xff]  ;;  %v9370_v30 = vcombine.low %v3685_v1, %v3687_v26 }
 0x807   : > { %v14079_v38 = vpack.c.bf16 %v3586_v21, %v3584_v62  ;;  %v14081_v27 = vpack.c.bf16 %v3587_v24, %v3585_v16  ;;  %4194 = vmatpush1.bf16.msra.mxu1 %v9362_v39  ;;  %v9375_v16 = vcombine.high %v3689_v49, %v3691_v31  ;;  %v9374_v26 = vcombine.low %v3689_v49, %v3691_v31 }
 0x808   : > { %v11146_v53 = vpop.eup %11145  ;;  %11151 = vrsqrt.f32 %v3512_v52  ;;  %4195 = vmatprep.subr.bf16.mxu1 %v9367_v19 }
 0x809   : > { %16978 = vst [vmem:[#allocation81_spill] sm:$0xff] %v14079_v38  ;;  %16979 = vst [vmem:[#allocation82_spill] sm:$0xff] %v14081_v27  ;;  %v3545_v14 = vmul.f32 %v11146_v53, %v13857_v29  ;;  %v3546_v17 = vmul.f32 %v11146_v53, %v13860_v4  ;;  %4752 = vmatprep.mubr.bf16.mxu0 %v14081_v27  ;;  %v3467_v44 = vpop.xlane.xlu0 %3466  ;;  %4120 = vmatprep.mubr.bf16.mxu1 %v14081_v27  ;;  %v3695_v4 = vld [vmem:[%s12860_s12 + $0x168] sm:$0xff] }
 0x80a   : > { %v11148_v28 = vpop.eup %11147  ;;  %v3497_v55 = vmul.f32 0.00390625, %v3467_v44  ;;  %4121 = vmatmul.mubr.bf16.gmra.mrb[116].mxu1 %v14079_v38  ;;  %4753 = vmatmul.mubr.bf16.gmra.mrb[116].mxu0 %v14079_v38  ;;  %v3693_v44 = vld [vmem:[%s12860_s12 + $0x148] sm:$0xff] }
 0x80b   : > { %v3547_v9 = vmul.f32 %v11148_v28, %v13863_v54  ;;  %v3548_v2 = vmul.f32 %v11148_v28, %v13868_v61  ;;  %v3470_v39 = vpop.xlane.xlu1 %3469  ;;  %4196 = vmatpush1.bf16.msra.mxu1 %v9366_v5  ;;  %v3588_v21 = vmul.f32 %v14041_v35, %v3545_v14  ;;  %v3589_v24 = vmul.f32 %v14044_v60, %v3546_v17 }
 0x80c   : > { %v3513_v19 = vadd.f32 1e-06, %v3497_v55  ;;  %v3498_v62 = vmul.f32 0.00390625, %v3470_v39  ;;  %4197 = vmatprep.subr.bf16.mxu1 %v9371_v45  ;;  %v9379_v14 = vcombine.high %v3693_v44, %v3695_v4  ;;  %v3699_v39 = vld [vmem:[%s12860_s12 + $0x1a8] sm:$0xff] }
 0x80d   : > { %v3590_v52 = vmul.f32 %v14041_v35, %v3547_v9  ;;  %v3591_v53 = vmul.f32 %v14044_v60, %v3548_v2  ;;  %v3697_v2 = vld [vmem:[%s12860_s12 + $0x188] sm:$0xff] }
 0x80e   : > { %11153 = vrsqrt.f32 %v3513_v19  ;;  %v3514_v28 = vadd.f32 1e-06, %v3498_v62 }
 0x80f   : > { %v14099_v5 = vpack.c.bf16 %v3590_v52, %v3588_v21  ;;  %v14101_v1 = vpack.c.bf16 %v3591_v53, %v3589_v24  ;;  %4198 = vmatpush1.bf16.msra.mxu1 %v9370_v30  ;;  %v9383_v52 = vcombine.high %v3697_v2, %v3699_v39 }
 0x810   : > { %v11150_v45 = vpop.eup %11149  ;;  %11155 = vrsqrt.f32 %v3514_v28  ;;  %4199 = vmatprep.subr.bf16.mxu1 %v9375_v16  ;;  %v9378_v16 = vcombine.low %v3693_v44, %v3695_v4  ;;  %v9382_v44 = vcombine.low %v3697_v2, %v3699_v39 }
 0x811   : > { %16980 = vst [vmem:[#allocation83_spill] sm:$0xff] %v14099_v5  ;;  %16981 = vst [vmem:[#allocation84_spill] sm:$0xff] %v14101_v1  ;;  %v3549_v17 = vmul.f32 %v11150_v45, %v13896_v59  ;;  %v3550_v55 = vmul.f32 %v11150_v45, %v13900_v7  ;;  %4762 = vmatprep.mubr.bf16.mxu0 %v14101_v1  ;;  %v3473_v9 = vpop.xlane.xlu0 %3472  ;;  %4130 = vmatprep.mubr.bf16.mxu1 %v14101_v1  ;;  %v3701_v7 = vld [vmem:[%s12860_s12 + $0x1c8] sm:$0xff] }
 0x812   : > { %v11152_v19 = vpop.eup %11151  ;;  %v3499_v62 = vmul.f32 0.00390625, %v3473_v9  ;;  %4131 = vmatmul.mubr.bf16.gmra.mrb[120].mxu1 %v14099_v5  ;;  %4763 = vmatmul.mubr.bf16.gmra.mrb[120].mxu0 %v14099_v5  ;;  %v3703_v59 = vld [vmem:[%s12860_s12 + $0x1e8] sm:$0xff] }
 0x813   : > { %v3551_v49 = vmul.f32 %v11152_v19, %v13903_v46  ;;  %v3552_v31 = vmul.f32 %v11152_v19, %v13908_v12  ;;  %v3476_v30 = vpop.xlane.xlu1 %3475  ;;  %4200 = vmatpush1.bf16.msra.mxu1 %v9374_v26  ;;  %v3592_v53 = vmul.f32 %v14041_v35, %v3549_v17  ;;  %v3593_v28 = vmul.f32 %v14044_v60, %v3550_v55 }
 0x814   : > { %v3515_v21 = vadd.f32 1e-06, %v3499_v62  ;;  %v3500_v24 = vmul.f32 0.00390625, %v3476_v30  ;;  %4201 = vmatprep.subr.bf16.mxu1 %v9379_v14  ;;  %v9387_v17 = vcombine.high %v3701_v7, %v3703_v59  ;;  %v3707_v30 = vld [vmem:[%s12860_s12 + $0x228] sm:$0xff] }
 0x815   : > { %v3594_v45 = vmul.f32 %v14041_v35, %v3551_v49  ;;  %v3595_v9 = vmul.f32 %v14044_v60, %v3552_v31  ;;  %v3705_v31 = vld [vmem:[%s12860_s12 + $0x208] sm:$0xff] }
 0x816   : > { %11157 = vrsqrt.f32 %v3515_v21  ;;  %v3516_v19 = vadd.f32 1e-06, %v3500_v24 }
 0x817   : > { %v14119_v26 = vpack.c.bf16 %v3594_v45, %v3592_v53  ;;  %v14121_v4 = vpack.c.bf16 %v3595_v9, %v3593_v28  ;;  %4202 = vmatpush1.bf16.msra.mxu1 %v9378_v16  ;;  %v9391_v45 = vcombine.high %v3705_v31, %v3707_v30 }
 0x818   : > { %v11154_v14 = vpop.eup %11153  ;;  %11159 = vrsqrt.f32 %v3516_v19  ;;  %4203 = vmatprep.subr.bf16.mxu1 %v9383_v52  ;;  %v9386_v52 = vcombine.low %v3701_v7, %v3703_v59  ;;  %v9390_v7 = vcombine.low %v3705_v31, %v3707_v30 }
 0x819   : > { %16982 = vst [vmem:[#allocation85_spill] sm:$0xff] %v14119_v26  ;;  %16983 = vst [vmem:[#allocation86_spill] sm:$0xff] %v14121_v4  ;;  %v3553_v55 = vmul.f32 %v11154_v14, %v13928_v63  ;;  %v3554_v62 = vmul.f32 %v11154_v14, %v13932_v57  ;;  %4140 = vmatprep.mubr.bf16.mxu1 %v14121_v4  ;;  %4772 = vmatprep.mubr.bf16.mxu0 %v14121_v4  ;;  %v3479_v49 = vpop.xlane.xlu0 %3478  ;;  %v3709_v57 = vld [vmem:[%s12860_s12 + $0x248] sm:$0xff] }
 0x81a   : > { %v11156_v21 = vpop.eup %11155  ;;  %v3501_v24 = vmul.f32 0.00390625, %v3479_v49  ;;  %4141 = vmatmul.mubr.bf16.gmra.mrb[124].mxu1 %v14119_v26  ;;  %4773 = vmatmul.mubr.bf16.gmra.mrb[124].mxu0 %v14119_v26  ;;  %v3711_v63 = vld [vmem:[%s12860_s12 + $0x268] sm:$0xff] }
 0x81b   : > { %v3555_v2 = vmul.f32 %v11156_v21, %v13935_v3  ;;  %v3556_v39 = vmul.f32 %v11156_v21, %v13940_v34  ;;  %4204 = vmatpush1.bf16.msra.mxu1 %v9382_v44  ;;  %v3482_v16 = vpop.xlane.xlu1 %3481  ;;  %v3596_v9 = vmul.f32 %v14041_v35, %v3553_v55  ;;  %v3597_v19 = vmul.f32 %v14044_v60, %v3554_v62  ;;  %v14426_v34 = vld [vmem:[%s12860_s12 + $0x2f8] sm:$0xff] }
 0x81c   : > { %v3517_v53 = vadd.f32 1e-06, %v3501_v24  ;;  %v3502_v28 = vmul.f32 0.00390625, %v3482_v16  ;;  %4205 = vmatprep.subr.bf16.mxu1 %v9387_v17  ;;  %v9395_v55 = vcombine.high %v3709_v57, %v3711_v63  ;;  %v3715_v16 = vld [vmem:[%s12860_s12 + $0x2a8] sm:$0xff] }
 0x81d   : > { %v3598_v14 = vmul.f32 %v14041_v35, %v3555_v2  ;;  %v3599_v49 = vmul.f32 %v14044_v60, %v3556_v39  ;;  %v3713_v39 = vld [vmem:[%s12860_s12 + $0x288] sm:$0xff] }
 0x81e   : > { %11161 = vrsqrt.f32 %v3517_v53  ;;  %v3518_v44 = vadd.f32 1e-06, %v3502_v28 }
 0x81f   : > { %v14139_v21 = vpack.c.bf16 %v3598_v14, %v3596_v9  ;;  %v14141_v59 = vpack.c.bf16 %v3599_v49, %v3597_v19  ;;  %4206 = vmatpush1.bf16.msra.mxu1 %v9386_v52  ;;  %v9399_v14 = vcombine.high %v3713_v39, %v3715_v16 }
 0x820   : > { %v11158_v17 = vpop.eup %11157  ;;  %11163 = vrsqrt.f32 %v3518_v44  ;;  %4207 = vmatprep.subr.bf16.mxu1 %v9391_v45  ;;  %v9394_v45 = vcombine.low %v3709_v57, %v3711_v63  ;;  %v9398_v57 = vcombine.low %v3713_v39, %v3715_v16 }
 0x821   : > { %16984 = vst [vmem:[#allocation87_spill] sm:$0xff] %v14139_v21  ;;  %16985 = vst [vmem:[#allocation88_spill] sm:$0xff] %v14141_v59  ;;  %v3557_v62 = vmul.f32 %v11158_v17, %v13960_v32  ;;  %v3558_v24 = vmul.f32 %v11158_v17, %v13964_v56  ;;  %4150 = vmatprep.mubr.bf16.mxu1 %v14141_v59  ;;  %4782 = vmatprep.mubr.bf16.mxu0 %v14141_v59  ;;  %v3485_v2 = vpop.xlane.xlu0 %3484  ;;  %v3717_v56 = vld [vmem:[%s12860_s12 + $0x2c8] sm:$0xff]  ;;  %v14423_v32 = vld [vmem:[%s12860_s12 + $0x2d8] sm:$0xff] }
 0x822   : > { %v11160_v53 = vpop.eup %11159  ;;  %v3503_v28 = vmul.f32 0.00390625, %v3485_v2  ;;  %4151 = vmatmul.mubr.bf16.gmra.mrb[128].mxu1 %v14139_v21  ;;  %4783 = vmatmul.mubr.bf16.gmra.mrb[128].mxu0 %v14139_v21 }
 0x823   : > { %v3559_v31 = vmul.f32 %v11160_v53, %v13967_v13  ;;  %v3560_v30 = vmul.f32 %v11160_v53, %v13972_v0  ;;  %4208 = vmatpush1.bf16.msra.mxu1 %v9390_v7  ;;  %v3488_v52 = vpop.xlane.xlu1 %3487  ;;  %v3600_v49 = vmul.f32 %v14041_v35, %v3557_v62  ;;  %v3601_v44 = vmul.f32 %v14044_v60, %v3558_v24  ;;  %v3719_v13 = vld [vmem:[%s12860_s12 + $0x2e8] sm:$0xff] }
 0x824   : > { %v3519_v9 = vadd.f32 1e-06, %v3503_v28  ;;  %v3504_v19 = vmul.f32 0.00390625, %v3488_v52  ;;  %4209 = vmatprep.subr.bf16.mxu1 %v9395_v55  ;;  %v9403_v62 = vcombine.high %v3717_v56, %v3719_v13 }
 0x825   : > { %v3602_v17 = vmul.f32 %v14041_v35, %v3559_v31  ;;  %v3603_v2 = vmul.f32 %v14044_v60, %v3560_v30  ;;  %v3721_v31 = vld [vmem:[%s12860_s12 + $0x308] sm:$0xff] }
 0x826   : > { %11165 = vrsqrt.f32 %v3519_v9  ;;  %v3520_v7 = vadd.f32 1e-06, %v3504_v19  ;;  %v3723_v30 = vld [vmem:[%s12860_s12 + $0x328] sm:$0xff] }
 0x827   : > { %v14159_v53 = vpack.c.bf16 %v3602_v17, %v3600_v49  ;;  %v14161_v63 = vpack.c.bf16 %v3603_v2, %v3601_v44  ;;  %4210 = vmatpush1.bf16.msra.mxu1 %v9394_v45  ;;  %v9402_v45 = vcombine.low %v3717_v56, %v3719_v13  ;;  %v9407_v9 = vcombine.high %v3721_v31, %v3723_v30  ;;  %v3725_v17 = vld [vmem:[%s12860_s12 + $0x348] sm:$0xff] }
 0x828   : > { %v11162_v55 = vpop.eup %11161  ;;  %11167 = vrsqrt.f32 %v3520_v7  ;;  %4211 = vmatprep.subr.bf16.mxu1 %v9399_v14  ;;  %v3727_v2 = vld [vmem:[%s12860_s12 + $0x368] sm:$0xff]  ;;  %v9406_v56 = vcombine.low %v3721_v31, %v3723_v30 }
 0x829   : > { %16986 = vst [vmem:[#allocation89_spill] sm:$0xff] %v14159_v53  ;;  %16987 = vst [vmem:[#allocation90_spill] sm:$0xff] %v14161_v63  ;;  %v3561_v24 = vmul.f32 %v11162_v55, %v13995_v22  ;;  %v3562_v28 = vmul.f32 %v11162_v55, %v13998_v42  ;;  %4160 = vmatprep.mubr.bf16.mxu1 %v14161_v63  ;;  %4792 = vmatprep.mubr.bf16.mxu0 %v14161_v63 }
 0x82a   : > { %v11164_v52 = vpop.eup %11163  ;;  %4161 = vmatmul.mubr.bf16.gmra.mrb[132].mxu1 %v14159_v53  ;;  %4793 = vmatmul.mubr.bf16.gmra.mrb[132].mxu0 %v14159_v53 }
 0x82b   : > { %v3563_v39 = vmul.f32 %v11164_v52, %v14001_v36  ;;  %v3564_v16 = vmul.f32 %v11164_v52, %v14006_v15  ;;  %4212 = vmatpush1.bf16.msra.mxu1 %v9398_v57  ;;  %v3604_v19 = vmul.f32 %v14041_v35, %v3561_v24  ;;  %v3605_v14 = vmul.f32 %v14044_v60, %v3562_v28  ;;  %v3729_v28 = vld [vmem:[%s12860_s12 + $0x388] sm:$0xff]  ;;  %v9647_v15 = vld [vmem:[%s12860_s12 + $0x238] sm:$0xff] }
 0x82c   : > { %4213 = vmatprep.subr.bf16.mxu1 %v9403_v62  ;;  %v9411_v57 = vcombine.high %v3725_v17, %v3727_v2  ;;  %v3731_v52 = vld [vmem:[%s12860_s12 + $0x3a8] sm:$0xff]  ;;  %v14398_v36 = vld [vmem:[%s12860_s12 + $0x258] sm:$0xff] }
 0x82d   : > { %v3606_v49 = vmul.f32 %v14041_v35, %v3563_v39  ;;  %v3607_v44 = vmul.f32 %v14044_v60, %v3564_v16  ;;  %v9410_v16 = vcombine.low %v3725_v17, %v3727_v2  ;;  %v9414_v17 = vcombine.low %v3729_v28, %v3731_v52 }
 0x82f   : > { %v14179_v7 = vpack.c.bf16 %v3606_v49, %v3604_v19  ;;  %v14181_v55 = vpack.c.bf16 %v3607_v44, %v3605_v14  ;;  %4214 = vmatpush1.bf16.msra.mxu1 %v9402_v45  ;;  %v9415_v45 = vcombine.high %v3729_v28, %v3731_v52  ;;  %v3733_v44 = vld [vmem:[%s12860_s12 + $0x3c8] sm:$0xff] }
 0x830   : > { %v11166_v13 = vpop.eup %11165  ;;  %4215 = vmatprep.subr.bf16.mxu1 %v9407_v9  ;;  %v4309_v52 = vld [vmem:[%s12866_s20 + $0x48] sm:$0xff] }
 0x831   : > { %16988 = vst [vmem:[#allocation91_spill] sm:$0xff] %v14179_v7  ;;  %16989 = vst [vmem:[#allocation92_spill] sm:$0xff] %v14181_v55  ;;  %v3565_v62 = vmul.f32 %v11166_v13, %v14019_v58  ;;  %v3566_v24 = vmul.f32 %v11166_v13, %v14022_v40  ;;  %4170 = vmatprep.mubr.bf16.mxu1 %v14181_v55  ;;  %4802 = vmatprep.mubr.bf16.mxu0 %v14181_v55  ;;  %v3735_v13 = vld [vmem:[%s12860_s12 + $0x3e8] sm:$0xff]  ;;  %v9645_v58 = vld [vmem:[%s12860_s12 + $0x218] sm:$0xff] }
 0x832   : > { %v11168_v39 = vpop.eup %11167  ;;  %4171 = vmatmul.mubr.bf16.gmra.mrb[136].mxu1 %v14179_v7  ;;  %4803 = vmatmul.mubr.bf16.gmra.mrb[136].mxu0 %v14179_v7  ;;  %v9419_v2 = vcombine.high %v3733_v44, %v3735_v13 }
 0x833   : > { %v3567_v31 = vmul.f32 %v11168_v39, %v14025_v33  ;;  %v3568_v30 = vmul.f32 %v11168_v39, %v14030_v43  ;;  %4216 = vmatpush1.bf16.msra.mxu1 %v9406_v56  ;;  %v3608_v9 = vmul.f32 %v14041_v35, %v3565_v62  ;;  %v3609_v19 = vmul.f32 %v14044_v60, %v3566_v24  ;;  %v10785_v62 = vld [vmem:[%s12869_s19] ss:$8 sps:$4 sm:$0xff]   ;;  %v10787_v24 = vld [vmem:[%s12869_s19 + $0x4] ss:$8 sps:$4 sm:$0xff]  }
 0x834   : > { %4217 = vmatprep.subr.bf16.mxu1 %v9411_v57  ;;  %v9418_v57 = vcombine.low %v3733_v44, %v3735_v13  ;;  %v4311_v39 = vld [vmem:[%s12866_s20 + $0x68] sm:$0xff]  ;;  %5867 = vmatprep.subr.bf16.mxu0 %v10787_v24 }
 0x835   : > { %v3610_v14 = vmul.f32 %v14041_v35, %v3567_v31  ;;  %v3611_v49 = vmul.f32 %v14044_v60, %v3568_v30  ;;  %v4305_v35 = vld [vmem:[%s12866_s20 + $0x8] sm:$0xff]  ;;  %5868 = vmatpush1.bf16.msra.mxu0 %v10785_v62  ;;  %v10788_v30 = vld [vmem:[%s12869_s19 + $0x10] ss:$8 sps:$4 sm:$0xff]  }
 0x836   : > { %v4307_v60 = vld [vmem:[%s12866_s20 + $0x28] sm:$0xff] }
 0x837   : > { %v14199_v33 = vpack.c.bf16 %v3610_v14, %v3608_v9  ;;  %v14201_v56 = vpack.c.bf16 %v3611_v49, %v3609_v19  ;;  %4218 = vmatpush1.bf16.msra.mxu1 %v9410_v16  ;;  %v9423_v28 = vcombine.high %v4305_v35, %v4307_v60  ;;  %v9422_v31 = vcombine.low %v4305_v35, %v4307_v60  ;;  %v10790_v16 = vld [vmem:[%s12869_s19 + $0x14] ss:$8 sps:$4 sm:$0xff]   ;;  %v4313_v9 = vld [vmem:[%s12866_s20 + $0x88] sm:$0xff]  ;;  %v10794_v60 = vld [vmem:[%s12869_s19 + $0x30] ss:$8 sps:$4 sm:$0xff]  }
 0x838   : > { %4219 = vmatprep.subr.bf16.mxu1 %v9415_v45  ;;  %v9427_v45 = vcombine.high %v4309_v52, %v4311_v39  ;;  %v4315_v19 = vld [vmem:[%s12866_s20 + $0xa8] sm:$0xff]  ;;  %5869 = vmatprep.subr.bf16.mxu0 %v10790_v16  ;;  %v9426_v14 = vcombine.low %v4309_v52, %v4311_v39 }
 0x839   : > { %16990 = vst [vmem:[#allocation93_spill] sm:$0xff] %v14199_v33  ;;  %16991 = vst [vmem:[#allocation94_spill] sm:$0xff] %v14201_v56  ;;  %4180 = vmatprep.mubr.bf16.mxu1 %v14201_v56  ;;  %4812 = vmatprep.mubr.bf16.mxu0 %v14201_v56  ;;  %v10791_v49 = vld [vmem:[%s12869_s19 + $0x20] ss:$8 sps:$4 sm:$0xff]   ;;  %v10793_v44 = vld [vmem:[%s12869_s19 + $0x24] ss:$8 sps:$4 sm:$0xff]   ;;  %v9431_v13 = vcombine.high %v4313_v9, %v4315_v19  ;;  %v9430_v35 = vcombine.low %v4313_v9, %v4315_v19 }
 0x83a   : > { %4181 = vmatmul.mubr.bf16.gmra.mrb[140].mxu1 %v14199_v33  ;;  %4813 = vmatmul.mubr.bf16.gmra.mrb[140].mxu0 %v14199_v33  ;;  %v4321_v24 = vld [vmem:[%s12866_s20 + $0x108] sm:$0xff]  ;;  %v10800_v19 = vld [vmem:[%s12869_s19 + $0x50] ss:$8 sps:$4 sm:$0xff]  }
 0x83b   : > { %4220 = vmatpush1.bf16.msra.mxu1 %v9414_v17  ;;  %4223 = vmatprep.mubr.bf16.mxu1 %v14058_v8  ;;  %v4317_v17 = vld [vmem:[%s12866_s20 + $0xc8] sm:$0xff] }
 0x83c   : > { %4221 = vmatprep.subr.bf16.mxu1 %v9419_v2  ;;  %5870 = vmatpush1.bf16.msra.mxu0 %v10788_v30  ;;  %v4319_v2 = vld [vmem:[%s12866_s20 + $0xe8] sm:$0xff] }
 0x83d   : > { %5871 = vmatprep.subr.bf16.mxu0 %v10793_v44  ;;  %v9435_v62 = vcombine.high %v4317_v17, %v4319_v2  ;;  %v9434_v52 = vcombine.low %v4317_v17, %v4319_v2  ;;  %v10797_v39 = vld [vmem:[%s12869_s19 + $0x40] ss:$8 sps:$4 sm:$0xff]  }
 0x83e   : > { %v4325_v16 = vld [vmem:[%s12866_s20 + $0x148] sm:$0xff] }
 0x83f   : > { %4222 = vmatpush1.bf16.msra.mxu1 %v9418_v57  ;;  %v10796_v57 = vld [vmem:[%s12869_s19 + $0x34] ss:$8 sps:$4 sm:$0xff]   ;;  %v4329_v44 = vld [vmem:[%s12866_s20 + $0x188] sm:$0xff] }
 0x840   : > { %4823 = vmatprep.subr.bf16.mxu1 %v9423_v28  ;;  %5872 = vmatpush1.bf16.msra.mxu0 %v10791_v49  ;;  %v4323_v28 = vld [vmem:[%s12866_s20 + $0x128] sm:$0xff] }
 0x841   : > { %5873 = vmatprep.subr.bf16.mxu0 %v10796_v57  ;;  %v9439_v30 = vcombine.high %v4321_v24, %v4323_v28  ;;  %v9438_v9 = vcombine.low %v4321_v24, %v4323_v28  ;;  %v10803_v2 = vld [vmem:[%s12869_s19 + $0x60] ss:$8 sps:$4 sm:$0xff]   ;;  %v10808_v28 = vld [vmem:[%s12869_s19 + $0x74] ss:$8 sps:$4 sm:$0xff]  }
 0x842   : > { %4224 = vmatmul.mubr.bf16.vlgmr.msra.gmra.mrb[144].mxu1 %v14056_v11  ;;  %v4333_v57 = vld [vmem:[%s12866_s20 + $0x1c8] sm:$0xff] }
 0x843   : > { %4233 = vmatprep.mubr.bf16.mxu1 %v14081_v27  ;;  %4824 = vmatpush1.bf16.msra.mxu1 %v9422_v31  ;;  %v10799_v31 = vld [vmem:[%s12869_s19 + $0x44] ss:$8 sps:$4 sm:$0xff]  }
 0x844   : > { %4825 = vmatprep.subr.bf16.mxu1 %v9427_v45  ;;  %5874 = vmatpush1.bf16.msra.mxu0 %v10794_v60  ;;  %v4327_v45 = vld [vmem:[%s12866_s20 + $0x168] sm:$0xff] }
 0x845   : > { %5875 = vmatprep.subr.bf16.mxu0 %v10799_v31  ;;  %v9443_v49 = vcombine.high %v4325_v16, %v4327_v45  ;;  %v9442_v17 = vcombine.low %v4325_v16, %v4327_v45  ;;  %v4337_v31 = vld [vmem:[%s12866_s20 + $0x208] sm:$0xff] }
 0x846   : > { %v10811_v45 = vld [vmem:[%s12869_s19 + $0x84] ss:$8 sps:$4 sm:$0xff]  }
 0x847   : > { %4826 = vmatpush1.bf16.msra.mxu1 %v9426_v14  ;;  %v10802_v14 = vld [vmem:[%s12869_s19 + $0x54] ss:$8 sps:$4 sm:$0xff]  }
 0x848   : > { %4827 = vmatprep.subr.bf16.mxu1 %v9431_v13  ;;  %5876 = vmatpush1.bf16.msra.mxu0 %v10797_v39  ;;  %v4331_v13 = vld [vmem:[%s12866_s20 + $0x1a8] sm:$0xff]  ;;  %v10806_v39 = vld [vmem:[%s12869_s19 + $0x70] ss:$8 sps:$4 sm:$0xff]  }
 0x849   : > { %5877 = vmatprep.subr.bf16.mxu0 %v10802_v14  ;;  %v9447_v60 = vcombine.high %v4329_v44, %v4331_v13  ;;  %v9446_v24 = vcombine.low %v4329_v44, %v4331_v13  ;;  %v4341_v14 = vld [vmem:[%s12866_s20 + $0x248] sm:$0xff]  ;;  %v10814_v13 = vld [vmem:[%s12869_s19 + $0x94] ss:$8 sps:$4 sm:$0xff]  }
 0x84a   : > { %4234 = vmatmul.mubr.bf16.gmra.mrb[148].mxu1 %v14079_v38 }
 0x84b   : > { %4243 = vmatprep.mubr.bf16.mxu1 %v14101_v1  ;;  %4828 = vmatpush1.bf16.msra.mxu1 %v9430_v35  ;;  %v10805_v35 = vld [vmem:[%s12869_s19 + $0x64] ss:$8 sps:$4 sm:$0xff]  }
 0x84c   : > { %4829 = vmatprep.subr.bf16.mxu1 %v9435_v62  ;;  %5878 = vmatpush1.bf16.msra.mxu0 %v10800_v19  ;;  %v4335_v62 = vld [vmem:[%s12866_s20 + $0x1e8] sm:$0xff] }
 0x84d   : > { %5879 = vmatprep.subr.bf16.mxu0 %v10805_v35  ;;  %v9450_v16 = vcombine.low %v4333_v57, %v4335_v62  ;;  %v10809_v19 = vld [vmem:[%s12869_s19 + $0x80] ss:$8 sps:$4 sm:$0xff]  }
 0x84e   : > { %v4345_v35 = vld [vmem:[%s12866_s20 + $0x288] sm:$0xff] }
 0x84f   : > { %4830 = vmatpush1.bf16.msra.mxu1 %v9434_v52  ;;  %v9451_v52 = vcombine.high %v4333_v57, %v4335_v62  ;;  %v10817_v62 = vld [vmem:[%s12869_s19 + $0xa4] ss:$8 sps:$4 sm:$0xff]  }
 0x850   : > { %4831 = vmatprep.subr.bf16.mxu1 %v9439_v30  ;;  %5880 = vmatpush1.bf16.msra.mxu0 %v10803_v2  ;;  %v4339_v30 = vld [vmem:[%s12866_s20 + $0x228] sm:$0xff]  ;;  %v10812_v2 = vld [vmem:[%s12869_s19 + $0x90] ss:$8 sps:$4 sm:$0xff]  }
 0x851   : > { %5881 = vmatprep.subr.bf16.mxu0 %v10808_v28  ;;  %v9454_v44 = vcombine.low %v4337_v31, %v4339_v30  ;;  %v10815_v28 = vld [vmem:[%s12869_s19 + $0xa0] ss:$8 sps:$4 sm:$0xff]  }
 0x852   : > { %4244 = vmatmul.mubr.bf16.gmra.mrb[152].mxu1 %v14099_v5 }
 0x853   : > { %4253 = vmatprep.mubr.bf16.mxu1 %v14121_v4  ;;  %4832 = vmatpush1.bf16.msra.mxu1 %v9438_v9  ;;  %v9455_v9 = vcombine.high %v4337_v31, %v4339_v30  ;;  %v10820_v30 = vld [vmem:[%s12869_s19 + $0xb4] ss:$8 sps:$4 sm:$0xff]  }
 0x854   : > { %4833 = vmatprep.subr.bf16.mxu1 %v9443_v49  ;;  %5882 = vmatpush1.bf16.msra.mxu0 %v10806_v39  ;;  %v4343_v49 = vld [vmem:[%s12866_s20 + $0x268] sm:$0xff] }
 0x855   : > { %5883 = vmatprep.subr.bf16.mxu0 %v10811_v45  ;;  %v9458_v57 = vcombine.low %v4341_v14, %v4343_v49  ;;  %v4351_v39 = vld [vmem:[%s12866_s20 + $0x2e8] sm:$0xff]  ;;  %v10818_v45 = vld [vmem:[%s12869_s19 + $0xb0] ss:$8 sps:$4 sm:$0xff]  }
 0x857   : > { %4834 = vmatpush1.bf16.msra.mxu1 %v9442_v17  ;;  %v9459_v17 = vcombine.high %v4341_v14, %v4343_v49  ;;  %v10823_v49 = vld [vmem:[%s12869_s19 + $0xc4] ss:$8 sps:$4 sm:$0xff]  }
 0x858   : > { %4835 = vmatprep.subr.bf16.mxu1 %v9447_v60  ;;  %5884 = vmatpush1.bf16.msra.mxu0 %v10809_v19  ;;  %v4347_v60 = vld [vmem:[%s12866_s20 + $0x2a8] sm:$0xff] }
 0x859   : > { %5885 = vmatprep.subr.bf16.mxu0 %v10814_v13  ;;  %v9462_v31 = vcombine.low %v4345_v35, %v4347_v60  ;;  %v4355_v19 = vld [vmem:[%s12866_s20 + $0x328] sm:$0xff] }
 0x85a   : > { %4254 = vmatmul.mubr.bf16.gmra.mrb[156].mxu1 %v14119_v26  ;;  %v10821_v13 = vld [vmem:[%s12869_s19 + $0xc0] ss:$8 sps:$4 sm:$0xff]  }
 0x85b   : > { %4263 = vmatprep.mubr.bf16.mxu1 %v14141_v59  ;;  %4836 = vmatpush1.bf16.msra.mxu1 %v9446_v24  ;;  %v9463_v24 = vcombine.high %v4345_v35, %v4347_v60  ;;  %v10826_v60 = vld [vmem:[%s12869_s19 + $0xd4] ss:$8 sps:$4 sm:$0xff]  }
 0x85c   : > { %4837 = vmatprep.subr.bf16.mxu1 %v9451_v52  ;;  %5886 = vmatpush1.bf16.msra.mxu0 %v10812_v2  ;;  %v4349_v52 = vld [vmem:[%s12866_s20 + $0x2c8] sm:$0xff] }
 0x85d   : > { %5887 = vmatprep.subr.bf16.mxu0 %v10817_v62  ;;  %v9466_v14 = vcombine.low %v4349_v52, %v4351_v39  ;;  %v4359_v2 = vld [vmem:[%s12866_s20 + $0x368] sm:$0xff]  ;;  %v10824_v62 = vld [vmem:[%s12869_s19 + $0xd0] ss:$8 sps:$4 sm:$0xff]  }
 0x85f   : > { %4838 = vmatpush1.bf16.msra.mxu1 %v9450_v16  ;;  %v9467_v16 = vcombine.high %v4349_v52, %v4351_v39  ;;  %v10829_v39 = vld [vmem:[%s12869_s19 + $0xe4] ss:$8 sps:$4 sm:$0xff]  }
 0x860   : > { %4839 = vmatprep.subr.bf16.mxu1 %v9455_v9  ;;  %5888 = vmatpush1.bf16.msra.mxu0 %v10815_v28  ;;  %v4353_v9 = vld [vmem:[%s12866_s20 + $0x308] sm:$0xff] }
 0x861   : > { %5889 = vmatprep.subr.bf16.mxu0 %v10820_v30  ;;  %v9470_v35 = vcombine.low %v4353_v9, %v4355_v19  ;;  %v4363_v28 = vld [vmem:[%s12866_s20 + $0x3a8] sm:$0xff] }
 0x862   : > { %4264 = vmatmul.mubr.bf16.gmra.mrb[160].mxu1 %v14139_v21  ;;  %v10827_v30 = vld [vmem:[%s12869_s19 + $0xe0] ss:$8 sps:$4 sm:$0xff]  }
 0x863   : > { %4273 = vmatprep.mubr.bf16.mxu1 %v14161_v63  ;;  %4840 = vmatpush1.bf16.msra.mxu1 %v9454_v44  ;;  %v9471_v44 = vcombine.high %v4353_v9, %v4355_v19 }
 0x864   : > { %4841 = vmatprep.subr.bf16.mxu1 %v9459_v17  ;;  %5890 = vmatpush1.bf16.msra.mxu0 %v10818_v45  ;;  %v4357_v17 = vld [vmem:[%s12866_s20 + $0x348] sm:$0xff] }
 0x865   : > { %5891 = vmatprep.subr.bf16.mxu0 %v10823_v49  ;;  %v9474_v52 = vcombine.low %v4357_v17, %v4359_v2  ;;  %v4367_v45 = vld [vmem:[%s12866_s20 + $0x3e8] sm:$0xff]  ;;  %v9612_v49 = vld [vmem:[%s12860_s12 + $0x10] sm:$0xff] }
 0x867   : > { %4842 = vmatpush1.bf16.msra.mxu1 %v9458_v57  ;;  %v9475_v57 = vcombine.high %v4357_v17, %v4359_v2 }
 0x868   : > { %4843 = vmatprep.subr.bf16.mxu1 %v9463_v24  ;;  %5892 = vmatpush1.bf16.msra.mxu0 %v10821_v13  ;;  %v4361_v24 = vld [vmem:[%s12866_s20 + $0x388] sm:$0xff]  ;;  %v10830_v13 = vld [vmem:[%s12869_s19 + $0xf0] ss:$8 sps:$4 sm:$0xff]  }
 0x869   : > { %5893 = vmatprep.subr.bf16.mxu0 %v10826_v60  ;;  %v9478_v9 = vcombine.low %v4361_v24, %v4363_v28  ;;  %v9618_v60 = vld [vmem:[%s12860_s12 + $0x70] sm:$0xff] }
 0x86a   : > { %4274 = vmatmul.mubr.bf16.gmra.mrb[164].mxu1 %v14159_v53 }
 0x86b   : > { %4283 = vmatprep.mubr.bf16.mxu1 %v14181_v55  ;;  %4844 = vmatpush1.bf16.msra.mxu1 %v9462_v31  ;;  %v9479_v31 = vcombine.high %v4361_v24, %v4363_v28  ;;  %v9620_v24 = vld [vmem:[%s12860_s12 + $0x90] sm:$0xff] }
 0x86c   : > { %4845 = vmatprep.subr.bf16.mxu1 %v9467_v16  ;;  %5894 = vmatpush1.bf16.msra.mxu0 %v10824_v62  ;;  %v4365_v16 = vld [vmem:[%s12866_s20 + $0x3c8] sm:$0xff]  ;;  %v9622_v28 = vld [vmem:[%s12860_s12 + $0xb0] sm:$0xff] }
 0x86d   : > { %5895 = vmatprep.subr.bf16.mxu0 %v10829_v39  ;;  %v9483_v19 = vcombine.high %v4365_v16, %v4367_v45  ;;  %v9482_v17 = vcombine.low %v4365_v16, %v4367_v45  ;;  %v9686_v39 = vcombine.high %v9620_v24, %v9622_v28  ;;  %v9685_v16 = vcombine.low %v9620_v24, %v9622_v28  ;;  %v9640_v24 = vld [vmem:[%s12860_s12 + $0x1d0] sm:$0xff] }
 0x86e   : > { %v9642_v28 = vld [vmem:[%s12860_s12 + $0x1f0] sm:$0xff] }
 0x86f   : > { %4846 = vmatpush1.bf16.msra.mxu1 %v9466_v14  ;;  %v10832_v14 = vld [vmem:[%s12869_s19 + $0xf4] ss:$8 sps:$4 sm:$0xff]  }
 0x870   : > { %4847 = vmatprep.subr.bf16.mxu1 %v9471_v44  ;;  %5896 = vmatpush1.bf16.msra.mxu0 %v10827_v30  ;;  %v9614_v44 = vld [vmem:[%s12860_s12 + $0x30] sm:$0xff] }
 0x871   : > { %5897 = vmatprep.subr.bf16.mxu0 %v10832_v14  ;;  %v9678_v2 = vcombine.high %v9612_v49, %v9614_v44  ;;  %v9626_v30 = vld [vmem:[%s12860_s12 + $0xf0] sm:$0xff] }
 0x872   : > { %4284 = vmatmul.mubr.bf16.gmra.mrb[168].mxu1 %v14179_v7 }
 0x873   : > { %4293 = vmatprep.mubr.bf16.mxu1 %v14201_v56  ;;  %4848 = vmatpush1.bf16.msra.mxu1 %v9470_v35  ;;  %v9616_v35 = vld [vmem:[%s12860_s12 + $0x50] sm:$0xff] }
 0x874   : > { %4849 = vmatprep.subr.bf16.mxu1 %v9475_v57  ;;  %5898 = vmatpush1.bf16.msra.mxu0 %v10830_v13  ;;  %v9677_v57 = vcombine.low %v9612_v49, %v9614_v44  ;;  %v9682_v62 = vcombine.high %v9616_v35, %v9618_v60  ;;  %v9632_v44 = vld [vmem:[%s12860_s12 + $0x150] sm:$0xff] }
 0x875   : > { %v9634_v13 = vld [vmem:[%s12860_s12 + $0x170] sm:$0xff] }
 0x877   : > { %4850 = vmatpush1.bf16.msra.mxu1 %v9474_v52  ;;  %v9681_v52 = vcombine.low %v9616_v35, %v9618_v60  ;;  %v9636_v35 = vld [vmem:[%s12860_s12 + $0x190] sm:$0xff] }
 0x878   : > { %4851 = vmatprep.subr.bf16.mxu1 %v9479_v31  ;;  %v9624_v31 = vld [vmem:[%s12860_s12 + $0xd0] sm:$0xff] }
 0x879   : > { %v9690_v45 = vcombine.high %v9624_v31, %v9626_v30  ;;  %v9689_v14 = vcombine.low %v9624_v31, %v9626_v30  ;;  %v9638_v60 = vld [vmem:[%s12860_s12 + $0x1b0] sm:$0xff] }
 0x87a   : > { %4294 = vmatmul.mubr.bf16.gmra.mrb[172].mxu1 %v14199_v33  ;;  %v9644_v31 = vld [vmem:[%s12860_s12 + $0x210] sm:$0xff] }
 0x87b   : > { %4852 = vmatpush1.bf16.msra.mxu1 %v9478_v9  ;;  %4855 = vmatprep.mubr.bf16.mxu1 %v14058_v8  ;;  %v9628_v9 = vld [vmem:[%s12860_s12 + $0x110] sm:$0xff] }
 0x87c   : > { %4853 = vmatprep.subr.bf16.mxu1 %v9483_v19  ;;  %v9630_v19 = vld [vmem:[%s12860_s12 + $0x130] sm:$0xff] }
 0x87d   : > { %v9694_v49 = vcombine.high %v9628_v9, %v9630_v19  ;;  %v9646_v30 = vld [vmem:[%s12860_s12 + $0x230] sm:$0xff] }
 0x87f   : > { %4854 = vmatpush1.bf16.msra.mxu1 %v9482_v17  ;;  %v9693_v17 = vcombine.low %v9628_v9, %v9630_v19  ;;  %v9648_v9 = vld [vmem:[%s12860_s12 + $0x250] sm:$0xff] }
 0x880   : > { %6533 = vmatprep.subr.bf16.mxu1 %v9678_v2  ;;  %v9698_v2 = vcombine.high %v9632_v44, %v9634_v13  ;;  %v9650_v19 = vld [vmem:[%s12860_s12 + $0x270] sm:$0xff] }
 0x882   : > { %4856 = vmatmul.mubr.bf16.vlgmr.msra.gmra.mrb[176].mxu1 %v14056_v11 }
 0x883   : > { %4865 = vmatprep.mubr.bf16.mxu1 %v14081_v27  ;;  %6534 = vmatpush1.bf16.msra.mxu1 %v9677_v57  ;;  %v9697_v57 = vcombine.low %v9632_v44, %v9634_v13  ;;  %v9652_v44 = vld [vmem:[%s12860_s12 + $0x290] sm:$0xff] }
 0x884   : > { %6535 = vmatprep.subr.bf16.mxu1 %v9682_v62  ;;  %v9702_v62 = vcombine.high %v9636_v35, %v9638_v60  ;;  %v9654_v13 = vld [vmem:[%s12860_s12 + $0x2b0] sm:$0xff] }
 0x887   : > { %6536 = vmatpush1.bf16.msra.mxu1 %v9681_v52  ;;  %v9701_v52 = vcombine.low %v9636_v35, %v9638_v60  ;;  %v9656_v35 = vld [vmem:[%s12860_s12 + $0x2d0] sm:$0xff] }
 0x888   : > { %6537 = vmatprep.subr.bf16.mxu1 %v9686_v39  ;;  %v9706_v39 = vcombine.high %v9640_v24, %v9642_v28  ;;  %v9658_v60 = vld [vmem:[%s12860_s12 + $0x2f0] sm:$0xff] }
 0x88a   : > { %4866 = vmatmul.mubr.bf16.gmra.mrb[180].mxu1 %v14079_v38 }
 0x88b   : > { %4875 = vmatprep.mubr.bf16.mxu1 %v14101_v1  ;;  %6538 = vmatpush1.bf16.msra.mxu1 %v9685_v16  ;;  %v9705_v16 = vcombine.low %v9640_v24, %v9642_v28  ;;  %v9722_v24 = vcombine.high %v9656_v35, %v9658_v60  ;;  %v9660_v28 = vld [vmem:[%s12860_s12 + $0x310] sm:$0xff] }
 0x88c   : > { %6539 = vmatprep.subr.bf16.mxu1 %v9690_v45  ;;  %v9710_v45 = vcombine.high %v9644_v31, %v9646_v30 }
 0x88f   : > { %6540 = vmatpush1.bf16.msra.mxu1 %v9689_v14  ;;  %v9709_v14 = vcombine.low %v9644_v31, %v9646_v30  ;;  %v9664_v30 = vld [vmem:[%s12860_s12 + $0x350] sm:$0xff] }
 0x890   : > { %6541 = vmatprep.subr.bf16.mxu1 %v9694_v49  ;;  %v9714_v49 = vcombine.high %v9648_v9, %v9650_v19 }
 0x892   : > { %4876 = vmatmul.mubr.bf16.gmra.mrb[184].mxu1 %v14099_v5 }
 0x893   : > { %4885 = vmatprep.mubr.bf16.mxu1 %v14121_v4  ;;  %6542 = vmatpush1.bf16.msra.mxu1 %v9693_v17  ;;  %v9713_v17 = vcombine.low %v9648_v9, %v9650_v19  ;;  %v9668_v19 = vld [vmem:[%s12860_s12 + $0x390] sm:$0xff] }
 0x894   : > { %6543 = vmatprep.subr.bf16.mxu1 %v9698_v2  ;;  %v9718_v2 = vcombine.high %v9652_v44, %v9654_v13 }
 0x897   : > { %6544 = vmatpush1.bf16.msra.mxu1 %v9697_v57  ;;  %v10835_v57 = vld [vmem:[%s12869_s19 + $0x104] ss:$8 sps:$4 sm:$0xff]  }
 0x898   : > { %6545 = vmatprep.subr.bf16.mxu1 %v9702_v62  ;;  %v9717_v62 = vcombine.low %v9652_v44, %v9654_v13  ;;  %5980 = vmatprep.subr.bf16.mxu0 %v10835_v57  ;;  %v9672_v13 = vld [vmem:[%s12860_s12 + $0x3d0] sm:$0xff]  ;;  %v9615_v57 = vld [vmem:[%s12860_s12 + $0x38] sm:$0xff] }
 0x89a   : > { %4886 = vmatmul.mubr.bf16.gmra.mrb[188].mxu1 %v14119_v26 }
 0x89b   : > { %4895 = vmatprep.mubr.bf16.mxu1 %v14141_v59  ;;  %6546 = vmatpush1.bf16.msra.mxu1 %v9701_v52  ;;  %v9662_v52 = vld [vmem:[%s12860_s12 + $0x330] sm:$0xff] }
 0x89c   : > { %6547 = vmatprep.subr.bf16.mxu1 %v9706_v39  ;;  %v9721_v39 = vcombine.low %v9656_v35, %v9658_v60  ;;  %v9726_v31 = vcombine.high %v9660_v28, %v9662_v52  ;;  %v9613_v60 = vld [vmem:[%s12860_s12 + $0x18] sm:$0xff] }
 0x89f   : > { %6548 = vmatpush1.bf16.msra.mxu1 %v9705_v16  ;;  %v9666_v16 = vld [vmem:[%s12860_s12 + $0x370] sm:$0xff] }
 0x8a0   : > { %6549 = vmatprep.subr.bf16.mxu1 %v9710_v45  ;;  %v9725_v45 = vcombine.low %v9660_v28, %v9662_v52  ;;  %v9730_v9 = vcombine.high %v9664_v30, %v9666_v16  ;;  %v9617_v28 = vld [vmem:[%s12860_s12 + $0x58] sm:$0xff] }
 0x8a1   : > { %v9619_v52 = vld [vmem:[%s12860_s12 + $0x78] sm:$0xff] }
 0x8a2   : > { %4896 = vmatmul.mubr.bf16.gmra.mrb[192].mxu1 %v14139_v21 }
 0x8a3   : > { %4905 = vmatprep.mubr.bf16.mxu1 %v14161_v63  ;;  %6550 = vmatpush1.bf16.msra.mxu1 %v9709_v14  ;;  %v9670_v14 = vld [vmem:[%s12860_s12 + $0x3b0] sm:$0xff] }
 0x8a4   : > { %6551 = vmatprep.subr.bf16.mxu1 %v9714_v49  ;;  %v9729_v49 = vcombine.low %v9664_v30, %v9666_v16  ;;  %v9734_v44 = vcombine.high %v9668_v19, %v9670_v14  ;;  %v9621_v30 = vld [vmem:[%s12860_s12 + $0x98] sm:$0xff] }
 0x8a5   : > { %v9623_v16 = vld [vmem:[%s12860_s12 + $0xb8] sm:$0xff] }
 0x8a7   : > { %6552 = vmatpush1.bf16.msra.mxu1 %v9713_v17  ;;  %v9674_v17 = vld [vmem:[%s12860_s12 + $0x3f0] sm:$0xff] }
 0x8a8   : > { %6553 = vmatprep.subr.bf16.mxu1 %v9718_v2  ;;  %v9733_v2 = vcombine.low %v9668_v19, %v9670_v14  ;;  %v9738_v35 = vcombine.high %v9672_v13, %v9674_v17  ;;  %v9625_v19 = vld [vmem:[%s12860_s12 + $0xd8] sm:$0xff] }
 0x8a9   : > { %v9627_v14 = vld [vmem:[%s12860_s12 + $0xf8] sm:$0xff] }
 0x8aa   : > { %4906 = vmatmul.mubr.bf16.gmra.mrb[196].mxu1 %v14159_v53 }
 0x8ab   : > { %4915 = vmatprep.mubr.bf16.mxu1 %v14181_v55  ;;  %6554 = vmatpush1.bf16.msra.mxu1 %v9717_v62  ;;  %v9737_v62 = vcombine.low %v9672_v13, %v9674_v17  ;;  %v9629_v13 = vld [vmem:[%s12860_s12 + $0x118] sm:$0xff] }
 0x8ac   : > { %6555 = vmatprep.subr.bf16.mxu1 %v9722_v24  ;;  %v9680_v24 = vcombine.high %v9613_v60, %v9615_v57  ;;  %v9631_v17 = vld [vmem:[%s12860_s12 + $0x138] sm:$0xff] }
 0x8af   : > { %6556 = vmatpush1.bf16.msra.mxu1 %v9721_v39  ;;  %v9679_v39 = vcombine.low %v9613_v60, %v9615_v57  ;;  %v9633_v60 = vld [vmem:[%s12860_s12 + $0x158] sm:$0xff] }
 0x8b0   : > { %6557 = vmatprep.subr.bf16.mxu1 %v9726_v31  ;;  %v9684_v31 = vcombine.high %v9617_v28, %v9619_v52  ;;  %v9635_v57 = vld [vmem:[%s12860_s12 + $0x178] sm:$0xff] }
 0x8b2   : > { %4916 = vmatmul.mubr.bf16.gmra.mrb[200].mxu1 %v14179_v7 }
 0x8b3   : > { %4925 = vmatprep.mubr.bf16.mxu1 %v14201_v56  ;;  %6558 = vmatpush1.bf16.msra.mxu1 %v9725_v45  ;;  %v9683_v45 = vcombine.low %v9617_v28, %v9619_v52  ;;  %v9700_v28 = vcombine.high %v9633_v60, %v9635_v57  ;;  %v9637_v52 = vld [vmem:[%s12860_s12 + $0x198] sm:$0xff] }
 0x8b4   : > { %6559 = vmatprep.subr.bf16.mxu1 %v9730_v9  ;;  %v9688_v9 = vcombine.high %v9621_v30, %v9623_v16 }
 0x8b7   : > { %6560 = vmatpush1.bf16.msra.mxu1 %v9729_v49  ;;  %v9687_v49 = vcombine.low %v9621_v30, %v9623_v16  ;;  %v9699_v16 = vcombine.low %v9633_v60, %v9635_v57 }
 0x8b8   : > { %6561 = vmatprep.subr.bf16.mxu1 %v9734_v44  ;;  %v9692_v44 = vcombine.high %v9625_v19, %v9627_v14 }
 0x8ba   : > { %4926 = vmatmul.mubr.bf16.gmra.mrb[204].mxu1 %v14199_v33 }
 0x8bb   : > { %6562 = vmatpush1.bf16.msra.mxu1 %v9733_v2  ;;  %6565 = vmatprep.mubr.bf16.mxu1 %v14058_v8  ;;  %v9691_v2 = vcombine.low %v9625_v19, %v9627_v14  ;;  %v9641_v14 = vld [vmem:[%s12860_s12 + $0x1d8] sm:$0xff] }
 0x8bc   : > { %6563 = vmatprep.subr.bf16.mxu1 %v9738_v35  ;;  %v9696_v35 = vcombine.high %v9629_v13, %v9631_v17 }
 0x8bf   : > { %6564 = vmatpush1.bf16.msra.mxu1 %v9737_v62  ;;  %v9695_v62 = vcombine.low %v9629_v13, %v9631_v17 }
 0x8c0   : > { %6646 = vmatprep.subr.bf16.mxu1 %v9680_v24  ;;  %v3736_v24 = vld [vmem:[%s12880_s18] sm:$0xf] }
 0x8c1   : > { %v14362_v30 = vrot.slane %v3736_v24, %v12997_v6 }
 0x8c2   : > { %6566 = vmatmul.mubr.bf16.vlgmr.msra.gmra.mrb[208].mxu1 %v14056_v11 }
 0x8c3   : > { %6575 = vmatprep.mubr.bf16.mxu1 %v14081_v27  ;;  %6647 = vmatpush1.bf16.msra.mxu1 %v9679_v39  ;;  %v9639_v39 = vld [vmem:[%s12860_s12 + $0x1b8] sm:$0xff] }
 0x8c4   : > { %6648 = vmatprep.subr.bf16.mxu1 %v9684_v31  ;;  %v14358_v31 = vrot.slane %v3736_v24, %v13002_v10  ;;  %v9703_v57 = vcombine.low %v9637_v52, %v9639_v39  ;;  %v14551_v27 = vld [vmem:[%s12866_s20 + $0x138] sm:$0xff] }
 0x8c5   : > { %16999 = vst [vmem:[#allocation102_spill] sm:$0xff] %v14551_v27 }
 0x8c7   : > { %6649 = vmatpush1.bf16.msra.mxu1 %v9683_v45  ;;  %v9704_v45 = vcombine.high %v9637_v52, %v9639_v39 }
 0x8c8   : > { %6650 = vmatprep.subr.bf16.mxu1 %v9688_v9 }
 0x8ca   : > { %6576 = vmatmul.mubr.bf16.gmra.mrb[212].mxu1 %v14079_v38 }
 0x8cb   : > { %6585 = vmatprep.mubr.bf16.mxu1 %v14101_v1  ;;  %6651 = vmatpush1.bf16.msra.mxu1 %v9687_v49  ;;  %v9643_v49 = vld [vmem:[%s12860_s12 + $0x1f8] sm:$0xff] }
 0x8cc   : > { %6652 = vmatprep.subr.bf16.mxu1 %v9692_v44  ;;  %v9708_v43 = vcombine.high %v9641_v14, %v9643_v49 }
 0x8cf   : > { %6653 = vmatpush1.bf16.msra.mxu1 %v9691_v2 }
 0x8d0   : > { %6654 = vmatprep.subr.bf16.mxu1 %v9696_v35 }
 0x8d2   : > { %6586 = vmatmul.mubr.bf16.gmra.mrb[216].mxu1 %v14099_v5 }
 0x8d3   : > { %6595 = vmatprep.mubr.bf16.mxu1 %v14121_v4  ;;  %6655 = vmatpush1.bf16.msra.mxu1 %v9695_v62 }
 0x8d4   : > { %6656 = vmatprep.subr.bf16.mxu1 %v9700_v28 }
 0x8d5   : > { %v4112_v9 = vpop.f32.mrb[112].mxu1  ;;  %v14364_v19 = vpop.f32.mrb[112].mxu0 }
 0x8d6   : > { %v14369_v44 = vadd.f32 %v4112_v9, %v14358_v31  ;;  %v4114_v13 = vpop.f32.mrb[113].mxu1  ;;  %v14371_v17 = vpop.f32.mrb[113].mxu0 }
 0x8d7   : > { %v14374_v2 = vadd.f32 %v4114_v13, %v14362_v30  ;;  %v4116_v35 = vpop.f32.mrb[114].mxu1  ;;  %v14376_v60 = vpop.f32.mrb[114].mxu0  ;;  %6657 = vmatpush1.bf16.msra.mxu1 %v9699_v16  ;;  %v9707_v16 = vcombine.low %v9641_v14, %v9643_v49  ;;  %v14409_v14 = vld [vmem:[%s12860_s12 + $0x298] sm:$0xff] }
 0x8d8   : > { %v9484_v62 = vmul.f32 -1.442695, %v14369_v44  ;;  %v14380_v24 = vadd.f32 %v4116_v35, %v14358_v31  ;;  %v4118_v28 = vpop.f32.mrb[115].mxu1  ;;  %v14382_v9 = vpop.f32.mrb[115].mxu0  ;;  %6658 = vmatprep.subr.bf16.mxu1 %v9704_v45  ;;  %v4368_v45 = vld [vmem:[%s12885_s1] sm:$0xf]  ;;  %v9712_v35 = vcombine.high %v9645_v58, %v9647_v15 }
 0x8d9   : > { %v9485_v40 = vmul.f32 -1.442695, %v14374_v2  ;;  %v14386_v13 = vadd.f32 %v4118_v28, %v14362_v30  ;;  %v14415_v49 = vrot.slane %v4368_v45, %v13002_v10  ;;  %v14429_v3 = vrot.slane %v4368_v45, %v12997_v6 }
 0x8da   : > { %11169 = vpow2.f32 %v9484_v62  ;;  %v9488_v52 = vmul.f32 -1.442695, %v14380_v24  ;;  %6596 = vmatmul.mubr.bf16.gmra.mrb[220].mxu1 %v14119_v26  ;;  %v14536_v26 = vld [vmem:[%s12866_s20 + $0xd8] sm:$0xff] }
 0x8db   : > { %11171 = vpow2.f32 %v9485_v40  ;;  %v9489_v39 = vmul.f32 -1.442695, %v14386_v13  ;;  %6605 = vmatprep.mubr.bf16.mxu1 %v14141_v59  ;;  %6659 = vmatpush1.bf16.msra.mxu1 %v9703_v57  ;;  %v14401_v40 = vld [vmem:[%s12860_s12 + $0x278] sm:$0xff]  ;;  %16997 = vst [vmem:[#allocation100_spill] sm:$0xff] %v14536_v26 }
 0x8dc   : > { %11173 = vpow2.f32 %v9488_v52  ;;  %6660 = vmatprep.subr.bf16.mxu1 %v9708_v43  ;;  %v14412_v43 = vld [vmem:[%s12860_s12 + $0x2b8] sm:$0xff] }
 0x8dd   : > { %11175 = vpow2.f32 %v9489_v39  ;;  %v4122_v62 = vpop.f32.mrb[116].mxu1  ;;  %v14395_v28 = vpop.f32.mrb[116].mxu0  ;;  %v9720_v29 = vcombine.high %v14409_v14, %v14412_v43 }
 0x8de   : > { %v14404_v42 = vadd.f32 %v4122_v62, %v14358_v31  ;;  %v4124_v22 = vpop.f32.mrb[117].mxu1  ;;  %v14406_v57 = vpop.f32.mrb[117].mxu0  ;;  %v9711_v62 = vcombine.low %v9645_v58, %v9647_v15  ;;  %v9716_v15 = vcombine.high %v14398_v36, %v14401_v40  ;;  %v14440_v58 = vld [vmem:[%s12860_s12 + $0x318] sm:$0xff] }
 0x8df   : > { %v14418_v52 = vadd.f32 %v4124_v22, %v14362_v30  ;;  %v4126_v39 = vpop.f32.mrb[118].mxu1  ;;  %v14420_v0 = vpop.f32.mrb[118].mxu0  ;;  %6661 = vmatpush1.bf16.msra.mxu1 %v9707_v16  ;;  %v14443_v16 = vld [vmem:[%s12860_s12 + $0x338] sm:$0xff] }
 0x8e0   : > { %v9492_v12 = vmul.f32 -1.442695, %v14404_v42  ;;  %v14433_v46 = vadd.f32 %v4126_v39, %v14358_v31  ;;  %v4128_v22 = vpop.f32.mrb[119].mxu1  ;;  %v14435_v61 = vpop.f32.mrb[119].mxu0  ;;  %6662 = vmatprep.subr.bf16.mxu1 %v9712_v35  ;;  %v9715_v39 = vcombine.low %v14398_v36, %v14401_v40  ;;  %v14454_v35 = vld [vmem:[%s12860_s12 + $0x358] sm:$0xff] }
 0x8e1   : > { %v9493_v45 = vmul.f32 -1.442695, %v14418_v52  ;;  %v14447_v54 = vadd.f32 %v4128_v22, %v14362_v30  ;;  %v14466_v40 = vld [vmem:[%s12860_s12 + $0x398] sm:$0xff] }
 0x8e2   : > { %11177 = vpow2.f32 %v9492_v12  ;;  %v9496_v50 = vmul.f32 -1.442695, %v14433_v46  ;;  %6606 = vmatmul.mubr.bf16.gmra.mrb[224].mxu1 %v14139_v21  ;;  %v14481_v36 = vld [vmem:[%s12860_s12 + $0x3f8] sm:$0xff] }
 0x8e3   : > { %11179 = vpow2.f32 %v9493_v45  ;;  %v9497_v20 = vmul.f32 -1.442695, %v14447_v54  ;;  %6615 = vmatprep.mubr.bf16.mxu1 %v14161_v63  ;;  %6663 = vmatpush1.bf16.msra.mxu1 %v9711_v62  ;;  %v14490_v12 = vld [vmem:[%s12866_s20 + $0x18] sm:$0xff] }
 0x8e4   : > { %v11170_v51 = vpop.eup %11169  ;;  %11181 = vpow2.f32 %v9496_v50  ;;  %6664 = vmatprep.subr.bf16.mxu1 %v9716_v15  ;;  %v14493_v22 = vld [vmem:[%s12866_s20 + $0x38] sm:$0xff] }
 0x8e5   : > { %v11172_v18 = vpop.eup %11171  ;;  %v5128_v6 = vadd.f32 1.0, %v11170_v51  ;;  %11183 = vpow2.f32 %v9497_v20  ;;  %v4132_v10 = vpop.f32.mrb[120].mxu1  ;;  %v14511_v63 = vld [vmem:[%s12866_s20 + $0x58] sm:$0xff] }
 0x8e6   : > { %v14495_v50 = vpop.f32.mrb[120].mxu0  ;;  %v11174_v45 = vpop.eup %11173  ;;  %v5129_v62 = vadd.f32 1.0, %v11172_v18  ;;  %v14502_v48 = vadd.f32 %v4132_v10, %v14358_v31  ;;  %v14521_v20 = vld [vmem:[%s12866_s20 + $0x78] sm:$0xff] }
 0x8e7   : > { %v4134_v25 = vpop.f32.mrb[121].mxu1  ;;  %v14504_v51 = vpop.f32.mrb[121].mxu0  ;;  %11185 = vrcp.f32 %v5128_v6  ;;  %v5132_v21 = vadd.f32 1.0, %v11174_v45  ;;  %6665 = vmatpush1.bf16.msra.mxu1 %v9715_v39  ;;  %v14524_v15 = vld [vmem:[%s12866_s20 + $0x98] sm:$0xff] }
 0x8e8   : > { %v11176_v23 = vpop.eup %11175  ;;  %v14514_v18 = vadd.f32 %v4134_v25, %v14362_v30  ;;  %v4136_v10 = vpop.f32.mrb[122].mxu1  ;;  %16993 = vst [vmem:[#allocation96_spill] sm:$0xff] %v14524_v15  ;;  %v14527_v6 = vld [vmem:[%s12866_s20 + $0xb8] sm:$0xff]  ;;  %11187 = vrcp.f32 %v5129_v62  ;;  %v9500_v25 = vmul.f32 -1.442695, %v14502_v48  ;;  %6666 = vmatprep.subr.bf16.mxu1 %v9720_v29 }
 0x8e9   : > { %v14516_v59 = vpop.f32.mrb[122].mxu0  ;;  %16994 = vst [vmem:[#allocation97_spill] sm:$0xff] %v14527_v6  ;;  %v5133_v45 = vadd.f32 1.0, %v11176_v23  ;;  %v14531_v4 = vadd.f32 %v4136_v10, %v14358_v31  ;;  %v4138_v39 = vpop.f32.mrb[123].mxu1  ;;  %11189 = vrcp.f32 %v5132_v21  ;;  %v14545_v62 = vld [vmem:[%s12866_s20 + $0xf8] sm:$0xff] }
 0x8ea   : > { %16992 = vst [vmem:[#allocation95_spill] sm:$0xff] %v14514_v18  ;;  %v14533_v5 = vpop.f32.mrb[123].mxu0  ;;  %v9501_v1 = vmul.f32 -1.442695, %v14514_v18  ;;  %v14540_v38 = vadd.f32 %v4138_v39, %v14362_v30  ;;  %16998 = vst [vmem:[#allocation101_spill] sm:$0xff] %v14545_v62  ;;  %v14548_v10 = vld [vmem:[%s12866_s20 + $0x118] sm:$0xff]  ;;  %6616 = vmatmul.mubr.bf16.gmra.mrb[228].mxu1 %v14159_v53 }
 0x8eb   : > { %16995 = vst [vmem:[#allocation98_spill] sm:$0xff] %v14531_v4  ;;  %16996 = vst [vmem:[#allocation99_spill] sm:$0xff] %v14533_v5  ;;  %11191 = vrcp.f32 %v5133_v45  ;;  %v9504_v29 = vmul.f32 -1.442695, %v14531_v4  ;;  %v14560_v23 = vld [vmem:[%s12866_s20 + $0x158] sm:$0xff]  ;;  %6625 = vmatprep.mubr.bf16.mxu1 %v14181_v55  ;;  %v17002_v45 = vcombine.low %v14409_v14, %v14412_v43  ;;  %v17003_v4 = vcombine.high %v14423_v32, %v14426_v34 }
 0x8ec   : > { %17000 = vst [vmem:[#allocation103_spill] sm:$0xff] %v14560_v23  ;;  %v14563_v18 = vld [vmem:[%s12866_s20 + $0x178] sm:$0xff]  ;;  %11193 = vpow2.f32 %v9500_v25  ;;  %v9505_v5 = vmul.f32 -1.442695, %v14540_v38  ;;  %v11178_v53 = vpop.eup %11177 }
 0x8ed   : > { %17001 = vst [vmem:[#allocation104_spill] sm:$0xff] %v14563_v18  ;;  %6667 = vmatpush1.bf16.msra.mxu1 %v17002_v45  ;;  %11195 = vpow2.f32 %v9501_v1  ;;  %v14584_v43 = vld [vmem:[%s12866_s20 + $0x198] sm:$0xff]  ;;  %v11180_v21 = vpop.eup %11179  ;;  %v5136_v39 = vadd.f32 1.0, %v11178_v53  ;;  %v4142_v1 = vpop.f32.mrb[124].mxu1  ;;  %v17006_v18 = vcombine.high %v14440_v58, %v14443_v16 }
 0x8ee   : > { %6668 = vmatprep.subr.bf16.mxu1 %v17003_v4  ;;  %v14587_v45 = vld [vmem:[%s12866_s20 + $0x1b8] sm:$0xff]  ;;  %11197 = vpow2.f32 %v9504_v29  ;;  %v14589_v6 = vpop.f32.mrb[124].mxu0  ;;  %v11182_v55 = vpop.eup %11181  ;;  %v5137_v62 = vadd.f32 1.0, %v11180_v21  ;;  %v14596_v14 = vadd.f32 %v4142_v1, %v14358_v31 }
 0x8ef   : > { %17004 = vst [vmem:[#allocation105_spill] sm:$0xff] %v14589_v6  ;;  %11199 = vpow2.f32 %v9505_v5  ;;  %v4144_v26 = vpop.f32.mrb[125].mxu1  ;;  %v14598_v15 = vpop.f32.mrb[125].mxu0  ;;  %v5140_v6 = vadd.f32 1.0, %v11182_v55  ;;  %v17005_v5 = vcombine.low %v14423_v32, %v14426_v34 }
 0x8f0   : > { %v11184_v29 = vpop.eup %11183  ;;  %11201 = vrcp.f32 %v5136_v39  ;;  %v14603_v4 = vadd.f32 %v4144_v26, %v14362_v30  ;;  %v4146_v27 = vpop.f32.mrb[126].mxu1  ;;  %v9508_v53 = vmul.f32 -1.442695, %v14596_v14 }
 0x8f1   : > { %v14605_v25 = vpop.f32.mrb[126].mxu0  ;;  %6669 = vmatpush1.bf16.msra.mxu1 %v17005_v5  ;;  %11203 = vrcp.f32 %v5137_v62  ;;  %v5141_v1 = vadd.f32 1.0, %v11184_v29  ;;  %v14614_v39 = vadd.f32 %v4146_v27, %v14358_v31  ;;  %v4148_v55 = vpop.f32.mrb[127].mxu1  ;;  %v4745_v5 = vadd.f32 %v14364_v19, %v14415_v49 }
 0x8f2   : > { %v14616_v26 = vpop.f32.mrb[127].mxu0  ;;  %6670 = vmatprep.subr.bf16.mxu1 %v17006_v18  ;;  %v11186_v23 = vpop.eup %11185  ;;  %11205 = vrcp.f32 %v5140_v6  ;;  %v9509_v34 = vmul.f32 -1.442695, %v14603_v4  ;;  %v14623_v32 = vadd.f32 %v4148_v55, %v14362_v30  ;;  %6626 = vmatmul.mubr.bf16.gmra.mrb[232].mxu1 %v14179_v7  ;;  %v4747_v55 = vadd.f32 %v14371_v17, %v14429_v3 }
 0x8f3   : > { %v11188_v29 = vpop.eup %11187  ;;  %v5320_v27 = vmul.f32 %v11186_v23, %v14369_v44  ;;  %11207 = vrcp.f32 %v5141_v1  ;;  %v9512_v21 = vmul.f32 -1.442695, %v14614_v39  ;;  %6635 = vmatprep.mubr.bf16.mxu1 %v14201_v56  ;;  %v17007_v44 = vcombine.low %v14440_v58, %v14443_v16 }
 0x8f4   : > { %v11190_v18 = vpop.eup %11189  ;;  %v5321_v6 = vmul.f32 %v11188_v29, %v14374_v2  ;;  %11209 = vpow2.f32 %v9508_v53  ;;  %v9513_v62 = vmul.f32 -1.442695, %v14623_v32  ;;  %v4749_v2 = vadd.f32 %v14376_v60, %v14415_v49 }
 0x8f5   : > { %6671 = vmatpush1.bf16.msra.mxu1 %v17007_v44  ;;  %v11192_v19 = vpop.eup %11191  ;;  %v14640_v23 = vmul.f32 %v5320_v27, %v4745_v5  ;;  %v5324_v1 = vmul.f32 %v11190_v18, %v14380_v24  ;;  %11211 = vpow2.f32 %v9509_v34  ;;  %v17008_v17 = vcombine.high %v14454_v35, %v14457_v47  ;;  %v4152_v16 = vpop.f32.mrb[128].mxu1 }
 0x8f6   : > { %v11194_v53 = vpop.eup %11193  ;;  %v14648_v29 = vmul.f32 %v5321_v6, %v4747_v55  ;;  %v5325_v56 = vmul.f32 %v11192_v19, %v14386_v13  ;;  %v4751_v58 = vadd.f32 %v14382_v9, %v14429_v3  ;;  %11213 = vpow2.f32 %v9512_v21  ;;  %v14653_v27 = vpop.f32.mrb[128].mxu0 }
 0x8f7   : > { %6672 = vmatprep.subr.bf16.mxu1 %v17008_v17  ;;  %v11196_v24 = vpop.eup %11195  ;;  %v14655_v5 = vmul.f32 %v5324_v1, %v4749_v2  ;;  %v5144_v60 = vadd.f32 1.0, %v11194_v53  ;;  %11215 = vpow2.f32 %v9513_v62  ;;  %v14658_v34 = vadd.f32 %v4152_v16, %v14358_v31  ;;  %v4154_v18 = vpop.f32.mrb[129].mxu1 }
 0x8f8   : > { %v14660_v6 = vpop.f32.mrb[129].mxu0  ;;  %v11198_v55 = vpop.eup %11197  ;;  %v14662_v13 = vmul.f32 %v5325_v56, %v4751_v58  ;;  %v4755_v9 = vadd.f32 %v14395_v28, %v14415_v49  ;;  %v5145_v21 = vadd.f32 1.0, %v11196_v24  ;;  %v14667_v44 = vadd.f32 %v4154_v18, %v14362_v30 }
 0x8f9   : > { %v4156_v19 = vpop.f32.mrb[130].mxu1  ;;  %v14669_v1 = vpop.f32.mrb[130].mxu0  ;;  %v17009_v62 = vcombine.low %v14454_v35, %v14457_v47  ;;  %11217 = vrcp.f32 %v5144_v60  ;;  %v5148_v56 = vadd.f32 1.0, %v11198_v55  ;;  %v9516_v53 = vmul.f32 -1.442695, %v14658_v34 }
 0x8fa   : > { %v11200_v2 = vpop.eup %11199  ;;  %v4158_v28 = vpop.f32.mrb[131].mxu1  ;;  %v17010_v16 = vcombine.high %v14466_v40, %v14469_v41  ;;  %v4757_v47 = vadd.f32 %v14406_v57, %v14429_v3  ;;  %11219 = vrcp.f32 %v5145_v21  ;;  %v9517_v18 = vmul.f32 -1.442695, %v14667_v44  ;;  %6636 = vmatmul.mubr.bf16.gmra.mrb[236].mxu1 %v14199_v33 }
 0x8fb   : > { %6673 = vmatpush1.bf16.msra.mxu1 %v17009_v62  ;;  %v14677_v58 = vpop.f32.mrb[131].mxu0  ;;  %v11202_v24 = vpop.eup %11201  ;;  %v5149_v35 = vadd.f32 1.0, %v11200_v2  ;;  %v4759_v55 = vadd.f32 %v14420_v0, %v14415_v49  ;;  %11221 = vrcp.f32 %v5148_v56  ;;  %v14689_v17 = vadd.f32 %v4156_v19, %v14358_v31  ;;  %6678 = vmatprep.mubr.bf16.mxu1 %v14058_v8 }
 0x8fc   : > { %6674 = vmatprep.subr.bf16.mxu1 %v17010_v16  ;;  %v11204_v62 = vpop.eup %11203  ;;  %v5328_v60 = vmul.f32 %v11202_v24, %v14404_v42  ;;  %v4761_v57 = vadd.f32 %v14435_v61, %v14429_v3  ;;  %v14696_v21 = vadd.f32 %v4158_v28, %v14362_v30  ;;  %v17011_v42 = vcombine.low %v14466_v40, %v14469_v41 }
 0x8fd   : > { %v11206_v16 = vpop.eup %11205  ;;  %v5329_v7 = vmul.f32 %v11204_v62, %v14418_v52  ;;  %11223 = vrcp.f32 %v5149_v35  ;;  %v9520_v52 = vmul.f32 -1.442695, %v14689_v17  ;;  %v17012_v61 = vcombine.high %v14478_v37, %v14481_v36  ;;  %v14713_v24 = vpop.f32.mrb[132].mxu0 }
 0x8fe   : > { %v11208_v0 = vpop.eup %11207  ;;  %v14702_v19 = vmul.f32 %v5328_v60, %v4755_v9  ;;  %v5332_v2 = vmul.f32 %v11206_v16, %v14433_v46  ;;  %11225 = vpow2.f32 %v9516_v53  ;;  %v9521_v40 = vmul.f32 -1.442695, %v14696_v21  ;;  %v4162_v9 = vpop.f32.mrb[132].mxu1 }
 0x8ff   : > { %6675 = vmatpush1.bf16.msra.mxu1 %v17011_v42  ;;  %v11210_v56 = vpop.eup %11209  ;;  %v14709_v28 = vmul.f32 %v5329_v7, %v4757_v47  ;;  %v5333_v41 = vmul.f32 %v11208_v0, %v14447_v54  ;;  %11227 = vpow2.f32 %v9517_v18  ;;  %v5449_v62 = vpack.c.bf16 %v14662_v13, %v14648_v29  ;;  %v4164_v60 = vpop.f32.mrb[133].mxu1  ;;  %v10833_v7 = vld [vmem:[%s12869_s19 + $0x100] ss:$8 sps:$4 sm:$0xff]  }
 0x900   : > { %6676 = vmatprep.subr.bf16.mxu1 %v17012_v61  ;;  %v11212_v46 = vpop.eup %11211  ;;  %v14715_v53 = vmul.f32 %v5332_v2, %v4759_v55  ;;  %v5152_v35 = vadd.f32 1.0, %v11210_v56  ;;  %11229 = vpow2.f32 %v9520_v52  ;;  %v14719_v16 = vpop.f32.mrb[133].mxu0  ;;  %v14723_v42 = vadd.f32 %v4162_v9, %v14358_v31 }
 0x901   : > { %v11214_v47 = vpop.eup %11213  ;;  %v5397_v54 = vmul.f32 %v5333_v41, %v4761_v57  ;;  %v5153_v18 = vadd.f32 1.0, %v11212_v46  ;;  %11231 = vpow2.f32 %v9521_v40  ;;  %v4166_v0 = vpop.f32.mrb[134].mxu1  ;;  %v17013_v2 = vcombine.low %v14478_v37, %v14481_v36  ;;  %5899 = vmatprep.mubr.bf16.mxu0 %v5449_v62  ;;  %v10838_v37 = vld [vmem:[%s12869_s19 + $0x114] ss:$8 sps:$4 sm:$0xff]  }
 0x902   : > { %v14725_v55 = vpop.f32.mrb[134].mxu0  ;;  %v11216_v29 = vpop.eup %11215  ;;  %v4765_v13 = vadd.f32 %v14495_v50, %v14415_v49  ;;  %11233 = vrcp.f32 %v5152_v35  ;;  %v5156_v52 = vadd.f32 1.0, %v11214_v47  ;;  %v14733_v57 = vadd.f32 %v4164_v60, %v14362_v30 }
 0x903   : > { %6677 = vmatpush1.bf16.msra.mxu1 %v17013_v2  ;;  %v4168_v61 = vpop.f32.mrb[135].mxu1  ;;  %v14735_v56 = vpop.f32.mrb[135].mxu0  ;;  %v17014_v41 = vcombine.high %v14490_v12, %v14493_v22  ;;  %v4767_v36 = vadd.f32 %v14504_v51, %v14429_v3  ;;  %11235 = vrcp.f32 %v5153_v18  ;;  %v5157_v50 = vadd.f32 1.0, %v11216_v29  ;;  %v10836_v51 = vld [vmem:[%s12869_s19 + $0x110] ss:$8 sps:$4 sm:$0xff]  }
 0x904   : > { %v17015_v40 = vpack.c.bf16 %v14655_v5, %v14640_v23  ;;  %v9524_v9 = vmul.f32 -1.442695, %v14723_v42  ;;  %v11218_v46 = vpop.eup %11217  ;;  %v4769_v35 = vadd.f32 %v14516_v59, %v14415_v49  ;;  %11237 = vrcp.f32 %v5156_v52  ;;  %v17016_v5 = vld [vmem:[#allocation99_spill] sm:$0xff]  ;;  %v17017_v59 = vld [vmem:[#allocation82_spill] sm:$0xff] }
 0x905   : > { %7280 = vmatprep.subr.bf16.mxu1 %v17014_v41  ;;  %v9525_v62 = vmul.f32 -1.442695, %v14733_v57  ;;  %v14751_v60 = vadd.f32 %v4166_v0, %v14358_v31  ;;  %v11220_v47 = vpop.eup %11219  ;;  %v5336_v23 = vmul.f32 %v11218_v46, %v14502_v48  ;;  %v4771_v18 = vadd.f32 %v17016_v5, %v14429_v3  ;;  %v10841_v29 = vld [vmem:[%s12869_s19 + $0x124] ss:$8 sps:$4 sm:$0xff]  }
 0x906   : > { %5900 = vmatmul.mubr.bf16.vlgmr.msra.gmra.mrb[144].mxu0 %v17015_v40  ;;  %6679 = vmatmul.mubr.bf16.vlgmr.msra.gmra.mrb[240].mxu1 %v14056_v11  ;;  %11239 = vrcp.f32 %v5157_v50  ;;  %v14759_v2 = vadd.f32 %v4168_v61, %v14362_v30  ;;  %v17018_v0 = vcombine.low %v14490_v12, %v14493_v22  ;;  %v11222_v52 = vpop.eup %11221  ;;  %v5453_v40 = vpack.c.bf16 %v5397_v54, %v14709_v28  ;;  %v17021_v22 = vld [vmem:[#allocation98_spill] sm:$0xff] }
 0x907   : > { %5981 = vmatpush1.bf16.msra.mxu0 %v10833_v7  ;;  %6688 = vmatprep.mubr.bf16.mxu1 %v17017_v59  ;;  %v17019_v7 = vld [vmem:[#allocation95_spill] sm:$0xff]  ;;  %11241 = vpow2.f32 %v9524_v9  ;;  %v9528_v48 = vmul.f32 -1.442695, %v14751_v60  ;;  %v17020_v50 = vcombine.high %v14511_v63, %v14521_v20  ;;  %v11224_v61 = vpop.eup %11223  ;;  %v14772_v46 = vmul.f32 %v5336_v23, %v4765_v13  ;;  %v14776_v9 = vpop.f32.mrb[136].mxu0  ;;  %v10842_v59 = vld [vmem:[%s12869_s19 + $0x130] ss:$8 sps:$4 sm:$0xff]  }
 0x908   : > { %7281 = vmatpush1.bf16.msra.mxu1 %v17018_v0  ;;  %v5337_v41 = vmul.f32 %v11220_v47, %v17019_v7  ;;  %5982 = vmatprep.subr.bf16.mxu0 %v10838_v37  ;;  %v5340_v12 = vmul.f32 %v11222_v52, %v17021_v22  ;;  %11243 = vpow2.f32 %v9525_v62  ;;  %v9529_v5 = vmul.f32 -1.442695, %v14759_v2  ;;  %v4172_v47 = vpop.f32.mrb[136].mxu1  ;;  %v11226_v0 = vpop.eup %11225  ;;  %v10839_v62 = vld [vmem:[%s12869_s19 + $0x120] ss:$8 sps:$4 sm:$0xff]  }
 0x909   : > { %7282 = vmatprep.subr.bf16.mxu1 %v17020_v50  ;;  %v5341_v28 = vmul.f32 %v11224_v61, %v14540_v38  ;;  %11245 = vpow2.f32 %v9528_v48  ;;  %5909 = vmatprep.mubr.bf16.mxu0 %v5453_v40  ;;  %v5452_v54 = vpack.c.bf16 %v14715_v53, %v14702_v19  ;;  %v4174_v13 = vpop.f32.mrb[137].mxu1  ;;  %v14783_v37 = vpop.f32.mrb[137].mxu0  ;;  %v5160_v50 = vadd.f32 1.0, %v11226_v0 }
 0x90a   : > { %v14778_v7 = vmul.f32 %v5337_v41, %v4767_v36  ;;  %v11228_v23 = vpop.eup %11227  ;;  %v14786_v52 = vmul.f32 %v5340_v12, %v4769_v35  ;;  %11247 = vpow2.f32 %v9529_v5  ;;  %v14789_v36 = vadd.f32 %v4172_v47, %v14358_v31  ;;  %v4176_v38 = vpop.f32.mrb[138].mxu1  ;;  %v17023_v35 = vld [vmem:[#allocation105_spill] sm:$0xff]  ;;  %v17024_v5 = vld [vmem:[#allocation96_spill] sm:$0xff] }
 0x90b   : > { %5983 = vmatpush1.bf16.msra.mxu0 %v10836_v51  ;;  %v14791_v41 = vpop.f32.mrb[138].mxu0  ;;  %v17022_v19 = vcombine.low %v14511_v63, %v14521_v20  ;;  %v11230_v53 = vpop.eup %11229  ;;  %v14796_v51 = vmul.f32 %v5341_v28, %v4771_v18  ;;  %v4775_v48 = vadd.f32 %v17023_v35, %v14415_v49  ;;  %v5161_v40 = vadd.f32 1.0, %v11228_v23  ;;  %v17025_v47 = vld [vmem:[#allocation97_spill] sm:$0xff] }
 0x90c   : > { %5984 = vmatprep.subr.bf16.mxu0 %v10841_v29  ;;  %v14801_v61 = vadd.f32 %v4174_v13, %v14362_v30  ;;  %v4178_v22 = vpop.f32.mrb[139].mxu1  ;;  %v14803_v12 = vpop.f32.mrb[139].mxu0  ;;  %v17026_v0 = vcombine.high %v17024_v5, %v17025_v47  ;;  %v10844_v63 = vld [vmem:[%s12869_s19 + $0x134] ss:$8 sps:$4 sm:$0xff]   ;;  %v4777_v18 = vadd.f32 %v14598_v15, %v14429_v3  ;;  %11249 = vrcp.f32 %v5160_v50 }
 0x90d   : > { %7283 = vmatpush1.bf16.msra.mxu1 %v17022_v19  ;;  %v11232_v20 = vpop.eup %11231  ;;  %v5164_v29 = vadd.f32 1.0, %v11230_v53  ;;  %v9532_v28 = vmul.f32 -1.442695, %v14789_v36  ;;  %11251 = vrcp.f32 %v5161_v40  ;;  %v14814_v35 = vadd.f32 %v4176_v38, %v14358_v31  ;;  %v17028_v53 = vld [vmem:[#allocation84_spill] sm:$0xff] }
 0x90e   : > { %7284 = vmatprep.subr.bf16.mxu1 %v17026_v0  ;;  %5910 = vmatmul.mubr.bf16.gmra.mrb[148].mxu0 %v5452_v54  ;;  %v11234_v13 = vpop.eup %11233  ;;  %v5165_v23 = vadd.f32 1.0, %v11232_v20  ;;  %v9533_v19 = vmul.f32 -1.442695, %v14801_v61  ;;  %v17027_v0 = vld [vmem:[#allocation81_spill] sm:$0xff]  ;;  %v4779_v54 = vadd.f32 %v14605_v25, %v14415_v49  ;;  %v14822_v50 = vadd.f32 %v4178_v22, %v14362_v30  ;;  %v10847_v40 = vld [vmem:[%s12869_s19 + $0x144] ss:$8 sps:$4 sm:$0xff]  }
 0x90f   : > { %6689 = vmatmul.mubr.bf16.gmra.mrb[244].mxu1 %v17027_v0  ;;  %5985 = vmatpush1.bf16.msra.mxu0 %v10839_v62  ;;  %v11236_v11 = vpop.eup %11235  ;;  %v5344_v15 = vmul.f32 %v11234_v13, %v14596_v14  ;;  %11253 = vrcp.f32 %v5164_v29  ;;  %v17029_v38 = vcombine.low %v17024_v5, %v17025_v47  ;;  %v4781_v14 = vadd.f32 %v14616_v26, %v14429_v3  ;;  %v17030_v29 = vld [vmem:[#allocation100_spill] sm:$0xff]  ;;  %v17031_v13 = vld [vmem:[#allocation101_spill] sm:$0xff]  ;;  %v14840_v47 = vpop.f32.mrb[140].mxu0 }
 0x910   : > { %6698 = vmatprep.mubr.bf16.mxu1 %v17028_v53  ;;  %v11238_v20 = vpop.eup %11237  ;;  %v5345_v62 = vmul.f32 %v11236_v11, %v14603_v4  ;;  %11255 = vrcp.f32 %v5165_v23  ;;  %v9536_v25 = vmul.f32 -1.442695, %v14814_v35  ;;  %v17032_v22 = vcombine.high %v17030_v29, %v17031_v13  ;;  %5986 = vmatprep.subr.bf16.mxu0 %v10844_v63  ;;  %v4182_v4 = vpop.f32.mrb[140].mxu1 }
 0x911   : > { %7285 = vmatpush1.bf16.msra.mxu1 %v17029_v38  ;;  %v11240_v53 = vpop.eup %11239  ;;  %v14836_v0 = vmul.f32 %v5344_v15, %v4775_v48  ;;  %v5348_v5 = vmul.f32 %v11238_v20, %v14614_v39  ;;  %11257 = vpow2.f32 %v9532_v28  ;;  %v9537_v11 = vmul.f32 -1.442695, %v14822_v50  ;;  %v14847_v48 = vpop.f32.mrb[141].mxu0  ;;  %v10845_v39 = vld [vmem:[%s12869_s19 + $0x140] ss:$8 sps:$4 sm:$0xff]  }
 0x912   : > { %7286 = vmatprep.subr.bf16.mxu1 %v17032_v22  ;;  %v11242_v26 = vpop.eup %11241  ;;  %v14842_v23 = vmul.f32 %v5345_v62, %v4777_v18  ;;  %v5349_v38 = vmul.f32 %v11240_v53, %v14623_v32  ;;  %11259 = vpow2.f32 %v9533_v19  ;;  %v5457_v63 = vpack.c.bf16 %v14796_v51, %v14778_v7  ;;  %v4184_v22 = vpop.f32.mrb[141].mxu1 }
 0x913   : > { %5987 = vmatpush1.bf16.msra.mxu0 %v10842_v59  ;;  %v11244_v28 = vpop.eup %11243  ;;  %v14850_v15 = vmul.f32 %v5348_v5, %v4779_v54  ;;  %v5168_v20 = vadd.f32 1.0, %v11242_v26  ;;  %11261 = vpow2.f32 %v9536_v25  ;;  %v5456_v18 = vpack.c.bf16 %v14786_v52, %v14772_v46  ;;  %v4186_v62 = vpop.f32.mrb[142].mxu1  ;;  %v17034_v46 = vld [vmem:[#allocation102_spill] sm:$0xff] }
 0x914   : > { %v14854_v32 = vpop.f32.mrb[142].mxu0  ;;  %v17033_v7 = vcombine.low %v17030_v29, %v17031_v13  ;;  %5988 = vmatprep.subr.bf16.mxu0 %v10847_v40  ;;  %v11246_v51 = vpop.eup %11245  ;;  %v5413_v59 = vmul.f32 %v5349_v38, %v4781_v14  ;;  %v5169_v19 = vadd.f32 1.0, %v11244_v28  ;;  %11263 = vpow2.f32 %v9537_v11  ;;  %5919 = vmatprep.mubr.bf16.mxu0 %v5457_v63  ;;  %v10850_v5 = vld [vmem:[%s12869_s19 + $0x154] ss:$8 sps:$4 sm:$0xff]   ;;  %v17036_v38 = vld [vmem:[#allocation83_spill] sm:$0xff] }
 0x915   : > { %v14860_v54 = vadd.f32 %v4182_v4, %v14358_v31  ;;  %v4188_v53 = vpop.f32.mrb[143].mxu1  ;;  %v14862_v25 = vpop.f32.mrb[143].mxu0  ;;  %v17035_v52 = vcombine.high %v14548_v10, %v17034_v46  ;;  %v4785_v40 = vadd.f32 %v14653_v27, %v14415_v49  ;;  %11265 = vrcp.f32 %v5168_v20  ;;  %v10848_v63 = vld [vmem:[%s12869_s19 + $0x150] ss:$8 sps:$4 sm:$0xff]  }
 0x916   : > { %7287 = vmatpush1.bf16.msra.mxu1 %v17033_v7  ;;  %v11248_v29 = vpop.eup %11247  ;;  %v5172_v14 = vadd.f32 1.0, %v11246_v51  ;;  %5920 = vmatmul.mubr.bf16.gmra.mrb[152].mxu0 %v5456_v18  ;;  %v14871_v13 = vadd.f32 %v4184_v22, %v14362_v30  ;;  %v4787_v11 = vadd.f32 %v14660_v6, %v14429_v3  ;;  %11267 = vrcp.f32 %v5169_v19  ;;  %v17037_v6 = vld [vmem:[#allocation86_spill] sm:$0xff] }
 0x917   : > { %7288 = vmatprep.subr.bf16.mxu1 %v17035_v52  ;;  %v5173_v4 = vadd.f32 1.0, %v11248_v29  ;;  %v9540_v26 = vmul.f32 -1.442695, %v14860_v54  ;;  %6699 = vmatmul.mubr.bf16.gmra.mrb[248].mxu1 %v17036_v38  ;;  %v11250_v28 = vpop.eup %11249  ;;  %v4789_v27 = vadd.f32 %v14669_v1, %v14415_v49  ;;  %v14882_v20 = vadd.f32 %v4186_v62, %v14358_v31  ;;  %v17039_v31 = vld [vmem:[#allocation103_spill] sm:$0xff]  ;;  %v17040_v62 = vld [vmem:[#allocation104_spill] sm:$0xff] }
 0x918   : > { %5989 = vmatpush1.bf16.msra.mxu0 %v10845_v39  ;;  %11269 = vrcp.f32 %v5172_v14  ;;  %v9541_v22 = vmul.f32 -1.442695, %v14871_v13  ;;  %6708 = vmatprep.mubr.bf16.mxu1 %v17037_v6  ;;  %v17038_v18 = vcombine.low %v14548_v10, %v17034_v46  ;;  %v11252_v39 = vpop.eup %11251  ;;  %v5352_v7 = vmul.f32 %v11250_v28, %v14658_v34  ;;  %v10853_v52 = vld [vmem:[%s12869_s19 + $0x164] ss:$8 sps:$4 sm:$0xff]   ;;  %v14904_v14 = vld [vmem:[%s12866_s20 + $0x1d8] sm:$0xff] }
 0x919   : > { %v4791_v1 = vadd.f32 %v14677_v58, %v14429_v3  ;;  %11271 = vrcp.f32 %v5173_v4  ;;  %v14892_v51 = vadd.f32 %v4188_v53, %v14362_v30  ;;  %v17041_v19 = vcombine.high %v17039_v31, %v17040_v62  ;;  %5990 = vmatprep.subr.bf16.mxu0 %v10850_v5  ;;  %v11254_v10 = vpop.eup %11253  ;;  %v14901_v58 = vpop.f32.mrb[144].mxu1  ;;  %v14907_v30 = vld [vmem:[%s12866_s20 + $0x1f8] sm:$0xff] }
 0x91a   : > { %7289 = vmatpush1.bf16.msra.mxu1 %v17038_v18  ;;  %v5353_v46 = vmul.f32 %v11252_v39, %v14667_v44  ;;  %11273 = vpow2.f32 %v9540_v26  ;;  %v9544_v34 = vmul.f32 -1.442695, %v14882_v20  ;;  %v5461_v29 = vpack.c.bf16 %v5413_v59, %v14842_v23  ;;  %v11256_v53 = vpop.eup %11255  ;;  %v14913_v44 = vpop.f32.mrb[145].mxu1  ;;  %v10851_v26 = vld [vmem:[%s12869_s19 + $0x160] ss:$8 sps:$4 sm:$0xff]  }
 0x91b   : > { %7290 = vmatprep.subr.bf16.mxu1 %v17041_v19  ;;  %v14909_v4 = vmul.f32 %v5352_v7, %v4785_v40  ;;  %v5356_v5 = vmul.f32 %v11254_v10, %v14689_v17  ;;  %11275 = vpow2.f32 %v9541_v22  ;;  %v9545_v28 = vmul.f32 -1.442695, %v14892_v51  ;;  %v11258_v23 = vpop.eup %11257  ;;  %v14919_v17 = vpop.f32.mrb[146].mxu1  ;;  %v14937_v19 = vld [vmem:[%s12866_s20 + $0x238] sm:$0xff] }
 0x91c   : > { %5991 = vmatpush1.bf16.msra.mxu0 %v10848_v63  ;;  %v5417_v59 = vmul.f32 %v5353_v46, %v4787_v11  ;;  %v5357_v18 = vmul.f32 %v11256_v53, %v14696_v21  ;;  %11277 = vpow2.f32 %v9544_v34  ;;  %5929 = vmatprep.mubr.bf16.mxu0 %v5461_v29  ;;  %v5460_v40 = vpack.c.bf16 %v14850_v15, %v14836_v0  ;;  %v11260_v63 = vpop.eup %11259  ;;  %v14926_v11 = vpop.f32.mrb[147].mxu1  ;;  %v14934_v15 = vld [vmem:[%s12866_s20 + $0x218] sm:$0xff]  ;;  %v17044_v29 = vld [vmem:[#allocation85_spill] sm:$0xff] }
 0x91d   : > { %v17042_v22 = vcombine.low %v17039_v31, %v17040_v62  ;;  %v14924_v39 = vmul.f32 %v5356_v5, %v4789_v27  ;;  %v5176_v7 = vadd.f32 1.0, %v11258_v23  ;;  %11279 = vpow2.f32 %v9545_v28  ;;  %5992 = vmatprep.subr.bf16.mxu0 %v10853_v52  ;;  %v10856_v31 = vld [vmem:[%s12869_s19 + $0x174] ss:$8 sps:$4 sm:$0xff]   ;;  %v11262_v27 = vpop.eup %11261  ;;  %v10854_v5 = vld [vmem:[%s12869_s19 + $0x170] ss:$8 sps:$4 sm:$0xff]   ;;  %v17045_v52 = vld [vmem:[#allocation88_spill] sm:$0xff] }
 0x91e   : > { %v17043_v21 = vcombine.high %v14584_v43, %v14587_v45  ;;  %v9837_v0 = vcombine.high %v14904_v14, %v14907_v30  ;;  %v5421_v62 = vmul.f32 %v5357_v18, %v4791_v1  ;;  %v5177_v10 = vadd.f32 1.0, %v11260_v63  ;;  %5930 = vmatmul.mubr.bf16.gmra.mrb[156].mxu0 %v5460_v40  ;;  %v11264_v46 = vpop.eup %11263 }
 0x91f   : > { %7291 = vmatpush1.bf16.msra.mxu1 %v17042_v22  ;;  %11281 = vrcp.f32 %v5176_v7  ;;  %v5180_v34 = vadd.f32 1.0, %v11262_v27  ;;  %v9836_v53 = vcombine.low %v14904_v14, %v14907_v30  ;;  %v11266_v28 = vpop.eup %11265  ;;  %v5181_v23 = vadd.f32 1.0, %v11264_v46  ;;  %v10859_v14 = vld [vmem:[%s12869_s19 + $0x184] ss:$8 sps:$4 sm:$0xff]  }
 0x920   : > { %7292 = vmatprep.subr.bf16.mxu1 %v17043_v21  ;;  %6709 = vmatmul.mubr.bf16.gmra.mrb[252].mxu1 %v17044_v29  ;;  %11283 = vrcp.f32 %v5177_v10  ;;  %v17046_v1 = vcombine.low %v14584_v43, %v14587_v45  ;;  %v9840_v18 = vcombine.low %v14934_v15, %v14937_v19  ;;  %v9841_v40 = vcombine.high %v14934_v15, %v14937_v19  ;;  %v11268_v30 = vpop.eup %11267  ;;  %v14961_v15 = vpop.f32.mrb[148].mxu1 }
 0x921   : > { %5993 = vmatpush1.bf16.msra.mxu0 %v10851_v26  ;;  %6718 = vmatprep.mubr.bf16.mxu1 %v17045_v52  ;;  %v5360_v26 = vmul.f32 %v11266_v28, %v14723_v42  ;;  %v4795_v22 = vadd.f32 %v14713_v24, %v14415_v49  ;;  %11285 = vrcp.f32 %v5180_v34  ;;  %v5465_v63 = vpack.c.bf16 %v5421_v62, %v5417_v59  ;;  %v14964_v42 = vld [vmem:[%s12866_s20 + $0x258] sm:$0xff] }
 0x922   : > { %5994 = vmatprep.subr.bf16.mxu0 %v10856_v31  ;;  %v11270_v43 = vpop.eup %11269  ;;  %v5361_v45 = vmul.f32 %v11268_v30, %v14733_v57  ;;  %v4797_v7 = vadd.f32 %v14719_v16, %v14429_v3  ;;  %11287 = vrcp.f32 %v5181_v23  ;;  %v5464_v21 = vpack.c.bf16 %v14924_v39, %v14909_v4  ;;  %v14967_v24 = vld [vmem:[%s12866_s20 + $0x278] sm:$0xff]  ;;  %v14974_v16 = vpop.f32.mrb[149].mxu1  ;;  %v10857_v4 = vld [vmem:[%s12869_s19 + $0x180] ss:$8 sps:$4 sm:$0xff]  }
 0x923   : > { %7293 = vmatpush1.bf16.msra.mxu1 %v17046_v1  ;;  %v11272_v59 = vpop.eup %11271  ;;  %v5364_v19 = vmul.f32 %v11270_v43, %v14751_v60  ;;  %v4799_v57 = vadd.f32 %v14725_v55, %v14415_v49  ;;  %5939 = vmatprep.mubr.bf16.mxu0 %v5465_v63  ;;  %v4801_v62 = vadd.f32 %v14735_v56, %v14429_v3  ;;  %v14980_v10 = vpop.f32.mrb[150].mxu1  ;;  %v14990_v1 = vld [vmem:[%s12866_s20 + $0x298] sm:$0xff] }
 0x924   : > { %7294 = vmatprep.subr.bf16.mxu1 %v9837_v0  ;;  %v14969_v0 = vmul.f32 %v5360_v26, %v4795_v22  ;;  %v11274_v39 = vpop.eup %11273  ;;  %v5425_v31 = vmul.f32 %v5361_v45, %v4797_v7  ;;  %v5365_v27 = vmul.f32 %v11272_v59, %v14759_v2  ;;  %v14984_v34 = vpop.f32.mrb[151].mxu1  ;;  %v9845_v2 = vcombine.high %v14964_v42, %v14967_v24  ;;  %v17047_v26 = vld [vmem:[#allocation87_spill] sm:$0xff]  ;;  %v10860_v22 = vld [vmem:[%s12869_s19 + $0x190] ss:$8 sps:$4 sm:$0xff]  }
 0x925   : > { %5995 = vmatpush1.bf16.msra.mxu0 %v10854_v5  ;;  %v11276_v55 = vpop.eup %11275  ;;  %v14982_v60 = vmul.f32 %v5364_v19, %v4799_v57  ;;  %v5184_v46 = vadd.f32 1.0, %v11274_v39  ;;  %v10862_v5 = vld [vmem:[%s12869_s19 + $0x194] ss:$8 sps:$4 sm:$0xff]   ;;  %v11745_v57 = vld [vmem:[%s12880_s18] sm:$0xf]  ;;  %v15012_v39 = vpop.f32.mrb[152].mxu1 }
 0x926   : > { %5996 = vmatprep.subr.bf16.mxu0 %v10859_v14  ;;  %v11278_v28 = vpop.eup %11277  ;;  %v5429_v23 = vmul.f32 %v5365_v27, %v4801_v62  ;;  %v5185_v56 = vadd.f32 1.0, %v11276_v55  ;;  %5940 = vmatmul.mubr.bf16.gmra.mrb[160].mxu0 %v5464_v21  ;;  %v17048_v45 = vld [vmem:[#allocation90_spill] sm:$0xff]  ;;  %v10865_v21 = vld [vmem:[%s12869_s19 + $0x1a4] ss:$8 sps:$4 sm:$0xff]  }
 0x927   : > { %7295 = vmatpush1.bf16.msra.mxu1 %v9836_v53  ;;  %v14993_v53 = vld [vmem:[%s12866_s20 + $0x2b8] sm:$0xff]  ;;  %v11280_v14 = vpop.eup %11279  ;;  %11289 = vrcp.f32 %v5184_v46  ;;  %v5188_v30 = vadd.f32 1.0, %v11278_v28  ;;  %v5468_v7 = vpack.c.bf16 %v14982_v60, %v14969_v0  ;;  %v15026_v46 = vpop.f32.mrb[153].mxu1 }
 0x928   : > { %7296 = vmatprep.subr.bf16.mxu1 %v9841_v40  ;;  %6719 = vmatmul.mubr.bf16.gmra.mrb[0].mxu1 %v17047_v26  ;;  %v9844_v40 = vcombine.low %v14964_v42, %v14967_v24  ;;  %11291 = vrcp.f32 %v5185_v56  ;;  %v5189_v63 = vadd.f32 1.0, %v11280_v14  ;;  %v5469_v43 = vpack.c.bf16 %v5429_v23, %v5425_v31  ;;  %v15015_v31 = vld [vmem:[%s12866_s20 + $0x2d8] sm:$0xff]  ;;  %v15036_v56 = vpop.f32.mrb[154].mxu1 }
 0x929   : > { %5997 = vmatpush1.bf16.msra.mxu0 %v10857_v4  ;;  %6728 = vmatprep.mubr.bf16.mxu1 %v17048_v45  ;;  %v11282_v59 = vpop.eup %11281  ;;  %11293 = vrcp.f32 %v5188_v30  ;;  %v9849_v42 = vcombine.high %v14990_v1, %v14993_v53  ;;  %v17049_v4 = vld [vmem:[#allocation45_spill] sm:$0xff]  ;;  %v15018_v27 = vld [vmem:[%s12866_s20 + $0x2f8] sm:$0xff]  ;;  %v15041_v30 = vpop.f32.mrb[155].mxu1 }
 0x92a   : > { %5998 = vmatprep.subr.bf16.mxu0 %v10862_v5  ;;  %v11284_v24 = vpop.eup %11283  ;;  %v5368_v19 = vmul.f32 %v11282_v59, %v14789_v36  ;;  %11295 = vrcp.f32 %v5189_v63  ;;  %v15010_v0 = vrot.slane %v11745_v57, %v17049_v4  ;;  %5949 = vmatprep.mubr.bf16.mxu0 %v5469_v43  ;;  %v4807_v36 = vadd.f32 %v14783_v37, %v14429_v3  ;;  %v17050_v60 = vld [vmem:[#allocation46_spill] sm:$0xff]  ;;  %v10863_v5 = vld [vmem:[%s12869_s19 + $0x1a0] ss:$8 sps:$4 sm:$0xff]  }
 0x92b   : > { %7297 = vmatpush1.bf16.msra.mxu1 %v9840_v18  ;;  %v4805_v18 = vadd.f32 %v14776_v9, %v14415_v49  ;;  %v11286_v62 = vpop.eup %11285  ;;  %v5369_v55 = vmul.f32 %v11284_v24, %v14801_v61  ;;  %v15024_v9 = vrot.slane %v11745_v57, %v17050_v60  ;;  %v4809_v37 = vadd.f32 %v14791_v41, %v14415_v49  ;;  %v15046_v41 = vld [vmem:[%s12866_s20 + $0x318] sm:$0xff] }
 0x92c   : > { %7298 = vmatprep.subr.bf16.mxu1 %v9845_v2  ;;  %v9848_v2 = vcombine.low %v14990_v1, %v14993_v53  ;;  %v11288_v28 = vpop.eup %11287  ;;  %v5372_v61 = vmul.f32 %v11286_v62, %v14814_v35  ;;  %v4811_v53 = vadd.f32 %v14803_v12, %v14429_v3  ;;  %v9853_v35 = vcombine.high %v15015_v31, %v15018_v27  ;;  %v15062_v59 = vld [vmem:[%s12866_s20 + $0x358] sm:$0xff] }
 0x92d   : > { %5999 = vmatpush1.bf16.msra.mxu0 %v10860_v22  ;;  %v15031_v23 = vmul.f32 %v5368_v19, %v4805_v18  ;;  %v5433_v14 = vmul.f32 %v5369_v55, %v4807_v36  ;;  %v5373_v1 = vmul.f32 %v11288_v28, %v14822_v50  ;;  %v15049_v22 = vld [vmem:[%s12866_s20 + $0x338] sm:$0xff]  ;;  %v15054_v50 = vadd.f32 %v14901_v58, %v15010_v0  ;;  %v17052_v19 = vld [vmem:[#allocation92_spill] sm:$0xff]  ;;  %v15085_v28 = vpop.f32.mrb[156].mxu1 }
 0x92e   : > { %6000 = vmatprep.subr.bf16.mxu0 %v10865_v21  ;;  %v5436_v63 = vmul.f32 %v5372_v61, %v4809_v37  ;;  %5950 = vmatmul.mubr.bf16.gmra.mrb[164].mxu0 %v5468_v7  ;;  %v15058_v43 = vadd.f32 %v14913_v44, %v15024_v9  ;;  %v17051_v21 = vld [vmem:[#allocation89_spill] sm:$0xff]  ;;  %v9852_v7 = vcombine.low %v15015_v31, %v15018_v27  ;;  %v10871_v18 = vld [vmem:[%s12869_s19 + $0x1c4] ss:$8 sps:$4 sm:$0xff]  }
 0x92f   : > { %7299 = vmatpush1.bf16.msra.mxu1 %v9844_v40  ;;  %v10868_v40 = vld [vmem:[%s12869_s19 + $0x1b4] ss:$8 sps:$4 sm:$0xff]   ;;  %v5437_v12 = vmul.f32 %v5373_v1, %v4811_v53  ;;  %v10866_v24 = vld [vmem:[%s12869_s19 + $0x1b0] ss:$8 sps:$4 sm:$0xff]   ;;  %v9857_v44 = vcombine.high %v15046_v41, %v15049_v22  ;;  %v15077_v62 = vadd.f32 %v14919_v17, %v15010_v0  ;;  %v9856_v36 = vcombine.low %v15046_v41, %v15049_v22  ;;  %v10869_v1 = vld [vmem:[%s12869_s19 + $0x1c0] ss:$8 sps:$4 sm:$0xff]  }
 0x930   : > { %7300 = vmatprep.subr.bf16.mxu1 %v9849_v42  ;;  %6729 = vmatmul.mubr.bf16.gmra.mrb[4].mxu1 %v17051_v21  ;;  %v15065_v42 = vld [vmem:[%s12866_s20 + $0x378] sm:$0xff]  ;;  %v5472_v58 = vpack.c.bf16 %v5436_v63, %v15031_v23  ;;  %v4815_v31 = vadd.f32 %v14840_v47, %v14415_v49  ;;  %v9486_v27 = vmul.f32 -1.442695, %v15054_v50  ;;  %v4817_v37 = vadd.f32 %v14847_v48, %v14429_v3  ;;  %v15097_v47 = vpop.f32.mrb[157].mxu1 }
 0x931   : > { %6001 = vmatpush1.bf16.msra.mxu0 %v10863_v5  ;;  %6738 = vmatprep.mubr.bf16.mxu1 %v17052_v19  ;;  %v11290_v57 = vpop.eup %11289  ;;  %v5473_v55 = vpack.c.bf16 %v5437_v12, %v5433_v14  ;;  %v9861_v17 = vcombine.high %v15062_v59, %v15065_v42  ;;  %v9487_v14 = vmul.f32 -1.442695, %v15058_v43  ;;  %v4819_v48 = vadd.f32 %v14854_v32, %v14415_v49  ;;  %v15103_v41 = vpop.f32.mrb[158].mxu1  ;;  %v9798_v49 = vld [vmem:[%s12866_s20 + $0x398] sm:$0xff] }
 0x932   : > { %6002 = vmatprep.subr.bf16.mxu0 %v10868_v40  ;;  %v5376_v5 = vmul.f32 %v11290_v57, %v14860_v54  ;;  %v15095_v54 = vadd.f32 %v14926_v11, %v15024_v9  ;;  %v4821_v40 = vadd.f32 %v14862_v25, %v14429_v3  ;;  %v9490_v63 = vmul.f32 -1.442695, %v15077_v62  ;;  %v15109_v12 = vpop.f32.mrb[159].mxu1  ;;  %v9800_v32 = vld [vmem:[%s12866_s20 + $0x3b8] sm:$0xff] }
 0x933   : > { %7301 = vmatpush1.bf16.msra.mxu1 %v9848_v2  ;;  %v11292_v2 = vpop.eup %11291  ;;  %5959 = vmatprep.mubr.bf16.mxu0 %v5473_v55  ;;  %11297 = vpow2.f32 %v9486_v27  ;;  %v10872_v3 = vld [vmem:[%s12869_s19 + $0x1d0] ss:$8 sps:$4 sm:$0xff]   ;;  %v15119_v25 = vadd.f32 %v14961_v15, %v15010_v0  ;;  %v9860_v57 = vcombine.low %v15062_v59, %v15065_v42  ;;  %v10877_v55 = vld [vmem:[%s12869_s19 + $0x1e4] ss:$8 sps:$4 sm:$0xff]   ;;  %v15135_v59 = vadd.f32 %v14980_v10, %v15010_v0 }
 0x934   : > { %7302 = vmatprep.subr.bf16.mxu1 %v9853_v35  ;;  %v11294_v23 = vpop.eup %11293  ;;  %v5377_v61 = vmul.f32 %v11292_v2, %v14871_v13  ;;  %v5440_v35 = vmul.f32 %v5376_v5, %v4815_v31  ;;  %11299 = vpow2.f32 %v9487_v14  ;;  %v15127_v2 = vadd.f32 %v14974_v16, %v15024_v9  ;;  %v9802_v27 = vld [vmem:[%s12866_s20 + $0x3d8] sm:$0xff]  ;;  %v10875_v16 = vld [vmem:[%s12869_s19 + $0x1e0] ss:$8 sps:$4 sm:$0xff]  }
 0x935   : > { %6003 = vmatpush1.bf16.msra.mxu0 %v10866_v24  ;;  %v11296_v53 = vpop.eup %11295  ;;  %v5380_v13 = vmul.f32 %v11294_v23, %v14882_v20  ;;  %v10874_v20 = vld [vmem:[%s12869_s19 + $0x1d4] ss:$8 sps:$4 sm:$0xff]   ;;  %11301 = vpow2.f32 %v9490_v63  ;;  %v9865_v31 = vcombine.high %v9798_v49, %v9800_v32  ;;  %v15129_v15 = vpop.f32.mrb[160].mxu1  ;;  %v15147_v10 = vadd.f32 %v14984_v34, %v15024_v9  ;;  %v10878_v34 = vld [vmem:[%s12869_s19 + $0x1f0] ss:$8 sps:$4 sm:$0xff]  }
 0x936   : > { %6004 = vmatprep.subr.bf16.mxu0 %v10871_v18  ;;  %v5441_v11 = vmul.f32 %v5377_v61, %v4817_v37  ;;  %v5381_v22 = vmul.f32 %v11296_v53, %v14892_v51  ;;  %5960 = vmatmul.mubr.bf16.gmra.mrb[168].mxu0 %v5472_v58  ;;  %v9491_v51 = vmul.f32 -1.442695, %v15095_v54  ;;  %v17053_v18 = vld [vmem:[#allocation91_spill] sm:$0xff]  ;;  %v15137_v42 = vpop.f32.mrb[161].mxu1  ;;  %v9864_v61 = vcombine.low %v9798_v49, %v9800_v32  ;;  %v10880_v37 = vld [vmem:[%s12869_s19 + $0x1f4] ss:$8 sps:$4 sm:$0xff]  }
 0x937   : > { %7303 = vmatpush1.bf16.msra.mxu1 %v9852_v7  ;;  %v5444_v24 = vmul.f32 %v5380_v13, %v4819_v48  ;;  %v15141_v23 = vpop.f32.mrb[162].mxu1  ;;  %v9495_v14 = vmul.f32 -1.442695, %v15127_v2  ;;  %v15155_v13 = vld [vmem:[%s12866_s20 + $0x30] sm:$0xff]  ;;  %v15159_v48 = vadd.f32 %v15012_v39, %v15010_v0  ;;  %v9499_v39 = vmul.f32 -1.442695, %v15147_v10 }
 0x938   : > { %7304 = vmatprep.subr.bf16.mxu1 %v9857_v44  ;;  %v5445_v7 = vmul.f32 %v5381_v22, %v4821_v40  ;;  %6739 = vmatmul.mubr.bf16.gmra.mrb[8].mxu1 %v17053_v18  ;;  %v17054_v44 = vld [vmem:[#allocation94_spill] sm:$0xff]  ;;  %11303 = vpow2.f32 %v9491_v51  ;;  %v15260_v18 = vld [vmem:[%s12866_s20 + $0xd0] sm:$0xff] }
 0x939   : > { %6005 = vmatpush1.bf16.msra.mxu0 %v10869_v1  ;;  %6748 = vmatprep.mubr.bf16.mxu1 %v17054_v44  ;;  %v5476_v58 = vpack.c.bf16 %v5444_v24, %v5440_v35  ;;  %v15149_v1 = vpop.f32.mrb[163].mxu1  ;;  %v15152_v35 = vld [vmem:[%s12866_s20 + $0x10] sm:$0xff]  ;;  %v15170_v24 = vadd.f32 %v15026_v46, %v15024_v9  ;;  %v9502_v49 = vmul.f32 -1.442695, %v15159_v48 }
 0x93a   : > { %v5477_v5 = vpack.c.bf16 %v5445_v7, %v5441_v11  ;;  %6006 = vmatprep.subr.bf16.mxu0 %v10874_v20  ;;  %v9498_v11 = vmul.f32 -1.442695, %v15135_v59  ;;  %v9807_v63 = vcombine.high %v15152_v35, %v15155_v13 }
 0x93b   : > { %7305 = vmatpush1.bf16.msra.mxu1 %v9856_v36  ;;  %v9804_v36 = vld [vmem:[%s12866_s20 + $0x3f8] sm:$0xff] }
 0x93c   : > { %7306 = vmatprep.subr.bf16.mxu1 %v9861_v17  ;;  %5969 = vmatprep.mubr.bf16.mxu0 %v5477_v5  ;;  %v9494_v17 = vmul.f32 -1.442695, %v15119_v25  ;;  %v9869_v53 = vcombine.high %v9802_v27, %v9804_v36  ;;  %v9868_v40 = vcombine.low %v9802_v27, %v9804_v36  ;;  %v9503_v5 = vmul.f32 -1.442695, %v15170_v24 }
 0x93d   : > { %6007 = vmatpush1.bf16.msra.mxu0 %v10872_v3  ;;  %v11298_v22 = vpop.eup %11297  ;;  %v15173_v32 = vpop.f32.mrb[164].mxu1  ;;  %v15177_v3 = vadd.f32 %v15036_v56, %v15010_v0  ;;  %v15192_v36 = vadd.f32 %v15085_v28, %v15010_v0 }
 0x93e   : > { %6008 = vmatprep.subr.bf16.mxu0 %v10877_v55  ;;  %5970 = vmatmul.mubr.bf16.gmra.mrb[172].mxu0 %v5476_v58  ;;  %11305 = vpow2.f32 %v9494_v17  ;;  %v11300_v20 = vpop.eup %11299  ;;  %v5130_v51 = vadd.f32 1.0, %v11298_v22  ;;  %v15179_v58 = vpop.f32.mrb[165].mxu1  ;;  %v17056_v17 = vld [vmem:[#allocation79_spill] sm:$0xff] }
 0x93f   : > { %7307 = vmatpush1.bf16.msra.mxu1 %v9860_v57  ;;  %11307 = vpow2.f32 %v9495_v14  ;;  %v11302_v7 = vpop.eup %11301  ;;  %v5131_v57 = vadd.f32 1.0, %v11300_v20  ;;  %v15181_v55 = vpop.f32.mrb[166].mxu1  ;;  %17055 = vst [vmem:[#allocation99_spill] sm:$0xff] %v15192_v36 }
 0x940   : > { %7308 = vmatprep.subr.bf16.mxu1 %v9865_v31  ;;  %6749 = vmatmul.mubr.bf16.gmra.mrb[12].mxu1 %v14199_v33  ;;  %11309 = vpow2.f32 %v9498_v11  ;;  %v15186_v31 = vadd.f32 %v15041_v30, %v15024_v9  ;;  %v15188_v27 = vpop.f32.mrb[167].mxu1  ;;  %v5134_v56 = vadd.f32 1.0, %v11302_v7  ;;  %v15253_v33 = vadd.f32 %v15137_v42, %v15024_v9 }
 0x941   : > { %6009 = vmatpush1.bf16.msra.mxu0 %v10875_v16  ;;  %7312 = vmatprep.mubr.bf16.mxu1 %v14058_v8  ;;  %11311 = vpow2.f32 %v9499_v39  ;;  %v9506_v16 = vmul.f32 -1.442695, %v15177_v3  ;;  %v15211_v39 = vadd.f32 %v15103_v41, %v15010_v0  ;;  %v15223_v41 = vadd.f32 %v15129_v15, %v15010_v0  ;;  %v15241_v15 = vld [vmem:[%s12866_s20 + $0xb0] sm:$0xff] }
 0x942   : > { %6010 = vmatprep.subr.bf16.mxu0 %v10880_v37  ;;  %v11304_v46 = vpop.eup %11303  ;;  %11313 = vpow2.f32 %v9502_v49  ;;  %v17057_v37 = vld [vmem:[#allocation82_spill] sm:$0xff]  ;;  %v9507_v30 = vmul.f32 -1.442695, %v15186_v31  ;;  %17064 = vst [vmem:[#allocation97_spill] sm:$0xff] %v15253_v33  ;;  %v15298_v42 = vadd.f32 %v15149_v1, %v15024_v9  ;;  %v15311_v1 = vadd.f32 %v15179_v58, %v15024_v9 }
 0x943   : > { %7309 = vmatpush1.bf16.msra.mxu1 %v9864_v61  ;;  %11315 = vrcp.f32 %v5130_v51  ;;  %v5135_v61 = vadd.f32 1.0, %v11304_v46  ;;  %17059 = vst [vmem:[#allocation98_spill] sm:$0xff] %v15211_v39  ;;  %v17061_v46 = vld [vmem:[#allocation81_spill] sm:$0xff]  ;;  %17062 = vst [vmem:[#allocation96_spill] sm:$0xff] %v15223_v41 }
 0x944   : > { %7310 = vmatprep.subr.bf16.mxu1 %v9869_v53  ;;  %11317 = vrcp.f32 %v5131_v57  ;;  %v9510_v53 = vmul.f32 -1.442695, %v15192_v36  ;;  %17066 = vst [vmem:[#allocation101_spill] sm:$0xff] %v15298_v42 }
 0x945   : > { %6011 = vmatpush1.bf16.msra.mxu0 %v10878_v34  ;;  %11319 = vpow2.f32 %v9503_v5  ;;  %v15199_v11 = vpop.f32.mrb[168].mxu1  ;;  %v15203_v34 = vadd.f32 %v15097_v47, %v15024_v9  ;;  %v15217_v47 = vadd.f32 %v15109_v12, %v15024_v9 }
 0x946   : > { %7167 = vmatprep.subr.bf16.mxu0 %v9807_v63  ;;  %11321 = vrcp.f32 %v5134_v56  ;;  %v15205_v22 = vpop.f32.mrb[169].mxu1 }
 0x947   : > { %7311 = vmatpush1.bf16.msra.mxu1 %v9868_v40  ;;  %11323 = vpow2.f32 %v9506_v16  ;;  %17058 = vst [vmem:[#allocation95_spill] sm:$0xff] %v15203_v34  ;;  %v15207_v40 = vpop.f32.mrb[170].mxu1  ;;  %17060 = vst [vmem:[#allocation105_spill] sm:$0xff] %v15217_v47  ;;  %v9511_v57 = vmul.f32 -1.442695, %v15203_v34  ;;  %v17063_v16 = vld [vmem:[#allocation84_spill] sm:$0xff] }
 0x948   : > { %v11306_v14 = vpop.eup %11305  ;;  %11325 = vrcp.f32 %v5135_v61  ;;  %v15213_v49 = vpop.f32.mrb[171].mxu1  ;;  %v15227_v61 = vld [vmem:[%s12866_s20 + $0x50] sm:$0xff] }
 0x949   : > { %v11308_v28 = vpop.eup %11307  ;;  %v5138_v20 = vadd.f32 1.0, %v11306_v14  ;;  %11327 = vpow2.f32 %v9507_v30  ;;  %v15230_v30 = vld [vmem:[%s12866_s20 + $0x70] sm:$0xff]  ;;  %v9514_v14 = vmul.f32 -1.442695, %v15211_v39 }
 0x94a   : > { %7313 = vmatmul.mubr.bf16.vlgmr.msra.gmra.mrb[16].mxu1 %v17056_v17  ;;  %v11310_v63 = vpop.eup %11309  ;;  %v5139_v7 = vadd.f32 1.0, %v11308_v28  ;;  %11329 = vpow2.f32 %v9510_v53  ;;  %v11746_v53 = vld [vmem:[%s12885_s1] sm:$0xf]  ;;  %v9518_v17 = vmul.f32 -1.442695, %v15223_v41  ;;  %v15276_v39 = vld [vmem:[%s12866_s20 + $0x130] sm:$0xff] }
 0x94b   : > { %7322 = vmatprep.mubr.bf16.mxu1 %v17057_v37  ;;  %v11312_v51 = vpop.eup %11311  ;;  %v5142_v56 = vadd.f32 1.0, %v11310_v63  ;;  %11331 = vrcp.f32 %v5138_v20  ;;  %v15235_v28 = vrot.slane %v11746_v53, %v17049_v4  ;;  %v15238_v63 = vld [vmem:[%s12866_s20 + $0x90] sm:$0xff]  ;;  %v15247_v20 = vrot.slane %v11746_v53, %v17050_v60 }
 0x94c   : > { %v11314_v5 = vpop.eup %11313  ;;  %11333 = vrcp.f32 %v5139_v7  ;;  %v5143_v8 = vadd.f32 1.0, %v11312_v51  ;;  %v15263_v53 = vld [vmem:[%s12866_s20 + $0xf0] sm:$0xff] }
 0x94d   : > { %v11316_v12 = vpop.eup %11315  ;;  %v15244_v37 = vpop.f32.mrb[172].mxu1  ;;  %11335 = vpow2.f32 %v9511_v57  ;;  %v15273_v57 = vld [vmem:[%s12866_s20 + $0x110] sm:$0xff]  ;;  %v5146_v34 = vadd.f32 1.0, %v11314_v5 }
 0x94e   : > { %v15255_v7 = vpop.f32.mrb[173].mxu1  ;;  %11337 = vrcp.f32 %v5142_v56  ;;  %v15280_v56 = vadd.f32 %v15141_v23, %v15010_v0  ;;  %v5322_v21 = vmul.f32 %v11316_v12, %v15054_v50  ;;  %v15322_v12 = vld [vmem:[%s12866_s20 + $0x170] sm:$0xff] }
 0x94f   : > { %11339 = vpow2.f32 %v9514_v14  ;;  %v9519_v14 = vmul.f32 -1.442695, %v15253_v33 }
 0x950   : > { %17065 = vst [vmem:[#allocation100_spill] sm:$0xff] %v15280_v56  ;;  %v9522_v36 = vmul.f32 -1.442695, %v15280_v56 }
 0x952   : > { %7323 = vmatmul.mubr.bf16.gmra.mrb[20].mxu1 %v17061_v46  ;;  %v11318_v46 = vpop.eup %11317 }
 0x953   : > { %7332 = vmatprep.mubr.bf16.mxu1 %v17063_v16  ;;  %v9515_v16 = vmul.f32 -1.442695, %v15217_v47  ;;  %v11320_v4 = vpop.eup %11319  ;;  %v15266_v47 = vpop.f32.mrb[174].mxu1  ;;  %v5323_v23 = vmul.f32 %v11318_v46, %v15058_v43 }
 0x954   : > { %v11322_v60 = vpop.eup %11321  ;;  %v15282_v41 = vpop.f32.mrb[175].mxu1  ;;  %v5147_v19 = vadd.f32 1.0, %v11320_v4 }
 0x955   : > { %v11324_v44 = vpop.eup %11323  ;;  %11341 = vpow2.f32 %v9515_v16 }
 0x956   : > { %v11326_v51 = vpop.eup %11325  ;;  %11343 = vrcp.f32 %v5143_v8  ;;  %v5150_v16 = vadd.f32 1.0, %v11324_v44  ;;  %v15302_v8 = vadd.f32 %v15173_v32, %v15010_v0  ;;  %v5326_v44 = vmul.f32 %v11322_v60, %v15077_v62  ;;  %v4857_v32 = vpop.f32.mrb[176].mxu1 }
 0x957   : > { %v11328_v5 = vpop.eup %11327  ;;  %11345 = vpow2.f32 %v9518_v17  ;;  %v4858_v50 = vadd.f32 %v4857_v32, %v15235_v28  ;;  %v4859_v43 = vpop.f32.mrb[177].mxu1  ;;  %v9523_v60 = vmul.f32 -1.442695, %v15298_v42  ;;  %v9527_v32 = vmul.f32 -1.442695, %v15311_v1 }
 0x958   : > { %v11330_v4 = vpop.eup %11329  ;;  %17067 = vst [vmem:[#allocation102_spill] sm:$0xff] %v15302_v8  ;;  %11347 = vrcp.f32 %v5146_v34  ;;  %v5151_v17 = vadd.f32 1.0, %v11328_v5  ;;  %v15316_v34 = vld [vmem:[%s12866_s20 + $0x150] sm:$0xff]  ;;  %v4860_v62 = vadd.f32 %v4859_v43, %v15247_v20  ;;  %v4861_v58 = vpop.f32.mrb[178].mxu1 }
 0x959   : > { %11349 = vrcp.f32 %v5147_v19  ;;  %v5154_v33 = vadd.f32 1.0, %v11330_v4  ;;  %v9526_v19 = vmul.f32 -1.442695, %v15302_v8  ;;  %v4863_v4 = vpop.f32.mrb[179].mxu1 }
 0x95a   : > { %7333 = vmatmul.mubr.bf16.gmra.mrb[24].mxu1 %v17036_v38  ;;  %v11332_v38 = vpop.eup %11331  ;;  %11351 = vpow2.f32 %v9519_v14  ;;  %v4862_v14 = vadd.f32 %v4861_v58, %v15235_v28  ;;  %v5387_v8 = vmul.f32 %v5323_v23, %v4860_v62  ;;  %v4864_v43 = vadd.f32 %v4863_v4, %v15247_v20 }
 0x95b   : > { %7342 = vmatprep.mubr.bf16.mxu1 %v17037_v6  ;;  %v5327_v6 = vmul.f32 %v11326_v51, %v15095_v54  ;;  %v11334_v46 = vpop.eup %11333  ;;  %11353 = vrcp.f32 %v5150_v16  ;;  %v15326_v54 = vadd.f32 %v15181_v55, %v15010_v0  ;;  %v5386_v51 = vmul.f32 %v5322_v21, %v4858_v50 }
 0x95c   : > { %v11336_v5 = vpop.eup %11335  ;;  %11355 = vpow2.f32 %v9522_v36  ;;  %v5330_v56 = vmul.f32 %v11332_v38, %v15119_v25  ;;  %v5390_v36 = vmul.f32 %v5326_v44, %v4862_v14  ;;  %v9826_v21 = vcombine.low %v15316_v34, %v15322_v12 }
 0x95d   : > { %v11338_v16 = vpop.eup %11337  ;;  %11357 = vrcp.f32 %v5151_v17  ;;  %v5155_v50 = vadd.f32 1.0, %v11336_v5  ;;  %v15337_v17 = vadd.f32 %v15188_v27, %v15024_v9  ;;  %v5391_v23 = vmul.f32 %v5327_v6, %v4864_v43  ;;  %v4867_v5 = vpop.f32.mrb[180].mxu1 }
 0x95e   : > { %v11340_v42 = vpop.eup %11339  ;;  %11359 = vrcp.f32 %v5154_v33  ;;  %v5331_v38 = vmul.f32 %v11334_v46, %v15127_v2  ;;  %v9530_v33 = vmul.f32 -1.442695, %v15326_v54  ;;  %v5450_v25 = vpack.c.bf16 %v5390_v36, %v5386_v51 }
 0x95f   : > { %v11342_v55 = vpop.eup %11341  ;;  %11361 = vpow2.f32 %v9523_v60  ;;  %v5158_v58 = vadd.f32 1.0, %v11340_v42  ;;  %v15344_v60 = vadd.f32 %v15199_v11, %v15010_v0  ;;  %v5451_v27 = vpack.c.bf16 %v5391_v23, %v5387_v8 }
 0x960   : > { %v11344_v62 = vpop.eup %11343  ;;  %11363 = vpow2.f32 %v9526_v19  ;;  %v5334_v6 = vmul.f32 %v11338_v16, %v15135_v59  ;;  %v5159_v4 = vadd.f32 1.0, %v11342_v55  ;;  %v15349_v2 = vadd.f32 %v15205_v22, %v15024_v9  ;;  %v4869_v19 = vpop.f32.mrb[181].mxu1 }
 0x961   : > { %v11346_v44 = vpop.eup %11345  ;;  %11365 = vpow2.f32 %v9527_v32  ;;  %v4868_v46 = vadd.f32 %v4867_v5, %v15235_v28  ;;  %v5335_v42 = vmul.f32 %v11344_v62, %v15147_v10  ;;  %v9531_v11 = vmul.f32 -1.442695, %v15337_v17  ;;  %v4871_v8 = vpop.f32.mrb[182].mxu1  ;;  %6012 = vmatprep.mubr.bf16.mxu0 %v5451_v27 }
 0x962   : > { %7343 = vmatmul.mubr.bf16.gmra.mrb[28].mxu1 %v17044_v29  ;;  %v11348_v14 = vpop.eup %11347  ;;  %11367 = vrcp.f32 %v5155_v50  ;;  %v4870_v32 = vadd.f32 %v4869_v19, %v15247_v20  ;;  %v5162_v59 = vadd.f32 1.0, %v11346_v44  ;;  %v4872_v22 = vadd.f32 %v4871_v8, %v15235_v28  ;;  %v4873_v36 = vpop.f32.mrb[183].mxu1  ;;  %6013 = vmatmul.mubr.bf16.vlgmr.msra.gmra.mrb[144].mxu0 %v5450_v25 }
 0x963   : > { %7352 = vmatprep.mubr.bf16.mxu1 %v17045_v52  ;;  %v11350_v51 = vpop.eup %11349  ;;  %11369 = vpow2.f32 %v9530_v33  ;;  %v5394_v16 = vmul.f32 %v5330_v56, %v4868_v46  ;;  %v9534_v23 = vmul.f32 -1.442695, %v15344_v60  ;;  %v4874_v50 = vadd.f32 %v4873_v36, %v15247_v20 }
 0x964   : > { %v11352_v43 = vpop.eup %11351  ;;  %11371 = vrcp.f32 %v5158_v58  ;;  %v5395_v10 = vmul.f32 %v5331_v38, %v4870_v32  ;;  %v17068_v62 = vcombine.low %v15152_v35, %v15155_v13  ;;  %v9535_v33 = vmul.f32 -1.442695, %v15349_v2 }
 0x965   : > { %v11354_v55 = vpop.eup %11353  ;;  %11373 = vrcp.f32 %v5159_v4  ;;  %v15364_v56 = vadd.f32 %v15207_v40, %v15010_v0  ;;  %v5398_v25 = vmul.f32 %v5334_v6, %v4872_v22  ;;  %v17069_v38 = vcombine.high %v15227_v61, %v15230_v30 }
 0x966   : > { %7168 = vmatpush1.bf16.msra.mxu0 %v17068_v62  ;;  %v11356_v5 = vpop.eup %11355  ;;  %v5163_v58 = vadd.f32 1.0, %v11352_v43  ;;  %11375 = vpow2.f32 %v9531_v11  ;;  %v15372_v35 = vadd.f32 %v15213_v49, %v15024_v9  ;;  %v5399_v13 = vmul.f32 %v5335_v42, %v4874_v50  ;;  %v4877_v11 = vpop.f32.mrb[184].mxu1 }
 0x967   : > { %7169 = vmatprep.subr.bf16.mxu0 %v17069_v38  ;;  %v11358_v44 = vpop.eup %11357  ;;  %v5338_v40 = vmul.f32 %v11348_v14, %v15159_v48  ;;  %v5339_v6 = vmul.f32 %v11350_v51, %v15170_v24  ;;  %11377 = vrcp.f32 %v5162_v59  ;;  %v5454_v4 = vpack.c.bf16 %v5398_v25, %v5394_v16  ;;  %v4879_v14 = vpop.f32.mrb[185].mxu1 }
 0x968   : > { %v11360_v27 = vpop.eup %11359  ;;  %v5342_v19 = vmul.f32 %v11354_v55, %v15177_v3  ;;  %v5166_v32 = vadd.f32 1.0, %v11356_v5  ;;  %11379 = vpow2.f32 %v9534_v23  ;;  %v17070_v49 = vcombine.low %v15227_v61, %v15230_v30  ;;  %v4881_v30 = vpop.f32.mrb[186].mxu1 }
 0x969   : > { %v11362_v46 = vpop.eup %11361  ;;  %v5455_v42 = vpack.c.bf16 %v5399_v13, %v5395_v10  ;;  %v5343_v43 = vmul.f32 %v11358_v44, %v15186_v31  ;;  %11381 = vpow2.f32 %v9535_v33  ;;  %v9538_v48 = vmul.f32 -1.442695, %v15364_v56  ;;  %v4883_v23 = vpop.f32.mrb[187].mxu1  ;;  %v17073_v44 = vld [vmem:[#allocation89_spill] sm:$0xff] }
 0x96a   : > { %7353 = vmatmul.mubr.bf16.gmra.mrb[32].mxu1 %v17047_v26  ;;  %7170 = vmatpush1.bf16.msra.mxu0 %v17070_v49  ;;  %v11364_v8 = vpop.eup %11363  ;;  %v4878_v24 = vadd.f32 %v4877_v11, %v15235_v28  ;;  %v17071_v3 = vcombine.high %v15238_v63, %v15241_v15  ;;  %11383 = vrcp.f32 %v5163_v58  ;;  %v9539_v59 = vmul.f32 -1.442695, %v15372_v35 }
 0x96b   : > { %7362 = vmatprep.mubr.bf16.mxu1 %v17048_v45  ;;  %v11366_v51 = vpop.eup %11365  ;;  %v15390_v61 = vadd.f32 %v15244_v37, %v15010_v0  ;;  %v4880_v31 = vadd.f32 %v4879_v14, %v15247_v20  ;;  %6022 = vmatprep.mubr.bf16.mxu0 %v5455_v42  ;;  %v5167_v16 = vadd.f32 1.0, %v11362_v46  ;;  %v15395_v22 = vadd.f32 %v15255_v7, %v15024_v9 }
 0x96c   : > { %7171 = vmatprep.subr.bf16.mxu0 %v17071_v3  ;;  %v5402_v36 = vmul.f32 %v5338_v40, %v4878_v24  ;;  %v4882_v55 = vadd.f32 %v4881_v30, %v15235_v28  ;;  %6023 = vmatmul.mubr.bf16.gmra.mrb[148].mxu0 %v5454_v4  ;;  %v11368_v10 = vpop.eup %11367  ;;  %11385 = vrcp.f32 %v5166_v32  ;;  %v5170_v50 = vadd.f32 1.0, %v11364_v8  ;;  %v17076_v32 = vld [vmem:[#allocation99_spill] sm:$0xff] }
 0x96d   : > { %v5403_v62 = vmul.f32 %v5339_v6, %v4880_v31  ;;  %v4884_v37 = vadd.f32 %v4883_v23, %v15247_v20  ;;  %v17072_v5 = vcombine.low %v15238_v63, %v15241_v15  ;;  %v11370_v33 = vpop.eup %11369  ;;  %v5171_v25 = vadd.f32 1.0, %v11366_v51  ;;  %v17075_v6 = vld [vmem:[#allocation92_spill] sm:$0xff]  ;;  %v4887_v42 = vpop.f32.mrb[188].mxu1 }
 0x96e   : > { %11387 = vpow2.f32 %v9538_v48  ;;  %v15404_v7 = vadd.f32 %v15266_v47, %v15010_v0  ;;  %v5406_v38 = vmul.f32 %v5342_v19, %v4882_v55  ;;  %v17074_v58 = vcombine.high %v15260_v18, %v15263_v53  ;;  %v11372_v13 = vpop.eup %11371  ;;  %v4889_v3 = vpop.f32.mrb[189].mxu1 }
 0x96f   : > { %7172 = vmatpush1.bf16.msra.mxu0 %v17072_v5  ;;  %11389 = vpow2.f32 %v9539_v59  ;;  %v9542_v40 = vmul.f32 -1.442695, %v15390_v61  ;;  %v15413_v63 = vadd.f32 %v15282_v41, %v15024_v9  ;;  %v5407_v15 = vmul.f32 %v5343_v43, %v4884_v37  ;;  %v11374_v0 = vpop.eup %11373  ;;  %v17078_v43 = vld [vmem:[#allocation95_spill] sm:$0xff]  ;;  %v17080_v59 = vld [vmem:[#allocation98_spill] sm:$0xff]  ;;  %v4891_v30 = vpop.f32.mrb[190].mxu1  ;;  %v17081_v5 = vld [vmem:[#allocation105_spill] sm:$0xff] }
 0x970   : > { %7173 = vmatprep.subr.bf16.mxu0 %v17074_v58  ;;  %11391 = vrcp.f32 %v5167_v16  ;;  %v9543_v47 = vmul.f32 -1.442695, %v15395_v22  ;;  %v5458_v4 = vpack.c.bf16 %v5406_v38, %v5402_v36  ;;  %v9827_v46 = vcombine.high %v15316_v34, %v15322_v12  ;;  %v11376_v19 = vpop.eup %11375  ;;  %v15433_v16 = vld [vmem:[%s12866_s20 + $0x190] sm:$0xff] }
 0x971   : > { %v5346_v11 = vmul.f32 %v11360_v27, %v17076_v32  ;;  %11393 = vrcp.f32 %v5170_v50  ;;  %v5174_v49 = vadd.f32 1.0, %v11370_v33  ;;  %v17077_v9 = vcombine.low %v15260_v18, %v15263_v53  ;;  %v11378_v8 = vpop.eup %11377  ;;  %v9767_v36 = vld [vmem:[%s12866_s20 + $0x1b0] sm:$0xff] }
 0x972   : > { %7363 = vmatmul.mubr.bf16.gmra.mrb[36].mxu1 %v17073_v44  ;;  %v5459_v41 = vpack.c.bf16 %v5407_v15, %v5403_v62  ;;  %v5347_v48 = vmul.f32 %v11368_v10, %v17078_v43  ;;  %11395 = vrcp.f32 %v5171_v25  ;;  %v9546_v24 = vmul.f32 -1.442695, %v15404_v7  ;;  %v11380_v51 = vpop.eup %11379  ;;  %v4893_v62 = vpop.f32.mrb[191].mxu1  ;;  %v9771_v32 = vld [vmem:[%s12866_s20 + $0x1f0] sm:$0xff]  ;;  %v17085_v43 = vld [vmem:[#allocation96_spill] sm:$0xff] }
 0x973   : > { %7372 = vmatprep.mubr.bf16.mxu1 %v17075_v6  ;;  %7174 = vmatpush1.bf16.msra.mxu0 %v17077_v9  ;;  %v4888_v14 = vadd.f32 %v4887_v42, %v15235_v28  ;;  %v17079_v27 = vcombine.high %v15273_v57, %v15276_v39  ;;  %v5350_v18 = vmul.f32 %v11372_v13, %v17080_v59  ;;  %11397 = vpow2.f32 %v9542_v40  ;;  %v11382_v55 = vpop.eup %11381  ;;  %v17083_v40 = vld [vmem:[#allocation91_spill] sm:$0xff]  ;;  %v17086_v59 = vld [vmem:[#allocation97_spill] sm:$0xff] }
 0x974   : > { %v9547_v53 = vmul.f32 -1.442695, %v15413_v63  ;;  %v4890_v31 = vadd.f32 %v4889_v3, %v15247_v20  ;;  %6032 = vmatprep.mubr.bf16.mxu0 %v5459_v41  ;;  %v5175_v23 = vadd.f32 1.0, %v11376_v19  ;;  %11399 = vpow2.f32 %v9543_v47  ;;  %v11384_v37 = vpop.eup %11383  ;;  %v17084_v19 = vld [vmem:[#allocation94_spill] sm:$0xff] }
 0x975   : > { %7175 = vmatprep.subr.bf16.mxu0 %v17079_v27  ;;  %v5410_v10 = vmul.f32 %v5346_v11, %v4888_v14  ;;  %v4892_v50 = vadd.f32 %v4891_v30, %v15235_v28  ;;  %6033 = vmatmul.mubr.bf16.gmra.mrb[152].mxu0 %v5458_v4  ;;  %v5351_v33 = vmul.f32 %v11374_v0, %v17081_v5  ;;  %11401 = vrcp.f32 %v5174_v49  ;;  %v9769_v0 = vld [vmem:[%s12866_s20 + $0x1d0] sm:$0xff] }
 0x976   : > { %v5411_v25 = vmul.f32 %v5347_v48, %v4890_v31  ;;  %v4894_v38 = vadd.f32 %v4893_v62, %v15247_v20  ;;  %v17082_v58 = vcombine.low %v15273_v57, %v15276_v39  ;;  %11403 = vpow2.f32 %v9546_v24  ;;  %v11386_v47 = vpop.eup %11385  ;;  %v4897_v57 = vpop.f32.mrb[192].mxu1  ;;  %v9773_v31 = vld [vmem:[%s12866_s20 + $0x210] sm:$0xff] }
 0x977   : > { %v5414_v13 = vmul.f32 %v5350_v18, %v4892_v50  ;;  %v9831_v15 = vcombine.high %v15433_v16, %v9767_v36  ;;  %11405 = vpow2.f32 %v9547_v53  ;;  %v5178_v39 = vadd.f32 1.0, %v11380_v51  ;;  %v4899_v3 = vpop.f32.mrb[193].mxu1  ;;  %v9775_v30 = vld [vmem:[%s12866_s20 + $0x230] sm:$0xff] }
 0x978   : > { %7176 = vmatpush1.bf16.msra.mxu0 %v17082_v58  ;;  %v5415_v4 = vmul.f32 %v5351_v33, %v4894_v38  ;;  %v11388_v11 = vpop.eup %11387  ;;  %11407 = vrcp.f32 %v5175_v23  ;;  %v9830_v9 = vcombine.low %v15433_v16, %v9767_v36  ;;  %v5354_v48 = vmul.f32 %v11378_v8, %v17085_v43  ;;  %v4901_v12 = vpop.f32.mrb[194].mxu1  ;;  %v17087_v36 = vld [vmem:[#allocation100_spill] sm:$0xff]  ;;  %v17090_v43 = vld [vmem:[#allocation102_spill] sm:$0xff] }
 0x979   : > { %7177 = vmatprep.subr.bf16.mxu0 %v9827_v46  ;;  %v5462_v49 = vpack.c.bf16 %v5414_v13, %v5410_v10  ;;  %v11390_v42 = vpop.eup %11389  ;;  %v5179_v24 = vadd.f32 1.0, %v11382_v55  ;;  %v4898_v14 = vadd.f32 %v4897_v57, %v15235_v28  ;;  %v9835_v27 = vcombine.high %v9769_v0, %v9771_v32  ;;  %v4903_v50 = vpop.f32.mrb[195].mxu1  ;;  %v17089_v13 = vld [vmem:[#allocation93_spill] sm:$0xff] }
 0x97a   : > { %7373 = vmatmul.mubr.bf16.gmra.mrb[40].mxu1 %v17083_v40  ;;  %v5463_v46 = vpack.c.bf16 %v5415_v4, %v5411_v25  ;;  %v11392_v41 = vpop.eup %11391  ;;  %v5355_v18 = vmul.f32 %v11384_v37, %v17086_v59  ;;  %v5182_v53 = vadd.f32 1.0, %v11388_v11  ;;  %v4900_v34 = vadd.f32 %v4899_v3, %v15247_v20  ;;  %v17088_v37 = vld [vmem:[#allocation101_spill] sm:$0xff] }
 0x97b   : > { %7382 = vmatprep.mubr.bf16.mxu1 %v17084_v19  ;;  %v11394_v51 = vpop.eup %11393  ;;  %v5358_v8 = vmul.f32 %v11386_v47, %v17087_v36  ;;  %v5183_v55 = vadd.f32 1.0, %v11390_v42  ;;  %v5418_v23 = vmul.f32 %v5354_v48, %v4898_v14  ;;  %v4902_v10 = vadd.f32 %v4901_v12, %v15235_v28  ;;  %v9783_v36 = vld [vmem:[%s12866_s20 + $0x2b0] sm:$0xff] }
 0x97c   : > { %7178 = vmatpush1.bf16.msra.mxu0 %v9826_v21  ;;  %6042 = vmatprep.mubr.bf16.mxu0 %v5463_v46  ;;  %v9834_v21 = vcombine.low %v9769_v0, %v9771_v32  ;;  %v11396_v16 = vpop.eup %11395  ;;  %v5359_v5 = vmul.f32 %v11392_v41, %v17088_v37  ;;  %11409 = vrcp.f32 %v5178_v39  ;;  %v5419_v33 = vmul.f32 %v5355_v18, %v4900_v34  ;;  %v9777_v0 = vld [vmem:[%s12866_s20 + $0x250] sm:$0xff] }
 0x97d   : > { %7179 = vmatprep.subr.bf16.mxu0 %v9831_v15  ;;  %6043 = vmatmul.mubr.bf16.gmra.mrb[156].mxu0 %v5462_v49  ;;  %v11398_v62 = vpop.eup %11397  ;;  %v4904_v25 = vadd.f32 %v4903_v50, %v15247_v20  ;;  %11411 = vrcp.f32 %v5179_v24  ;;  %v5422_v58 = vmul.f32 %v5358_v8, %v4902_v10  ;;  %v9839_v15 = vcombine.high %v9773_v31, %v9775_v30  ;;  %v9779_v32 = vld [vmem:[%s12866_s20 + $0x270] sm:$0xff]  ;;  %v4907_v57 = vpop.f32.mrb[196].mxu1 }
 0x97e   : > { %v11400_v38 = vpop.eup %11399  ;;  %11413 = vrcp.f32 %v5182_v53  ;;  %v5186_v39 = vadd.f32 1.0, %v11398_v62  ;;  %v5362_v48 = vmul.f32 %v11394_v51, %v17090_v43  ;;  %v4908_v14 = vadd.f32 %v4907_v57, %v15235_v28  ;;  %v4909_v3 = vpop.f32.mrb[197].mxu1  ;;  %v9785_v37 = vld [vmem:[%s12866_s20 + $0x2d0] sm:$0xff] }
 0x97f   : > { %v11402_v47 = vpop.eup %11401  ;;  %v5423_v4 = vmul.f32 %v5359_v5, %v4904_v25  ;;  %11415 = vrcp.f32 %v5183_v55  ;;  %v5466_v49 = vpack.c.bf16 %v5422_v58, %v5418_v23  ;;  %v5187_v24 = vadd.f32 1.0, %v11400_v38  ;;  %v4911_v34 = vpop.f32.mrb[198].mxu1  ;;  %v9787_v5 = vld [vmem:[%s12866_s20 + $0x2f0] sm:$0xff] }
 0x980   : > { %7180 = vmatpush1.bf16.msra.mxu0 %v9830_v9  ;;  %v11404_v11 = vpop.eup %11403  ;;  %v9838_v9 = vcombine.low %v9773_v31, %v9775_v30  ;;  %v5363_v59 = vmul.f32 %v11396_v16, %v15311_v1  ;;  %v4910_v53 = vadd.f32 %v4909_v3, %v15247_v20  ;;  %v9842_v12 = vcombine.low %v9777_v0, %v9779_v32  ;;  %v4913_v55 = vpop.f32.mrb[199].mxu1  ;;  %v9789_v57 = vld [vmem:[%s12866_s20 + $0x310] sm:$0xff] }
 0x981   : > { %7181 = vmatprep.subr.bf16.mxu0 %v9835_v27  ;;  %v11406_v42 = vpop.eup %11405  ;;  %v5467_v46 = vpack.c.bf16 %v5423_v4, %v5419_v33  ;;  %v9843_v27 = vcombine.high %v9777_v0, %v9779_v32  ;;  %v5190_v18 = vadd.f32 1.0, %v11404_v11  ;;  %v5366_v31 = vmul.f32 %v11402_v47, %v15326_v54 }
 0x982   : > { %7383 = vmatmul.mubr.bf16.gmra.mrb[44].mxu1 %v17089_v13  ;;  %v11408_v41 = vpop.eup %11407  ;;  %v5191_v30 = vadd.f32 1.0, %v11406_v42  ;;  %v5426_v51 = vmul.f32 %v5362_v48, %v4908_v14  ;;  %v4912_v8 = vadd.f32 %v4911_v34, %v15235_v28  ;;  %11417 = vrcp.f32 %v5186_v39 }
 0x983   : > { %6052 = vmatprep.mubr.bf16.mxu0 %v5467_v46  ;;  %v5367_v1 = vmul.f32 %v11408_v41, %v15337_v17  ;;  %v5427_v16 = vmul.f32 %v5363_v59, %v4910_v53  ;;  %v4914_v23 = vadd.f32 %v4913_v55, %v15247_v20  ;;  %11419 = vrcp.f32 %v5187_v24  ;;  %v9791_v46 = vld [vmem:[%s12866_s20 + $0x330] sm:$0xff] }
 0x984   : > { %7182 = vmatpush1.bf16.msra.mxu0 %v9834_v21  ;;  %v9781_v21 = vld [vmem:[%s12866_s20 + $0x290] sm:$0xff]  ;;  %v5430_v10 = vmul.f32 %v5366_v31, %v4912_v8  ;;  %11421 = vrcp.f32 %v5190_v18  ;;  %v9851_v11 = vcombine.high %v9785_v37, %v9787_v5  ;;  %v9850_v14 = vcombine.low %v9785_v37, %v9787_v5 }
 0x985   : > { %7183 = vmatprep.subr.bf16.mxu0 %v9839_v15  ;;  %6053 = vmatmul.mubr.bf16.gmra.mrb[160].mxu0 %v5466_v49  ;;  %v9847_v50 = vcombine.high %v9781_v21, %v9783_v36  ;;  %v5431_v62 = vmul.f32 %v5367_v1, %v4914_v23  ;;  %11423 = vrcp.f32 %v5191_v30  ;;  %v4917_v17 = vpop.f32.mrb[200].mxu1  ;;  %v9846_v15 = vcombine.low %v9781_v21, %v9783_v36  ;;  %v9793_v53 = vld [vmem:[%s12866_s20 + $0x350] sm:$0xff] }
 0x986   : > { %v11410_v54 = vpop.eup %11409  ;;  %v5470_v25 = vpack.c.bf16 %v5430_v10, %v5426_v51  ;;  %v4918_v0 = vadd.f32 %v4917_v17, %v15235_v28  ;;  %v4919_v32 = vpop.f32.mrb[201].mxu1  ;;  %v9854_v31 = vcombine.low %v9789_v57, %v9791_v46 }
 0x987   : > { %v11412_v33 = vpop.eup %11411  ;;  %v5471_v58 = vpack.c.bf16 %v5431_v62, %v5427_v16  ;;  %v5370_v4 = vmul.f32 %v11410_v54, %v15344_v60  ;;  %v4920_v42 = vadd.f32 %v4919_v32, %v15247_v20  ;;  %v4921_v39 = vpop.f32.mrb[202].mxu1  ;;  %v9799_v54 = vld [vmem:[%s12866_s20 + $0x3b0] sm:$0xff] }
 0x988   : > { %7184 = vmatpush1.bf16.msra.mxu0 %v9838_v9  ;;  %v11414_v38 = vpop.eup %11413  ;;  %v5371_v49 = vmul.f32 %v11412_v33, %v15349_v2  ;;  %v4922_v60 = vadd.f32 %v4921_v39, %v15235_v28  ;;  %v4923_v43 = vpop.f32.mrb[203].mxu1 }
 0x989   : > { %7185 = vmatprep.subr.bf16.mxu0 %v9843_v27  ;;  %v11416_v47 = vpop.eup %11415  ;;  %6062 = vmatprep.mubr.bf16.mxu0 %v5471_v58  ;;  %v5374_v9 = vmul.f32 %v11414_v38, %v15364_v56  ;;  %v5434_v41 = vmul.f32 %v5370_v4, %v4918_v0  ;;  %v4924_v2 = vadd.f32 %v4923_v43, %v15247_v20  ;;  %v9795_v56 = vld [vmem:[%s12866_s20 + $0x370] sm:$0xff]  ;;  %v17094_v43 = vld [vmem:[#allocation82_spill] sm:$0xff] }
 0x98a   : > { %v5375_v48 = vmul.f32 %v11416_v47, %v15372_v35  ;;  %v5435_v24 = vmul.f32 %v5371_v49, %v4920_v42  ;;  %v9855_v27 = vcombine.high %v9789_v57, %v9791_v46  ;;  %v9859_v1 = vcombine.high %v9793_v53, %v9795_v56  ;;  %v9801_v47 = vld [vmem:[%s12866_s20 + $0x3d0] sm:$0xff]  ;;  %v17091_v42 = vld [vmem:[#allocation80_spill] sm:$0xff] }
 0x98b   : > { %v5438_v3 = vmul.f32 %v5374_v9, %v4922_v60  ;;  %v9858_v38 = vcombine.low %v9793_v53, %v9795_v56  ;;  %v9803_v4 = vld [vmem:[%s12866_s20 + $0x3f0] sm:$0xff]  ;;  %v17093_v60 = vld [vmem:[#allocation79_spill] sm:$0xff] }
 0x98c   : > { %7186 = vmatpush1.bf16.msra.mxu0 %v9842_v12  ;;  %v11418_v59 = vpop.eup %11417  ;;  %v5439_v18 = vmul.f32 %v5375_v48, %v4924_v2  ;;  %v9866_v39 = vcombine.low %v9801_v47, %v9803_v4 }
 0x98d   : > { %7187 = vmatprep.subr.bf16.mxu0 %v9847_v50  ;;  %6063 = vmatmul.mubr.bf16.gmra.mrb[164].mxu0 %v5470_v25  ;;  %v11420_v34 = vpop.eup %11419  ;;  %v5474_v12 = vpack.c.bf16 %v5438_v3, %v5434_v41  ;;  %v4927_v36 = vpop.f32.mrb[204].mxu1  ;;  %v5378_v51 = vmul.f32 %v11418_v59, %v15390_v61  ;;  %v9797_v50 = vld [vmem:[%s12866_s20 + $0x390] sm:$0xff] }
 0x98e   : > { %v11422_v21 = vpop.eup %11421  ;;  %v5475_v35 = vpack.c.bf16 %v5439_v18, %v5435_v24  ;;  %v4928_v8 = vadd.f32 %v4927_v36, %v15235_v28  ;;  %v4929_v55 = vpop.f32.mrb[205].mxu1  ;;  %v5379_v16 = vmul.f32 %v11420_v34, %v15395_v22  ;;  %v9863_v58 = vcombine.high %v9797_v50, %v9799_v54  ;;  %v17099_v3 = vld [vmem:[#allocation81_spill] sm:$0xff]  ;;  %v17105_v34 = vld [vmem:[#allocation83_spill] sm:$0xff] }
 0x98f   : > { %v11424_v30 = vpop.eup %11423  ;;  %v4930_v23 = vadd.f32 %v4929_v55, %v15247_v20  ;;  %v4931_v10 = vpop.f32.mrb[206].mxu1  ;;  %v5382_v62 = vmul.f32 %v11422_v21, %v15404_v7  ;;  %v9862_v32 = vcombine.low %v9797_v50, %v9799_v54  ;;  %v10889_v54 = vld [vmem:[%s12869_s19 + $0x224] ss:$8 sps:$4 sm:$0xff]  }
 0x990   : > { %7188 = vmatpush1.bf16.msra.mxu0 %v9846_v15  ;;  %6072 = vmatprep.mubr.bf16.mxu0 %v5475_v35  ;;  %v5442_v37 = vmul.f32 %v5378_v51, %v4928_v8  ;;  %v4932_v61 = vadd.f32 %v4931_v10, %v15235_v28  ;;  %v4933_v5 = vpop.f32.mrb[207].mxu1  ;;  %v5383_v33 = vmul.f32 %v11424_v30, %v15413_v63 }
 0x991   : > { %7189 = vmatprep.subr.bf16.mxu0 %v9851_v11  ;;  %v5443_v25 = vmul.f32 %v5379_v16, %v4930_v23  ;;  %v4934_v22 = vadd.f32 %v4933_v5, %v15247_v20  ;;  %v9867_v63 = vcombine.high %v9801_v47, %v9803_v4  ;;  %v10883_v16 = vld [vmem:[%s12869_s19 + $0x204] ss:$8 sps:$4 sm:$0xff]   ;;  %v10884_v23 = vld [vmem:[%s12869_s19 + $0x210] ss:$8 sps:$4 sm:$0xff]  }
 0x992   : > { %v5446_v17 = vmul.f32 %v5382_v62, %v4932_v61  ;;  %v10892_v62 = vld [vmem:[%s12869_s19 + $0x234] ss:$8 sps:$4 sm:$0xff]   ;;  %v10890_v61 = vld [vmem:[%s12869_s19 + $0x230] ss:$8 sps:$4 sm:$0xff]  }
 0x993   : > { %v5447_v15 = vmul.f32 %v5383_v33, %v4934_v22  ;;  %v17123_v22 = vld [vmem:[#allocation45_spill] sm:$0xff] }
 0x994   : > { %7190 = vmatpush1.bf16.msra.mxu0 %v9850_v14  ;;  %v5478_v0 = vpack.c.bf16 %v5446_v17, %v5442_v37  ;;  %v10895_v17 = vld [vmem:[%s12869_s19 + $0x244] ss:$8 sps:$4 sm:$0xff]   ;;  %v10896_v47 = vld [vmem:[%s12869_s19 + $0x250] ss:$8 sps:$4 sm:$0xff]  }
 0x995   : > { %7191 = vmatprep.subr.bf16.mxu0 %v9855_v27  ;;  %6073 = vmatmul.mubr.bf16.gmra.mrb[168].mxu0 %v5474_v12  ;;  %v15500_v7 = vpop.f32.mrb[208].mxu1  ;;  %v5479_v28 = vpack.c.bf16 %v5447_v15, %v5443_v25  ;;  %v17100_v27 = vld [vmem:[#allocation84_spill] sm:$0xff]  ;;  %v17106_v12 = vld [vmem:[#allocation86_spill] sm:$0xff] }
 0x996   : > { %v15502_v11 = vpop.f32.mrb[209].mxu1  ;;  %v10893_v25 = vld [vmem:[%s12869_s19 + $0x240] ss:$8 sps:$4 sm:$0xff]  }
 0x997   : > { %6082 = vmatprep.mubr.bf16.mxu0 %v5479_v28  ;;  %v15504_v20 = vpop.f32.mrb[210].mxu1 }
 0x998   : > { %7192 = vmatpush1.bf16.msra.mxu0 %v9854_v31  ;;  %v15506_v49 = vpop.f32.mrb[211].mxu1 }
 0x999   : > { %7193 = vmatprep.subr.bf16.mxu0 %v9859_v1  ;;  %v10881_v1 = vld [vmem:[%s12869_s19 + $0x200] ss:$8 sps:$4 sm:$0xff]  }
 0x99c   : > { %7194 = vmatpush1.bf16.msra.mxu0 %v9858_v38 }
 0x99d   : > { %7195 = vmatprep.subr.bf16.mxu0 %v9863_v58  ;;  %6083 = vmatmul.mubr.bf16.gmra.mrb[172].mxu0 %v5478_v0  ;;  %v15509_v57 = vpop.f32.mrb[212].mxu1  ;;  %v10898_v58 = vld [vmem:[%s12869_s19 + $0x254] ss:$8 sps:$4 sm:$0xff]  }
 0x99e   : > { %7199 = vmatprep.mubr.bf16.mxu0 %v17091_v42  ;;  %v15511_v46 = vpop.f32.mrb[213].mxu1  ;;  %v10904_v42 = vld [vmem:[%s12869_s19 + $0x274] ss:$8 sps:$4 sm:$0xff]  }
 0x99f   : > { %v15513_v9 = vpop.f32.mrb[214].mxu1 }
 0x9a0   : > { %7196 = vmatpush1.bf16.msra.mxu0 %v9862_v32  ;;  %v15515_v41 = vpop.f32.mrb[215].mxu1 }
 0x9a1   : > { %7197 = vmatprep.subr.bf16.mxu0 %v9867_v63  ;;  %17092 = vst [vmem:[#allocation103_spill] sm:$0xff] %v15515_v41  ;;  %v10899_v63 = vld [vmem:[%s12869_s19 + $0x260] ss:$8 sps:$4 sm:$0xff]  }
 0x9a4   : > { %7198 = vmatpush1.bf16.msra.mxu0 %v9866_v39 }
 0x9a5   : > { %v15519_v48 = vpop.f32.mrb[216].mxu1  ;;  %8324 = vmatprep.subr.bf16.mxu0 %v10883_v16  ;;  %v10910_v16 = vld [vmem:[%s12869_s19 + $0x294] ss:$8 sps:$4 sm:$0xff]  }
 0x9a6   : > { %17095 = vst [vmem:[#allocation104_spill] sm:$0xff] %v15519_v48  ;;  %v15521_v24 = vpop.f32.mrb[217].mxu1 }
 0x9a7   : > { %7200 = vmatmul.mubr.bf16.vlgmr.msra.gmra.mrb[176].mxu0 %v17093_v60  ;;  %17096 = vst [vmem:[#allocation85_spill] sm:$0xff] %v15521_v24  ;;  %v15523_v2 = vpop.f32.mrb[218].mxu1  ;;  %v10902_v60 = vld [vmem:[%s12869_s19 + $0x270] ss:$8 sps:$4 sm:$0xff]  }
 0x9a8   : > { %7209 = vmatprep.mubr.bf16.mxu0 %v17094_v43  ;;  %17097 = vst [vmem:[#allocation88_spill] sm:$0xff] %v15523_v2  ;;  %v15525_v14 = vpop.f32.mrb[219].mxu1  ;;  %8325 = vmatpush1.bf16.msra.mxu0 %v10881_v1  ;;  %v10905_v1 = vld [vmem:[%s12869_s19 + $0x280] ss:$8 sps:$4 sm:$0xff]  }
 0x9a9   : > { %17098 = vst [vmem:[#allocation87_spill] sm:$0xff] %v15525_v14 }
 0x9ad   : > { %v15529_v59 = vpop.f32.mrb[220].mxu1 }
 0x9ae   : > { %17101 = vst [vmem:[#allocation90_spill] sm:$0xff] %v15529_v59  ;;  %v15531_v18 = vpop.f32.mrb[221].mxu1 }
 0x9af   : > { %7210 = vmatmul.mubr.bf16.gmra.mrb[180].mxu0 %v17099_v3  ;;  %17102 = vst [vmem:[#allocation89_spill] sm:$0xff] %v15531_v18  ;;  %v15533_v53 = vpop.f32.mrb[222].mxu1 }
 0x9b0   : > { %7219 = vmatprep.mubr.bf16.mxu0 %v17100_v27  ;;  %17103 = vst [vmem:[#allocation92_spill] sm:$0xff] %v15533_v53  ;;  %v15535_v56 = vpop.f32.mrb[223].mxu1  ;;  %v10907_v27 = vld [vmem:[%s12869_s19 + $0x284] ss:$8 sps:$4 sm:$0xff]  }
 0x9b1   : > { %17104 = vst [vmem:[#allocation99_spill] sm:$0xff] %v15535_v56  ;;  %v15738_v53 = vld [vmem:[%s12885_s1 + $0x4] sm:$0xf] }
 0x9b2   : > { %17125 = vst [vmem:[#allocation83_spill] sm:$0xff] %v15738_v53  ;;  %v15748_v2 = vrot.slane %v15738_v53, %v17123_v22 }
 0x9b5   : > { %v15539_v21 = vpop.f32.mrb[224].mxu1 }
 0x9b6   : > { %17107 = vst [vmem:[#allocation95_spill] sm:$0xff] %v15539_v21  ;;  %v15541_v36 = vpop.f32.mrb[225].mxu1 }
 0x9b7   : > { %7220 = vmatmul.mubr.bf16.gmra.mrb[184].mxu0 %v17105_v34  ;;  %17108 = vst [vmem:[#allocation98_spill] sm:$0xff] %v15541_v36  ;;  %v15543_v35 = vpop.f32.mrb[226].mxu1 }
 0x9b8   : > { %7229 = vmatprep.mubr.bf16.mxu0 %v17106_v12  ;;  %17109 = vst [vmem:[#allocation105_spill] sm:$0xff] %v15543_v35  ;;  %v15545_v31 = vpop.f32.mrb[227].mxu1 }
 0x9b9   : > { %17110 = vst [vmem:[#allocation91_spill] sm:$0xff] %v15545_v31 }
 0x9bd   : > { %v15549_v30 = vpop.f32.mrb[228].mxu1 }
 0x9be   : > { %17111 = vst [vmem:[#allocation94_spill] sm:$0xff] %v15549_v30  ;;  %v15551_v51 = vpop.f32.mrb[229].mxu1 }
 0x9bf   : > { %7230 = vmatmul.mubr.bf16.gmra.mrb[188].mxu0 %v17044_v29  ;;  %17112 = vst [vmem:[#allocation96_spill] sm:$0xff] %v15551_v51  ;;  %v15553_v8 = vpop.f32.mrb[230].mxu1  ;;  %v10886_v29 = vld [vmem:[%s12869_s19 + $0x214] ss:$8 sps:$4 sm:$0xff]   ;;  %v10931_v51 = vld [vmem:[%s12869_s19 + $0x304] ss:$8 sps:$4 sm:$0xff]  }
 0x9c0   : > { %7239 = vmatprep.mubr.bf16.mxu0 %v17045_v52  ;;  %17113 = vst [vmem:[#allocation97_spill] sm:$0xff] %v15553_v8  ;;  %v15555_v55 = vpop.f32.mrb[231].mxu1  ;;  %8326 = vmatprep.subr.bf16.mxu0 %v10886_v29 }
 0x9c1   : > { %17114 = vst [vmem:[#allocation100_spill] sm:$0xff] %v15555_v55  ;;  %8327 = vmatpush1.bf16.msra.mxu0 %v10884_v23  ;;  %v10908_v23 = vld [vmem:[%s12869_s19 + $0x290] ss:$8 sps:$4 sm:$0xff]  }
 0x9c2   : > { %8328 = vmatprep.subr.bf16.mxu0 %v10889_v54 }
 0x9c5   : > { %v15562_v52 = vpop.f32.mrb[232].mxu1 }
 0x9c6   : > { %17115 = vst [vmem:[#allocation101_spill] sm:$0xff] %v15562_v52  ;;  %v15565_v10 = vpop.f32.mrb[233].mxu1 }
 0x9c7   : > { %7240 = vmatmul.mubr.bf16.gmra.mrb[192].mxu0 %v17047_v26  ;;  %17116 = vst [vmem:[#allocation93_spill] sm:$0xff] %v15565_v10  ;;  %v15567_v50 = vpop.f32.mrb[234].mxu1 }
 0x9c8   : > { %7249 = vmatprep.mubr.bf16.mxu0 %v17048_v45  ;;  %17117 = vst [vmem:[#allocation102_spill] sm:$0xff] %v15567_v50  ;;  %v15569_v26 = vpop.f32.mrb[235].mxu1  ;;  %v10887_v45 = vld [vmem:[%s12869_s19 + $0x220] ss:$8 sps:$4 sm:$0xff]  }
 0x9c9   : > { %17118 = vst [vmem:[#allocation80_spill] sm:$0xff] %v15569_v26  ;;  %8329 = vmatpush1.bf16.msra.mxu0 %v10887_v45 }
 0x9ca   : > { %8330 = vmatprep.subr.bf16.mxu0 %v10892_v62  ;;  %v10913_v62 = vld [vmem:[%s12869_s19 + $0x2a4] ss:$8 sps:$4 sm:$0xff]  }
 0x9cd   : > { %v15576_v37 = vpop.f32.mrb[236].mxu1  ;;  %8331 = vmatpush1.bf16.msra.mxu0 %v10890_v61 }
 0x9ce   : > { %17119 = vst [vmem:[#allocation79_spill] sm:$0xff] %v15576_v37  ;;  %v15579_v5 = vpop.f32.mrb[237].mxu1  ;;  %8332 = vmatprep.subr.bf16.mxu0 %v10895_v17 }
 0x9cf   : > { %7250 = vmatmul.mubr.bf16.gmra.mrb[196].mxu0 %v17073_v44  ;;  %17120 = vst [vmem:[#allocation82_spill] sm:$0xff] %v15579_v5  ;;  %v15581_v33 = vpop.f32.mrb[238].mxu1 }
 0x9d0   : > { %7259 = vmatprep.mubr.bf16.mxu0 %v17075_v6  ;;  %17121 = vst [vmem:[#allocation81_spill] sm:$0xff] %v15581_v33  ;;  %v15583_v44 = vpop.f32.mrb[239].mxu1  ;;  %v15587_v6 = vld [vmem:[%s12880_s18 + $0x4] sm:$0xf] }
 0x9d1   : > { %17122 = vst [vmem:[#allocation84_spill] sm:$0xff] %v15583_v44  ;;  %v15593_v38 = vrot.slane %v15587_v6, %v17123_v22  ;;  %8333 = vmatpush1.bf16.msra.mxu0 %v10893_v25  ;;  %v17124_v25 = vld [vmem:[#allocation46_spill] sm:$0xff] }
 0x9d2   : > { %8334 = vmatprep.subr.bf16.mxu0 %v10898_v58  ;;  %v15625_v17 = vrot.slane %v15587_v6, %v17124_v25  ;;  %v10920_v44 = vld [vmem:[%s12869_s19 + $0x2d0] ss:$8 sps:$4 sm:$0xff]  }
 0x9d5   : > { %8335 = vmatpush1.bf16.msra.mxu0 %v10896_v47  ;;  %v10911_v47 = vld [vmem:[%s12869_s19 + $0x2a0] ss:$8 sps:$4 sm:$0xff]  }
 0x9d7   : > { %7260 = vmatmul.mubr.bf16.gmra.mrb[200].mxu0 %v17083_v40 }
 0x9d8   : > { %7269 = vmatprep.mubr.bf16.mxu0 %v17084_v19  ;;  %v10901_v19 = vld [vmem:[%s12869_s19 + $0x264] ss:$8 sps:$4 sm:$0xff]  }
 0x9d9   : > { %v6680_v15 = vpop.f32.mrb[240].mxu1  ;;  %8336 = vmatprep.subr.bf16.mxu0 %v10901_v19  ;;  %v10916_v19 = vld [vmem:[%s12869_s19 + $0x2b4] ss:$8 sps:$4 sm:$0xff]  }
 0x9da   : > { %v15599_v40 = vadd.f32 %v6680_v15, %v15593_v38  ;;  %v6682_v4 = vpop.f32.mrb[241].mxu1  ;;  %8337 = vmatpush1.bf16.msra.mxu0 %v10899_v63 }
 0x9db   : > { %v6684_v0 = vpop.f32.mrb[242].mxu1  ;;  %8338 = vmatprep.subr.bf16.mxu0 %v10904_v42  ;;  %v10914_v42 = vld [vmem:[%s12869_s19 + $0x2b0] ss:$8 sps:$4 sm:$0xff]  }
 0x9dc   : > { %v15603_v28 = vadd.f32 %v6684_v0, %v15593_v38  ;;  %v6686_v32 = vpop.f32.mrb[243].mxu1  ;;  %v15635_v0 = vadd.f32 %v6682_v4, %v15625_v17 }
 0x9de   : > { %8339 = vmatpush1.bf16.msra.mxu0 %v10902_v60 }
 0x9df   : > { %7270 = vmatmul.mubr.bf16.gmra.mrb[204].mxu0 %v17089_v13  ;;  %8340 = vmatprep.subr.bf16.mxu0 %v10907_v27 }
 0x9e2   : > { %v6690_v39 = vpop.f32.mrb[244].mxu1  ;;  %8341 = vmatpush1.bf16.msra.mxu0 %v10905_v1 }
 0x9e3   : > { %v15610_v43 = vadd.f32 %v6690_v39, %v15593_v38  ;;  %v6692_v3 = vpop.f32.mrb[245].mxu1  ;;  %8342 = vmatprep.subr.bf16.mxu0 %v10910_v16  ;;  %v9872_v39 = vmul.f32 -1.442695, %v15599_v40  ;;  %v9873_v16 = vmul.f32 -1.442695, %v15635_v0 }
 0x9e4   : > { %v6694_v34 = vpop.f32.mrb[246].mxu1 }
 0x9e5   : > { %v15614_v13 = vadd.f32 %v6694_v34, %v15593_v38  ;;  %v6696_v12 = vpop.f32.mrb[247].mxu1  ;;  %v10919_v34 = vld [vmem:[%s12869_s19 + $0x2c4] ss:$8 sps:$4 sm:$0xff]   ;;  %11425 = vpow2.f32 %v9872_v39  ;;  %v9880_v39 = vmul.f32 -1.442695, %v15610_v43 }
 0x9e6   : > { %8343 = vmatpush1.bf16.msra.mxu0 %v10908_v23  ;;  %v15652_v23 = vadd.f32 %v6686_v32, %v15625_v17  ;;  %11427 = vpow2.f32 %v9873_v16 }
 0x9e7   : > { %8344 = vmatprep.subr.bf16.mxu0 %v10913_v62  ;;  %v10917_v62 = vld [vmem:[%s12869_s19 + $0x2c0] ss:$8 sps:$4 sm:$0xff]  }
 0x9ea   : > { %v6700_v29 = vpop.f32.mrb[248].mxu1  ;;  %8345 = vmatpush1.bf16.msra.mxu0 %v10911_v47  ;;  %v10922_v47 = vld [vmem:[%s12869_s19 + $0x2d4] ss:$8 sps:$4 sm:$0xff]  }
 0x9eb   : > { %v15620_v45 = vadd.f32 %v6700_v29, %v15593_v38  ;;  %v6702_v54 = vpop.f32.mrb[249].mxu1  ;;  %8346 = vmatprep.subr.bf16.mxu0 %v10916_v19  ;;  %v15658_v19 = vadd.f32 %v6692_v3, %v15625_v17 }
 0x9ec   : > { %v6704_v61 = vpop.f32.mrb[250].mxu1  ;;  %v15681_v37 = vadd.f32 %v6702_v54, %v15625_v17 }
 0x9ed   : > { %v15628_v58 = vadd.f32 %v6704_v61, %v15593_v38  ;;  %v15630_v15 = vpop.f32.mrb[251].mxu1  ;;  %v9876_v61 = vmul.f32 -1.442695, %v15603_v28  ;;  %v9881_v3 = vmul.f32 -1.442695, %v15658_v19 }
 0x9ee   : > { %8347 = vmatpush1.bf16.msra.mxu0 %v10914_v42  ;;  %v9889_v55 = vmul.f32 -1.442695, %v15681_v37 }
 0x9ef   : > { %8348 = vmatprep.subr.bf16.mxu0 %v10919_v34  ;;  %11429 = vpow2.f32 %v9876_v61  ;;  %v9884_v61 = vmul.f32 -1.442695, %v15614_v13  ;;  %v11426_v5 = vpop.eup %11425 }
 0x9f0   : > { %v7587_v10 = vadd.f32 1.0, %v11426_v5  ;;  %v9892_v5 = vmul.f32 -1.442695, %v15628_v58 }
 0x9f2   : > { %8349 = vmatpush1.bf16.msra.mxu0 %v10917_v62  ;;  %v15675_v62 = vadd.f32 %v6696_v12, %v15625_v17 }
 0x9f3   : > { %v6710_v63 = vpop.f32.mrb[252].mxu1  ;;  %8350 = vmatprep.subr.bf16.mxu0 %v10922_v47  ;;  %v10925_v47 = vld [vmem:[%s12869_s19 + $0x2e4] ss:$8 sps:$4 sm:$0xff]  }
 0x9f4   : > { %v15640_v60 = vadd.f32 %v6710_v63, %v15593_v38  ;;  %v15642_v27 = vpop.f32.mrb[253].mxu1  ;;  %v9877_v63 = vmul.f32 -1.442695, %v15652_v23  ;;  %v9885_v26 = vmul.f32 -1.442695, %v15675_v62 }
 0x9f5   : > { %v6714_v1 = vpop.f32.mrb[254].mxu1 }
 0x9f6   : > { %v15647_v4 = vadd.f32 %v6714_v1, %v15593_v38  ;;  %v15649_v29 = vpop.f32.mrb[255].mxu1  ;;  %11431 = vpow2.f32 %v9877_v63  ;;  %8351 = vmatpush1.bf16.msra.mxu0 %v10920_v44  ;;  %v11428_v63 = vpop.eup %11427  ;;  %v9888_v44 = vmul.f32 -1.442695, %v15620_v45 }
 0x9f7   : > { %11433 = vpow2.f32 %v9880_v39  ;;  %8352 = vmatprep.subr.bf16.mxu0 %v10925_v47  ;;  %v15695_v47 = vadd.f32 %v15630_v15, %v15625_v17 }
 0x9f8   : > { %11435 = vpow2.f32 %v9881_v3  ;;  %v10926_v3 = vld [vmem:[%s12869_s19 + $0x2f0] ss:$8 sps:$4 sm:$0xff]  }
 0x9f9   : > { %11437 = vpow2.f32 %v9884_v61  ;;  %v11430_v52 = vpop.eup %11429  ;;  %v9893_v15 = vmul.f32 -1.442695, %v15695_v47 }
 0x9fa   : > { %11439 = vpow2.f32 %v9885_v26  ;;  %v15708_v26 = vadd.f32 %v15642_v27, %v15625_v17  ;;  %v15722_v27 = vadd.f32 %v15649_v29, %v15625_v17 }
 0x9fb   : > { %v6720_v1 = vpop.f32.mrb[0].mxu1  ;;  %11441 = vpow2.f32 %v9888_v44 }
 0x9fc   : > { %v15663_v32 = vadd.f32 %v6720_v1, %v15593_v38  ;;  %v15665_v42 = vpop.f32.mrb[1].mxu1  ;;  %v10923_v1 = vld [vmem:[%s12869_s19 + $0x2e0] ss:$8 sps:$4 sm:$0xff]   ;;  %11443 = vrcp.f32 %v7587_v10 }
 0x9fd   : > { %v6724_v34 = vpop.f32.mrb[2].mxu1  ;;  %8353 = vmatpush1.bf16.msra.mxu0 %v10923_v1  ;;  %11445 = vpow2.f32 %v9889_v55  ;;  %v15729_v29 = vadd.f32 %v15665_v42, %v15625_v17 }
 0x9fe   : > { %v15670_v16 = vadd.f32 %v6724_v34, %v15593_v38  ;;  %v15672_v33 = vpop.f32.mrb[3].mxu1  ;;  %v10928_v34 = vld [vmem:[%s12869_s19 + $0x2f4] ss:$8 sps:$4 sm:$0xff]   ;;  %v9904_v56 = vmul.f32 -1.442695, %v15663_v32 }
 0x9ff   : > { %8354 = vmatprep.subr.bf16.mxu0 %v10928_v34  ;;  %v7591_v34 = vadd.f32 1.0, %v11430_v52 }
 0xa00   : > { %v11432_v1 = vpop.eup %11431 }
 0xa01   : > { %8355 = vmatpush1.bf16.msra.mxu0 %v10926_v3  ;;  %v11434_v30 = vpop.eup %11433 }
 0xa02   : > { %8437 = vmatprep.subr.bf16.mxu0 %v10931_v51  ;;  %v11436_v35 = vpop.eup %11435  ;;  %v7595_v10 = vadd.f32 1.0, %v11434_v30  ;;  %v9900_v30 = vmul.f32 -1.442695, %v15647_v4 }
 0xa03   : > { %v6730_v50 = vpop.f32.mrb[4].mxu1  ;;  %v11438_v55 = vpop.eup %11437 }
 0xa04   : > { %v15687_v12 = vadd.f32 %v6730_v50, %v15593_v38  ;;  %v15689_v39 = vpop.f32.mrb[5].mxu1  ;;  %v7588_v50 = vadd.f32 1.0, %v11428_v63  ;;  %v7592_v63 = vadd.f32 1.0, %v11432_v1  ;;  %v11440_v1 = vpop.eup %11439 }
 0xa05   : > { %v6734_v54 = vpop.f32.mrb[6].mxu1  ;;  %v11442_v36 = vpop.eup %11441  ;;  %v7600_v21 = vadd.f32 1.0, %v11440_v1 }
 0xa06   : > { %v15698_v61 = vadd.f32 %v6734_v54, %v15593_v38  ;;  %v15700_v8 = vpop.f32.mrb[7].mxu1  ;;  %11447 = vrcp.f32 %v7588_v50  ;;  %v9896_v54 = vmul.f32 -1.442695, %v15640_v60  ;;  %v7603_v59 = vadd.f32 1.0, %v11442_v36 }
 0xa07   : > { %11449 = vpow2.f32 %v9892_v5  ;;  %v7596_v5 = vadd.f32 1.0, %v11436_v35  ;;  %v15752_v36 = vadd.f32 %v15672_v33, %v15625_v17 }
 0xa08   : > { %11451 = vrcp.f32 %v7591_v34  ;;  %v7599_v34 = vadd.f32 1.0, %v11438_v55 }
 0xa09   : > { %11453 = vpow2.f32 %v9893_v15  ;;  %v11444_v15 = vpop.eup %11443 }
 0xa0a   : > { %11455 = vpow2.f32 %v9896_v54  ;;  %v11446_v54 = vpop.eup %11445 }
 0xa0b   : > { %v6740_v31 = vpop.f32.mrb[8].mxu1  ;;  %11457 = vrcp.f32 %v7592_v63 }
 0xa0c   : > { %v15711_v44 = vadd.f32 %v6740_v31, %v15593_v38  ;;  %v15713_v52 = vpop.f32.mrb[9].mxu1  ;;  %v9897_v31 = vmul.f32 -1.442695, %v15708_v26  ;;  %11459 = vrcp.f32 %v7595_v10 }
 0xa0d   : > { %v6744_v51 = vpop.f32.mrb[10].mxu1  ;;  %11461 = vrcp.f32 %v7596_v5 }
 0xa0e   : > { %v15716_v3 = vadd.f32 %v6744_v51, %v15593_v38  ;;  %v15718_v50 = vpop.f32.mrb[11].mxu1  ;;  %v9901_v51 = vmul.f32 -1.442695, %v15722_v27  ;;  %11463 = vpow2.f32 %v9897_v31 }
 0xa0f   : > { %11465 = vrcp.f32 %v7599_v34  ;;  %v9905_v34 = vmul.f32 -1.442695, %v15729_v29 }
 0xa10   : > { %v11448_v10 = vpop.eup %11447  ;;  %11467 = vpow2.f32 %v9900_v30 }
 0xa11   : > { %v11450_v18 = vpop.eup %11449  ;;  %11469 = vpow2.f32 %v9901_v51  ;;  %v9908_v51 = vmul.f32 -1.442695, %v15670_v16  ;;  %v7780_v22 = vmul.f32 %v11448_v10, %v15635_v0  ;;  %v9909_v0 = vmul.f32 -1.442695, %v15752_v36 }
 0xa12   : > { %v11452_v1 = vpop.eup %11451  ;;  %11471 = vrcp.f32 %v7600_v21  ;;  %v7607_v48 = vadd.f32 1.0, %v11450_v18  ;;  %v7779_v21 = vmul.f32 %v11444_v15, %v15599_v40  ;;  %v15763_v18 = vadd.f32 %v15689_v39, %v15625_v17 }
 0xa13   : > { %v6750_v35 = vpop.f32.mrb[12].mxu1  ;;  %v11454_v14 = vpop.eup %11453  ;;  %11473 = vpow2.f32 %v9904_v56 }
 0xa14   : > { %v15732_v63 = vadd.f32 %v6750_v35, %v15593_v38  ;;  %v15734_v55 = vpop.f32.mrb[13].mxu1  ;;  %v7604_v35 = vadd.f32 1.0, %v11446_v54  ;;  %v11456_v24 = vpop.eup %11455  ;;  %11475 = vrcp.f32 %v7603_v59  ;;  %v7608_v54 = vadd.f32 1.0, %v11454_v14 }
 0xa15   : > { %v6754_v5 = vpop.f32.mrb[14].mxu1  ;;  %v11458_v30 = vpop.eup %11457 }
 0xa16   : > { %v15741_v31 = vadd.f32 %v6754_v5, %v15593_v38  ;;  %v15743_v42 = vpop.f32.mrb[15].mxu1  ;;  %v15756_v38 = vrot.slane %v15738_v53, %v17124_v25  ;;  %11477 = vrcp.f32 %v7604_v35  ;;  %v11460_v33 = vpop.eup %11459  ;;  %v7783_v5 = vmul.f32 %v11452_v1, %v15603_v28 }
 0xa17   : > { %v7611_v25 = vadd.f32 1.0, %v11456_v24  ;;  %11479 = vpow2.f32 %v9905_v34  ;;  %v11462_v59 = vpop.eup %11461  ;;  %v7784_v15 = vmul.f32 %v11458_v30, %v15652_v23  ;;  %v9912_v35 = vmul.f32 -1.442695, %v15687_v12 }
 0xa18   : > { %11481 = vrcp.f32 %v7607_v48  ;;  %v11464_v39 = vpop.eup %11463  ;;  %v9913_v34 = vmul.f32 -1.442695, %v15763_v18 }
 0xa19   : > { %11483 = vpow2.f32 %v9908_v51  ;;  %v11466_v1 = vpop.eup %11465 }
 0xa1a   : > { %11485 = vrcp.f32 %v7608_v54  ;;  %v11468_v30 = vpop.eup %11467 }
 0xa1b   : > { %11487 = vrcp.f32 %v7611_v25  ;;  %v11470_v51 = vpop.eup %11469 }
 0xa1c   : > { %11489 = vpow2.f32 %v9909_v0  ;;  %v11472_v54 = vpop.eup %11471 }
 0xa1d   : > { %v7314_v56 = vpop.f32.mrb[16].mxu1  ;;  %11491 = vpow2.f32 %v9912_v35 }
 0xa1e   : > { %v7315_v53 = vadd.f32 %v7314_v56, %v15748_v2  ;;  %v7316_v40 = vpop.f32.mrb[17].mxu1  ;;  %11493 = vpow2.f32 %v9913_v34 }
 0xa1f   : > { %v7317_v14 = vadd.f32 %v7316_v40, %v15756_v38  ;;  %v7318_v10 = vpop.f32.mrb[18].mxu1  ;;  %v7612_v40 = vadd.f32 1.0, %v11464_v39  ;;  %v7615_v39 = vadd.f32 1.0, %v11468_v30 }
 0xa20   : > { %v15771_v41 = vmul.f32 %v7779_v21, %v7315_v53  ;;  %v7319_v24 = vadd.f32 %v7318_v10, %v15748_v2  ;;  %v7320_v28 = vpop.f32.mrb[19].mxu1  ;;  %v15782_v53 = vadd.f32 %v15700_v8, %v15625_v17  ;;  %v7787_v10 = vmul.f32 %v11460_v33, %v15610_v43 }
 0xa21   : > { %v15775_v23 = vmul.f32 %v7780_v22, %v7317_v14  ;;  %v7321_v48 = vadd.f32 %v7320_v28, %v15756_v38  ;;  %v9916_v22 = vmul.f32 -1.442695, %v15698_v61  ;;  %v7788_v14 = vmul.f32 %v11462_v59, %v15658_v19 }
 0xa22   : > { %17126 = vst [vmem:[#allocation86_spill] sm:$0xff] %v15771_v41  ;;  %v15778_v56 = vmul.f32 %v7783_v5, %v7319_v24  ;;  %v11474_v5 = vpop.eup %11473  ;;  %v7791_v24 = vmul.f32 %v11466_v1, %v15614_v13  ;;  %v7616_v28 = vadd.f32 1.0, %v11470_v51  ;;  %v15796_v43 = vadd.f32 %v15713_v52, %v15625_v17 }
 0xa23   : > { %v15784_v21 = vmul.f32 %v7784_v15, %v7321_v48  ;;  %v11476_v15 = vpop.eup %11475  ;;  %v7792_v19 = vmul.f32 %v11472_v54, %v15675_v62  ;;  %11495 = vrcp.f32 %v7612_v40  ;;  %v9917_v59 = vmul.f32 -1.442695, %v15782_v53 }
 0xa24   : > { %v11478_v48 = vpop.eup %11477  ;;  %v7619_v8 = vadd.f32 1.0, %v11474_v5  ;;  %11497 = vpow2.f32 %v9916_v22  ;;  %v9921_v54 = vmul.f32 -1.442695, %v15796_v43  ;;  %v15814_v5 = vadd.f32 %v15718_v50, %v15625_v17 }
 0xa25   : > { %v7324_v0 = vpop.f32.mrb[20].mxu1  ;;  %v11480_v25 = vpop.eup %11479  ;;  %11499 = vrcp.f32 %v7615_v39 }
 0xa26   : > { %v7325_v33 = vadd.f32 %v7324_v0, %v15748_v2  ;;  %v7326_v35 = vpop.f32.mrb[21].mxu1  ;;  %v11482_v51 = vpop.eup %11481  ;;  %v9920_v0 = vmul.f32 -1.442695, %v15711_v44  ;;  %11501 = vrcp.f32 %v7616_v28 }
 0xa27   : > { %v7327_v34 = vadd.f32 %v7326_v35, %v15756_v38  ;;  %v7328_v30 = vpop.f32.mrb[22].mxu1  ;;  %v11484_v40 = vpop.eup %11483  ;;  %11503 = vpow2.f32 %v9917_v59 }
 0xa28   : > { %v15802_v13 = vmul.f32 %v7787_v10, %v7325_v33  ;;  %v7329_v52 = vadd.f32 %v7328_v30, %v15748_v2  ;;  %v7330_v1 = vpop.f32.mrb[23].mxu1  ;;  %v11486_v22 = vpop.eup %11485  ;;  %v7620_v10 = vadd.f32 1.0, %v11480_v25  ;;  %11505 = vrcp.f32 %v7619_v8 }
 0xa29   : > { %v15806_v41 = vmul.f32 %v7788_v14, %v7327_v34  ;;  %v7331_v62 = vadd.f32 %v7330_v1, %v15756_v38  ;;  %v11488_v33 = vpop.eup %11487  ;;  %v7795_v14 = vmul.f32 %v11476_v15, %v15620_v45  ;;  %v7623_v30 = vadd.f32 1.0, %v11484_v40 }
 0xa2a   : > { %v15810_v35 = vmul.f32 %v7791_v24, %v7329_v52  ;;  %v11490_v34 = vpop.eup %11489  ;;  %v7796_v24 = vmul.f32 %v11478_v48, %v15681_v37  ;;  %11507 = vpow2.f32 %v9920_v0  ;;  %v9924_v52 = vmul.f32 -1.442695, %v15716_v3 }
 0xa2b   : > { %v15816_v39 = vmul.f32 %v7792_v19, %v7331_v62  ;;  %v11492_v50 = vpop.eup %11491  ;;  %v7799_v19 = vmul.f32 %v11482_v51, %v15628_v58  ;;  %11509 = vpow2.f32 %v9921_v54  ;;  %v7800_v1 = vmul.f32 %v11486_v22, %v15695_v47 }
 0xa2c   : > { %v11494_v15 = vpop.eup %11493  ;;  %11511 = vrcp.f32 %v7620_v10  ;;  %v9925_v37 = vmul.f32 -1.442695, %v15814_v5  ;;  %v7624_v62 = vadd.f32 1.0, %v11490_v34  ;;  %v15832_v40 = vadd.f32 %v15734_v55, %v15625_v17 }
 0xa2d   : > { %v7334_v25 = vpop.f32.mrb[24].mxu1  ;;  %11513 = vrcp.f32 %v7623_v30  ;;  %v7627_v28 = vadd.f32 1.0, %v11492_v50  ;;  %v9928_v55 = vmul.f32 -1.442695, %v15732_v63 }
 0xa2e   : > { %v7335_v45 = vadd.f32 %v7334_v25, %v15748_v2  ;;  %v7336_v8 = vpop.f32.mrb[25].mxu1  ;;  %v11496_v25 = vpop.eup %11495  ;;  %11515 = vpow2.f32 %v9924_v52 }
 0xa2f   : > { %v7337_v48 = vadd.f32 %v7336_v8, %v15756_v38  ;;  %v7338_v0 = vpop.f32.mrb[26].mxu1  ;;  %v11498_v10 = vpop.eup %11497  ;;  %v7628_v8 = vadd.f32 1.0, %v11494_v15  ;;  %11517 = vpow2.f32 %v9925_v37 }
 0xa30   : > { %v15834_v58 = vmul.f32 %v7795_v14, %v7335_v45  ;;  %v7339_v51 = vadd.f32 %v7338_v0, %v15748_v2  ;;  %v7340_v54 = vpop.f32.mrb[27].mxu1  ;;  %v11500_v59 = vpop.eup %11499  ;;  %v15845_v14 = vadd.f32 %v15743_v42, %v15625_v17  ;;  %11519 = vrcp.f32 %v7624_v62 }
 0xa31   : > { %v15837_v47 = vmul.f32 %v7796_v24, %v7337_v48  ;;  %v7341_v22 = vadd.f32 %v7340_v54, %v15756_v38  ;;  %v11502_v30 = vpop.eup %11501  ;;  %v9929_v24 = vmul.f32 -1.442695, %v15832_v40  ;;  %11521 = vrcp.f32 %v7627_v28 }
 0xa32   : > { %v15840_v34 = vmul.f32 %v7799_v19, %v7339_v51  ;;  %v11504_v52 = vpop.eup %11503  ;;  %v7803_v19 = vmul.f32 %v11488_v33, %v15640_v60  ;;  %v7631_v15 = vadd.f32 1.0, %v11498_v10  ;;  %v7804_v42 = vmul.f32 %v11496_v25, %v15708_v26 }
 0xa33   : > { %v15847_v45 = vmul.f32 %v7800_v1, %v7341_v22  ;;  %v11506_v17 = vpop.eup %11505  ;;  %11523 = vrcp.f32 %v7628_v8  ;;  %v9932_v1 = vmul.f32 -1.442695, %v15741_v31  ;;  %v7807_v54 = vmul.f32 %v11500_v59, %v15647_v4 }
 0xa34   : > { %v11508_v51 = vpop.eup %11507  ;;  %11525 = vpow2.f32 %v9928_v55  ;;  %v9933_v60 = vmul.f32 -1.442695, %v15845_v14  ;;  %v7632_v10 = vadd.f32 1.0, %v11504_v52 }
 0xa35   : > { %v7344_v37 = vpop.f32.mrb[28].mxu1  ;;  %v11510_v22 = vpop.eup %11509  ;;  %11527 = vpow2.f32 %v9929_v24 }
 0xa36   : > { %v7345_v0 = vadd.f32 %v7344_v37, %v15748_v2  ;;  %v7346_v62 = vpop.f32.mrb[29].mxu1  ;;  %v11512_v8 = vpop.eup %11511  ;;  %v7808_v37 = vmul.f32 %v11502_v30, %v15722_v27  ;;  %11529 = vrcp.f32 %v7631_v15 }
 0xa37   : > { %v7347_v33 = vadd.f32 %v7346_v62, %v15756_v38  ;;  %v7348_v28 = vpop.f32.mrb[30].mxu1  ;;  %11531 = vpow2.f32 %v9932_v1  ;;  %v11514_v55 = vpop.eup %11513  ;;  %v7635_v62 = vadd.f32 1.0, %v11508_v51  ;;  %v7636_v1 = vadd.f32 1.0, %v11510_v22 }
 0xa38   : > { %v15861_v50 = vmul.f32 %v7803_v19, %v7345_v0  ;;  %v7349_v26 = vadd.f32 %v7348_v28, %v15748_v2  ;;  %v7350_v25 = vpop.f32.mrb[31].mxu1  ;;  %11533 = vpow2.f32 %v9933_v60  ;;  %v11516_v24 = vpop.eup %11515  ;;  %v7812_v28 = vmul.f32 %v11512_v8, %v15729_v29 }
 0xa39   : > { %v15865_v48 = vmul.f32 %v7804_v42, %v7347_v33  ;;  %v7351_v4 = vadd.f32 %v7350_v25, %v15756_v38  ;;  %11535 = vrcp.f32 %v7632_v10  ;;  %v11518_v0 = vpop.eup %11517  ;;  %v7811_v42 = vmul.f32 %v11506_v17, %v15663_v32 }
 0xa3a   : > { %17127 = vst [vmem:[#allocation45_spill] sm:$0xff] %v15861_v50  ;;  %v15868_v59 = vmul.f32 %v7807_v54, %v7349_v26  ;;  %v11520_v15 = vpop.eup %11519  ;;  %v7639_v10 = vadd.f32 1.0, %v11516_v24  ;;  %v7815_v51 = vmul.f32 %v11514_v55, %v15670_v16  ;;  %11537 = vrcp.f32 %v7635_v62 }
 0xa3b   : > { %17128 = vst [vmem:[#allocation46_spill] sm:$0xff] %v15865_v48  ;;  %v15870_v52 = vmul.f32 %v7808_v37, %v7351_v4  ;;  %v11522_v33 = vpop.eup %11521  ;;  %v7640_v4 = vadd.f32 1.0, %v11518_v0  ;;  %v7816_v22 = vmul.f32 %v11520_v15, %v15752_v36  ;;  %11539 = vrcp.f32 %v7636_v1 }
 0xa3c   : > { %17129 = vst [vmem:[#allocation106_spill] sm:$0xff] %v15868_v59  ;;  %11541 = vrcp.f32 %v7639_v10  ;;  %v7819_v1 = vmul.f32 %v11522_v33, %v15687_v12 }
 0xa3d   : > { %v7354_v27 = vpop.f32.mrb[32].mxu1  ;;  %v11524_v37 = vpop.eup %11523  ;;  %11543 = vrcp.f32 %v7640_v4 }
 0xa3e   : > { %v7355_v54 = vadd.f32 %v7354_v27, %v15748_v2  ;;  %v7356_v60 = vpop.f32.mrb[33].mxu1  ;;  %v11526_v17 = vpop.eup %11525 }
 0xa3f   : > { %v7357_v26 = vadd.f32 %v7356_v60, %v15756_v38  ;;  %v7358_v25 = vpop.f32.mrb[34].mxu1  ;;  %v11528_v8 = vpop.eup %11527  ;;  %v7643_v36 = vadd.f32 1.0, %v11526_v17 }
 0xa40   : > { %v15881_v19 = vmul.f32 %v7811_v42, %v7355_v54  ;;  %v7359_v30 = vadd.f32 %v7358_v25, %v15748_v2  ;;  %v7360_v32 = vpop.f32.mrb[35].mxu1  ;;  %v11530_v60 = vpop.eup %11529 }
 0xa41   : > { %v15885_v27 = vmul.f32 %v7812_v28, %v7357_v26  ;;  %v7361_v29 = vadd.f32 %v7360_v32, %v15756_v38  ;;  %v11532_v55 = vpop.eup %11531  ;;  %v17134_v26 = vld [vmem:[#allocation44_spill] sm:$0xff]  ;;  %11545 = vrcp.f32 %v7643_v36 }
 0xa42   : > { %17130 = vst [vmem:[#allocation107_spill] sm:$0xff] %v15881_v19  ;;  %v15888_v24 = vmul.f32 %v7815_v51, %v7359_v30  ;;  %v11534_v42 = vpop.eup %11533  ;;  %v7644_v30 = vadd.f32 1.0, %v11528_v8  ;;  %v15900_v25 = vrot.slane %v15587_v6, %v17134_v26  ;;  %v7820_v51 = vmul.f32 %v11524_v37, %v15763_v18  ;;  %v17137_v18 = vld [vmem:[#allocation43_spill] sm:$0xff] }
 0xa43   : > { %17131 = vst [vmem:[#allocation108_spill] sm:$0xff] %v15885_v27  ;;  %v15890_v16 = vmul.f32 %v7816_v22, %v7361_v29  ;;  %v11536_v54 = vpop.eup %11535  ;;  %v7647_v4 = vadd.f32 1.0, %v11532_v55  ;;  %v7823_v22 = vmul.f32 %v11530_v60, %v15698_v61  ;;  %v7648_v29 = vadd.f32 1.0, %v11534_v42 }
 0xa44   : > { %17132 = vst [vmem:[#allocation109_spill] sm:$0xff] %v15888_v24  ;;  %v7824_v8 = vmul.f32 %v11536_v54, %v15782_v53  ;;  %v15914_v37 = vrot.slane %v15587_v6, %v17137_v18  ;;  %11547 = vrcp.f32 %v7644_v30  ;;  %v11538_v61 = vpop.eup %11537  ;;  %v15924_v54 = vadd.f32 %v15500_v7, %v15900_v25 }
 0xa45   : > { %17133 = vst [vmem:[#allocation110_spill] sm:$0xff] %v15890_v16  ;;  %v7364_v62 = vpop.f32.mrb[36].mxu1  ;;  %11549 = vrcp.f32 %v7647_v4  ;;  %v11540_v42 = vpop.eup %11539  ;;  %v15936_v4 = vadd.f32 %v15504_v20, %v15900_v25 }
 0xa46   : > { %v7365_v28 = vadd.f32 %v7364_v62, %v15748_v2  ;;  %v7366_v10 = vpop.f32.mrb[37].mxu1  ;;  %11551 = vrcp.f32 %v7648_v29  ;;  %v11542_v36 = vpop.eup %11541  ;;  %v7828_v7 = vmul.f32 %v11540_v42, %v15796_v43 }
 0xa47   : > { %v7367_v32 = vadd.f32 %v7366_v10, %v15756_v38  ;;  %v7368_v17 = vpop.f32.mrb[38].mxu1  ;;  %v11544_v30 = vpop.eup %11543 }
 0xa48   : > { %v15905_v0 = vmul.f32 %v7819_v1, %v7365_v28  ;;  %v7369_v12 = vadd.f32 %v7368_v17, %v15748_v2  ;;  %v7370_v33 = vpop.f32.mrb[39].mxu1  ;;  %v15930_v28 = vadd.f32 %v15502_v11, %v15914_v37 }
 0xa49   : > { %v15909_v62 = vmul.f32 %v7820_v51, %v7367_v32  ;;  %v7371_v15 = vadd.f32 %v7370_v33, %v15756_v38  ;;  %v7832_v33 = vmul.f32 %v11544_v30, %v15814_v5  ;;  %v17154_v30 = vld [vmem:[#allocation89_spill] sm:$0xff] }
 0xa4a   : > { %17135 = vst [vmem:[#allocation111_spill] sm:$0xff] %v15905_v0  ;;  %v15916_v55 = vmul.f32 %v7823_v22, %v7369_v12  ;;  %v7831_v22 = vmul.f32 %v11542_v36, %v15716_v3  ;;  %v9871_v43 = vmul.f32 -1.442695, %v15930_v28  ;;  %v9874_v3 = vmul.f32 -1.442695, %v15936_v4 }
 0xa4b   : > { %17136 = vst [vmem:[#allocation112_spill] sm:$0xff] %v15909_v62  ;;  %v15918_v60 = vmul.f32 %v7824_v8, %v7371_v15  ;;  %v7827_v15 = vmul.f32 %v11538_v61, %v15711_v44  ;;  %v9870_v44 = vmul.f32 -1.442695, %v15924_v54  ;;  %v11546_v42 = vpop.eup %11545  ;;  %v16031_v53 = vadd.f32 %v17154_v30, %v15914_v37 }
 0xa4c   : > { %17138 = vst [vmem:[#allocation113_spill] sm:$0xff] %v15916_v55 }
 0xa4d   : > { %17139 = vst [vmem:[#allocation114_spill] sm:$0xff] %v15918_v60  ;;  %v7374_v1 = vpop.f32.mrb[40].mxu1  ;;  %11553 = vpow2.f32 %v9870_v44 }
 0xa4e   : > { %v7375_v10 = vadd.f32 %v7374_v1, %v15748_v2  ;;  %v7376_v51 = vpop.f32.mrb[41].mxu1  ;;  %v11548_v1 = vpop.eup %11547  ;;  %11555 = vpow2.f32 %v9871_v43 }
 0xa4f   : > { %v7377_v32 = vadd.f32 %v7376_v51, %v15756_v38  ;;  %v7378_v17 = vpop.f32.mrb[42].mxu1  ;;  %11557 = vpow2.f32 %v9874_v3 }
 0xa50   : > { %v15941_v29 = vmul.f32 %v7827_v15, %v7375_v10  ;;  %v7379_v11 = vadd.f32 %v7378_v17, %v15748_v2  ;;  %v7380_v12 = vpop.f32.mrb[43].mxu1  ;;  %v11550_v10 = vpop.eup %11549 }
 0xa51   : > { %v15946_v8 = vmul.f32 %v7828_v7, %v7377_v32  ;;  %v7381_v20 = vadd.f32 %v7380_v12, %v15756_v38  ;;  %v11552_v51 = vpop.eup %11551  ;;  %v15961_v7 = vadd.f32 %v15506_v49, %v15914_v37  ;;  %v7835_v32 = vmul.f32 %v11546_v42, %v15732_v63 }
 0xa52   : > { %17140 = vst [vmem:[#allocation115_spill] sm:$0xff] %v15941_v29  ;;  %v15950_v61 = vmul.f32 %v7831_v22, %v7379_v11  ;;  %v7836_v11 = vmul.f32 %v11548_v1, %v15832_v40  ;;  %v15977_v42 = vadd.f32 %v15511_v46, %v15914_v37  ;;  %v7840_v40 = vmul.f32 %v11552_v51, %v15845_v14  ;;  %v17148_v46 = vld [vmem:[#allocation103_spill] sm:$0xff] }
 0xa53   : > { %17141 = vst [vmem:[#allocation116_spill] sm:$0xff] %v15946_v8  ;;  %v15953_v36 = vmul.f32 %v7832_v33, %v7381_v20  ;;  %v15969_v33 = vadd.f32 %v15509_v57, %v15900_v25  ;;  %v7839_v20 = vmul.f32 %v11550_v10, %v15741_v31  ;;  %v9875_v57 = vmul.f32 -1.442695, %v15961_v7  ;;  %v17152_v14 = vld [vmem:[#allocation87_spill] sm:$0xff] }
 0xa54   : > { %17142 = vst [vmem:[#allocation117_spill] sm:$0xff] %v15950_v61  ;;  %v15986_v31 = vadd.f32 %v15513_v9, %v15900_v25  ;;  %v17160_v8 = vld [vmem:[#allocation91_spill] sm:$0xff] }
 0xa55   : > { %17143 = vst [vmem:[#allocation118_spill] sm:$0xff] %v15953_v36  ;;  %v7384_v5 = vpop.f32.mrb[44].mxu1  ;;  %11559 = vpow2.f32 %v9875_v57  ;;  %v17151_v57 = vld [vmem:[#allocation88_spill] sm:$0xff] }
 0xa56   : > { %v7385_v17 = vadd.f32 %v7384_v5, %v15748_v2  ;;  %v7386_v22 = vpop.f32.mrb[45].mxu1  ;;  %v9878_v5 = vmul.f32 -1.442695, %v15969_v33  ;;  %v9882_v9 = vmul.f32 -1.442695, %v15986_v31 }
 0xa57   : > { %v7387_v12 = vadd.f32 %v7386_v22, %v15756_v38  ;;  %v7388_v44 = vpop.f32.mrb[46].mxu1 }
 0xa58   : > { %v15972_v43 = vmul.f32 %v7835_v32, %v7385_v17  ;;  %v7389_v49 = vadd.f32 %v7388_v44, %v15748_v2  ;;  %v7390_v63 = vpop.f32.mrb[47].mxu1  ;;  %v15995_v32 = vadd.f32 %v17148_v46, %v15914_v37  ;;  %v11554_v17 = vpop.eup %11553  ;;  %11561 = vpow2.f32 %v9878_v5  ;;  %v17149_v44 = vld [vmem:[#allocation104_spill] sm:$0xff] }
 0xa59   : > { %v15980_v3 = vmul.f32 %v7836_v11, %v7387_v12  ;;  %v7391_v1 = vadd.f32 %v7390_v63, %v15756_v38  ;;  %v9879_v38 = vmul.f32 -1.442695, %v15977_v42  ;;  %v11556_v22 = vpop.eup %11555  ;;  %v17150_v63 = vld [vmem:[#allocation85_spill] sm:$0xff]  ;;  %v16014_v46 = vadd.f32 %v17151_v57, %v15900_v25 }
 0xa5a   : > { %17144 = vst [vmem:[#allocation119_spill] sm:$0xff] %v15972_v43  ;;  %v15988_v10 = vmul.f32 %v7839_v20, %v7389_v49  ;;  %v9883_v11 = vmul.f32 -1.442695, %v15995_v32  ;;  %v11558_v12 = vpop.eup %11557  ;;  %v16006_v20 = vadd.f32 %v17149_v44, %v15900_v25  ;;  %v7585_v49 = vadd.f32 1.0, %v11554_v17 }
 0xa5b   : > { %17145 = vst [vmem:[#allocation120_spill] sm:$0xff] %v15980_v3  ;;  %v15990_v2 = vmul.f32 %v7840_v40, %v7391_v1  ;;  %11563 = vpow2.f32 %v9879_v38  ;;  %v16010_v40 = vadd.f32 %v17150_v63, %v15914_v37  ;;  %v7586_v1 = vadd.f32 1.0, %v11556_v22 }
 0xa5c   : > { %17146 = vst [vmem:[#allocation121_spill] sm:$0xff] %v15988_v10  ;;  %11565 = vpow2.f32 %v9882_v9  ;;  %v7589_v5 = vadd.f32 1.0, %v11558_v12  ;;  %v16018_v38 = vadd.f32 %v17152_v14, %v15914_v37  ;;  %v9886_v9 = vmul.f32 -1.442695, %v16006_v20 }
 0xa5d   : > { %17147 = vst [vmem:[#allocation122_spill] sm:$0xff] %v15990_v2  ;;  %11567 = vpow2.f32 %v9883_v11  ;;  %v9887_v17 = vmul.f32 -1.442695, %v16010_v40  ;;  %v17153_v11 = vld [vmem:[#allocation90_spill] sm:$0xff]  ;;  %v9890_v22 = vmul.f32 -1.442695, %v16014_v46 }
 0xa5e   : > { %11569 = vrcp.f32 %v7585_v49  ;;  %v16024_v63 = vadd.f32 %v17153_v11, %v15900_v25  ;;  %v9891_v12 = vmul.f32 -1.442695, %v16018_v38  ;;  %v9895_v10 = vmul.f32 -1.442695, %v16031_v53 }
 0xa5f   : > { %v11560_v44 = vpop.eup %11559  ;;  %11571 = vrcp.f32 %v7586_v1 }
 0xa60   : > { %11573 = vrcp.f32 %v7589_v5  ;;  %v7590_v14 = vadd.f32 1.0, %v11560_v44  ;;  %v9894_v49 = vmul.f32 -1.442695, %v16024_v63  ;;  %v17155_v5 = vld [vmem:[#allocation92_spill] sm:$0xff] }
 0xa61   : > { %11575 = vpow2.f32 %v9886_v9  ;;  %v16035_v43 = vadd.f32 %v17155_v5, %v15900_v25  ;;  %v17156_v9 = vld [vmem:[#allocation99_spill] sm:$0xff] }
 0xa62   : > { %v11562_v57 = vpop.eup %11561  ;;  %11577 = vpow2.f32 %v9887_v17  ;;  %v16039_v17 = vadd.f32 %v17156_v9, %v15914_v37  ;;  %v17159_v9 = vld [vmem:[#allocation105_spill] sm:$0xff] }
 0xa63   : > { %v7593_v11 = vadd.f32 1.0, %v11562_v57  ;;  %11579 = vpow2.f32 %v9890_v22  ;;  %v17157_v22 = vld [vmem:[#allocation95_spill] sm:$0xff] }
 0xa64   : > { %11581 = vpow2.f32 %v9891_v12  ;;  %v16044_v57 = vadd.f32 %v17157_v22, %v15900_v25  ;;  %v9898_v12 = vmul.f32 -1.442695, %v16035_v43 }
 0xa65   : > { %v11564_v51 = vpop.eup %11563  ;;  %11583 = vrcp.f32 %v7590_v14  ;;  %v17158_v14 = vld [vmem:[#allocation98_spill] sm:$0xff] }
 0xa66   : > { %v11566_v15 = vpop.eup %11565  ;;  %v7594_v6 = vadd.f32 1.0, %v11564_v51  ;;  %11585 = vpow2.f32 %v9894_v49  ;;  %v9899_v49 = vmul.f32 -1.442695, %v16039_v17 }
 0xa67   : > { %v11568_v1 = vpop.eup %11567  ;;  %v7597_v44 = vadd.f32 1.0, %v11566_v15  ;;  %11587 = vrcp.f32 %v7593_v11  ;;  %v16049_v15 = vadd.f32 %v17158_v14, %v15914_v37  ;;  %v16054_v11 = vadd.f32 %v17159_v9, %v15900_v25 }
 0xa68   : > { %v7598_v30 = vadd.f32 1.0, %v11568_v1  ;;  %v11570_v51 = vpop.eup %11569  ;;  %11589 = vrcp.f32 %v7594_v6  ;;  %v9902_v6 = vmul.f32 -1.442695, %v16044_v57  ;;  %v16061_v9 = vadd.f32 %v17160_v8, %v15914_v37  ;;  %v17162_v8 = vld [vmem:[#allocation94_spill] sm:$0xff] }
 0xa69   : > { %v11572_v5 = vpop.eup %11571  ;;  %11591 = vrcp.f32 %v7597_v44  ;;  %v9903_v2 = vmul.f32 -1.442695, %v16049_v15  ;;  %v9906_v44 = vmul.f32 -1.442695, %v16054_v11  ;;  %v7777_v0 = vmul.f32 %v11570_v51, %v15924_v54  ;;  %v17163_v54 = vld [vmem:[#allocation96_spill] sm:$0xff] }
 0xa6a   : > { %v11574_v1 = vpop.eup %11573  ;;  %11593 = vpow2.f32 %v9895_v10  ;;  %v17161_v10 = vld [vmem:[#allocation83_spill] sm:$0xff]  ;;  %v16075_v60 = vadd.f32 %v17162_v8, %v15900_v25 }
 0xa6b   : > { %v11576_v22 = vpop.eup %11575  ;;  %11595 = vrcp.f32 %v7598_v30  ;;  %v16065_v36 = vrot.slane %v17161_v10, %v17134_v26  ;;  %v7781_v19 = vmul.f32 %v11574_v1, %v15936_v4 }
 0xa6c   : > { %v11578_v3 = vpop.eup %11577  ;;  %11597 = vpow2.f32 %v9898_v12  ;;  %v7601_v61 = vadd.f32 1.0, %v11576_v22  ;;  %v7778_v22 = vmul.f32 %v11572_v5, %v15930_v28  ;;  %v9907_v28 = vmul.f32 -1.442695, %v16061_v9 }
 0xa6d   : > { %v11580_v14 = vpop.eup %11579  ;;  %11599 = vpow2.f32 %v9899_v49  ;;  %v7602_v12 = vadd.f32 1.0, %v11578_v3  ;;  %v16070_v49 = vrot.slane %v17161_v10, %v17137_v18  ;;  %v16080_v3 = vadd.f32 %v17163_v54, %v15914_v37 }
 0xa6e   : > { %v11582_v29 = vpop.eup %11581  ;;  %11601 = vpow2.f32 %v9902_v6  ;;  %v7605_v62 = vadd.f32 1.0, %v11580_v14 }
 0xa6f   : > { %v11584_v30 = vpop.eup %11583  ;;  %11603 = vpow2.f32 %v9903_v2  ;;  %v7606_v24 = vadd.f32 1.0, %v11582_v29  ;;  %v17164_v2 = vld [vmem:[#allocation97_spill] sm:$0xff] }
 0xa70   : > { %v11586_v55 = vpop.eup %11585  ;;  %11605 = vpow2.f32 %v9906_v44  ;;  %v16085_v5 = vadd.f32 %v17164_v2, %v15900_v25  ;;  %v7782_v4 = vmul.f32 %v11584_v30, %v15961_v7 }
 0xa71   : > { %v11588_v26 = vpop.eup %11587  ;;  %11607 = vrcp.f32 %v7601_v61  ;;  %v7609_v29 = vadd.f32 1.0, %v11586_v55  ;;  %v9910_v61 = vmul.f32 -1.442695, %v16075_v60 }
 0xa72   : > { %v11590_v6 = vpop.eup %11589  ;;  %11609 = vrcp.f32 %v7602_v12  ;;  %v9914_v55 = vmul.f32 -1.442695, %v16085_v5 }
 0xa73   : > { %v11592_v8 = vpop.eup %11591  ;;  %11611 = vrcp.f32 %v7605_v62 }
 0xa74   : > { %v11594_v54 = vpop.eup %11593  ;;  %11613 = vrcp.f32 %v7606_v24  ;;  %v7785_v24 = vmul.f32 %v11588_v26, %v15969_v33 }
 0xa75   : > { %v11596_v16 = vpop.eup %11595  ;;  %11615 = vpow2.f32 %v9907_v28 }
 0xa76   : > { %v11598_v30 = vpop.eup %11597  ;;  %11617 = vrcp.f32 %v7609_v29 }
 0xa77   : > { %v11600_v62 = vpop.eup %11599  ;;  %11619 = vpow2.f32 %v9910_v61  ;;  %v17167_v61 = vld [vmem:[#allocation93_spill] sm:$0xff] }
 0xa78   : > { %v11602_v28 = vpop.eup %11601  ;;  %v7614_v48 = vadd.f32 1.0, %v11600_v62 }
 0xa79   : > { %v11604_v59 = vpop.eup %11603 }
 0xa7a   : > { %v7201_v51 = vpop.f32.mrb[176].mxu0  ;;  %v7618_v62 = vadd.f32 1.0, %v11604_v59 }
 0xa7b   : > { %v7202_v14 = vadd.f32 %v7201_v51, %v16065_v36  ;;  %v7203_v10 = vpop.f32.mrb[177].mxu0  ;;  %v9911_v51 = vmul.f32 -1.442695, %v16080_v3 }
 0xa7c   : > { %v7204_v1 = vadd.f32 %v7203_v10, %v16070_v49  ;;  %v7205_v44 = vpop.f32.mrb[178].mxu0  ;;  %v7610_v10 = vadd.f32 1.0, %v11594_v54  ;;  %v10929_v54 = vld [vmem:[%s12869_s19 + $0x300] ss:$8 sps:$4 sm:$0xff]  }
 0xa7d   : > { %v7841_v18 = vmul.f32 %v7777_v0, %v7202_v14  ;;  %v7206_v27 = vadd.f32 %v7205_v44, %v16065_v36  ;;  %v7207_v2 = vpop.f32.mrb[179].mxu0  ;;  %v17165_v0 = vld [vmem:[#allocation100_spill] sm:$0xff]  ;;  %11621 = vpow2.f32 %v9911_v51  ;;  %v16114_v51 = vadd.f32 %v17167_v61, %v15914_v37 }
 0xa7e   : > { %v7842_v50 = vmul.f32 %v7778_v22, %v7204_v1  ;;  %v7208_v7 = vadd.f32 %v7207_v2, %v16070_v49  ;;  %v16097_v14 = vadd.f32 %v17165_v0, %v15914_v37  ;;  %v7786_v22 = vmul.f32 %v11590_v6, %v15977_v42  ;;  %v10934_v42 = vld [vmem:[%s12869_s19 + $0x314] ss:$8 sps:$4 sm:$0xff]   ;;  %v11606_v6 = vpop.eup %11605 }
 0xa7f   : > { %v7845_v12 = vmul.f32 %v7781_v19, %v7206_v27  ;;  %v7789_v2 = vmul.f32 %v11592_v8, %v15986_v31  ;;  %v7613_v19 = vadd.f32 1.0, %v11598_v30  ;;  %v7790_v0 = vmul.f32 %v11596_v16, %v15995_v32  ;;  %v17166_v31 = vld [vmem:[#allocation101_spill] sm:$0xff]  ;;  %v11608_v16 = vpop.eup %11607 }
 0xa80   : > { %v7846_v44 = vmul.f32 %v7782_v4, %v7208_v7  ;;  %11623 = vpow2.f32 %v9914_v55  ;;  %v16109_v8 = vadd.f32 %v17166_v31, %v15900_v25  ;;  %v7617_v32 = vadd.f32 1.0, %v11602_v28 }
 0xa81   : > { %v7905_v1 = vpack.c.bf16 %v7845_v12, %v7841_v18  ;;  %11625 = vrcp.f32 %v7610_v10  ;;  %v9915_v18 = vmul.f32 -1.442695, %v16097_v14  ;;  %v11610_v12 = vpop.eup %11609  ;;  %v7621_v28 = vadd.f32 1.0, %v11606_v6 }
 0xa82   : > { %v7211_v27 = vpop.f32.mrb[180].mxu0  ;;  %v7906_v29 = vpack.c.bf16 %v7846_v44, %v7842_v50  ;;  %11627 = vrcp.f32 %v7613_v19  ;;  %v9918_v59 = vmul.f32 -1.442695, %v16109_v8  ;;  %v9919_v6 = vmul.f32 -1.442695, %v16114_v51 }
 0xa83   : > { %v7212_v26 = vadd.f32 %v7211_v27, %v16065_v36  ;;  %v7213_v33 = vpop.f32.mrb[181].mxu0  ;;  %v10932_v27 = vld [vmem:[%s12869_s19 + $0x310] ss:$8 sps:$4 sm:$0xff]   ;;  %11629 = vrcp.f32 %v7614_v48  ;;  %v7793_v48 = vmul.f32 %v11608_v16, %v16006_v20 }
 0xa84   : > { %v7214_v50 = vadd.f32 %v7213_v33, %v16070_v49  ;;  %v7215_v4 = vpop.f32.mrb[182].mxu0  ;;  %8356 = vmatprep.mubr.bf16.mxu0 %v7906_v29  ;;  %v11612_v29 = vpop.eup %11611  ;;  %v17168_v33 = vld [vmem:[#allocation102_spill] sm:$0xff]  ;;  %11631 = vpow2.f32 %v9915_v18 }
 0xa85   : > { %v7849_v7 = vmul.f32 %v7785_v24, %v7212_v26  ;;  %v7216_v30 = vadd.f32 %v7215_v4, %v16065_v36  ;;  %v7217_v55 = vpop.f32.mrb[183].mxu0  ;;  %8357 = vmatmul.mubr.bf16.vlgmr.msra.gmra.mrb[144].mxu0 %v7905_v1  ;;  %v16121_v31 = vadd.f32 %v17168_v33, %v15900_v25  ;;  %v10937_v26 = vld [vmem:[%s12869_s19 + $0x324] ss:$8 sps:$4 sm:$0xff]   ;;  %v11614_v4 = vpop.eup %11613  ;;  %11633 = vrcp.f32 %v7617_v32 }
 0xa86   : > { %v7850_v10 = vmul.f32 %v7786_v22, %v7214_v50  ;;  %v7218_v44 = vadd.f32 %v7217_v55, %v16070_v49  ;;  %8438 = vmatpush1.bf16.msra.mxu0 %v10929_v54  ;;  %v17169_v22 = vld [vmem:[#allocation80_spill] sm:$0xff]  ;;  %v11616_v54 = vpop.eup %11615  ;;  %v7797_v18 = vmul.f32 %v11612_v29, %v16014_v46  ;;  %11635 = vrcp.f32 %v7618_v62 }
 0xa87   : > { %v7853_v24 = vmul.f32 %v7789_v2, %v7216_v30  ;;  %8439 = vmatprep.subr.bf16.mxu0 %v10934_v42  ;;  %v16127_v1 = vadd.f32 %v17169_v22, %v15914_v37  ;;  %v11618_v2 = vpop.eup %11617  ;;  %v7794_v42 = vmul.f32 %v11610_v12, %v16010_v40  ;;  %v10935_v55 = vld [vmem:[%s12869_s19 + $0x320] ss:$8 sps:$4 sm:$0xff]   ;;  %11637 = vrcp.f32 %v7621_v28 }
 0xa88   : > { %v7854_v19 = vmul.f32 %v7790_v0, %v7218_v44  ;;  %v11620_v33 = vpop.eup %11619  ;;  %v7798_v0 = vmul.f32 %v11614_v4, %v16018_v38  ;;  %v9922_v20 = vmul.f32 -1.442695, %v16121_v31  ;;  %v7622_v40 = vadd.f32 1.0, %v11616_v54  ;;  %v17170_v38 = vld [vmem:[#allocation79_spill] sm:$0xff] }
 0xa89   : > { %v7909_v50 = vpack.c.bf16 %v7853_v24, %v7849_v7  ;;  %v10940_v7 = vld [vmem:[%s12869_s19 + $0x334] ss:$8 sps:$4 sm:$0xff]   ;;  %v11622_v44 = vpop.eup %11621  ;;  %11639 = vpow2.f32 %v9918_v59  ;;  %v9923_v46 = vmul.f32 -1.442695, %v16127_v1  ;;  %v7625_v4 = vadd.f32 1.0, %v11620_v33 }
 0xa8a   : > { %v7221_v61 = vpop.f32.mrb[184].mxu0  ;;  %8440 = vmatpush1.bf16.msra.mxu0 %v10932_v27  ;;  %v7910_v30 = vpack.c.bf16 %v7854_v19, %v7850_v10  ;;  %v11624_v10 = vpop.eup %11623  ;;  %11641 = vpow2.f32 %v9919_v6  ;;  %v16142_v27 = vadd.f32 %v17170_v38, %v15900_v25  ;;  %v17171_v59 = vld [vmem:[#allocation82_spill] sm:$0xff] }
 0xa8b   : > { %v7222_v16 = vadd.f32 %v7221_v61, %v16065_v36  ;;  %v7223_v32 = vpop.f32.mrb[185].mxu0  ;;  %8441 = vmatprep.subr.bf16.mxu0 %v10937_v26  ;;  %v11626_v26 = vpop.eup %11625  ;;  %v16147_v22 = vadd.f32 %v17171_v59, %v15914_v37  ;;  %v10938_v6 = vld [vmem:[%s12869_s19 + $0x330] ss:$8 sps:$4 sm:$0xff]   ;;  %v7626_v61 = vadd.f32 1.0, %v11622_v44  ;;  %11643 = vpow2.f32 %v9922_v20 }
 0xa8c   : > { %v7224_v12 = vadd.f32 %v7223_v32, %v16070_v49  ;;  %v7225_v62 = vpop.f32.mrb[186].mxu0  ;;  %8366 = vmatprep.mubr.bf16.mxu0 %v7910_v30  ;;  %v11628_v32 = vpop.eup %11627  ;;  %v7629_v33 = vadd.f32 1.0, %v11624_v10  ;;  %11645 = vpow2.f32 %v9923_v46  ;;  %v9926_v20 = vmul.f32 -1.442695, %v16142_v27  ;;  %v10941_v10 = vld [vmem:[%s12869_s19 + $0x340] ss:$8 sps:$4 sm:$0xff]  }
 0xa8d   : > { %v7857_v29 = vmul.f32 %v7793_v48, %v7222_v16  ;;  %v7226_v28 = vadd.f32 %v7225_v62, %v16065_v36  ;;  %v7227_v24 = vpop.f32.mrb[187].mxu0  ;;  %8367 = vmatmul.mubr.bf16.gmra.mrb[148].mxu0 %v7909_v50  ;;  %v17172_v48 = vld [vmem:[#allocation81_spill] sm:$0xff]  ;;  %v10943_v50 = vld [vmem:[%s12869_s19 + $0x344] ss:$8 sps:$4 sm:$0xff]   ;;  %11647 = vrcp.f32 %v7622_v40 }
 0xa8e   : > { %v7858_v19 = vmul.f32 %v7794_v42, %v7224_v12  ;;  %v7228_v54 = vadd.f32 %v7227_v24, %v16070_v49  ;;  %8442 = vmatpush1.bf16.msra.mxu0 %v10935_v55  ;;  %v16153_v30 = vadd.f32 %v17172_v48, %v15900_v25  ;;  %v17173_v62 = vld [vmem:[#allocation84_spill] sm:$0xff]  ;;  %v11630_v55 = vpop.eup %11629  ;;  %11649 = vrcp.f32 %v7625_v4  ;;  %v10946_v24 = vld [vmem:[%s12869_s19 + $0x354] ss:$8 sps:$4 sm:$0xff]  }
 0xa8f   : > { %v7861_v16 = vmul.f32 %v7797_v18, %v7226_v28  ;;  %8443 = vmatprep.subr.bf16.mxu0 %v10940_v7  ;;  %v16158_v42 = vadd.f32 %v17173_v62, %v15914_v37  ;;  %v11632_v25 = vpop.eup %11631  ;;  %v7801_v18 = vmul.f32 %v11618_v2, %v16024_v63  ;;  %v9927_v7 = vmul.f32 -1.442695, %v16147_v22 }
 0xa90   : > { %v7862_v12 = vmul.f32 %v7798_v0, %v7228_v54  ;;  %v11634_v28 = vpop.eup %11633  ;;  %v7802_v37 = vmul.f32 %v11626_v26, %v16031_v53  ;;  %11651 = vrcp.f32 %v7626_v61  ;;  %v9930_v0 = vmul.f32 -1.442695, %v16153_v30 }
 0xa91   : > { %v7913_v44 = vpack.c.bf16 %v7861_v16, %v7857_v29  ;;  %v11636_v59 = vpop.eup %11635  ;;  %v7805_v63 = vmul.f32 %v11628_v32, %v16035_v43  ;;  %11653 = vrcp.f32 %v7629_v33  ;;  %v9931_v2 = vmul.f32 -1.442695, %v16158_v42  ;;  %v10944_v32 = vld [vmem:[%s12869_s19 + $0x350] ss:$8 sps:$4 sm:$0xff]  }
 0xa92   : > { %v7231_v38 = vpop.f32.mrb[188].mxu0  ;;  %8444 = vmatpush1.bf16.msra.mxu0 %v10938_v6  ;;  %v7914_v46 = vpack.c.bf16 %v7862_v12, %v7858_v19  ;;  %v11638_v53 = vpop.eup %11637  ;;  %v7630_v26 = vadd.f32 1.0, %v11632_v25  ;;  %11655 = vpow2.f32 %v9926_v20  ;;  %v7806_v43 = vmul.f32 %v11630_v55, %v16039_v17  ;;  %v10949_v12 = vld [vmem:[%s12869_s19 + $0x364] ss:$8 sps:$4 sm:$0xff]  }
 0xa93   : > { %v7232_v40 = vadd.f32 %v7231_v38, %v16065_v36  ;;  %v7233_v29 = vpop.f32.mrb[189].mxu0  ;;  %8445 = vmatprep.subr.bf16.mxu0 %v10943_v50  ;;  %v11640_v48 = vpop.eup %11639  ;;  %11657 = vpow2.f32 %v9927_v7  ;;  %v10947_v38 = vld [vmem:[%s12869_s19 + $0x360] ss:$8 sps:$4 sm:$0xff]  }
 0xa94   : > { %v7234_v4 = vadd.f32 %v7233_v29, %v16070_v49  ;;  %v7235_v19 = vpop.f32.mrb[190].mxu0  ;;  %8376 = vmatprep.mubr.bf16.mxu0 %v7914_v46  ;;  %v11642_v33 = vpop.eup %11641  ;;  %11659 = vpow2.f32 %v9930_v0  ;;  %v7633_v17 = vadd.f32 1.0, %v11640_v48  ;;  %v10952_v29 = vld [vmem:[%s12869_s19 + $0x374] ss:$8 sps:$4 sm:$0xff]  }
 0xa95   : > { %v7865_v54 = vmul.f32 %v7801_v18, %v7232_v40  ;;  %v7236_v6 = vadd.f32 %v7235_v19, %v16065_v36  ;;  %v7237_v61 = vpop.f32.mrb[191].mxu0  ;;  %8377 = vmatmul.mubr.bf16.gmra.mrb[152].mxu0 %v7913_v44  ;;  %11661 = vpow2.f32 %v9931_v2  ;;  %v11644_v25 = vpop.eup %11643 }
 0xa96   : > { %v7866_v16 = vmul.f32 %v7802_v37, %v7234_v4  ;;  %v7238_v50 = vadd.f32 %v7237_v61, %v16070_v49  ;;  %8446 = vmatpush1.bf16.msra.mxu0 %v10941_v10  ;;  %11663 = vrcp.f32 %v7630_v26  ;;  %v11646_v18 = vpop.eup %11645  ;;  %v7809_v10 = vmul.f32 %v11634_v28, %v16044_v57 }
 0xa97   : > { %v7869_v62 = vmul.f32 %v7805_v63, %v7236_v6  ;;  %8447 = vmatprep.subr.bf16.mxu0 %v10946_v24  ;;  %v11648_v46 = vpop.eup %11647  ;;  %v7634_v37 = vadd.f32 1.0, %v11642_v33  ;;  %v7810_v63 = vmul.f32 %v11636_v59, %v16049_v15  ;;  %v7637_v2 = vadd.f32 1.0, %v11644_v25 }
 0xa98   : > { %v7870_v20 = vmul.f32 %v7806_v43, %v7238_v50  ;;  %v11650_v24 = vpop.eup %11649  ;;  %v7638_v6 = vadd.f32 1.0, %v11646_v18  ;;  %v7814_v43 = vmul.f32 %v11648_v46, %v16061_v9  ;;  %11665 = vrcp.f32 %v7633_v17  ;;  %v10953_v18 = vld [vmem:[%s12869_s19 + $0x380] ss:$8 sps:$4 sm:$0xff]  }
 0xa99   : > { %v7917_v44 = vpack.c.bf16 %v7869_v62, %v7865_v54  ;;  %v7813_v54 = vmul.f32 %v11638_v53, %v16054_v11  ;;  %11667 = vrcp.f32 %v7634_v37  ;;  %v10955_v53 = vld [vmem:[%s12869_s19 + $0x384] ss:$8 sps:$4 sm:$0xff]  }
 0xa9a   : > { %v7241_v55 = vpop.f32.mrb[192].mxu0  ;;  %8448 = vmatpush1.bf16.msra.mxu0 %v10944_v32  ;;  %v7918_v7 = vpack.c.bf16 %v7870_v20, %v7866_v16  ;;  %v11652_v26 = vpop.eup %11651  ;;  %v10950_v16 = vld [vmem:[%s12869_s19 + $0x370] ss:$8 sps:$4 sm:$0xff]   ;;  %11669 = vrcp.f32 %v7637_v2 }
 0xa9b   : > { %v7242_v0 = vadd.f32 %v7241_v55, %v16065_v36  ;;  %v7243_v40 = vpop.f32.mrb[193].mxu0  ;;  %8449 = vmatprep.subr.bf16.mxu0 %v10949_v12  ;;  %v11654_v48 = vpop.eup %11653  ;;  %11671 = vrcp.f32 %v7638_v6  ;;  %v7817_v55 = vmul.f32 %v11650_v24, %v16075_v60  ;;  %v7818_v37 = vmul.f32 %v11652_v26, %v16080_v3  ;;  %v10956_v26 = vld [vmem:[%s12869_s19 + $0x390] ss:$8 sps:$4 sm:$0xff]  }
 0xa9c   : > { %v7244_v4 = vadd.f32 %v7243_v40, %v16070_v49  ;;  %v7245_v19 = vpop.f32.mrb[194].mxu0  ;;  %8386 = vmatprep.mubr.bf16.mxu0 %v7918_v7  ;;  %v11656_v50 = vpop.eup %11655 }
 0xa9d   : > { %v7873_v57 = vmul.f32 %v7809_v10, %v7242_v0  ;;  %v7246_v28 = vadd.f32 %v7245_v19, %v16065_v36  ;;  %v7247_v61 = vpop.f32.mrb[195].mxu0  ;;  %8387 = vmatmul.mubr.bf16.gmra.mrb[156].mxu0 %v7917_v44  ;;  %v11658_v32 = vpop.eup %11657  ;;  %v7641_v20 = vadd.f32 1.0, %v11656_v50  ;;  %v10958_v10 = vld [vmem:[%s12869_s19 + $0x394] ss:$8 sps:$4 sm:$0xff]  }
 0xa9e   : > { %v7874_v15 = vmul.f32 %v7810_v63, %v7244_v4  ;;  %v7248_v59 = vadd.f32 %v7247_v61, %v16070_v49  ;;  %8450 = vmatpush1.bf16.msra.mxu0 %v10947_v38  ;;  %v11660_v62 = vpop.eup %11659  ;;  %v7642_v7 = vadd.f32 1.0, %v11658_v32  ;;  %v7821_v63 = vmul.f32 %v11654_v48, %v16085_v5  ;;  %v10964_v32 = vld [vmem:[%s12869_s19 + $0x3b4] ss:$8 sps:$4 sm:$0xff]  }
 0xa9f   : > { %v7877_v11 = vmul.f32 %v7813_v54, %v7246_v28  ;;  %8451 = vmatprep.subr.bf16.mxu0 %v10952_v29  ;;  %v11662_v9 = vpop.eup %11661  ;;  %v7645_v0 = vadd.f32 1.0, %v11660_v62  ;;  %11673 = vrcp.f32 %v7641_v20 }
 0xaa0   : > { %v7878_v33 = vmul.f32 %v7814_v43, %v7248_v59  ;;  %v11664_v17 = vpop.eup %11663  ;;  %v7646_v2 = vadd.f32 1.0, %v11662_v9  ;;  %11675 = vrcp.f32 %v7642_v7  ;;  %v10959_v59 = vld [vmem:[%s12869_s19 + $0x3a0] ss:$8 sps:$4 sm:$0xff]   ;;  %v10967_v7 = vld [vmem:[%s12869_s19 + $0x3c4] ss:$8 sps:$4 sm:$0xff]  }
 0xaa1   : > { %v7921_v12 = vpack.c.bf16 %v7877_v11, %v7873_v57  ;;  %v7822_v19 = vmul.f32 %v11664_v17, %v16097_v14  ;;  %v10961_v57 = vld [vmem:[%s12869_s19 + $0x3a4] ss:$8 sps:$4 sm:$0xff]   ;;  %11677 = vrcp.f32 %v7645_v0 }
 0xaa2   : > { %v7251_v25 = vpop.f32.mrb[196].mxu0  ;;  %8452 = vmatpush1.bf16.msra.mxu0 %v10950_v16  ;;  %v7922_v44 = vpack.c.bf16 %v7878_v33, %v7874_v15  ;;  %v11666_v5 = vpop.eup %11665  ;;  %11679 = vrcp.f32 %v7646_v2 }
 0xaa3   : > { %v7252_v38 = vadd.f32 %v7251_v25, %v16065_v36  ;;  %v7253_v46 = vpop.f32.mrb[197].mxu0  ;;  %8453 = vmatprep.subr.bf16.mxu0 %v10955_v53  ;;  %v11668_v61 = vpop.eup %11667  ;;  %v7825_v50 = vmul.f32 %v11666_v5, %v16109_v8 }
 0xaa4   : > { %v7254_v40 = vadd.f32 %v7253_v46, %v16070_v49  ;;  %v7255_v29 = vpop.f32.mrb[198].mxu0  ;;  %8396 = vmatprep.mubr.bf16.mxu0 %v7922_v44  ;;  %v11670_v43 = vpop.eup %11669  ;;  %v7826_v33 = vmul.f32 %v11668_v61, %v16114_v51  ;;  %v10962_v51 = vld [vmem:[%s12869_s19 + $0x3b0] ss:$8 sps:$4 sm:$0xff]  }
 0xaa5   : > { %v7881_v4 = vmul.f32 %v7817_v55, %v7252_v38  ;;  %v7256_v60 = vadd.f32 %v7255_v29, %v16065_v36  ;;  %v7257_v24 = vpop.f32.mrb[199].mxu0  ;;  %8397 = vmatmul.mubr.bf16.gmra.mrb[160].mxu0 %v7921_v12  ;;  %v11672_v16 = vpop.eup %11671  ;;  %v7829_v9 = vmul.f32 %v11670_v43, %v16121_v31  ;;  %v10965_v29 = vld [vmem:[%s12869_s19 + $0x3c0] ss:$8 sps:$4 sm:$0xff]  }
 0xaa6   : > { %v7882_v54 = vmul.f32 %v7818_v37, %v7254_v40  ;;  %v7258_v3 = vadd.f32 %v7257_v24, %v16070_v49  ;;  %8454 = vmatpush1.bf16.msra.mxu0 %v10953_v18  ;;  %v7830_v8 = vmul.f32 %v11672_v16, %v16127_v1 }
 0xaa7   : > { %v7885_v6 = vmul.f32 %v7821_v63, %v7256_v60  ;;  %8455 = vmatprep.subr.bf16.mxu0 %v10958_v10  ;;  %v10970_v60 = vld [vmem:[%s12869_s19 + $0x3d4] ss:$8 sps:$4 sm:$0xff]  }
 0xaa8   : > { %v7886_v28 = vmul.f32 %v7822_v19, %v7258_v3 }
 0xaa9   : > { %v7925_v48 = vpack.c.bf16 %v7885_v6, %v7881_v4  ;;  %v11674_v38 = vpop.eup %11673 }
 0xaaa   : > { %v7261_v14 = vpop.f32.mrb[200].mxu0  ;;  %8456 = vmatpush1.bf16.msra.mxu0 %v10956_v26  ;;  %v7926_v15 = vpack.c.bf16 %v7886_v28, %v7882_v54  ;;  %v11676_v31 = vpop.eup %11675  ;;  %v7833_v63 = vmul.f32 %v11674_v38, %v16142_v27 }
 0xaab   : > { %v7262_v11 = vadd.f32 %v7261_v14, %v16065_v36  ;;  %v7263_v53 = vpop.f32.mrb[201].mxu0  ;;  %8457 = vmatprep.subr.bf16.mxu0 %v10961_v57  ;;  %v11678_v37 = vpop.eup %11677  ;;  %v7834_v24 = vmul.f32 %v11676_v31, %v16147_v22  ;;  %v10968_v22 = vld [vmem:[%s12869_s19 + $0x3d0] ss:$8 sps:$4 sm:$0xff]   ;;  %v17208_v31 = vld [vmem:[#allocation119_spill] sm:$0xff] }
 0xaac   : > { %v7264_v62 = vadd.f32 %v7263_v53, %v16070_v49  ;;  %v7265_v12 = vpop.f32.mrb[202].mxu0  ;;  %8406 = vmatprep.mubr.bf16.mxu0 %v7926_v15  ;;  %v11680_v1 = vpop.eup %11679  ;;  %v7837_v3 = vmul.f32 %v11678_v37, %v16153_v30  ;;  %v10971_v15 = vld [vmem:[%s12869_s19 + $0x3e0] ss:$8 sps:$4 sm:$0xff]  }
 0xaad   : > { %v7889_v20 = vmul.f32 %v7825_v50, %v7262_v11  ;;  %v7266_v25 = vadd.f32 %v7265_v12, %v16065_v36  ;;  %v7267_v44 = vpop.f32.mrb[203].mxu0  ;;  %8407 = vmatmul.mubr.bf16.gmra.mrb[164].mxu0 %v7925_v48  ;;  %v7838_v57 = vmul.f32 %v11680_v1, %v16158_v42  ;;  %v10973_v48 = vld [vmem:[%s12869_s19 + $0x3e4] ss:$8 sps:$4 sm:$0xff]   ;;  %v17174_v42 = vpack.c.bf16 %v15784_v21, %v15775_v23  ;;  %v3628_v37 = vld [vmem:[%s12890_s6] sm:$0x3]  ;;  %s17244_s6 = sld [smem:[#allocation32_spill]] }
 0xaae   : > { %v7890_v18 = vmul.f32 %v7826_v33, %v7264_v62  ;;  %v7268_v17 = vadd.f32 %v7267_v44, %v16070_v49  ;;  %8458 = vmatpush1.bf16.msra.mxu0 %v10959_v59  ;;  %v17175_v59 = vld [vmem:[#allocation86_spill] sm:$0xff]  ;;  %v17177_v50 = vpack.c.bf16 %v15816_v39, %v15806_v41  ;;  %v17178_v11 = vpack.c.bf16 %v15810_v35, %v15802_v13  ;;  %v17184_v33 = vld [vmem:[#allocation45_spill] sm:$0xff]  ;;  %v17187_v62 = vld [vmem:[#allocation108_spill] sm:$0xff] }
 0xaaf   : > { %v7893_v55 = vmul.f32 %v7829_v9, %v7266_v25  ;;  %8459 = vmatprep.subr.bf16.mxu0 %v10964_v32  ;;  %v17176_v16 = vpack.c.bf16 %v15778_v56, %v17175_v59  ;;  %v17179_v23 = vpack.c.bf16 %v15847_v45, %v15837_v47  ;;  %v17180_v21 = vpack.c.bf16 %v15840_v34, %v15834_v58  ;;  %v17181_v56 = vld [vmem:[#allocation46_spill] sm:$0xff]  ;;  %v17189_v35 = vld [vmem:[#allocation109_spill] sm:$0xff]  ;;  %v17190_v12 = vld [vmem:[#allocation107_spill] sm:$0xff] }
 0xab0   : > { %v7894_v46 = vmul.f32 %v7830_v8, %v7268_v17  ;;  %v17182_v53 = vpack.c.bf16 %v15870_v52, %v17181_v56  ;;  %v17183_v32 = vld [vmem:[#allocation106_spill] sm:$0xff]  ;;  %v17191_v47 = vpack.c.bf16 %v17189_v35, %v17190_v12  ;;  %v17193_v9 = vld [vmem:[#allocation112_spill] sm:$0xff]  ;;  %v17195_v34 = vld [vmem:[#allocation113_spill] sm:$0xff] }
 0xab1   : > { %v7929_v10 = vpack.c.bf16 %v7893_v55, %v7889_v20  ;;  %v17185_v41 = vpack.c.bf16 %v17183_v32, %v17184_v33  ;;  %v17186_v39 = vld [vmem:[#allocation110_spill] sm:$0xff]  ;;  %v17196_v20 = vld [vmem:[#allocation111_spill] sm:$0xff]  ;;  %v17199_v44 = vld [vmem:[#allocation116_spill] sm:$0xff] }
 0xab2   : > { %v7271_v0 = vpop.f32.mrb[204].mxu0  ;;  %8460 = vmatpush1.bf16.msra.mxu0 %v10962_v51  ;;  %v7930_v40 = vpack.c.bf16 %v7894_v46, %v7890_v18  ;;  %v17188_v13 = vpack.c.bf16 %v17186_v39, %v17187_v62  ;;  %v17192_v45 = vld [vmem:[#allocation114_spill] sm:$0xff]  ;;  %v17197_v52 = vpack.c.bf16 %v17195_v34, %v17196_v20  ;;  %v17201_v18 = vld [vmem:[#allocation117_spill] sm:$0xff]  ;;  %v17202_v17 = vld [vmem:[#allocation115_spill] sm:$0xff] }
 0xab3   : > { %v7272_v2 = vadd.f32 %v7271_v0, %v16065_v36  ;;  %v7273_v4 = vpop.f32.mrb[205].mxu0  ;;  %8461 = vmatprep.subr.bf16.mxu0 %v10967_v7  ;;  %v17194_v58 = vpack.c.bf16 %v17192_v45, %v17193_v9  ;;  %v17198_v25 = vld [vmem:[#allocation118_spill] sm:$0xff]  ;;  %v17203_v51 = vpack.c.bf16 %v17201_v18, %v17202_v17  ;;  %v17205_v7 = vld [vmem:[#allocation120_spill] sm:$0xff]  ;;  %v17207_v46 = vld [vmem:[#allocation121_spill] sm:$0xff]  ;;  %p10062_p9 = scmp.ne.s32.totalorder %s17244_s6, 1 }
 0xab4   : > { %v7274_v19 = vadd.f32 %v7273_v4, %v16070_v49  ;;  %v7275_v54 = vpop.f32.mrb[206].mxu0  ;;  %8416 = vmatprep.mubr.bf16.mxu0 %v7930_v40  ;;  %v17200_v8 = vpack.c.bf16 %v17198_v25, %v17199_v44  ;;  %v17204_v55 = vld [vmem:[#allocation122_spill] sm:$0xff]  ;;  %v17210_v0 = vld [vmem:[#allocation44_spill] sm:$0xff]  ;;  %v17220_v32 = vld [vmem:[#allocation55_spill] sm:$0xff]  ;;  %s17245_s13 = sld [smem:[#allocation136_spill]] (!%p10062_p9) }
 0xab5   : > { %v7897_v26 = vmul.f32 %v7833_v63, %v7272_v2  ;;  %v7276_v6 = vadd.f32 %v7275_v54, %v16065_v36  ;;  %v7277_v27 = vpop.f32.mrb[207].mxu0  ;;  %8417 = vmatmul.mubr.bf16.gmra.mrb[168].mxu0 %v7929_v10  ;;  %v10976_v36 = vld [vmem:[%s12869_s19 + $0x3f4] ss:$8 sps:$4 sm:$0xff]   ;;  %v17206_v38 = vpack.c.bf16 %v17204_v55, %v17205_v7  ;;  %v17209_v10 = vpack.c.bf16 %v17207_v46, %v17208_v31  ;;  %v17212_v63 = vld [vmem:[#allocation47_spill] sm:$0xff]  ;;  %v17221_v39 = vld [vmem:[#allocation56_spill] sm:$0xff] }
 0xab6   : > { %v7898_v5 = vmul.f32 %v7834_v24, %v7274_v19  ;;  %v7278_v28 = vadd.f32 %v7277_v27, %v16070_v49  ;;  %8462 = vmatpush1.bf16.msra.mxu0 %v10965_v29  ;;  %v10974_v49 = vld [vmem:[%s12869_s19 + $0x3f0] ss:$8 sps:$4 sm:$0xff]   ;;  %v16277_v40 = vrot.slane %v3628_v37, %v17210_v0  ;;  %v17211_v29 = vld [vmem:[#allocation43_spill] sm:$0xff]  ;;  %v17225_v17 = vld [vmem:[#allocation60_spill] sm:$0xff] }
 0xab7   : > { %v7901_v61 = vmul.f32 %v7837_v3, %v7276_v6  ;;  %8463 = vmatprep.subr.bf16.mxu0 %v10970_v60  ;;  %v16280_v1 = vrot.slane %v3628_v37, %v17211_v29  ;;  %v17213_v60 = vld [vmem:[#allocation48_spill] sm:$0xff]  ;;  %v17214_v3 = vld [vmem:[#allocation49_spill] sm:$0xff]  ;;  %v17224_v44 = vld [vmem:[#allocation59_spill] sm:$0xff] }
 0xab8   : > { %v7902_v43 = vmul.f32 %v7838_v57, %v7278_v28  ;;  %v3640_v2 = vadd.f32 %v16277_v40, %v17212_v63  ;;  %v17215_v57 = vld [vmem:[#allocation50_spill] sm:$0xff]  ;;  %v3648_v33 = vadd.f32 %v16277_v40, %v17220_v32  ;;  %v17222_v12 = vld [vmem:[#allocation57_spill] sm:$0xff] }
 0xab9   : > { %v7933_v30 = vpack.c.bf16 %v7901_v61, %v7897_v26  ;;  %v3641_v24 = vadd.f32 %v16280_v1, %v17213_v60  ;;  %v3642_v26 = vadd.f32 %v16277_v40, %v17214_v3  ;;  %v3649_v62 = vadd.f32 %v16280_v1, %v17221_v39  ;;  %v17227_v37 = vld [vmem:[#allocation62_spill] sm:$0xff] }
 0xaba   : > { %8464 = vmatpush1.bf16.msra.mxu0 %v10968_v22  ;;  %v7934_v14 = vpack.c.bf16 %v7902_v43, %v7898_v5  ;;  %v3643_v5 = vadd.f32 %v16280_v1, %v17215_v57  ;;  %v3655_v0 = vadd.f32 %v16280_v1, %v17227_v37  ;;  %v17230_v57 = vld [vmem:[#allocation65_spill] sm:$0xff]  ;;  %v17239_v37 = vld [vmem:[#allocation74_spill] sm:$0xff] }
 0xabb   : > { %8465 = vmatprep.subr.bf16.mxu0 %v10973_v48  ;;  %v17216_v48 = vld [vmem:[#allocation51_spill] sm:$0xff] }
 0xabc   : > { %8426 = vmatprep.mubr.bf16.mxu0 %v7934_v14  ;;  %v3644_v43 = vadd.f32 %v16277_v40, %v17216_v48  ;;  %v17217_v14 = vld [vmem:[#allocation52_spill] sm:$0xff] }
 0xabd   : > { %8427 = vmatmul.mubr.bf16.gmra.mrb[172].mxu0 %v7933_v30 }
 0xabe   : > { %8466 = vmatpush1.bf16.msra.mxu0 %v10971_v15  ;;  %8469 = vmatprep.mubr.bf16.mxu0 %v17174_v42  ;;  %v3645_v15 = vadd.f32 %v16280_v1, %v17217_v14 }
 0xabf   : > { %8467 = vmatprep.subr.bf16.mxu0 %v10976_v36 }
 0xac2   : > { %8468 = vmatpush1.bf16.msra.mxu0 %v10974_v49  ;;  %v17218_v49 = vld [vmem:[#allocation53_spill] sm:$0xff] }
 0xac3   : > { %v3646_v59 = vadd.f32 %v16277_v40, %v17218_v49  ;;  %v17232_v49 = vld [vmem:[#allocation67_spill] sm:$0xff] }
 0xac5   : > { %8470 = vmatmul.mubr.bf16.vlgmr.msra.gmra.mrb[144].mxu0 %v17176_v16 }
 0xac6   : > { %8479 = vmatprep.mubr.bf16.mxu0 %v17177_v50 }
 0xacd   : > { %8480 = vmatmul.mubr.bf16.gmra.mrb[148].mxu0 %v17178_v11  ;;  %v17219_v11 = vld [vmem:[#allocation54_spill] sm:$0xff] }
 0xace   : > { %8489 = vmatprep.mubr.bf16.mxu0 %v17179_v23  ;;  %v3647_v23 = vadd.f32 %v16280_v1, %v17219_v11  ;;  %v17233_v11 = vld [vmem:[#allocation68_spill] sm:$0xff] }
 0xad5   : > { %8490 = vmatmul.mubr.bf16.gmra.mrb[152].mxu0 %v17180_v21 }
 0xad6   : > { %8499 = vmatprep.mubr.bf16.mxu0 %v17182_v53 }
 0xadd   : > { %8500 = vmatmul.mubr.bf16.gmra.mrb[156].mxu0 %v17185_v41 }
 0xade   : > { %8509 = vmatprep.mubr.bf16.mxu0 %v17188_v13 }
 0xae5   : > { %8510 = vmatmul.mubr.bf16.gmra.mrb[160].mxu0 %v17191_v47  ;;  %v3650_v47 = vadd.f32 %v16277_v40, %v17222_v12 }
 0xae6   : > { %8519 = vmatprep.mubr.bf16.mxu0 %v17194_v58  ;;  %v17223_v58 = vld [vmem:[#allocation58_spill] sm:$0xff] }
 0xae7   : > { %v3651_v34 = vadd.f32 %v16280_v1, %v17223_v58 }
 0xaed   : > { %8520 = vmatmul.mubr.bf16.gmra.mrb[164].mxu0 %v17197_v52 }
 0xaee   : > { %8529 = vmatprep.mubr.bf16.mxu0 %v17200_v8  ;;  %v3652_v8 = vadd.f32 %v16277_v40, %v17224_v44 }
 0xaf5   : > { %8530 = vmatmul.mubr.bf16.gmra.mrb[168].mxu0 %v17203_v51  ;;  %v3653_v51 = vadd.f32 %v16280_v1, %v17225_v17 }
 0xaf6   : > { %8539 = vmatprep.mubr.bf16.mxu0 %v17206_v38  ;;  %v17226_v38 = vld [vmem:[#allocation61_spill] sm:$0xff] }
 0xaf7   : > { %v3654_v46 = vadd.f32 %v16277_v40, %v17226_v38 }
 0xafd   : > { %8540 = vmatmul.mubr.bf16.gmra.mrb[172].mxu0 %v17209_v10 }
 0xb98   : > { %v8471_v4 = vpop.f32.mrb[144].mxu0 }
 0xb99   : > { %v16286_v19 = vadd.f32 %v8471_v4, %v3640_v2  ;;  %v8473_v54 = vpop.f32.mrb[145].mxu0  ;;  %v17228_v4 = vld [vmem:[#allocation63_spill] sm:$0xff] }
 0xb9a   : > { %v16290_v6 = vadd.f32 %v8473_v54, %v3641_v24  ;;  %v8475_v27 = vpop.f32.mrb[146].mxu0  ;;  %v3656_v60 = vadd.f32 %v16277_v40, %v17228_v4  ;;  %v17229_v54 = vld [vmem:[#allocation64_spill] sm:$0xff] }
 0xb9b   : > { %8582 = vst [vmem:[#allocation2] sm:$0xff] %v16286_v19  ;;  %v16295_v28 = vadd.f32 %v8475_v27, %v3642_v26  ;;  %v8477_v22 = vpop.f32.mrb[147].mxu0  ;;  %v3657_v3 = vadd.f32 %v16280_v1, %v17229_v54 }
 0xb9c   : > { %8583 = vst [vmem:[#allocation2 + $0x8] sm:$0xff] %v16290_v6  ;;  %v16298_v61 = vadd.f32 %v8477_v22, %v3643_v5  ;;  %v3658_v5 = vadd.f32 %v16277_v40, %v17230_v57 }
 0xb9d   : > { %8584 = vst [vmem:[#allocation2 + $0x10] sm:$0xff] %v16295_v28 }
 0xb9e   : > { %8585 = vst [vmem:[#allocation2 + $0x18] sm:$0xff] %v16298_v61 }
 0xba0   : > { %v8481_v30 = vpop.f32.mrb[148].mxu0 }
 0xba1   : > { %v16306_v36 = vadd.f32 %v8481_v30, %v3644_v43  ;;  %v8483_v42 = vpop.f32.mrb[149].mxu0  ;;  %v17231_v43 = vld [vmem:[#allocation66_spill] sm:$0xff] }
 0xba2   : > { %v16310_v16 = vadd.f32 %v8483_v42, %v3645_v15  ;;  %v8485_v50 = vpop.f32.mrb[150].mxu0  ;;  %v3659_v30 = vadd.f32 %v16280_v1, %v17231_v43  ;;  %v17242_v43 = vld [vmem:[#allocation77_spill] sm:$0xff] }
 0xba3   : > { %8586 = vst [vmem:[#allocation2 + $0x20] sm:$0xff] %v16306_v36  ;;  %v16315_v21 = vadd.f32 %v8485_v50, %v3646_v59  ;;  %v8487_v56 = vpop.f32.mrb[151].mxu0  ;;  %v3660_v59 = vadd.f32 %v16277_v40, %v17232_v49 }
 0xba4   : > { %8587 = vst [vmem:[#allocation2 + $0x28] sm:$0xff] %v16310_v16  ;;  %v16318_v53 = vadd.f32 %v8487_v56, %v3647_v23  ;;  %v3661_v23 = vadd.f32 %v16280_v1, %v17233_v11 }
 0xba5   : > { %8588 = vst [vmem:[#allocation2 + $0x30] sm:$0xff] %v16315_v21 }
 0xba6   : > { %8589 = vst [vmem:[#allocation2 + $0x38] sm:$0xff] %v16318_v53 }
 0xba8   : > { %v8491_v41 = vpop.f32.mrb[152].mxu0 }
 0xba9   : > { %v16326_v13 = vadd.f32 %v8491_v41, %v3648_v33  ;;  %v8493_v35 = vpop.f32.mrb[153].mxu0  ;;  %v17234_v33 = vld [vmem:[#allocation69_spill] sm:$0xff] }
 0xbaa   : > { %v16330_v45 = vadd.f32 %v8493_v35, %v3649_v62  ;;  %v8495_v9 = vpop.f32.mrb[154].mxu0  ;;  %v3662_v41 = vadd.f32 %v16277_v40, %v17234_v33  ;;  %v17235_v35 = vld [vmem:[#allocation70_spill] sm:$0xff]  ;;  %v8619_v33 = vmul.f32 (!%p10062_p9), %v16286_v19, %v16286_v19 }
 0xbab   : > { %8590 = vst [vmem:[#allocation2 + $0x40] sm:$0xff] %v16326_v13  ;;  %v16335_v20 = vadd.f32 %v8495_v9, %v3650_v47  ;;  %v8497_v52 = vpop.f32.mrb[155].mxu0  ;;  %v3663_v12 = vadd.f32 %v16280_v1, %v17235_v35  ;;  %v8626_v35 = vmul.f32 (!%p10062_p9), %v16318_v53, %v16318_v53 }
 0xbac   : > { %8591 = vst [vmem:[#allocation2 + $0x48] sm:$0xff] %v16330_v45  ;;  %v16338_v25 = vadd.f32 %v8497_v52, %v3651_v34  ;;  %v17236_v34 = vld [vmem:[#allocation71_spill] sm:$0xff] }
 0xbad   : > { %8592 = vst [vmem:[#allocation2 + $0x50] sm:$0xff] %v16335_v20  ;;  %v3664_v52 = vadd.f32 %v16277_v40, %v17236_v34 }
 0xbae   : > { %8593 = vst [vmem:[#allocation2 + $0x58] sm:$0xff] %v16338_v25 }
 0xbb0   : > { %v8501_v18 = vpop.f32.mrb[156].mxu0 }
 0xbb1   : > { %v16346_v55 = vadd.f32 %v8501_v18, %v3652_v8  ;;  %v8503_v7 = vpop.f32.mrb[157].mxu0  ;;  %v17237_v8 = vld [vmem:[#allocation72_spill] sm:$0xff] }
 0xbb2   : > { %v16350_v31 = vadd.f32 %v8503_v7, %v3653_v51  ;;  %v8505_v10 = vpop.f32.mrb[158].mxu0  ;;  %v3665_v18 = vadd.f32 %v16280_v1, %v17237_v8  ;;  %v17238_v7 = vld [vmem:[#allocation73_spill] sm:$0xff]  ;;  %v8629_v8 = vmul.f32 (!%p10062_p9), %v16335_v20, %v16335_v20 }
 0xbb3   : > { %8594 = vst [vmem:[#allocation2 + $0x60] sm:$0xff] %v16346_v55  ;;  %v16355_v29 = vadd.f32 %v8505_v10, %v3654_v46  ;;  %v8507_v63 = vpop.f32.mrb[159].mxu0  ;;  %v3666_v38 = vadd.f32 %v16277_v40, %v17238_v7  ;;  %v8627_v7 = vmul.f32 (!%p10062_p9), %v16326_v13, %v16326_v13 }
 0xbb4   : > { %8595 = vst [vmem:[#allocation2 + $0x68] sm:$0xff] %v16350_v31  ;;  %v16358_v2 = vadd.f32 %v8507_v63, %v3655_v0  ;;  %v3667_v0 = vadd.f32 %v16280_v1, %v17239_v37 }
 0xbb5   : > { %8596 = vst [vmem:[#allocation2 + $0x70] sm:$0xff] %v16355_v29  ;;  %v8633_v37 = vmul.f32 (!%p10062_p9), %v16355_v29, %v16355_v29 }
 0xbb6   : > { %8597 = vst [vmem:[#allocation2 + $0x78] sm:$0xff] %v16358_v2 }
 0xbb8   : > { %v8511_v24 = vpop.f32.mrb[160].mxu0 }
 0xbb9   : > { %v16366_v26 = vadd.f32 %v8511_v24, %v3656_v60  ;;  %v8513_v27 = vpop.f32.mrb[161].mxu0  ;;  %v17240_v24 = vld [vmem:[#allocation75_spill] sm:$0xff] }
 0xbba   : > { %v16370_v22 = vadd.f32 %v8513_v27, %v3657_v3  ;;  %v8515_v48 = vpop.f32.mrb[162].mxu0  ;;  %v3668_v54 = vadd.f32 %v16277_v40, %v17240_v24  ;;  %v17241_v27 = vld [vmem:[#allocation76_spill] sm:$0xff]  ;;  %v8631_v24 = vmul.f32 (!%p10062_p9), %v16346_v55, %v16346_v55 }
 0xbbb   : > { %8598 = vst [vmem:[#allocation2 + $0x80] sm:$0xff] %v16366_v26  ;;  %v16375_v14 = vadd.f32 %v8515_v48, %v3658_v5  ;;  %v8517_v15 = vpop.f32.mrb[163].mxu0  ;;  %v3669_v57 = vadd.f32 %v16280_v1, %v17241_v27 }
 0xbbc   : > { %8599 = vst [vmem:[#allocation2 + $0x88] sm:$0xff] %v16370_v22  ;;  %v16378_v42 = vadd.f32 %v8517_v15, %v3659_v30  ;;  %v3670_v30 = vadd.f32 %v16277_v40, %v17242_v43  ;;  %v8623_v40 = vmul.f32 (!%p10062_p9), %v16306_v36, %v16306_v36  ;;  %v8635_v43 = vmul.f32 (!%p10062_p9), %v16366_v26, %v16366_v26 }
 0xbbd   : > { %8600 = vst [vmem:[#allocation2 + $0x90] sm:$0xff] %v16375_v14  ;;  %v8637_v27 = vmul.f32 (!%p10062_p9), %v16375_v14, %v16375_v14 }
 0xbbe   : > { %8601 = vst [vmem:[#allocation2 + $0x98] sm:$0xff] %v16378_v42 }
 0xbc0   : > { %v8521_v50 = vpop.f32.mrb[164].mxu0 }
 0xbc1   : > { %v16386_v56 = vadd.f32 %v8521_v50, %v3660_v59  ;;  %v8523_v32 = vpop.f32.mrb[165].mxu0  ;;  %v17243_v59 = vld [vmem:[#allocation78_spill] sm:$0xff] }
 0xbc2   : > { %v16390_v39 = vadd.f32 %v8523_v32, %v3661_v23  ;;  %v8525_v62 = vpop.f32.mrb[166].mxu0  ;;  %v3671_v50 = vadd.f32 %v16280_v1, %v17243_v59  ;;  %v8624_v1 = vmul.f32 (!%p10062_p9), %v16310_v16, %v16310_v16 }
 0xbc3   : > { %8602 = vst [vmem:[#allocation2 + $0xa0] sm:$0xff] %v16386_v56  ;;  %v16395_v47 = vadd.f32 %v8525_v62, %v3662_v41  ;;  %v8527_v9 = vpop.f32.mrb[167].mxu0  ;;  %v8620_v41 = vmul.f32 (!%p10062_p9), %v16290_v6, %v16290_v6  ;;  %v8625_v62 = vmul.f32 (!%p10062_p9), %v16315_v21, %v16315_v21 }
 0xbc4   : > { %8603 = vst [vmem:[#allocation2 + $0xa8] sm:$0xff] %v16390_v39  ;;  %v16398_v58 = vadd.f32 %v8527_v9, %v3663_v12  ;;  %v8621_v12 = vmul.f32 (!%p10062_p9), %v16295_v28, %v16295_v28  ;;  %v8622_v9 = vmul.f32 (!%p10062_p9), %v16298_v61, %v16298_v61  ;;  %v8657_v34 = vadd.f32 (!%p10062_p9), %v8624_v1, %v8623_v40 }
 0xbc5   : > { %8604 = vst [vmem:[#allocation2 + $0xb0] sm:$0xff] %v16395_v47  ;;  %v8640_v1 = vmul.f32 (!%p10062_p9), %v16390_v39, %v16390_v39 }
 0xbc6   : > { %8605 = vst [vmem:[#allocation2 + $0xb8] sm:$0xff] %v16398_v58  ;;  %8658 = vadd.xlane.f32.xlu1 (!%p10062_p9), %v8657_v34  ;;  %v8642_v59 = vmul.f32 (!%p10062_p9), %v16398_v58, %v16398_v58 }
 0xbc8   : > { %v8531_v44 = vpop.f32.mrb[168].mxu0 }
 0xbc9   : > { %v16406_v17 = vadd.f32 %v8531_v44, %v3664_v52  ;;  %v8533_v51 = vpop.f32.mrb[169].mxu0  ;;  %v8651_v52 = vadd.f32 (!%p10062_p9), %v8620_v41, %v8619_v33  ;;  %v8660_v44 = vadd.f32 (!%p10062_p9), %v8626_v35, %v8625_v62 }
 0xbca   : > { %v16410_v46 = vadd.f32 %v8533_v51, %v3665_v18  ;;  %v8535_v10 = vpop.f32.mrb[170].mxu0  ;;  %v8630_v18 = vmul.f32 (!%p10062_p9), %v16338_v25, %v16338_v25  ;;  %v8654_v51 = vadd.f32 (!%p10062_p9), %v8622_v9, %v8621_v12 }
 0xbcb   : > { %8606 = vst [vmem:[#allocation2 + $0xc0] sm:$0xff] %v16406_v17  ;;  %v16415_v63 = vadd.f32 %v8535_v10, %v3666_v38  ;;  %v8537_v4 = vpop.f32.mrb[171].mxu0  ;;  %8652 = vadd.xlane.f32.xlu0 (!%p10062_p9), %v8651_v52  ;;  %v8628_v38 = vmul.f32 (!%p10062_p9), %v16330_v45, %v16330_v45  ;;  %8661 = vadd.xlane.f32.xlu1 (!%p10062_p9), %v8660_v44 }
 0xbcc   : > { %8607 = vst [vmem:[#allocation2 + $0xc8] sm:$0xff] %v16410_v46  ;;  %v16418_v60 = vadd.f32 %v8537_v4, %v3667_v0  ;;  %v8666_v10 = vadd.f32 (!%p10062_p9), %v8630_v18, %v8629_v8  ;;  %v8634_v0 = vmul.f32 (!%p10062_p9), %v16358_v2, %v16358_v2  ;;  %v8643_v12 = vmul.f32 (!%p10062_p9), %v16406_v17, %v16406_v17 }
 0xbcd   : > { %8608 = vst [vmem:[#allocation2 + $0xd0] sm:$0xff] %v16415_v63  ;;  %v8663_v4 = vadd.f32 (!%p10062_p9), %v8628_v38, %v8627_v7  ;;  %v8645_v41 = vmul.f32 (!%p10062_p9), %v16415_v63, %v16415_v63  ;;  %v8644_v9 = vmul.f32 (!%p10062_p9), %v16410_v46, %v16410_v46 }
 0xbce   : > { %8609 = vst [vmem:[#allocation2 + $0xd8] sm:$0xff] %v16418_v60  ;;  %v8646_v62 = vmul.f32 (!%p10062_p9), %v16418_v60, %v16418_v60 }
 0xbcf   : > { %8655 = vadd.xlane.f32.xlu0 (!%p10062_p9), %v8654_v51  ;;  %8667 = vadd.xlane.f32.xlu1 (!%p10062_p9), %v8666_v10  ;;  %v8687_v8 = vadd.f32 (!%p10062_p9), %v8644_v9, %v8643_v12  ;;  %v17246_v9 = vld [vmem:[#allocation44_spill] sm:$0xff] (!%p10062_p9) }
 0xbd0   : > { %v8541_v3 = vpop.f32.mrb[172].mxu0  ;;  %8617 = sbr.rel (%p10062_p9) target bundleno = 3209 (0xc89), region = 124  ;;  %v8690_v34 = vadd.f32 (!%p10062_p9), %v8646_v62, %v8645_v41 }
 0xbd1   : > { %v16426_v5 = vadd.f32 %v8541_v3, %v3668_v54  ;;  %v8543_v48 = vpop.f32.mrb[173].mxu0  ;;  %v8632_v54 = vmul.f32 (!%p10062_p9), %v16350_v31, %v16350_v31  ;;  %v8672_v3 = vadd.f32 (!%p10062_p9), %v8634_v0, %v8633_v37 }
 0xbd2   : > { %v16430_v15 = vadd.f32 %v8543_v48, %v3669_v57  ;;  %v8545_v49 = vpop.f32.mrb[174].mxu0  ;;  %v8638_v57 = vmul.f32 (!%p10062_p9), %v16378_v42, %v16378_v42 }
 0xbd3   : > { %8610 = vst [vmem:[#allocation2 + $0xe0] sm:$0xff] %v16426_v5  ;;  %v16435_v11 = vadd.f32 %v8545_v49, %v3670_v30  ;;  %v8547_v23 = vpop.f32.mrb[175].mxu0  ;;  %8664 = vadd.xlane.f32.xlu0 (!%p10062_p9), %v8663_v4  ;;  %v8669_v48 = vadd.f32 (!%p10062_p9), %v8632_v54, %v8631_v24  ;;  %v8636_v30 = vmul.f32 (!%p10062_p9), %v16370_v22, %v16370_v22 }
 0xbd4   : > { %8611 = vst [vmem:[#allocation2 + $0xe8] sm:$0xff] %v16430_v15  ;;  %v16438_v32 = vadd.f32 %v8547_v23, %v3671_v50  ;;  %v8641_v49 = vmul.f32 (!%p10062_p9), %v16395_v47, %v16395_v47  ;;  %v8639_v50 = vmul.f32 (!%p10062_p9), %v16386_v56, %v16386_v56  ;;  %8673 = vadd.xlane.f32.xlu1 (!%p10062_p9), %v8672_v3 }
 0xbd5   : > { %8612 = vst [vmem:[#allocation2 + $0xf0] sm:$0xff] %v16435_v11  ;;  %v8678_v23 = vadd.f32 (!%p10062_p9), %v8638_v57, %v8637_v27  ;;  %v8675_v40 = vadd.f32 (!%p10062_p9), %v8636_v30, %v8635_v43  ;;  %v8649_v52 = vmul.f32 (!%p10062_p9), %v16435_v11, %v16435_v11  ;;  %v8647_v18 = vmul.f32 (!%p10062_p9), %v16426_v5, %v16426_v5 }
 0xbd6   : > { %8613 = vst [vmem:[#allocation2 + $0xf8] sm:$0xff] %v16438_v32  ;;  %v8684_v33 = vadd.f32 (!%p10062_p9), %v8642_v59, %v8641_v49  ;;  %v8681_v35 = vadd.f32 (!%p10062_p9), %v8640_v1, %v8639_v50  ;;  %v8650_v44 = vmul.f32 (!%p10062_p9), %v16438_v32, %v16438_v32  ;;  %v8648_v51 = vmul.f32 (!%p10062_p9), %v16430_v15, %v16430_v15 }
 0xbd7   : > { %8670 = vadd.xlane.f32.xlu0 %v8669_v48 }
 0xbd8   : > { %8679 = vadd.xlane.f32.xlu1 %v8678_v23  ;;  %v8696_v7 = vadd.f32 %v8650_v44, %v8649_v52  ;;  %v8693_v38 = vadd.f32 %v8648_v51, %v8647_v18  ;;  %v17247_v52 = vld [vmem:[#allocation43_spill] sm:$0xff] }
 0xbdb   : > { %8676 = vadd.xlane.f32.xlu0 %v8675_v40  ;;  %v8618_v40 = vld [vmem:[%s17245_s13] sm:$0x3] }
 0xbdc   : > { %8685 = vadd.xlane.f32.xlu1 %v8684_v33  ;;  %v16514_v44 = vrot.slane %v8618_v40, %v17247_v52 }
 0xbdf   : > { %8682 = vadd.xlane.f32.xlu0 %v8681_v35 }
 0xbe0   : > { %8691 = vadd.xlane.f32.xlu1 %v8690_v34  ;;  %v16511_v34 = vrot.slane %v8618_v40, %v17246_v9 }
 0xbe3   : > { %8688 = vadd.xlane.f32.xlu0 %v8687_v8 }
 0xbe4   : > { %8697 = vadd.xlane.f32.xlu1 %v8696_v7 }
 0xbe7   : > { %8694 = vadd.xlane.f32.xlu0 %v8693_v38 }
 0xc53   : > { %v8659_v10 = vpop.xlane.xlu1 %8658 }
 0xc54   : > { %v8701_v0 = vmul.f32 0.00390625, %v8659_v10 }
 0xc56   : > { %v8717_v24 = vadd.f32 1e-06, %v8701_v0 }
 0xc58   : > { %v8653_v37 = vpop.xlane.xlu0 %8652  ;;  %v8662_v3 = vpop.xlane.xlu1 %8661  ;;  %11747 = vrsqrt.f32 %v8717_v24 }
 0xc59   : > { %v8699_v4 = vmul.f32 0.00390625, %v8653_v37  ;;  %v8702_v57 = vmul.f32 0.00390625, %v8662_v3 }
 0xc5b   : > { %v8715_v54 = vadd.f32 1e-06, %v8699_v4  ;;  %v8718_v43 = vadd.f32 1e-06, %v8702_v57 }
 0xc5c   : > { %v8656_v27 = vpop.xlane.xlu0 %8655  ;;  %v8668_v49 = vpop.xlane.xlu1 %8667 }
 0xc5d   : > { %v8700_v48 = vmul.f32 0.00390625, %v8656_v27  ;;  %11749 = vrsqrt.f32 %v8715_v54  ;;  %v8704_v50 = vmul.f32 0.00390625, %v8668_v49 }
 0xc5e   : > { %11751 = vrsqrt.f32 %v8718_v43 }
 0xc5f   : > { %v8716_v30 = vadd.f32 1e-06, %v8700_v48  ;;  %v8720_v1 = vadd.f32 1e-06, %v8704_v50 }
 0xc60   : > { %v8665_v59 = vpop.xlane.xlu0 %8664 }
 0xc61   : > { %v8703_v23 = vmul.f32 0.00390625, %v8665_v59  ;;  %11753 = vrsqrt.f32 %v8716_v30  ;;  %v8674_v41 = vpop.xlane.xlu1 %8673 }
 0xc62   : > { %11755 = vrsqrt.f32 %v8720_v1  ;;  %v8706_v35 = vmul.f32 0.00390625, %v8674_v41  ;;  %v11748_v8 = vpop.eup %11747 }
 0xc63   : > { %v8719_v33 = vadd.f32 1e-06, %v8703_v23  ;;  %v8751_v38 = vmul.f32 %v11748_v8, %v16306_v36  ;;  %v8752_v10 = vmul.f32 %v11748_v8, %v16310_v16 }
 0xc64   : > { %v8671_v62 = vpop.xlane.xlu0 %8670  ;;  %v8722_v18 = vadd.f32 1e-06, %v8706_v35 }
 0xc65   : > { %v8705_v12 = vmul.f32 0.00390625, %v8671_v62  ;;  %11757 = vrsqrt.f32 %v8719_v33  ;;  %v8680_v37 = vpop.xlane.xlu1 %8679  ;;  %v8794_v3 = vmul.f32 %v16511_v34, %v8751_v38  ;;  %v8795_v27 = vmul.f32 %v16514_v44, %v8752_v10 }
 0xc66   : > { %11759 = vrsqrt.f32 %v8722_v18  ;;  %v8708_v54 = vmul.f32 0.00390625, %v8680_v37 }
 0xc67   : > { %v8721_v51 = vadd.f32 1e-06, %v8705_v12  ;;  %v11750_v7 = vpop.eup %11749  ;;  %8826 = vst [vmem:[%s12894_s24 + $0x20] sm:$0xff] %v8794_v3  ;;  %8827 = vst [vmem:[%s12894_s24 + $0x28] sm:$0xff] %v8795_v27 }
 0xc68   : > { %v8677_v0 = vpop.xlane.xlu0 %8676  ;;  %v8747_v4 = vmul.f32 %v11750_v7, %v16286_v19  ;;  %v8748_v24 = vmul.f32 %v11750_v7, %v16290_v6  ;;  %v11752_v57 = vpop.eup %11751  ;;  %v8724_v43 = vadd.f32 1e-06, %v8708_v54 }
 0xc69   : > { %11761 = vrsqrt.f32 %v8721_v51  ;;  %v8707_v36 = vmul.f32 0.00390625, %v8677_v0  ;;  %v8753_v19 = vmul.f32 %v11752_v57, %v16315_v21  ;;  %v8754_v6 = vmul.f32 %v11752_v57, %v16318_v53  ;;  %v8686_v59 = vpop.xlane.xlu1 %8685 }
 0xc6a   : > { %v8790_v16 = vmul.f32 %v16511_v34, %v8747_v4  ;;  %v8791_v48 = vmul.f32 %v16514_v44, %v8748_v24  ;;  %11763 = vrsqrt.f32 %v8724_v43  ;;  %v8710_v1 = vmul.f32 0.00390625, %v8686_v59 }
 0xc6b   : > { %v11754_v30 = vpop.eup %11753  ;;  %v8723_v49 = vadd.f32 1e-06, %v8707_v36  ;;  %v8796_v33 = vmul.f32 %v16511_v34, %v8753_v19  ;;  %v8797_v21 = vmul.f32 %v16514_v44, %v8754_v6 }
 0xc6c   : > { %v8683_v50 = vpop.xlane.xlu0 %8682  ;;  %8822 = vst [vmem:[%s12894_s24] sm:$0xff] %v8790_v16  ;;  %8823 = vst [vmem:[%s12894_s24 + $0x8] sm:$0xff] %v8791_v48  ;;  %v8749_v23 = vmul.f32 %v11754_v30, %v16295_v28  ;;  %v8750_v40 = vmul.f32 %v11754_v30, %v16298_v61  ;;  %v11756_v41 = vpop.eup %11755  ;;  %v8726_v12 = vadd.f32 1e-06, %v8710_v1 }
 0xc6d   : > { %11765 = vrsqrt.f32 %v8723_v49  ;;  %v8709_v53 = vmul.f32 0.00390625, %v8683_v50  ;;  %8828 = vst [vmem:[%s12894_s24 + $0x30] sm:$0xff] %v8796_v33  ;;  %8829 = vst [vmem:[%s12894_s24 + $0x38] sm:$0xff] %v8797_v21  ;;  %v8757_v28 = vmul.f32 %v11756_v41, %v16335_v20  ;;  %v8758_v61 = vmul.f32 %v11756_v41, %v16338_v25  ;;  %v8692_v8 = vpop.xlane.xlu1 %8691 }
 0xc6e   : > { %v8792_v62 = vmul.f32 %v16511_v34, %v8749_v23  ;;  %v8793_v35 = vmul.f32 %v16514_v44, %v8750_v40  ;;  %11767 = vrsqrt.f32 %v8726_v12  ;;  %v8712_v38 = vmul.f32 0.00390625, %v8692_v8 }
 0xc6f   : > { %v11758_v9 = vpop.eup %11757  ;;  %v8725_v52 = vadd.f32 1e-06, %v8709_v53  ;;  %v8800_v10 = vmul.f32 %v16511_v34, %v8757_v28  ;;  %v8801_v20 = vmul.f32 %v16514_v44, %v8758_v61 }
 0xc70   : > { %v8689_v18 = vpop.xlane.xlu0 %8688  ;;  %8824 = vst [vmem:[%s12894_s24 + $0x10] sm:$0xff] %v8792_v62  ;;  %8825 = vst [vmem:[%s12894_s24 + $0x18] sm:$0xff] %v8793_v35  ;;  %v8755_v51 = vmul.f32 %v11758_v9, %v16326_v13  ;;  %v8756_v7 = vmul.f32 %v11758_v9, %v16330_v45  ;;  %v11760_v37 = vpop.eup %11759  ;;  %v8728_v24 = vadd.f32 1e-06, %v8712_v38 }
 0xc71   : > { %11769 = vrsqrt.f32 %v8725_v52  ;;  %v8711_v25 = vmul.f32 0.00390625, %v8689_v18  ;;  %8832 = vst [vmem:[%s12894_s24 + $0x50] sm:$0xff] %v8800_v10  ;;  %8833 = vst [vmem:[%s12894_s24 + $0x58] sm:$0xff] %v8801_v20  ;;  %v8761_v13 = vmul.f32 %v11760_v37, %v16355_v29  ;;  %v8762_v45 = vmul.f32 %v11760_v37, %v16358_v2  ;;  %v8698_v27 = vpop.xlane.xlu1 %8697 }
 0xc72   : > { %v8798_v0 = vmul.f32 %v16511_v34, %v8755_v51  ;;  %v8799_v4 = vmul.f32 %v16514_v44, %v8756_v7  ;;  %11771 = vrsqrt.f32 %v8728_v24  ;;  %v8714_v48 = vmul.f32 0.00390625, %v8698_v27 }
 0xc73   : > { %v11762_v54 = vpop.eup %11761  ;;  %v8727_v3 = vadd.f32 1e-06, %v8711_v25  ;;  %v8804_v43 = vmul.f32 %v16511_v34, %v8761_v13  ;;  %v8805_v29 = vmul.f32 %v16514_v44, %v8762_v45 }
 0xc74   : > { %v8695_v36 = vpop.xlane.xlu0 %8694  ;;  %8830 = vst [vmem:[%s12894_s24 + $0x40] sm:$0xff] %v8798_v0  ;;  %8831 = vst [vmem:[%s12894_s24 + $0x48] sm:$0xff] %v8799_v4  ;;  %v8759_v57 = vmul.f32 %v11762_v54, %v16346_v55  ;;  %v8760_v16 = vmul.f32 %v11762_v54, %v16350_v31  ;;  %v11764_v30 = vpop.eup %11763  ;;  %v8730_v49 = vadd.f32 1e-06, %v8714_v48 }
 0xc75   : > { %11773 = vrsqrt.f32 %v8727_v3  ;;  %v8713_v2 = vmul.f32 0.00390625, %v8695_v36  ;;  %8836 = vst [vmem:[%s12894_s24 + $0x70] sm:$0xff] %v8804_v43  ;;  %8837 = vst [vmem:[%s12894_s24 + $0x78] sm:$0xff] %v8805_v29  ;;  %v8765_v55 = vmul.f32 %v11764_v30, %v16375_v14  ;;  %v8766_v31 = vmul.f32 %v11764_v30, %v16378_v42 }
 0xc76   : > { %v8802_v19 = vmul.f32 %v16511_v34, %v8759_v57  ;;  %v8803_v6 = vmul.f32 %v16514_v44, %v8760_v16  ;;  %11775 = vrsqrt.f32 %v8730_v49 }
 0xc77   : > { %v11766_v59 = vpop.eup %11765  ;;  %v8729_v50 = vadd.f32 1e-06, %v8713_v2  ;;  %v8808_v1 = vmul.f32 %v16511_v34, %v8765_v55  ;;  %v8809_v33 = vmul.f32 %v16514_v44, %v8766_v31 }
 0xc78   : > { %8834 = vst [vmem:[%s12894_s24 + $0x60] sm:$0xff] %v8802_v19  ;;  %8835 = vst [vmem:[%s12894_s24 + $0x68] sm:$0xff] %v8803_v6  ;;  %v8763_v23 = vmul.f32 %v11766_v59, %v16366_v26  ;;  %v8764_v40 = vmul.f32 %v11766_v59, %v16370_v22  ;;  %v11768_v21 = vpop.eup %11767 }
 0xc79   : > { %11777 = vrsqrt.f32 %v8729_v50  ;;  %8840 = vst [vmem:[%s12894_s24 + $0x90] sm:$0xff] %v8808_v1  ;;  %8841 = vst [vmem:[%s12894_s24 + $0x98] sm:$0xff] %v8809_v33  ;;  %v8769_v26 = vmul.f32 %v11768_v21, %v16395_v47  ;;  %v8770_v22 = vmul.f32 %v11768_v21, %v16398_v58 }
 0xc7a   : > { %v8806_v14 = vmul.f32 %v16511_v34, %v8763_v23  ;;  %v8807_v42 = vmul.f32 %v16514_v44, %v8764_v40 }
 0xc7b   : > { %v11770_v53 = vpop.eup %11769  ;;  %v8812_v35 = vmul.f32 %v16511_v34, %v8769_v26  ;;  %v8813_v12 = vmul.f32 %v16514_v44, %v8770_v22 }
 0xc7c   : > { %8838 = vst [vmem:[%s12894_s24 + $0x80] sm:$0xff] %v8806_v14  ;;  %8839 = vst [vmem:[%s12894_s24 + $0x88] sm:$0xff] %v8807_v42  ;;  %v8767_v41 = vmul.f32 %v11770_v53, %v16386_v56  ;;  %v8768_v62 = vmul.f32 %v11770_v53, %v16390_v39  ;;  %v11772_v9 = vpop.eup %11771 }
 0xc7d   : > { %8844 = vst [vmem:[%s12894_s24 + $0xb0] sm:$0xff] %v8812_v35  ;;  %8845 = vst [vmem:[%s12894_s24 + $0xb8] sm:$0xff] %v8813_v12  ;;  %v8773_v58 = vmul.f32 %v11772_v9, %v16415_v63  ;;  %v8774_v56 = vmul.f32 %v11772_v9, %v16418_v60 }
 0xc7e   : > { %v8810_v28 = vmul.f32 %v16511_v34, %v8767_v41  ;;  %v8811_v61 = vmul.f32 %v16514_v44, %v8768_v62 }
 0xc7f   : > { %v11774_v47 = vpop.eup %11773  ;;  %v8816_v8 = vmul.f32 %v16511_v34, %v8773_v58  ;;  %v8817_v18 = vmul.f32 %v16514_v44, %v8774_v56 }
 0xc80   : > { %8842 = vst [vmem:[%s12894_s24 + $0xa0] sm:$0xff] %v8810_v28  ;;  %8843 = vst [vmem:[%s12894_s24 + $0xa8] sm:$0xff] %v8811_v61  ;;  %v8771_v39 = vmul.f32 %v11774_v47, %v16406_v17  ;;  %v8772_v52 = vmul.f32 %v11774_v47, %v16410_v46  ;;  %v11776_v51 = vpop.eup %11775 }
 0xc81   : > { %8848 = vst [vmem:[%s12894_s24 + $0xd0] sm:$0xff] %v8816_v8  ;;  %8849 = vst [vmem:[%s12894_s24 + $0xd8] sm:$0xff] %v8817_v18  ;;  %v8777_v17 = vmul.f32 %v11776_v51, %v16435_v11  ;;  %v8778_v46 = vmul.f32 %v11776_v51, %v16438_v32 }
 0xc82   : > { %v8814_v7 = vmul.f32 %v16511_v34, %v8771_v39  ;;  %v8815_v63 = vmul.f32 %v16514_v44, %v8772_v52 }
 0xc83   : > { %v11778_v60 = vpop.eup %11777  ;;  %v8820_v20 = vmul.f32 %v16511_v34, %v8777_v17  ;;  %v8821_v25 = vmul.f32 %v16514_v44, %v8778_v46 }
 0xc84   : > { %8846 = vst [vmem:[%s12894_s24 + $0xc0] sm:$0xff] %v8814_v7  ;;  %8847 = vst [vmem:[%s12894_s24 + $0xc8] sm:$0xff] %v8815_v63  ;;  %v8775_v38 = vmul.f32 %v11778_v60, %v16426_v5  ;;  %v8776_v10 = vmul.f32 %v11778_v60, %v16430_v15 }
 0xc85   : > { %8852 = vst [vmem:[%s12894_s24 + $0xf0] sm:$0xff] %v8820_v20  ;;  %8853 = vst [vmem:[%s12894_s24 + $0xf8] sm:$0xff] %v8821_v25 }
 0xc86   : > { %v8818_v37 = vmul.f32 %v16511_v34, %v8775_v38  ;;  %v8819_v0 = vmul.f32 %v16514_v44, %v8776_v10 }
 0xc88   : > { %8850 = vst [vmem:[%s12894_s24 + $0xe0] sm:$0xff] %v8818_v37  ;;  %8851 = vst [vmem:[%s12894_s24 + $0xe8] sm:$0xff] %v8819_v0 }
 0xc89 PF: > { %s17248_s4 = sld [smem:[#allocation33_spill]]  ;;  %s17249_s18 = sld [smem:[#allocation137_spill]] }
 0xc8a   : > { %s8868_s20 = sshll.u32 %s12894_s24, 4  ;;  %s8855_s19 = scalar_lea.sflag [#allocation5], %s12816_s5  ;;  %s16619_s20 = int_to_ptr.vmem [resolvable:$true] %s8868_s20 }
 0xc8b   : > { %s12079_s25 = scalar_lea.vmem %s16619_s20, 4096  ;;  %p17251_p5 = scmp.ne.s32.totalorder %s16901_s8, 0 }
 0xc8c   : > { %p12080_p10 = scmp.ne.s32.totalorder %s16619_s20, %s12079_s25  ;;  %s12242_s28 = smov [#allocation20]  }
 0xc8d   : > { %s12083_s3 = sshll.u32 %s12242_s28, 4  ;;  %s12084_s3 = int_to_ptr.vmem [resolvable:$false] %s12083_s3 }
 0xc8e   : > { %p12081_p4 = pnand %p12080_p10, %p17251_p5  ;;  %s12085_s16 = scalar_lea.vmem %s12084_s3, 8192 }
 0xc8f   : > { %s10076_s30 = sshll.u32 %s17248_s4, 12  ;;  %s17250_s14 = smov %s17249_s18 }
 0xc90   : > { %s16616_s12 = scalar_lea.hbm %s17249_s18, %s10076_s30  ;;  %p12082_p6 = pneg %p12081_p4 }
 0xc91   : > { %p12086_p8 = scmp.lt.s32.totalorder %s16619_s20, %s12084_s3  ;;  %p12087_p1 = scmp.lt.s32.totalorder %s12085_s16, %s12079_s25 }
 0xc93   : > { %p12088_p11 = por %p12087_p1, %p12086_p8 }
 0xc95   : > { %p12089_p2 = pnand %p12088_p11, %p12082_p6 }
 0xc97   : > { %12092 = shalt.err (!%p12089_p2)
}
 0xc98   : > { %s12093_s24 = scalar_lea.hbm %s16616_s12, 4096  ;;  %s12097_s11 = scalar_lea.hbm %s17250_s14, 8192 }
 0xc99   : > { %p12094_p7 = scmp.ne.s32.totalorder %s16616_s12, %s12093_s24  ;;  %p12098_p12 = scmp.lt.u32.totalorder %s16616_s12, %s17250_s14 }
 0xc9a   : > { %p12099_p3 = scmp.lt.u32.totalorder %s12097_s11, %s12093_s24  ;;  %p12101_p10 = scmp.lt.u32.totalorder %s12093_s24, %s16616_s12 }
 0xc9b   : > { %p12095_p0 = pnand %p12094_p7, %p17251_p5 }
 0xc9c   : > { %p12100_p9 = por %p12099_p3, %p12098_p12 }
 0xc9d   : > { %p12096_p13 = pneg %p12095_p0 }
 0xc9e   : > { %p12102_p4 = por %p12101_p10, %p12100_p9 }
 0xca0   : > { %p12103_p6 = pnand %p12102_p4, %p12096_p13 }
 0xca2   : > { %12106 = shalt.err (!%p12103_p6)
}
 0xca3   : > { %s12243_s2 = smov 256   ;;  %s12244_s9 = smov 16  }
 0xca4   : > { %10455 = dma.vmem_to_hbm [thread:$0]  (%p17251_p5), %s16619_s20, 4096, %s16616_s12, %s8855_s19, %s12243_s2, %s12243_s2, %s12244_s9  }
 0xca5 PF: > { %s17252_s27 = sld [smem:[#allocation30_spill]]  ;;  %s17253_s6 = sld [smem:[#allocation42_spill]] }
 0xca6   : > { %p10493_p8 = scmp.ge.s32.totalorder %s12221_s23, 2 }
 0xcab   : > { %s8883_s1 = sand.u32 1, %s17252_s27   ;;  %p17254_p1 = scmp.ne.s32.totalorder %s17253_s6, 0 }
 0xcac   : > { %s8884_s22 = scalar_lea.sflag [#allocation5], %s8883_s1 }
 0xcad   : > { %p10489_p11 = pnand %p10493_p8, %p17254_p1 }
 0xcaf   : > { %12176 = dma.done.wait (!%p10489_p11), %s8884_s22, 4096  }
 0xcb0   : > { %12178 = vsyncadd (!%p10489_p11), %s8884_s22, 4294963200  ;;  %s45_s23 = sadd.s32 1, %s12221_s23   ;;  %s17255_s29 = sld [smem:[#allocation28_spill]] }
 0xcb1   : > { %p42_p2 = scmp.ge.s32.totalorder %s45_s23, 6   ;;  %s17256_s30 = sld [smem:[#allocation29_spill]] }
 0xcb2   : > { %s17257_s15 = sld [smem:[#allocation40_spill]]  ;;  %s17258_s8 = sld [smem:[#allocation31_spill]] }
 0xcb3   : > { %s17259_s18 = sld [smem:[#allocation41_spill]]  ;;  %s17260_s20 = sld [smem:[#allocation34_spill]] }
 0xcb4   : > { %s17261_s5 = sld [smem:[#allocation37_spill]]  ;;  %s17262_s22 = sld [smem:[#allocation38_spill]] }
 0xcb5   : > { %s17263_s16 = smov %s12197_s17  ;;  %s17265_s19 = smov %s12213_s21 }
 0xcb6   :  { %44 = sbr.rel (!%p42_p2) target bundleno = 35 (0x23), region = 253 }
 0xcb8   : > { %s17264_s17 = smov %s17258_s8 }
 0xcba   : > { %s17266_s21 = smov %s17261_s5 }
 0xcbd   :  { %8889 = vsyncpa [#allocation4], 1 }
 0xcbe   :  { %8891 = vsyncpa [#allocation4 + $0x1], 1 }
 0xcbf   :  { %8892 = vsyncpa [#allocation7], 1 }
 0xcc0   :  { %8894 = vsyncpa [#allocation7 + $0x1], 1 }
 0xcc1   :  { %8895 = vsyncpa [#allocation10], 1 }
 0xcc2   :  { %8897 = vsyncpa [#allocation10 + $0x1], 1 }
 0xcc3   :  { %8898 = vsyncpa [#allocation13], 1 }
 0xcc4   :  { %8900 = vsyncpa [#allocation13 + $0x1], 1 }
 0xcc5   :  { %8901 = vsyncpa [#allocation16], 1 }
 0xcc6   :  { %8903 = vsyncpa [#allocation16 + $0x1], 1 }
 0xcc7   :  { %8904 = vsyncpa [#allocation19], 1 }
 0xcc8   :  { %8906 = vsyncpa [#allocation19 + $0x1], 1 }
 0xcc9   :  { %8907 = vsyncpa [#allocation5], 1 }
 0xcca   :  { %8909 = vsyncpa [#allocation5 + $0x1], 1 }

</bundles_post_ra>
